<compile_context>
chip_gen: v7x
topology: tpu7x:2x2x1
jax: 0.10.0
libtpu: 0.0.40
codegen_flags: <defaults>
</compile_context>

<pallas_src>
import jax
import jax.numpy as jnp
from jax import lax
from jax.experimental import pallas as pl
from jax.experimental.pallas import tpu as pltpu

LRELU_SLOPE = 0.2
IN_EPS = 1e-5
COUT_TILE = 128  # lane-dense output tile (all Cout are 64/128/256/512)


# --------------------------------------------------------------------------
# Fused conv (+bias) (+InstanceNorm) (+LeakyReLU) kernel
# --------------------------------------------------------------------------
def _make_conv_kernel(KH, KW, OH, OW, has_bias, apply_in, apply_lrelu):
    """Kernel for one (batch b, Cout-tile) grid cell.

    refs: x   (1, Hp, Wp, Cin)    bf16  -- full padded image for batch b
          w   (KH*KW, Cin, Ct)    bf16  -- weights for this Cout tile
          [bias (1, Ct) f32]
          o   (1, OH, OW, Ct)     bf16
          acc (OH, OW, Ct)        f32 VMEM scratch (full spatial extent, so
                                       InstanceNorm can be fused in-place)
    """

    def kernel(*refs):
        if has_bias:
            x_ref, w_ref, b_ref, o_ref, acc_ref = refs
        else:
            x_ref, w_ref, o_ref, acc_ref = refs
            b_ref = None
        ct = o_ref.shape[3]

        def compute_row(oh, carry):
            acc = jnp.zeros((OW, ct), jnp.float32)
            for kh in range(KH):                       # taps unrolled (4 or 16)
                row = x_ref[0, oh + kh, :, :]          # (Wp, Cin) bf16
                for kw in range(KW):
                    seg = row[kw:kw + OW, :]           # (OW, Cin) static slice
                    acc = acc + jnp.dot(seg, w_ref[kh * KW + kw],
                                        preferred_element_type=jnp.float32)
            if has_bias:
                acc = acc + b_ref[...]                 # (1, Ct) broadcast
            acc_ref[oh] = acc
            return carry

        lax.fori_loop(0, OH, compute_row, 0)

        y = acc_ref[...]                               # (OH, OW, Ct) f32
        if apply_in:
            # InstanceNorm2d(affine=False, eps=1e-5): biased variance over the
            # spatial extent, per (batch, channel) — exact per-channel-tile.
            mean = jnp.mean(y, axis=(0, 1), keepdims=True)
            ctr = y - mean
            var = jnp.mean(ctr * ctr, axis=(0, 1), keepdims=True)
            y = ctr * lax.rsqrt(var + IN_EPS)
        if apply_lrelu:
            y = jnp.where(y >= 0.0, y, LRELU_SLOPE * y)
        o_ref[...] = y[None].astype(o_ref.dtype)

    return kernel


def conv_block(xp, w_taps, bias, *, KH, KW, apply_in, apply_lrelu):
    """Direct convolution over an already padded NHWC bf16 input.

    xp:     (B, Hp, Wp, Cin)   bf16
    w_taps: (KH*KW, Cin, Cout) bf16
    bias:   (1, Cout) f32 or None
    -> (B, OH, OW, Cout) bf16, OH = Hp-KH+1, OW = Wp-KW+1  (stride 1)
    """
    B, Hp, Wp, Cin = xp.shape
    taps, wcin, Cout = w_taps.shape
    assert taps == KH * KW and wcin == Cin
    OH, OW = Hp - KH + 1, Wp - KW + 1
    Ct = min(COUT_TILE, Cout)
    assert Cout % Ct == 0
    has_bias = bias is not None

    kernel = _make_conv_kernel(KH, KW, OH, OW, has_bias, apply_in, apply_lrelu)

    in_specs = [
        # Full padded image per batch element; the block index is constant
        # across the inner Cout axis, so Pallas does not re-DMA it per tile.
        pl.BlockSpec((1, Hp, Wp, Cin), lambda b, c: (b, 0, 0, 0)),
        pl.BlockSpec((KH * KW, Cin, Ct), lambda b, c: (0, 0, c)),
    ]
    args = [xp, w_taps]
    if has_bias:
        in_specs.append(pl.BlockSpec((1, Ct), lambda b, c: (0, c)))
        args.append(bias)

    return pl.pallas_call(
        kernel,
        out_shape=jax.ShapeDtypeStruct((B, OH, OW, Cout), jnp.bfloat16),
        grid=(B, Cout // Ct),
        in_specs=in_specs,
        out_specs=pl.BlockSpec((1, OH, OW, Ct), lambda b, c: (b, 0, 0, c)),
        scratch_shapes=[pltpu.VMEM((OH, OW, Ct), jnp.float32)],
        compiler_params=pltpu.CompilerParams(
            dimension_semantics=("parallel", "parallel")),
    )(*args)


# --------------------------------------------------------------------------
# Final 512->1 conv fused with the global average pool
# --------------------------------------------------------------------------
def _make_final_kernel(KH, KW, OH, OW):
    # mean_{oh,ow}(conv(x)) = sum_taps w_t . mean_{oh,ow}(x shifted by t) + bias
    # => only per-tap channel means are needed; the (B,OH,OW,1) conv output
    # (a lane-sparse N=1 GEMM) is never materialized.
    def kernel(x_ref, w_ref, b_ref, o_ref):
        # x (1, Hp, Wp, Cin) bf16, w (KH*KW, 1, Cin) bf16, b (1,1) f32,
        # o (B, 1) f32 — a single resident block; step b fills row b.
        b = pl.program_id(0)
        cin = x_ref.shape[3]
        s = jnp.zeros((1, cin), jnp.float32)
        for kh in range(KH):
            for kw in range(KW):
                slab = x_ref[0, kh:kh + OH, kw:kw + OW, :].astype(jnp.float32)
                m = jnp.mean(jnp.mean(slab, axis=0), axis=0, keepdims=True)
                s = s + m * w_ref[kh * KW + kw].astype(jnp.float32)
        val = jnp.sum(s, axis=1, keepdims=True) + b_ref[...]
        o_ref[pl.ds(b, 1), :] = val

    return kernel


def final_conv_avgpool(xp, w_taps, bias):
    B, Hp, Wp, Cin = xp.shape
    KH = KW = 4
    OH, OW = Hp - KH + 1, Wp - KW + 1
    return pl.pallas_call(
        _make_final_kernel(KH, KW, OH, OW),
        out_shape=jax.ShapeDtypeStruct((B, 1), jnp.float32),
        grid=(B,),
        in_specs=[
            pl.BlockSpec((1, Hp, Wp, Cin), lambda b: (b, 0, 0, 0)),
            pl.BlockSpec((KH * KW, 1, Cin), lambda b: (0, 0, 0)),
            pl.BlockSpec((1, 1), lambda b: (0, 0)),
        ],
        out_specs=pl.BlockSpec((B, 1), lambda b: (0, 0)),
        compiler_params=pltpu.CompilerParams(
            dimension_semantics=("arbitrary",)),
    )(xp, w_taps, bias)


# --------------------------------------------------------------------------
# Plain-JAX layout glue (no data duplication, only pad + permutation)
# --------------------------------------------------------------------------
def _pad_hw1(x):
    return jnp.pad(x, ((0, 0), (1, 1), (1, 1), (0, 0)))


def _space_to_depth2(xp):
    """(B, Hp, Wp, C) -> (B, Hp/2, Wp/2, 4C), channels ordered (rp, cp, c)."""
    B, Hp, Wp, C = xp.shape
    assert Hp % 2 == 0 and Wp % 2 == 0, "input spatial dims must be even"
    x = xp.reshape(B, Hp // 2, 2, Wp // 2, 2, C)
    x = jnp.transpose(x, (0, 1, 3, 2, 4, 5))
    return x.reshape(B, Hp // 2, Wp // 2, 4 * C)


# --------------------------------------------------------------------------
# Parameters (PyTorch-Conv2d-style init) + one-time kernel re-layout
# --------------------------------------------------------------------------
def init_params(key, input_nc):
    specs = [(input_nc, 64), (64, 128), (128, 256), (256, 512), (512, 1)]
    params = []
    for cin, cout in specs:
        key, kw_, kb_ = jax.random.split(key, 3)
        bound = 1.0 / jnp.sqrt(float(cin * 4 * 4))
        w = jax.random.uniform(kw_, (cout, cin, 4, 4), jnp.float32, -bound, bound)
        b = jax.random.uniform(kb_, (cout,), jnp.float32, -bound, bound)
        params.append((w, b))
    return params


def _prep_w_stride2(w_oihw):
    """4x4/stride-2 weights -> 2x2/stride-1 weights over the space-to-depth
    input: (Cout, Cin, 4, 4) -> (4 taps, 4*Cin, Cout) bf16."""
    cout, cin, _, _ = w_oihw.shape
    w = jnp.transpose(w_oihw, (2, 3, 1, 0))        # (kh, kw, ci, co)
    w = w.reshape(2, 2, 2, 2, cin, cout)           # (ph, rp, pw, cp, ci, co)
    w = jnp.transpose(w, (0, 2, 1, 3, 4, 5))       # (ph, pw, rp, cp, ci, co)
    return w.reshape(4, 4 * cin, cout).astype(jnp.bfloat16)


def _prep_w_stride1(w_oihw):
    """(Cout, Cin, KH, KW) -> (KH*KW taps, Cin, Cout) bf16."""
    cout, cin, kh, kw = w_oihw.shape
    w = jnp.transpose(w_oihw, (2, 3, 1, 0)).reshape(kh * kw, cin, cout)
    return w.astype(jnp.bfloat16)


def prepare_params(params):
    """One-time re-layout. Biases of the convs feeding InstanceNorm(affine=False)
    are dropped — IN's mean subtraction cancels a per-channel bias exactly."""
    (w0, b0), (w1, _), (w2, _), (w3, _), (w4, b4) = params
    return (
        (_prep_w_stride2(w0), b0.reshape(1, -1).astype(jnp.float32)),
        _prep_w_stride2(w1),
        _prep_w_stride2(w2),
        _prep_w_stride1(w3),
        (jnp.transpose(_prep_w_stride1(w4), (0, 2, 1)),    # (16, 1, 512)
         b4.reshape(1, 1).astype(jnp.float32)),
    )


# --------------------------------------------------------------------------
# Forward pass (mirrors Discriminator.forward)
# --------------------------------------------------------------------------
def discriminator_forward(x_nchw, prepared):
    (w0, b0), w1, w2, w3, (w4, b4) = prepared
    x = jnp.transpose(x_nchw, (0, 2, 3, 1)).astype(jnp.bfloat16)   # NHWC bf16

    # conv(input_nc->64, 4x4, s2, p1) + LeakyReLU(0.2)   (bias kept, no IN)
    x = conv_block(_space_to_depth2(_pad_hw1(x)), w0, b0,
                   KH=2, KW=2, apply_in=False, apply_lrelu=True)

    # conv(64->128, s2) + IN + LReLU ; conv(128->256, s2) + IN + LReLU
    for w in (w1, w2):
        x = conv_block(_space_to_depth2(_pad_hw1(x)), w, None,
                       KH=2, KW=2, apply_in=True, apply_lrelu=True)

    # conv(256->512, 4x4, s1, p1) + IN + LReLU
    x = conv_block(_pad_hw1(x), w3, None,
                   KH=4, KW=4, apply_in=True, apply_lrelu=True)

    # conv(512->1, 4x4, s1, p1) fused with F.avg_pool2d over the full extent
    return final_conv_avgpool(_pad_hw1(x), w4, b4)            # (B, 1) f32


if __name__ == "__main__":
    key = jax.random.PRNGKey(0)
    kx, kp = jax.random.split(key)
    input_nc = 3
    # 32x32 is the smallest "nice" spatial size keeping every conv output
    # non-empty (a 16x16 input would make the 5th 4x4 conv output 0-sized).
    x = jax.random.normal(kx, (2, input_nc, 32, 32), jnp.float32)
    params = init_params(kp, input_nc)
    prepared = prepare_params(params)

    out = jax.jit(discriminator_forward)(x, prepared)
    out = jax.block_until_ready(out)
    assert out.shape == (2, 1) and out.dtype == jnp.float32
    print("KERNEL_OK")
</pallas_src>

<mosaic_0001>
module attributes {stable_mosaic.version = 11 : i64} {
  func.func @kernel(%arg0: i32, %arg1: i32, %arg2: memref<1x17x17x12xbf16, #tpu.memory_space<vmem>>, %arg3: memref<4x12x64xbf16, #tpu.memory_space<vmem>>, %arg4: memref<1x64xf32, #tpu.memory_space<vmem>>, %arg5: memref<1x16x16x64xbf16, #tpu.memory_space<vmem>>, %arg6: memref<16x16x64xf32, #tpu.memory_space<vmem>>) attributes {dimension_semantics = [#tpu.dimension_semantics<parallel>, #tpu.dimension_semantics<parallel>], iteration_bounds = array<i64: 2, 1>, scalar_prefetch = 0 : i64, scratch_operands = 1 : i64, tpu.core_type = #tpu.core_type<tc>, window_params = [{transform_indices = @transform_0, window_bounds = array<i64: 1, 17, 17, 12>}, {transform_indices = @transform_1, window_bounds = array<i64: 4, 12, 64>}, {transform_indices = @transform_2, window_bounds = array<i64: 1, 64>}, {transform_indices = @transform_3, window_bounds = array<i64: 1, 16, 16, 64>}]} {
    %c0_i32 = arith.constant 0 : i32
    %c16_i32 = arith.constant 16 : i32
    %0 = arith.addi %c0_i32, %c16_i32 : i32
    %c1_i32 = arith.constant 1 : i32
    scf.for %arg7 = %c0_i32 to %0 step %c1_i32  : i32 {
      %cst_8 = arith.constant 0.000000e+00 : f32
      %10 = vector.broadcast %cst_8 : f32 to vector<16x64xf32>
      %c0_i32_9 = arith.constant 0 : i32
      %11 = arith.addi %arg7, %c0_i32_9 : i32
      %c0_10 = arith.constant 0 : index
      %12 = arith.index_cast %11 : i32 to index
      %c0_11 = arith.constant 0 : index
      %c0_12 = arith.constant 0 : index
      %13 = vector.load %arg2[%c0_10, %12, %c0_11, %c0_12] : memref<1x17x17x12xbf16, #tpu.memory_space<vmem>>, vector<1x1x17x12xbf16>
      %14 = vector.shape_cast %13 : vector<1x1x17x12xbf16> to vector<17x12xbf16>
      %15 = vector.extract_strided_slice %14 {offsets = [0, 0], sizes = [16, 12], strides = [1, 1]} : vector<17x12xbf16> to vector<16x12xbf16>
      %c0_13 = arith.constant 0 : index
      %c0_14 = arith.constant 0 : index
      %c0_15 = arith.constant 0 : index
      %16 = vector.load %arg3[%c0_13, %c0_14, %c0_15] : memref<4x12x64xbf16, #tpu.memory_space<vmem>>, vector<1x12x64xbf16>
      %17 = vector.shape_cast %16 : vector<1x12x64xbf16> to vector<12x64xbf16>
      %cst_16 = arith.constant dense<0.000000e+00> : vector<16x64xf32>
      %18 = tpu.matmul %15, %17, %cst_16 {dimension_numbers = #tpu.dot_dimension_numbers<[1], [0], [0], [1], [0, 0, 1, 1], [], []>} : vector<16x12xbf16>, vector<12x64xbf16>, vector<16x64xf32> -> vector<16x64xf32>
      %19 = arith.addf %10, %18 : vector<16x64xf32>
      %20 = vector.extract_strided_slice %14 {offsets = [1, 0], sizes = [16, 12], strides = [1, 1]} : vector<17x12xbf16> to vector<16x12xbf16>
      %c1 = arith.constant 1 : index
      %c0_17 = arith.constant 0 : index
      %c0_18 = arith.constant 0 : index
      %21 = vector.load %arg3[%c1, %c0_17, %c0_18] : memref<4x12x64xbf16, #tpu.memory_space<vmem>>, vector<1x12x64xbf16>
      %22 = vector.shape_cast %21 : vector<1x12x64xbf16> to vector<12x64xbf16>
      %cst_19 = arith.constant dense<0.000000e+00> : vector<16x64xf32>
      %23 = tpu.matmul %20, %22, %cst_19 {dimension_numbers = #tpu.dot_dimension_numbers<[1], [0], [0], [1], [0, 0, 1, 1], [], []>} : vector<16x12xbf16>, vector<12x64xbf16>, vector<16x64xf32> -> vector<16x64xf32>
      %24 = arith.addf %19, %23 : vector<16x64xf32>
      %c1_i32_20 = arith.constant 1 : i32
      %25 = arith.addi %arg7, %c1_i32_20 : i32
      %c0_21 = arith.constant 0 : index
      %26 = arith.index_cast %25 : i32 to index
      %c0_22 = arith.constant 0 : index
      %c0_23 = arith.constant 0 : index
      %27 = vector.load %arg2[%c0_21, %26, %c0_22, %c0_23] : memref<1x17x17x12xbf16, #tpu.memory_space<vmem>>, vector<1x1x17x12xbf16>
      %28 = vector.shape_cast %27 : vector<1x1x17x12xbf16> to vector<17x12xbf16>
      %29 = vector.extract_strided_slice %28 {offsets = [0, 0], sizes = [16, 12], strides = [1, 1]} : vector<17x12xbf16> to vector<16x12xbf16>
      %c2 = arith.constant 2 : index
      %c0_24 = arith.constant 0 : index
      %c0_25 = arith.constant 0 : index
      %30 = vector.load %arg3[%c2, %c0_24, %c0_25] : memref<4x12x64xbf16, #tpu.memory_space<vmem>>, vector<1x12x64xbf16>
      %31 = vector.shape_cast %30 : vector<1x12x64xbf16> to vector<12x64xbf16>
      %cst_26 = arith.constant dense<0.000000e+00> : vector<16x64xf32>
      %32 = tpu.matmul %29, %31, %cst_26 {dimension_numbers = #tpu.dot_dimension_numbers<[1], [0], [0], [1], [0, 0, 1, 1], [], []>} : vector<16x12xbf16>, vector<12x64xbf16>, vector<16x64xf32> -> vector<16x64xf32>
      %33 = arith.addf %24, %32 : vector<16x64xf32>
      %34 = vector.extract_strided_slice %28 {offsets = [1, 0], sizes = [16, 12], strides = [1, 1]} : vector<17x12xbf16> to vector<16x12xbf16>
      %c3 = arith.constant 3 : index
      %c0_27 = arith.constant 0 : index
      %c0_28 = arith.constant 0 : index
      %35 = vector.load %arg3[%c3, %c0_27, %c0_28] : memref<4x12x64xbf16, #tpu.memory_space<vmem>>, vector<1x12x64xbf16>
      %36 = vector.shape_cast %35 : vector<1x12x64xbf16> to vector<12x64xbf16>
      %cst_29 = arith.constant dense<0.000000e+00> : vector<16x64xf32>
      %37 = tpu.matmul %34, %36, %cst_29 {dimension_numbers = #tpu.dot_dimension_numbers<[1], [0], [0], [1], [0, 0, 1, 1], [], []>} : vector<16x12xbf16>, vector<12x64xbf16>, vector<16x64xf32> -> vector<16x64xf32>
      %38 = arith.addf %33, %37 : vector<16x64xf32>
      %c0_30 = arith.constant 0 : index
      %c0_31 = arith.constant 0 : index
      %39 = vector.load %arg4[%c0_30, %c0_31] : memref<1x64xf32, #tpu.memory_space<vmem>>, vector<1x64xf32>
      %40 = vector.broadcast %39 : vector<1x64xf32> to vector<16x64xf32>
      %41 = arith.addf %38, %40 : vector<16x64xf32>
      %42 = arith.index_cast %arg7 : i32 to index
      %c0_32 = arith.constant 0 : index
      %c0_33 = arith.constant 0 : index
      %43 = vector.load %arg6[%42, %c0_32, %c0_33] : memref<16x16x64xf32, #tpu.memory_space<vmem>>, vector<1x16x64xf32>
      %44 = vector.shape_cast %43 : vector<1x16x64xf32> to vector<16x64xf32>
      %45 = vector.shape_cast %41 : vector<16x64xf32> to vector<1x16x64xf32>
      tpu.vector_store %arg6[%42, %c0_32, %c0_33], %45 {strides = array<i32>} : memref<16x16x64xf32, #tpu.memory_space<vmem>>, vector<1x16x64xf32>,
    }
    %c16_i32_0 = arith.constant 16 : i32
    %c0 = arith.constant 0 : index
    %c0_1 = arith.constant 0 : index
    %c0_2 = arith.constant 0 : index
    %1 = vector.load %arg6[%c0, %c0_1, %c0_2] : memref<16x16x64xf32, #tpu.memory_space<vmem>>, vector<16x16x64xf32>
    %cst = arith.constant 0.000000e+00 : f32
    %2 = vector.broadcast %cst : f32 to vector<16x16x64xf32>
    %3 = arith.cmpf oge, %1, %2 : vector<16x16x64xf32>
    %cst_3 = arith.constant 2.000000e-01 : f32
    %4 = vector.broadcast %cst_3 : f32 to vector<16x16x64xf32>
    %5 = arith.mulf %4, %1 : vector<16x16x64xf32>
    %6 = arith.select %3, %1, %5 : vector<16x16x64xi1>, vector<16x16x64xf32>
    %7 = vector.shape_cast %6 : vector<16x16x64xf32> to vector<1x16x16x64xf32>
    %8 = arith.truncf %7 : vector<1x16x16x64xf32> to vector<1x16x16x64xbf16>
    %c0_4 = arith.constant 0 : index
    %c0_5 = arith.constant 0 : index
    %c0_6 = arith.constant 0 : index
    %c0_7 = arith.constant 0 : index
    %9 = vector.load %arg5[%c0_4, %c0_5, %c0_6, %c0_7] : memref<1x16x16x64xbf16, #tpu.memory_space<vmem>>, vector<1x16x16x64xbf16>
    tpu.vector_store %arg5[%c0_4, %c0_5, %c0_6, %c0_7], %8 {strides = array<i32>} : memref<1x16x16x64xbf16, #tpu.memory_space<vmem>>, vector<1x16x16x64xbf16>,
    return
  }
  func.func @transform_0(%arg0: i32, %arg1: i32) -> (i32, i32, i32, i32) {
    %c0_i32 = arith.constant 0 : i32
    %c0_i32_0 = arith.constant 0 : i32
    %c0_i32_1 = arith.constant 0 : i32
    %c0_i32_2 = arith.constant 0 : i32
    return %arg0, %c0_i32, %c0_i32_0, %c0_i32_1 : i32, i32, i32, i32
  }
  func.func @transform_1(%arg0: i32, %arg1: i32) -> (i32, i32, i32) {
    %c0_i32 = arith.constant 0 : i32
    %c0_i32_0 = arith.constant 0 : i32
    %c0_i32_1 = arith.constant 0 : i32
    return %c0_i32, %c0_i32_0, %arg1 : i32, i32, i32
  }
  func.func @transform_2(%arg0: i32, %arg1: i32) -> (i32, i32) {
    %c0_i32 = arith.constant 0 : i32
    %c0_i32_0 = arith.constant 0 : i32
    return %c0_i32, %arg1 : i32, i32
  }
  func.func @transform_3(%arg0: i32, %arg1: i32) -> (i32, i32, i32, i32) {
    %c0_i32 = arith.constant 0 : i32
    %c0_i32_0 = arith.constant 0 : i32
    %c0_i32_1 = arith.constant 0 : i32
    return %arg0, %c0_i32, %c0_i32_0, %arg1 : i32, i32, i32, i32
  }
}

module attributes {stable_mosaic.version = 11 : i64} {
  func.func @kernel(%arg0: i32, %arg1: i32, %arg2: memref<1x9x9x256xbf16, #tpu.memory_space<vmem>>, %arg3: memref<4x256x128xbf16, #tpu.memory_space<vmem>>, %arg4: memref<1x8x8x128xbf16, #tpu.memory_space<vmem>>, %arg5: memref<8x8x128xf32, #tpu.memory_space<vmem>>) attributes {dimension_semantics = [#tpu.dimension_semantics<parallel>, #tpu.dimension_semantics<parallel>], iteration_bounds = array<i64: 2, 1>, scalar_prefetch = 0 : i64, scratch_operands = 1 : i64, tpu.core_type = #tpu.core_type<tc>, window_params = [{transform_indices = @transform_0, window_bounds = array<i64: 1, 9, 9, 256>}, {transform_indices = @transform_1, window_bounds = array<i64: 4, 256, 128>}, {transform_indices = @transform_2, window_bounds = array<i64: 1, 8, 8, 128>}]} {
    %c0_i32 = arith.constant 0 : i32
    %c8_i32 = arith.constant 8 : i32
    %0 = arith.addi %c0_i32, %c8_i32 : i32
    %c1_i32 = arith.constant 1 : i32
    scf.for %arg6 = %c0_i32 to %0 step %c1_i32  : i32 {
      %cst_13 = arith.constant 0.000000e+00 : f32
      %26 = vector.broadcast %cst_13 : f32 to vector<8x128xf32>
      %c0_i32_14 = arith.constant 0 : i32
      %27 = arith.addi %arg6, %c0_i32_14 : i32
      %c0_15 = arith.constant 0 : index
      %28 = arith.index_cast %27 : i32 to index
      %c0_16 = arith.constant 0 : index
      %c0_17 = arith.constant 0 : index
      %29 = vector.load %arg2[%c0_15, %28, %c0_16, %c0_17] : memref<1x9x9x256xbf16, #tpu.memory_space<vmem>>, vector<1x1x9x256xbf16>
      %30 = vector.shape_cast %29 : vector<1x1x9x256xbf16> to vector<9x256xbf16>
      %31 = vector.extract_strided_slice %30 {offsets = [0, 0], sizes = [8, 256], strides = [1, 1]} : vector<9x256xbf16> to vector<8x256xbf16>
      %c0_18 = arith.constant 0 : index
      %c0_19 = arith.constant 0 : index
      %c0_20 = arith.constant 0 : index
      %32 = vector.load %arg3[%c0_18, %c0_19, %c0_20] : memref<4x256x128xbf16, #tpu.memory_space<vmem>>, vector<1x256x128xbf16>
      %33 = vector.shape_cast %32 : vector<1x256x128xbf16> to vector<256x128xbf16>
      %cst_21 = arith.constant dense<0.000000e+00> : vector<8x128xf32>
      %34 = tpu.matmul %31, %33, %cst_21 {dimension_numbers = #tpu.dot_dimension_numbers<[1], [0], [0], [1], [0, 0, 1, 1], [], []>} : vector<8x256xbf16>, vector<256x128xbf16>, vector<8x128xf32> -> vector<8x128xf32>
      %35 = arith.addf %26, %34 : vector<8x128xf32>
      %36 = vector.extract_strided_slice %30 {offsets = [1, 0], sizes = [8, 256], strides = [1, 1]} : vector<9x256xbf16> to vector<8x256xbf16>
      %c1 = arith.constant 1 : index
      %c0_22 = arith.constant 0 : index
      %c0_23 = arith.constant 0 : index
      %37 = vector.load %arg3[%c1, %c0_22, %c0_23] : memref<4x256x128xbf16, #tpu.memory_space<vmem>>, vector<1x256x128xbf16>
      %38 = vector.shape_cast %37 : vector<1x256x128xbf16> to vector<256x128xbf16>
      %cst_24 = arith.constant dense<0.000000e+00> : vector<8x128xf32>
      %39 = tpu.matmul %36, %38, %cst_24 {dimension_numbers = #tpu.dot_dimension_numbers<[1], [0], [0], [1], [0, 0, 1, 1], [], []>} : vector<8x256xbf16>, vector<256x128xbf16>, vector<8x128xf32> -> vector<8x128xf32>
      %40 = arith.addf %35, %39 : vector<8x128xf32>
      %c1_i32_25 = arith.constant 1 : i32
      %41 = arith.addi %arg6, %c1_i32_25 : i32
      %c0_26 = arith.constant 0 : index
      %42 = arith.index_cast %41 : i32 to index
      %c0_27 = arith.constant 0 : index
      %c0_28 = arith.constant 0 : index
      %43 = vector.load %arg2[%c0_26, %42, %c0_27, %c0_28] : memref<1x9x9x256xbf16, #tpu.memory_space<vmem>>, vector<1x1x9x256xbf16>
      %44 = vector.shape_cast %43 : vector<1x1x9x256xbf16> to vector<9x256xbf16>
      %45 = vector.extract_strided_slice %44 {offsets = [0, 0], sizes = [8, 256], strides = [1, 1]} : vector<9x256xbf16> to vector<8x256xbf16>
      %c2 = arith.constant 2 : index
      %c0_29 = arith.constant 0 : index
      %c0_30 = arith.constant 0 : index
      %46 = vector.load %arg3[%c2, %c0_29, %c0_30] : memref<4x256x128xbf16, #tpu.memory_space<vmem>>, vector<1x256x128xbf16>
      %47 = vector.shape_cast %46 : vector<1x256x128xbf16> to vector<256x128xbf16>
      %cst_31 = arith.constant dense<0.000000e+00> : vector<8x128xf32>
      %48 = tpu.matmul %45, %47, %cst_31 {dimension_numbers = #tpu.dot_dimension_numbers<[1], [0], [0], [1], [0, 0, 1, 1], [], []>} : vector<8x256xbf16>, vector<256x128xbf16>, vector<8x128xf32> -> vector<8x128xf32>
      %49 = arith.addf %40, %48 : vector<8x128xf32>
      %50 = vector.extract_strided_slice %44 {offsets = [1, 0], sizes = [8, 256], strides = [1, 1]} : vector<9x256xbf16> to vector<8x256xbf16>
      %c3 = arith.constant 3 : index
      %c0_32 = arith.constant 0 : index
      %c0_33 = arith.constant 0 : index
      %51 = vector.load %arg3[%c3, %c0_32, %c0_33] : memref<4x256x128xbf16, #tpu.memory_space<vmem>>, vector<1x256x128xbf16>
      %52 = vector.shape_cast %51 : vector<1x256x128xbf16> to vector<256x128xbf16>
      %cst_34 = arith.constant dense<0.000000e+00> : vector<8x128xf32>
      %53 = tpu.matmul %50, %52, %cst_34 {dimension_numbers = #tpu.dot_dimension_numbers<[1], [0], [0], [1], [0, 0, 1, 1], [], []>} : vector<8x256xbf16>, vector<256x128xbf16>, vector<8x128xf32> -> vector<8x128xf32>
      %54 = arith.addf %49, %53 : vector<8x128xf32>
      %55 = arith.index_cast %arg6 : i32 to index
      %c0_35 = arith.constant 0 : index
      %c0_36 = arith.constant 0 : index
      %56 = vector.load %arg5[%55, %c0_35, %c0_36] : memref<8x8x128xf32, #tpu.memory_space<vmem>>, vector<1x8x128xf32>
      %57 = vector.shape_cast %56 : vector<1x8x128xf32> to vector<8x128xf32>
      %58 = vector.shape_cast %54 : vector<8x128xf32> to vector<1x8x128xf32>
      tpu.vector_store %arg5[%55, %c0_35, %c0_36], %58 {strides = array<i32>} : memref<8x8x128xf32, #tpu.memory_space<vmem>>, vector<1x8x128xf32>,
    }
    %c8_i32_0 = arith.constant 8 : i32
    %c0 = arith.constant 0 : index
    %c0_1 = arith.constant 0 : index
    %c0_2 = arith.constant 0 : index
    %1 = vector.load %arg5[%c0, %c0_1, %c0_2] : memref<8x8x128xf32, #tpu.memory_space<vmem>>, vector<8x8x128xf32>
    %cst = arith.constant dense<0.000000e+00> : vector<128xf32>
    %2 = vector.multi_reduction <add>, %1, %cst [0, 1] : vector<8x8x128xf32> to vector<128xf32>
    %3 = vector.shape_cast %2 : vector<128xf32> to vector<1x1x128xf32>
    %cst_3 = arith.constant 6.400000e+01 : f32
    %4 = vector.broadcast %cst_3 : f32 to vector<1x1x128xf32>
    %5 = arith.divf %3, %4 : vector<1x1x128xf32>
    %6 = vector.broadcast %5 : vector<1x1x128xf32> to vector<8x8x128xf32>
    %7 = arith.subf %1, %6 : vector<8x8x128xf32>
    %8 = arith.mulf %7, %7 : vector<8x8x128xf32>
    %cst_4 = arith.constant dense<0.000000e+00> : vector<128xf32>
    %9 = vector.multi_reduction <add>, %8, %cst_4 [0, 1] : vector<8x8x128xf32> to vector<128xf32>
    %10 = vector.shape_cast %9 : vector<128xf32> to vector<1x1x128xf32>
    %cst_5 = arith.constant 6.400000e+01 : f32
    %11 = vector.broadcast %cst_5 : f32 to vector<1x1x128xf32>
    %12 = arith.divf %10, %11 : vector<1x1x128xf32>
    %cst_6 = arith.constant 9.99999974E-6 : f32
    %13 = vector.broadcast %cst_6 : f32 to vector<1x1x128xf32>
    %14 = arith.addf %12, %13 : vector<1x1x128xf32>
    %15 = math.rsqrt %14 : vector<1x1x128xf32>
    %16 = vector.broadcast %15 : vector<1x1x128xf32> to vector<8x8x128xf32>
    %17 = arith.mulf %7, %16 : vector<8x8x128xf32>
    %cst_7 = arith.constant 0.000000e+00 : f32
    %18 = vector.broadcast %cst_7 : f32 to vector<8x8x128xf32>
    %19 = arith.cmpf oge, %17, %18 : vector<8x8x128xf32>
    %cst_8 = arith.constant 2.000000e-01 : f32
    %20 = vector.broadcast %cst_8 : f32 to vector<8x8x128xf32>
    %21 = arith.mulf %20, %17 : vector<8x8x128xf32>
    %22 = arith.select %19, %17, %21 : vector<8x8x128xi1>, vector<8x8x128xf32>
    %23 = vector.shape_cast %22 : vector<8x8x128xf32> to vector<1x8x8x128xf32>
    %24 = arith.truncf %23 : vector<1x8x8x128xf32> to vector<1x8x8x128xbf16>
    %c0_9 = arith.constant 0 : index
    %c0_10 = arith.constant 0 : index
    %c0_11 = arith.constant 0 : index
    %c0_12 = arith.constant 0 : index
    %25 = vector.load %arg4[%c0_9, %c0_10, %c0_11, %c0_12] : memref<1x8x8x128xbf16, #tpu.memory_space<vmem>>, vector<1x8x8x128xbf16>
    tpu.vector_store %arg4[%c0_9, %c0_10, %c0_11, %c0_12], %24 {strides = array<i32>} : memref<1x8x8x128xbf16, #tpu.memory_space<vmem>>, vector<1x8x8x128xbf16>,
    return
  }
  func.func @transform_0(%arg0: i32, %arg1: i32) -> (i32, i32, i32, i32) {
    %c0_i32 = arith.constant 0 : i32
    %c0_i32_0 = arith.constant 0 : i32
    %c0_i32_1 = arith.constant 0 : i32
    %c0_i32_2 = arith.constant 0 : i32
    return %arg0, %c0_i32, %c0_i32_0, %c0_i32_1 : i32, i32, i32, i32
  }
  func.func @transform_1(%arg0: i32, %arg1: i32) -> (i32, i32, i32) {
    %c0_i32 = arith.constant 0 : i32
    %c0_i32_0 = arith.constant 0 : i32
    %c0_i32_1 = arith.constant 0 : i32
    return %c0_i32, %c0_i32_0, %arg1 : i32, i32, i32
  }
  func.func @transform_2(%arg0: i32, %arg1: i32) -> (i32, i32, i32, i32) {
    %c0_i32 = arith.constant 0 : i32
    %c0_i32_0 = arith.constant 0 : i32
    %c0_i32_1 = arith.constant 0 : i32
    return %arg0, %c0_i32, %c0_i32_0, %arg1 : i32, i32, i32, i32
  }
}

module attributes {stable_mosaic.version = 11 : i64} {
  func.func @kernel(%arg0: i32, %arg1: i32, %arg2: memref<1x5x5x512xbf16, #tpu.memory_space<vmem>>, %arg3: memref<4x512x128xbf16, #tpu.memory_space<vmem>>, %arg4: memref<1x4x4x128xbf16, #tpu.memory_space<vmem>>, %arg5: memref<4x4x128xf32, #tpu.memory_space<vmem>>) attributes {dimension_semantics = [#tpu.dimension_semantics<parallel>, #tpu.dimension_semantics<parallel>], iteration_bounds = array<i64: 2, 2>, scalar_prefetch = 0 : i64, scratch_operands = 1 : i64, tpu.core_type = #tpu.core_type<tc>, window_params = [{transform_indices = @transform_0, window_bounds = array<i64: 1, 5, 5, 512>}, {transform_indices = @transform_1, window_bounds = array<i64: 4, 512, 128>}, {transform_indices = @transform_2, window_bounds = array<i64: 1, 4, 4, 128>}]} {
    %c0_i32 = arith.constant 0 : i32
    %c4_i32 = arith.constant 4 : i32
    %0 = arith.addi %c0_i32, %c4_i32 : i32
    %c1_i32 = arith.constant 1 : i32
    scf.for %arg6 = %c0_i32 to %0 step %c1_i32  : i32 {
      %cst_13 = arith.constant 0.000000e+00 : f32
      %26 = vector.broadcast %cst_13 : f32 to vector<4x128xf32>
      %c0_i32_14 = arith.constant 0 : i32
      %27 = arith.addi %arg6, %c0_i32_14 : i32
      %c0_15 = arith.constant 0 : index
      %28 = arith.index_cast %27 : i32 to index
      %c0_16 = arith.constant 0 : index
      %c0_17 = arith.constant 0 : index
      %29 = vector.load %arg2[%c0_15, %28, %c0_16, %c0_17] : memref<1x5x5x512xbf16, #tpu.memory_space<vmem>>, vector<1x1x5x512xbf16>
      %30 = vector.shape_cast %29 : vector<1x1x5x512xbf16> to vector<5x512xbf16>
      %31 = vector.extract_strided_slice %30 {offsets = [0, 0], sizes = [4, 512], strides = [1, 1]} : vector<5x512xbf16> to vector<4x512xbf16>
      %c0_18 = arith.constant 0 : index
      %c0_19 = arith.constant 0 : index
      %c0_20 = arith.constant 0 : index
      %32 = vector.load %arg3[%c0_18, %c0_19, %c0_20] : memref<4x512x128xbf16, #tpu.memory_space<vmem>>, vector<1x512x128xbf16>
      %33 = vector.shape_cast %32 : vector<1x512x128xbf16> to vector<512x128xbf16>
      %cst_21 = arith.constant dense<0.000000e+00> : vector<4x128xf32>
      %34 = tpu.matmul %31, %33, %cst_21 {dimension_numbers = #tpu.dot_dimension_numbers<[1], [0], [0], [1], [0, 0, 1, 1], [], []>} : vector<4x512xbf16>, vector<512x128xbf16>, vector<4x128xf32> -> vector<4x128xf32>
      %35 = arith.addf %26, %34 : vector<4x128xf32>
      %36 = vector.extract_strided_slice %30 {offsets = [1, 0], sizes = [4, 512], strides = [1, 1]} : vector<5x512xbf16> to vector<4x512xbf16>
      %c1 = arith.constant 1 : index
      %c0_22 = arith.constant 0 : index
      %c0_23 = arith.constant 0 : index
      %37 = vector.load %arg3[%c1, %c0_22, %c0_23] : memref<4x512x128xbf16, #tpu.memory_space<vmem>>, vector<1x512x128xbf16>
      %38 = vector.shape_cast %37 : vector<1x512x128xbf16> to vector<512x128xbf16>
      %cst_24 = arith.constant dense<0.000000e+00> : vector<4x128xf32>
      %39 = tpu.matmul %36, %38, %cst_24 {dimension_numbers = #tpu.dot_dimension_numbers<[1], [0], [0], [1], [0, 0, 1, 1], [], []>} : vector<4x512xbf16>, vector<512x128xbf16>, vector<4x128xf32> -> vector<4x128xf32>
      %40 = arith.addf %35, %39 : vector<4x128xf32>
      %c1_i32_25 = arith.constant 1 : i32
      %41 = arith.addi %arg6, %c1_i32_25 : i32
      %c0_26 = arith.constant 0 : index
      %42 = arith.index_cast %41 : i32 to index
      %c0_27 = arith.constant 0 : index
      %c0_28 = arith.constant 0 : index
      %43 = vector.load %arg2[%c0_26, %42, %c0_27, %c0_28] : memref<1x5x5x512xbf16, #tpu.memory_space<vmem>>, vector<1x1x5x512xbf16>
      %44 = vector.shape_cast %43 : vector<1x1x5x512xbf16> to vector<5x512xbf16>
      %45 = vector.extract_strided_slice %44 {offsets = [0, 0], sizes = [4, 512], strides = [1, 1]} : vector<5x512xbf16> to vector<4x512xbf16>
      %c2 = arith.constant 2 : index
      %c0_29 = arith.constant 0 : index
      %c0_30 = arith.constant 0 : index
      %46 = vector.load %arg3[%c2, %c0_29, %c0_30] : memref<4x512x128xbf16, #tpu.memory_space<vmem>>, vector<1x512x128xbf16>
      %47 = vector.shape_cast %46 : vector<1x512x128xbf16> to vector<512x128xbf16>
      %cst_31 = arith.constant dense<0.000000e+00> : vector<4x128xf32>
      %48 = tpu.matmul %45, %47, %cst_31 {dimension_numbers = #tpu.dot_dimension_numbers<[1], [0], [0], [1], [0, 0, 1, 1], [], []>} : vector<4x512xbf16>, vector<512x128xbf16>, vector<4x128xf32> -> vector<4x128xf32>
      %49 = arith.addf %40, %48 : vector<4x128xf32>
      %50 = vector.extract_strided_slice %44 {offsets = [1, 0], sizes = [4, 512], strides = [1, 1]} : vector<5x512xbf16> to vector<4x512xbf16>
      %c3 = arith.constant 3 : index
      %c0_32 = arith.constant 0 : index
      %c0_33 = arith.constant 0 : index
      %51 = vector.load %arg3[%c3, %c0_32, %c0_33] : memref<4x512x128xbf16, #tpu.memory_space<vmem>>, vector<1x512x128xbf16>
      %52 = vector.shape_cast %51 : vector<1x512x128xbf16> to vector<512x128xbf16>
      %cst_34 = arith.constant dense<0.000000e+00> : vector<4x128xf32>
      %53 = tpu.matmul %50, %52, %cst_34 {dimension_numbers = #tpu.dot_dimension_numbers<[1], [0], [0], [1], [0, 0, 1, 1], [], []>} : vector<4x512xbf16>, vector<512x128xbf16>, vector<4x128xf32> -> vector<4x128xf32>
      %54 = arith.addf %49, %53 : vector<4x128xf32>
      %55 = arith.index_cast %arg6 : i32 to index
      %c0_35 = arith.constant 0 : index
      %c0_36 = arith.constant 0 : index
      %56 = vector.load %arg5[%55, %c0_35, %c0_36] : memref<4x4x128xf32, #tpu.memory_space<vmem>>, vector<1x4x128xf32>
      %57 = vector.shape_cast %56 : vector<1x4x128xf32> to vector<4x128xf32>
      %58 = vector.shape_cast %54 : vector<4x128xf32> to vector<1x4x128xf32>
      tpu.vector_store %arg5[%55, %c0_35, %c0_36], %58 {strides = array<i32>} : memref<4x4x128xf32, #tpu.memory_space<vmem>>, vector<1x4x128xf32>,
    }
    %c4_i32_0 = arith.constant 4 : i32
    %c0 = arith.constant 0 : index
    %c0_1 = arith.constant 0 : index
    %c0_2 = arith.constant 0 : index
    %1 = vector.load %arg5[%c0, %c0_1, %c0_2] : memref<4x4x128xf32, #tpu.memory_space<vmem>>, vector<4x4x128xf32>
    %cst = arith.constant dense<0.000000e+00> : vector<128xf32>
    %2 = vector.multi_reduction <add>, %1, %cst [0, 1] : vector<4x4x128xf32> to vector<128xf32>
    %3 = vector.shape_cast %2 : vector<128xf32> to vector<1x1x128xf32>
    %cst_3 = arith.constant 1.600000e+01 : f32
    %4 = vector.broadcast %cst_3 : f32 to vector<1x1x128xf32>
    %5 = arith.divf %3, %4 : vector<1x1x128xf32>
    %6 = vector.broadcast %5 : vector<1x1x128xf32> to vector<4x4x128xf32>
    %7 = arith.subf %1, %6 : vector<4x4x128xf32>
    %8 = arith.mulf %7, %7 : vector<4x4x128xf32>
    %cst_4 = arith.constant dense<0.000000e+00> : vector<128xf32>
    %9 = vector.multi_reduction <add>, %8, %cst_4 [0, 1] : vector<4x4x128xf32> to vector<128xf32>
    %10 = vector.shape_cast %9 : vector<128xf32> to vector<1x1x128xf32>
    %cst_5 = arith.constant 1.600000e+01 : f32
    %11 = vector.broadcast %cst_5 : f32 to vector<1x1x128xf32>
    %12 = arith.divf %10, %11 : vector<1x1x128xf32>
    %cst_6 = arith.constant 9.99999974E-6 : f32
    %13 = vector.broadcast %cst_6 : f32 to vector<1x1x128xf32>
    %14 = arith.addf %12, %13 : vector<1x1x128xf32>
    %15 = math.rsqrt %14 : vector<1x1x128xf32>
    %16 = vector.broadcast %15 : vector<1x1x128xf32> to vector<4x4x128xf32>
    %17 = arith.mulf %7, %16 : vector<4x4x128xf32>
    %cst_7 = arith.constant 0.000000e+00 : f32
    %18 = vector.broadcast %cst_7 : f32 to vector<4x4x128xf32>
    %19 = arith.cmpf oge, %17, %18 : vector<4x4x128xf32>
    %cst_8 = arith.constant 2.000000e-01 : f32
    %20 = vector.broadcast %cst_8 : f32 to vector<4x4x128xf32>
    %21 = arith.mulf %20, %17 : vector<4x4x128xf32>
    %22 = arith.select %19, %17, %21 : vector<4x4x128xi1>, vector<4x4x128xf32>
    %23 = vector.shape_cast %22 : vector<4x4x128xf32> to vector<1x4x4x128xf32>
    %24 = arith.truncf %23 : vector<1x4x4x128xf32> to vector<1x4x4x128xbf16>
    %c0_9 = arith.constant 0 : index
    %c0_10 = arith.constant 0 : index
    %c0_11 = arith.constant 0 : index
    %c0_12 = arith.constant 0 : index
    %25 = vector.load %arg4[%c0_9, %c0_10, %c0_11, %c0_12] : memref<1x4x4x128xbf16, #tpu.memory_space<vmem>>, vector<1x4x4x128xbf16>
    tpu.vector_store %arg4[%c0_9, %c0_10, %c0_11, %c0_12], %24 {strides = array<i32>} : memref<1x4x4x128xbf16, #tpu.memory_space<vmem>>, vector<1x4x4x128xbf16>,
    return
  }
  func.func @transform_0(%arg0: i32, %arg1: i32) -> (i32, i32, i32, i32) {
    %c0_i32 = arith.constant 0 : i32
    %c0_i32_0 = arith.constant 0 : i32
    %c0_i32_1 = arith.constant 0 : i32
    %c0_i32_2 = arith.constant 0 : i32
    return %arg0, %c0_i32, %c0_i32_0, %c0_i32_1 : i32, i32, i32, i32
  }
  func.func @transform_1(%arg0: i32, %arg1: i32) -> (i32, i32, i32) {
    %c0_i32 = arith.constant 0 : i32
    %c0_i32_0 = arith.constant 0 : i32
    %c0_i32_1 = arith.constant 0 : i32
    return %c0_i32, %c0_i32_0, %arg1 : i32, i32, i32
  }
  func.func @transform_2(%arg0: i32, %arg1: i32) -> (i32, i32, i32, i32) {
    %c0_i32 = arith.constant 0 : i32
    %c0_i32_0 = arith.constant 0 : i32
    %c0_i32_1 = arith.constant 0 : i32
    return %arg0, %c0_i32, %c0_i32_0, %arg1 : i32, i32, i32, i32
  }
}

module attributes {stable_mosaic.version = 11 : i64} {
  func.func @kernel(%arg0: i32, %arg1: i32, %arg2: memref<1x6x6x256xbf16, #tpu.memory_space<vmem>>, %arg3: memref<16x256x128xbf16, #tpu.memory_space<vmem>>, %arg4: memref<1x3x3x128xbf16, #tpu.memory_space<vmem>>, %arg5: memref<3x3x128xf32, #tpu.memory_space<vmem>>) attributes {dimension_semantics = [#tpu.dimension_semantics<parallel>, #tpu.dimension_semantics<parallel>], iteration_bounds = array<i64: 2, 4>, scalar_prefetch = 0 : i64, scratch_operands = 1 : i64, tpu.core_type = #tpu.core_type<tc>, window_params = [{transform_indices = @transform_0, window_bounds = array<i64: 1, 6, 6, 256>}, {transform_indices = @transform_1, window_bounds = array<i64: 16, 256, 128>}, {transform_indices = @transform_2, window_bounds = array<i64: 1, 3, 3, 128>}]} {
    %c0_i32 = arith.constant 0 : i32
    %c3_i32 = arith.constant 3 : i32
    %0 = arith.addi %c0_i32, %c3_i32 : i32
    %c1_i32 = arith.constant 1 : i32
    scf.for %arg6 = %c0_i32 to %0 step %c1_i32  : i32 {
      %cst_13 = arith.constant 0.000000e+00 : f32
      %26 = vector.broadcast %cst_13 : f32 to vector<3x128xf32>
      %c0_i32_14 = arith.constant 0 : i32
      %27 = arith.addi %arg6, %c0_i32_14 : i32
      %c0_15 = arith.constant 0 : index
      %28 = arith.index_cast %27 : i32 to index
      %c0_16 = arith.constant 0 : index
      %c0_17 = arith.constant 0 : index
      %29 = vector.load %arg2[%c0_15, %28, %c0_16, %c0_17] : memref<1x6x6x256xbf16, #tpu.memory_space<vmem>>, vector<1x1x6x256xbf16>
      %30 = vector.shape_cast %29 : vector<1x1x6x256xbf16> to vector<6x256xbf16>
      %31 = vector.extract_strided_slice %30 {offsets = [0, 0], sizes = [3, 256], strides = [1, 1]} : vector<6x256xbf16> to vector<3x256xbf16>
      %c0_18 = arith.constant 0 : index
      %c0_19 = arith.constant 0 : index
      %c0_20 = arith.constant 0 : index
      %32 = vector.load %arg3[%c0_18, %c0_19, %c0_20] : memref<16x256x128xbf16, #tpu.memory_space<vmem>>, vector<1x256x128xbf16>
      %33 = vector.shape_cast %32 : vector<1x256x128xbf16> to vector<256x128xbf16>
      %cst_21 = arith.constant dense<0.000000e+00> : vector<3x128xf32>
      %34 = tpu.matmul %31, %33, %cst_21 {dimension_numbers = #tpu.dot_dimension_numbers<[1], [0], [0], [1], [0, 0, 1, 1], [], []>} : vector<3x256xbf16>, vector<256x128xbf16>, vector<3x128xf32> -> vector<3x128xf32>
      %35 = arith.addf %26, %34 : vector<3x128xf32>
      %36 = vector.extract_strided_slice %30 {offsets = [1, 0], sizes = [3, 256], strides = [1, 1]} : vector<6x256xbf16> to vector<3x256xbf16>
      %c1 = arith.constant 1 : index
      %c0_22 = arith.constant 0 : index
      %c0_23 = arith.constant 0 : index
      %37 = vector.load %arg3[%c1, %c0_22, %c0_23] : memref<16x256x128xbf16, #tpu.memory_space<vmem>>, vector<1x256x128xbf16>
      %38 = vector.shape_cast %37 : vector<1x256x128xbf16> to vector<256x128xbf16>
      %cst_24 = arith.constant dense<0.000000e+00> : vector<3x128xf32>
      %39 = tpu.matmul %36, %38, %cst_24 {dimension_numbers = #tpu.dot_dimension_numbers<[1], [0], [0], [1], [0, 0, 1, 1], [], []>} : vector<3x256xbf16>, vector<256x128xbf16>, vector<3x128xf32> -> vector<3x128xf32>
      %40 = arith.addf %35, %39 : vector<3x128xf32>
      %41 = vector.extract_strided_slice %30 {offsets = [2, 0], sizes = [3, 256], strides = [1, 1]} : vector<6x256xbf16> to vector<3x256xbf16>
      %c2 = arith.constant 2 : index
      %c0_25 = arith.constant 0 : index
      %c0_26 = arith.constant 0 : index
      %42 = vector.load %arg3[%c2, %c0_25, %c0_26] : memref<16x256x128xbf16, #tpu.memory_space<vmem>>, vector<1x256x128xbf16>
      %43 = vector.shape_cast %42 : vector<1x256x128xbf16> to vector<256x128xbf16>
      %cst_27 = arith.constant dense<0.000000e+00> : vector<3x128xf32>
      %44 = tpu.matmul %41, %43, %cst_27 {dimension_numbers = #tpu.dot_dimension_numbers<[1], [0], [0], [1], [0, 0, 1, 1], [], []>} : vector<3x256xbf16>, vector<256x128xbf16>, vector<3x128xf32> -> vector<3x128xf32>
      %45 = arith.addf %40, %44 : vector<3x128xf32>
      %46 = vector.extract_strided_slice %30 {offsets = [3, 0], sizes = [3, 256], strides = [1, 1]} : vector<6x256xbf16> to vector<3x256xbf16>
      %c3 = arith.constant 3 : index
      %c0_28 = arith.constant 0 : index
      %c0_29 = arith.constant 0 : index
      %47 = vector.load %arg3[%c3, %c0_28, %c0_29] : memref<16x256x128xbf16, #tpu.memory_space<vmem>>, vector<1x256x128xbf16>
      %48 = vector.shape_cast %47 : vector<1x256x128xbf16> to vector<256x128xbf16>
      %cst_30 = arith.constant dense<0.000000e+00> : vector<3x128xf32>
      %49 = tpu.matmul %46, %48, %cst_30 {dimension_numbers = #tpu.dot_dimension_numbers<[1], [0], [0], [1], [0, 0, 1, 1], [], []>} : vector<3x256xbf16>, vector<256x128xbf16>, vector<3x128xf32> -> vector<3x128xf32>
      %50 = arith.addf %45, %49 : vector<3x128xf32>
      %c1_i32_31 = arith.constant 1 : i32
      %51 = arith.addi %arg6, %c1_i32_31 : i32
      %c0_32 = arith.constant 0 : index
      %52 = arith.index_cast %51 : i32 to index
      %c0_33 = arith.constant 0 : index
      %c0_34 = arith.constant 0 : index
      %53 = vector.load %arg2[%c0_32, %52, %c0_33, %c0_34] : memref<1x6x6x256xbf16, #tpu.memory_space<vmem>>, vector<1x1x6x256xbf16>
      %54 = vector.shape_cast %53 : vector<1x1x6x256xbf16> to vector<6x256xbf16>
      %55 = vector.extract_strided_slice %54 {offsets = [0, 0], sizes = [3, 256], strides = [1, 1]} : vector<6x256xbf16> to vector<3x256xbf16>
      %c4 = arith.constant 4 : index
      %c0_35 = arith.constant 0 : index
      %c0_36 = arith.constant 0 : index
      %56 = vector.load %arg3[%c4, %c0_35, %c0_36] : memref<16x256x128xbf16, #tpu.memory_space<vmem>>, vector<1x256x128xbf16>
      %57 = vector.shape_cast %56 : vector<1x256x128xbf16> to vector<256x128xbf16>
      %cst_37 = arith.constant dense<0.000000e+00> : vector<3x128xf32>
      %58 = tpu.matmul %55, %57, %cst_37 {dimension_numbers = #tpu.dot_dimension_numbers<[1], [0], [0], [1], [0, 0, 1, 1], [], []>} : vector<3x256xbf16>, vector<256x128xbf16>, vector<3x128xf32> -> vector<3x128xf32>
      %59 = arith.addf %50, %58 : vector<3x128xf32>
      %60 = vector.extract_strided_slice %54 {offsets = [1, 0], sizes = [3, 256], strides = [1, 1]} : vector<6x256xbf16> to vector<3x256xbf16>
      %c5 = arith.constant 5 : index
      %c0_38 = arith.constant 0 : index
      %c0_39 = arith.constant 0 : index
      %61 = vector.load %arg3[%c5, %c0_38, %c0_39] : memref<16x256x128xbf16, #tpu.memory_space<vmem>>, vector<1x256x128xbf16>
      %62 = vector.shape_cast %61 : vector<1x256x128xbf16> to vector<256x128xbf16>
      %cst_40 = arith.constant dense<0.000000e+00> : vector<3x128xf32>
      %63 = tpu.matmul %60, %62, %cst_40 {dimension_numbers = #tpu.dot_dimension_numbers<[1], [0], [0], [1], [0, 0, 1, 1], [], []>} : vector<3x256xbf16>, vector<256x128xbf16>, vector<3x128xf32> -> vector<3x128xf32>
      %64 = arith.addf %59, %63 : vector<3x128xf32>
      %65 = vector.extract_strided_slice %54 {offsets = [2, 0], sizes = [3, 256], strides = [1, 1]} : vector<6x256xbf16> to vector<3x256xbf16>
      %c6 = arith.constant 6 : index
      %c0_41 = arith.constant 0 : index
      %c0_42 = arith.constant 0 : index
      %66 = vector.load %arg3[%c6, %c0_41, %c0_42] : memref<16x256x128xbf16, #tpu.memory_space<vmem>>, vector<1x256x128xbf16>
      %67 = vector.shape_cast %66 : vector<1x256x128xbf16> to vector<256x128xbf16>
      %cst_43 = arith.constant dense<0.000000e+00> : vector<3x128xf32>
      %68 = tpu.matmul %65, %67, %cst_43 {dimension_numbers = #tpu.dot_dimension_numbers<[1], [0], [0], [1], [0, 0, 1, 1], [], []>} : vector<3x256xbf16>, vector<256x128xbf16>, vector<3x128xf32> -> vector<3x128xf32>
      %69 = arith.addf %64, %68 : vector<3x128xf32>
      %70 = vector.extract_strided_slice %54 {offsets = [3, 0], sizes = [3, 256], strides = [1, 1]} : vector<6x256xbf16> to vector<3x256xbf16>
      %c7 = arith.constant 7 : index
      %c0_44 = arith.constant 0 : index
      %c0_45 = arith.constant 0 : index
      %71 = vector.load %arg3[%c7, %c0_44, %c0_45] : memref<16x256x128xbf16, #tpu.memory_space<vmem>>, vector<1x256x128xbf16>
      %72 = vector.shape_cast %71 : vector<1x256x128xbf16> to vector<256x128xbf16>
      %cst_46 = arith.constant dense<0.000000e+00> : vector<3x128xf32>
      %73 = tpu.matmul %70, %72, %cst_46 {dimension_numbers = #tpu.dot_dimension_numbers<[1], [0], [0], [1], [0, 0, 1, 1], [], []>} : vector<3x256xbf16>, vector<256x128xbf16>, vector<3x128xf32> -> vector<3x128xf32>
      %74 = arith.addf %69, %73 : vector<3x128xf32>
      %c2_i32 = arith.constant 2 : i32
      %75 = arith.addi %arg6, %c2_i32 : i32
      %c0_47 = arith.constant 0 : index
      %76 = arith.index_cast %75 : i32 to index
      %c0_48 = arith.constant 0 : index
      %c0_49 = arith.constant 0 : index
      %77 = vector.load %arg2[%c0_47, %76, %c0_48, %c0_49] : memref<1x6x6x256xbf16, #tpu.memory_space<vmem>>, vector<1x1x6x256xbf16>
      %78 = vector.shape_cast %77 : vector<1x1x6x256xbf16> to vector<6x256xbf16>
      %79 = vector.extract_strided_slice %78 {offsets = [0, 0], sizes = [3, 256], strides = [1, 1]} : vector<6x256xbf16> to vector<3x256xbf16>
      %c8 = arith.constant 8 : index
      %c0_50 = arith.constant 0 : index
      %c0_51 = arith.constant 0 : index
      %80 = vector.load %arg3[%c8, %c0_50, %c0_51] : memref<16x256x128xbf16, #tpu.memory_space<vmem>>, vector<1x256x128xbf16>
      %81 = vector.shape_cast %80 : vector<1x256x128xbf16> to vector<256x128xbf16>
      %cst_52 = arith.constant dense<0.000000e+00> : vector<3x128xf32>
      %82 = tpu.matmul %79, %81, %cst_52 {dimension_numbers = #tpu.dot_dimension_numbers<[1], [0], [0], [1], [0, 0, 1, 1], [], []>} : vector<3x256xbf16>, vector<256x128xbf16>, vector<3x128xf32> -> vector<3x128xf32>
      %83 = arith.addf %74, %82 : vector<3x128xf32>
      %84 = vector.extract_strided_slice %78 {offsets = [1, 0], sizes = [3, 256], strides = [1, 1]} : vector<6x256xbf16> to vector<3x256xbf16>
      %c9 = arith.constant 9 : index
      %c0_53 = arith.constant 0 : index
      %c0_54 = arith.constant 0 : index
      %85 = vector.load %arg3[%c9, %c0_53, %c0_54] : memref<16x256x128xbf16, #tpu.memory_space<vmem>>, vector<1x256x128xbf16>
      %86 = vector.shape_cast %85 : vector<1x256x128xbf16> to vector<256x128xbf16>
      %cst_55 = arith.constant dense<0.000000e+00> : vector<3x128xf32>
      %87 = tpu.matmul %84, %86, %cst_55 {dimension_numbers = #tpu.dot_dimension_numbers<[1], [0], [0], [1], [0, 0, 1, 1], [], []>} : vector<3x256xbf16>, vector<256x128xbf16>, vector<3x128xf32> -> vector<3x128xf32>
      %88 = arith.addf %83, %87 : vector<3x128xf32>
      %89 = vector.extract_strided_slice %78 {offsets = [2, 0], sizes = [3, 256], strides = [1, 1]} : vector<6x256xbf16> to vector<3x256xbf16>
      %c10 = arith.constant 10 : index
      %c0_56 = arith.constant 0 : index
      %c0_57 = arith.constant 0 : index
      %90 = vector.load %arg3[%c10, %c0_56, %c0_57] : memref<16x256x128xbf16, #tpu.memory_space<vmem>>, vector<1x256x128xbf16>
      %91 = vector.shape_cast %90 : vector<1x256x128xbf16> to vector<256x128xbf16>
      %cst_58 = arith.constant dense<0.000000e+00> : vector<3x128xf32>
      %92 = tpu.matmul %89, %91, %cst_58 {dimension_numbers = #tpu.dot_dimension_numbers<[1], [0], [0], [1], [0, 0, 1, 1], [], []>} : vector<3x256xbf16>, vector<256x128xbf16>, vector<3x128xf32> -> vector<3x128xf32>
      %93 = arith.addf %88, %92 : vector<3x128xf32>
      %94 = vector.extract_strided_slice %78 {offsets = [3, 0], sizes = [3, 256], strides = [1, 1]} : vector<6x256xbf16> to vector<3x256xbf16>
      %c11 = arith.constant 11 : index
      %c0_59 = arith.constant 0 : index
      %c0_60 = arith.constant 0 : index
      %95 = vector.load %arg3[%c11, %c0_59, %c0_60] : memref<16x256x128xbf16, #tpu.memory_space<vmem>>, vector<1x256x128xbf16>
      %96 = vector.shape_cast %95 : vector<1x256x128xbf16> to vector<256x128xbf16>
      %cst_61 = arith.constant dense<0.000000e+00> : vector<3x128xf32>
      %97 = tpu.matmul %94, %96, %cst_61 {dimension_numbers = #tpu.dot_dimension_numbers<[1], [0], [0], [1], [0, 0, 1, 1], [], []>} : vector<3x256xbf16>, vector<256x128xbf16>, vector<3x128xf32> -> vector<3x128xf32>
      %98 = arith.addf %93, %97 : vector<3x128xf32>
      %c3_i32_62 = arith.constant 3 : i32
      %99 = arith.addi %arg6, %c3_i32_62 : i32
      %c0_63 = arith.constant 0 : index
      %100 = arith.index_cast %99 : i32 to index
      %c0_64 = arith.constant 0 : index
      %c0_65 = arith.constant 0 : index
      %101 = vector.load %arg2[%c0_63, %100, %c0_64, %c0_65] : memref<1x6x6x256xbf16, #tpu.memory_space<vmem>>, vector<1x1x6x256xbf16>
      %102 = vector.shape_cast %101 : vector<1x1x6x256xbf16> to vector<6x256xbf16>
      %103 = vector.extract_strided_slice %102 {offsets = [0, 0], sizes = [3, 256], strides = [1, 1]} : vector<6x256xbf16> to vector<3x256xbf16>
      %c12 = arith.constant 12 : index
      %c0_66 = arith.constant 0 : index
      %c0_67 = arith.constant 0 : index
      %104 = vector.load %arg3[%c12, %c0_66, %c0_67] : memref<16x256x128xbf16, #tpu.memory_space<vmem>>, vector<1x256x128xbf16>
      %105 = vector.shape_cast %104 : vector<1x256x128xbf16> to vector<256x128xbf16>
      %cst_68 = arith.constant dense<0.000000e+00> : vector<3x128xf32>
      %106 = tpu.matmul %103, %105, %cst_68 {dimension_numbers = #tpu.dot_dimension_numbers<[1], [0], [0], [1], [0, 0, 1, 1], [], []>} : vector<3x256xbf16>, vector<256x128xbf16>, vector<3x128xf32> -> vector<3x128xf32>
      %107 = arith.addf %98, %106 : vector<3x128xf32>
      %108 = vector.extract_strided_slice %102 {offsets = [1, 0], sizes = [3, 256], strides = [1, 1]} : vector<6x256xbf16> to vector<3x256xbf16>
      %c13 = arith.constant 13 : index
      %c0_69 = arith.constant 0 : index
      %c0_70 = arith.constant 0 : index
      %109 = vector.load %arg3[%c13, %c0_69, %c0_70] : memref<16x256x128xbf16, #tpu.memory_space<vmem>>, vector<1x256x128xbf16>
      %110 = vector.shape_cast %109 : vector<1x256x128xbf16> to vector<256x128xbf16>
      %cst_71 = arith.constant dense<0.000000e+00> : vector<3x128xf32>
      %111 = tpu.matmul %108, %110, %cst_71 {dimension_numbers = #tpu.dot_dimension_numbers<[1], [0], [0], [1], [0, 0, 1, 1], [], []>} : vector<3x256xbf16>, vector<256x128xbf16>, vector<3x128xf32> -> vector<3x128xf32>
      %112 = arith.addf %107, %111 : vector<3x128xf32>
      %113 = vector.extract_strided_slice %102 {offsets = [2, 0], sizes = [3, 256], strides = [1, 1]} : vector<6x256xbf16> to vector<3x256xbf16>
      %c14 = arith.constant 14 : index
      %c0_72 = arith.constant 0 : index
      %c0_73 = arith.constant 0 : index
      %114 = vector.load %arg3[%c14, %c0_72, %c0_73] : memref<16x256x128xbf16, #tpu.memory_space<vmem>>, vector<1x256x128xbf16>
      %115 = vector.shape_cast %114 : vector<1x256x128xbf16> to vector<256x128xbf16>
      %cst_74 = arith.constant dense<0.000000e+00> : vector<3x128xf32>
      %116 = tpu.matmul %113, %115, %cst_74 {dimension_numbers = #tpu.dot_dimension_numbers<[1], [0], [0], [1], [0, 0, 1, 1], [], []>} : vector<3x256xbf16>, vector<256x128xbf16>, vector<3x128xf32> -> vector<3x128xf32>
      %117 = arith.addf %112, %116 : vector<3x128xf32>
      %118 = vector.extract_strided_slice %102 {offsets = [3, 0], sizes = [3, 256], strides = [1, 1]} : vector<6x256xbf16> to vector<3x256xbf16>
      %c15 = arith.constant 15 : index
      %c0_75 = arith.constant 0 : index
      %c0_76 = arith.constant 0 : index
      %119 = vector.load %arg3[%c15, %c0_75, %c0_76] : memref<16x256x128xbf16, #tpu.memory_space<vmem>>, vector<1x256x128xbf16>
      %120 = vector.shape_cast %119 : vector<1x256x128xbf16> to vector<256x128xbf16>
      %cst_77 = arith.constant dense<0.000000e+00> : vector<3x128xf32>
      %121 = tpu.matmul %118, %120, %cst_77 {dimension_numbers = #tpu.dot_dimension_numbers<[1], [0], [0], [1], [0, 0, 1, 1], [], []>} : vector<3x256xbf16>, vector<256x128xbf16>, vector<3x128xf32> -> vector<3x128xf32>
      %122 = arith.addf %117, %121 : vector<3x128xf32>
      %123 = arith.index_cast %arg6 : i32 to index
      %c0_78 = arith.constant 0 : index
      %c0_79 = arith.constant 0 : index
      %124 = vector.load %arg5[%123, %c0_78, %c0_79] : memref<3x3x128xf32, #tpu.memory_space<vmem>>, vector<1x3x128xf32>
      %125 = vector.shape_cast %124 : vector<1x3x128xf32> to vector<3x128xf32>
      %126 = vector.shape_cast %122 : vector<3x128xf32> to vector<1x3x128xf32>
      tpu.vector_store %arg5[%123, %c0_78, %c0_79], %126 {strides = array<i32>} : memref<3x3x128xf32, #tpu.memory_space<vmem>>, vector<1x3x128xf32>,
    }
    %c3_i32_0 = arith.constant 3 : i32
    %c0 = arith.constant 0 : index
    %c0_1 = arith.constant 0 : index
    %c0_2 = arith.constant 0 : index
    %1 = vector.load %arg5[%c0, %c0_1, %c0_2] : memref<3x3x128xf32, #tpu.memory_space<vmem>>, vector<3x3x128xf32>
    %cst = arith.constant dense<0.000000e+00> : vector<128xf32>
    %2 = vector.multi_reduction <add>, %1, %cst [0, 1] : vector<3x3x128xf32> to vector<128xf32>
    %3 = vector.shape_cast %2 : vector<128xf32> to vector<1x1x128xf32>
    %cst_3 = arith.constant 9.000000e+00 : f32
    %4 = vector.broadcast %cst_3 : f32 to vector<1x1x128xf32>
    %5 = arith.divf %3, %4 : vector<1x1x128xf32>
    %6 = vector.broadcast %5 : vector<1x1x128xf32> to vector<3x3x128xf32>
    %7 = arith.subf %1, %6 : vector<3x3x128xf32>
    %8 = arith.mulf %7, %7 : vector<3x3x128xf32>
    %cst_4 = arith.constant dense<0.000000e+00> : vector<128xf32>
    %9 = vector.multi_reduction <add>, %8, %cst_4 [0, 1] : vector<3x3x128xf32> to vector<128xf32>
    %10 = vector.shape_cast %9 : vector<128xf32> to vector<1x1x128xf32>
    %cst_5 = arith.constant 9.000000e+00 : f32
    %11 = vector.broadcast %cst_5 : f32 to vector<1x1x128xf32>
    %12 = arith.divf %10, %11 : vector<1x1x128xf32>
    %cst_6 = arith.constant 9.99999974E-6 : f32
    %13 = vector.broadcast %cst_6 : f32 to vector<1x1x128xf32>
    %14 = arith.addf %12, %13 : vector<1x1x128xf32>
    %15 = math.rsqrt %14 : vector<1x1x128xf32>
    %16 = vector.broadcast %15 : vector<1x1x128xf32> to vector<3x3x128xf32>
    %17 = arith.mulf %7, %16 : vector<3x3x128xf32>
    %cst_7 = arith.constant 0.000000e+00 : f32
    %18 = vector.broadcast %cst_7 : f32 to vector<3x3x128xf32>
    %19 = arith.cmpf oge, %17, %18 : vector<3x3x128xf32>
    %cst_8 = arith.constant 2.000000e-01 : f32
    %20 = vector.broadcast %cst_8 : f32 to vector<3x3x128xf32>
    %21 = arith.mulf %20, %17 : vector<3x3x128xf32>
    %22 = arith.select %19, %17, %21 : vector<3x3x128xi1>, vector<3x3x128xf32>
    %23 = vector.shape_cast %22 : vector<3x3x128xf32> to vector<1x3x3x128xf32>
    %24 = arith.truncf %23 : vector<1x3x3x128xf32> to vector<1x3x3x128xbf16>
    %c0_9 = arith.constant 0 : index
    %c0_10 = arith.constant 0 : index
    %c0_11 = arith.constant 0 : index
    %c0_12 = arith.constant 0 : index
    %25 = vector.load %arg4[%c0_9, %c0_10, %c0_11, %c0_12] : memref<1x3x3x128xbf16, #tpu.memory_space<vmem>>, vector<1x3x3x128xbf16>
    tpu.vector_store %arg4[%c0_9, %c0_10, %c0_11, %c0_12], %24 {strides = array<i32>} : memref<1x3x3x128xbf16, #tpu.memory_space<vmem>>, vector<1x3x3x128xbf16>,
    return
  }
  func.func @transform_0(%arg0: i32, %arg1: i32) -> (i32, i32, i32, i32) {
    %c0_i32 = arith.constant 0 : i32
    %c0_i32_0 = arith.constant 0 : i32
    %c0_i32_1 = arith.constant 0 : i32
    %c0_i32_2 = arith.constant 0 : i32
    return %arg0, %c0_i32, %c0_i32_0, %c0_i32_1 : i32, i32, i32, i32
  }
  func.func @transform_1(%arg0: i32, %arg1: i32) -> (i32, i32, i32) {
    %c0_i32 = arith.constant 0 : i32
    %c0_i32_0 = arith.constant 0 : i32
    %c0_i32_1 = arith.constant 0 : i32
    return %c0_i32, %c0_i32_0, %arg1 : i32, i32, i32
  }
  func.func @transform_2(%arg0: i32, %arg1: i32) -> (i32, i32, i32, i32) {
    %c0_i32 = arith.constant 0 : i32
    %c0_i32_0 = arith.constant 0 : i32
    %c0_i32_1 = arith.constant 0 : i32
    return %arg0, %c0_i32, %c0_i32_0, %arg1 : i32, i32, i32, i32
  }
}

module attributes {stable_mosaic.version = 11 : i64} {
  func.func @kernel(%arg0: i32, %arg1: memref<1x5x5x512xbf16, #tpu.memory_space<vmem>>, %arg2: memref<16x1x512xbf16, #tpu.memory_space<vmem>>, %arg3: memref<1x1xf32, #tpu.memory_space<vmem>>, %arg4: memref<2x1xf32, #tpu.memory_space<vmem>>) attributes {dimension_semantics = [#tpu.dimension_semantics<arbitrary>], iteration_bounds = array<i64: 2>, scalar_prefetch = 0 : i64, scratch_operands = 0 : i64, tpu.core_type = #tpu.core_type<tc>, window_params = [{transform_indices = @transform_0, window_bounds = array<i64: 1, 5, 5, 512>}, {pipeline_mode = #tpu.pipeline_mode<synchronous>, transform_indices = @transform_1, window_bounds = array<i64: 16, 1, 512>}, {pipeline_mode = #tpu.pipeline_mode<synchronous>, transform_indices = @transform_2, window_bounds = array<i64: 1, 1>}, {pipeline_mode = #tpu.pipeline_mode<synchronous>, transform_indices = @transform_3, window_bounds = array<i64: 2, 1>}]} {
    %cst = arith.constant 0.000000e+00 : f32
    %0 = vector.broadcast %cst : f32 to vector<1x512xf32>
    %c0 = arith.constant 0 : index
    %c0_0 = arith.constant 0 : index
    %c0_1 = arith.constant 0 : index
    %c0_2 = arith.constant 0 : index
    %1 = vector.load %arg1[%c0, %c0_0, %c0_1, %c0_2] : memref<1x5x5x512xbf16, #tpu.memory_space<vmem>>, vector<1x2x2x512xbf16>
    %2 = vector.shape_cast %1 : vector<1x2x2x512xbf16> to vector<2x2x512xbf16>
    %3 = arith.extf %2 : vector<2x2x512xbf16> to vector<2x2x512xf32>
    %cst_3 = arith.constant dense<0.000000e+00> : vector<2x512xf32>
    %4 = vector.multi_reduction <add>, %3, %cst_3 [0] : vector<2x2x512xf32> to vector<2x512xf32>
    %cst_4 = arith.constant 2.000000e+00 : f32
    %5 = vector.broadcast %cst_4 : f32 to vector<2x512xf32>
    %6 = arith.divf %4, %5 : vector<2x512xf32>
    %cst_5 = arith.constant dense<0.000000e+00> : vector<512xf32>
    %7 = vector.multi_reduction <add>, %6, %cst_5 [0] : vector<2x512xf32> to vector<512xf32>
    %8 = vector.shape_cast %7 : vector<512xf32> to vector<1x512xf32>
    %cst_6 = arith.constant 2.000000e+00 : f32
    %9 = vector.broadcast %cst_6 : f32 to vector<1x512xf32>
    %10 = arith.divf %8, %9 : vector<1x512xf32>
    %c0_7 = arith.constant 0 : index
    %c0_8 = arith.constant 0 : index
    %c0_9 = arith.constant 0 : index
    %11 = vector.load %arg2[%c0_7, %c0_8, %c0_9] : memref<16x1x512xbf16, #tpu.memory_space<vmem>>, vector<1x1x512xbf16>
    %12 = vector.shape_cast %11 : vector<1x1x512xbf16> to vector<1x512xbf16>
    %13 = arith.extf %12 : vector<1x512xbf16> to vector<1x512xf32>
    %14 = arith.mulf %10, %13 : vector<1x512xf32>
    %15 = arith.addf %0, %14 : vector<1x512xf32>
    %c0_10 = arith.constant 0 : index
    %c0_11 = arith.constant 0 : index
    %c1 = arith.constant 1 : index
    %c0_12 = arith.constant 0 : index
    %16 = vector.load %arg1[%c0_10, %c0_11, %c1, %c0_12] : memref<1x5x5x512xbf16, #tpu.memory_space<vmem>>, vector<1x2x2x512xbf16>
    %17 = vector.shape_cast %16 : vector<1x2x2x512xbf16> to vector<2x2x512xbf16>
    %18 = arith.extf %17 : vector<2x2x512xbf16> to vector<2x2x512xf32>
    %cst_13 = arith.constant dense<0.000000e+00> : vector<2x512xf32>
    %19 = vector.multi_reduction <add>, %18, %cst_13 [0] : vector<2x2x512xf32> to vector<2x512xf32>
    %cst_14 = arith.constant 2.000000e+00 : f32
    %20 = vector.broadcast %cst_14 : f32 to vector<2x512xf32>
    %21 = arith.divf %19, %20 : vector<2x512xf32>
    %cst_15 = arith.constant dense<0.000000e+00> : vector<512xf32>
    %22 = vector.multi_reduction <add>, %21, %cst_15 [0] : vector<2x512xf32> to vector<512xf32>
    %23 = vector.shape_cast %22 : vector<512xf32> to vector<1x512xf32>
    %cst_16 = arith.constant 2.000000e+00 : f32
    %24 = vector.broadcast %cst_16 : f32 to vector<1x512xf32>
    %25 = arith.divf %23, %24 : vector<1x512xf32>
    %c1_17 = arith.constant 1 : index
    %c0_18 = arith.constant 0 : index
    %c0_19 = arith.constant 0 : index
    %26 = vector.load %arg2[%c1_17, %c0_18, %c0_19] : memref<16x1x512xbf16, #tpu.memory_space<vmem>>, vector<1x1x512xbf16>
    %27 = vector.shape_cast %26 : vector<1x1x512xbf16> to vector<1x512xbf16>
    %28 = arith.extf %27 : vector<1x512xbf16> to vector<1x512xf32>
    %29 = arith.mulf %25, %28 : vector<1x512xf32>
    %30 = arith.addf %15, %29 : vector<1x512xf32>
    %c0_20 = arith.constant 0 : index
    %c0_21 = arith.constant 0 : index
    %c2 = arith.constant 2 : index
    %c0_22 = arith.constant 0 : index
    %31 = vector.load %arg1[%c0_20, %c0_21, %c2, %c0_22] : memref<1x5x5x512xbf16, #tpu.memory_space<vmem>>, vector<1x2x2x512xbf16>
    %32 = vector.shape_cast %31 : vector<1x2x2x512xbf16> to vector<2x2x512xbf16>
    %33 = arith.extf %32 : vector<2x2x512xbf16> to vector<2x2x512xf32>
    %cst_23 = arith.constant dense<0.000000e+00> : vector<2x512xf32>
    %34 = vector.multi_reduction <add>, %33, %cst_23 [0] : vector<2x2x512xf32> to vector<2x512xf32>
    %cst_24 = arith.constant 2.000000e+00 : f32
    %35 = vector.broadcast %cst_24 : f32 to vector<2x512xf32>
    %36 = arith.divf %34, %35 : vector<2x512xf32>
    %cst_25 = arith.constant dense<0.000000e+00> : vector<512xf32>
    %37 = vector.multi_reduction <add>, %36, %cst_25 [0] : vector<2x512xf32> to vector<512xf32>
    %38 = vector.shape_cast %37 : vector<512xf32> to vector<1x512xf32>
    %cst_26 = arith.constant 2.000000e+00 : f32
    %39 = vector.broadcast %cst_26 : f32 to vector<1x512xf32>
    %40 = arith.divf %38, %39 : vector<1x512xf32>
    %c2_27 = arith.constant 2 : index
    %c0_28 = arith.constant 0 : index
    %c0_29 = arith.constant 0 : index
    %41 = vector.load %arg2[%c2_27, %c0_28, %c0_29] : memref<16x1x512xbf16, #tpu.memory_space<vmem>>, vector<1x1x512xbf16>
    %42 = vector.shape_cast %41 : vector<1x1x512xbf16> to vector<1x512xbf16>
    %43 = arith.extf %42 : vector<1x512xbf16> to vector<1x512xf32>
    %44 = arith.mulf %40, %43 : vector<1x512xf32>
    %45 = arith.addf %30, %44 : vector<1x512xf32>
    %c0_30 = arith.constant 0 : index
    %c0_31 = arith.constant 0 : index
    %c3 = arith.constant 3 : index
    %c0_32 = arith.constant 0 : index
    %46 = vector.load %arg1[%c0_30, %c0_31, %c3, %c0_32] : memref<1x5x5x512xbf16, #tpu.memory_space<vmem>>, vector<1x2x2x512xbf16>
    %47 = vector.shape_cast %46 : vector<1x2x2x512xbf16> to vector<2x2x512xbf16>
    %48 = arith.extf %47 : vector<2x2x512xbf16> to vector<2x2x512xf32>
    %cst_33 = arith.constant dense<0.000000e+00> : vector<2x512xf32>
    %49 = vector.multi_reduction <add>, %48, %cst_33 [0] : vector<2x2x512xf32> to vector<2x512xf32>
    %cst_34 = arith.constant 2.000000e+00 : f32
    %50 = vector.broadcast %cst_34 : f32 to vector<2x512xf32>
    %51 = arith.divf %49, %50 : vector<2x512xf32>
    %cst_35 = arith.constant dense<0.000000e+00> : vector<512xf32>
    %52 = vector.multi_reduction <add>, %51, %cst_35 [0] : vector<2x512xf32> to vector<512xf32>
    %53 = vector.shape_cast %52 : vector<512xf32> to vector<1x512xf32>
    %cst_36 = arith.constant 2.000000e+00 : f32
    %54 = vector.broadcast %cst_36 : f32 to vector<1x512xf32>
    %55 = arith.divf %53, %54 : vector<1x512xf32>
    %c3_37 = arith.constant 3 : index
    %c0_38 = arith.constant 0 : index
    %c0_39 = arith.constant 0 : index
    %56 = vector.load %arg2[%c3_37, %c0_38, %c0_39] : memref<16x1x512xbf16, #tpu.memory_space<vmem>>, vector<1x1x512xbf16>
    %57 = vector.shape_cast %56 : vector<1x1x512xbf16> to vector<1x512xbf16>
    %58 = arith.extf %57 : vector<1x512xbf16> to vector<1x512xf32>
    %59 = arith.mulf %55, %58 : vector<1x512xf32>
    %60 = arith.addf %45, %59 : vector<1x512xf32>
    %c0_40 = arith.constant 0 : index
    %c1_41 = arith.constant 1 : index
    %c0_42 = arith.constant 0 : index
    %c0_43 = arith.constant 0 : index
    %61 = vector.load %arg1[%c0_40, %c1_41, %c0_42, %c0_43] : memref<1x5x5x512xbf16, #tpu.memory_space<vmem>>, vector<1x2x2x512xbf16>
    %62 = vector.shape_cast %61 : vector<1x2x2x512xbf16> to vector<2x2x512xbf16>
    %63 = arith.extf %62 : vector<2x2x512xbf16> to vector<2x2x512xf32>
    %cst_44 = arith.constant dense<0.000000e+00> : vector<2x512xf32>
    %64 = vector.multi_reduction <add>, %63, %cst_44 [0] : vector<2x2x512xf32> to vector<2x512xf32>
    %cst_45 = arith.constant 2.000000e+00 : f32
    %65 = vector.broadcast %cst_45 : f32 to vector<2x512xf32>
    %66 = arith.divf %64, %65 : vector<2x512xf32>
    %cst_46 = arith.constant dense<0.000000e+00> : vector<512xf32>
    %67 = vector.multi_reduction <add>, %66, %cst_46 [0] : vector<2x512xf32> to vector<512xf32>
    %68 = vector.shape_cast %67 : vector<512xf32> to vector<1x512xf32>
    %cst_47 = arith.constant 2.000000e+00 : f32
    %69 = vector.broadcast %cst_47 : f32 to vector<1x512xf32>
    %70 = arith.divf %68, %69 : vector<1x512xf32>
    %c4 = arith.constant 4 : index
    %c0_48 = arith.constant 0 : index
    %c0_49 = arith.constant 0 : index
    %71 = vector.load %arg2[%c4, %c0_48, %c0_49] : memref<16x1x512xbf16, #tpu.memory_space<vmem>>, vector<1x1x512xbf16>
    %72 = vector.shape_cast %71 : vector<1x1x512xbf16> to vector<1x512xbf16>
    %73 = arith.extf %72 : vector<1x512xbf16> to vector<1x512xf32>
    %74 = arith.mulf %70, %73 : vector<1x512xf32>
    %75 = arith.addf %60, %74 : vector<1x512xf32>
    %c0_50 = arith.constant 0 : index
    %c1_51 = arith.constant 1 : index
    %c1_52 = arith.constant 1 : index
    %c0_53 = arith.constant 0 : index
    %76 = vector.load %arg1[%c0_50, %c1_51, %c1_52, %c0_53] : memref<1x5x5x512xbf16, #tpu.memory_space<vmem>>, vector<1x2x2x512xbf16>
    %77 = vector.shape_cast %76 : vector<1x2x2x512xbf16> to vector<2x2x512xbf16>
    %78 = arith.extf %77 : vector<2x2x512xbf16> to vector<2x2x512xf32>
    %cst_54 = arith.constant dense<0.000000e+00> : vector<2x512xf32>
    %79 = vector.multi_reduction <add>, %78, %cst_54 [0] : vector<2x2x512xf32> to vector<2x512xf32>
    %cst_55 = arith.constant 2.000000e+00 : f32
    %80 = vector.broadcast %cst_55 : f32 to vector<2x512xf32>
    %81 = arith.divf %79, %80 : vector<2x512xf32>
    %cst_56 = arith.constant dense<0.000000e+00> : vector<512xf32>
    %82 = vector.multi_reduction <add>, %81, %cst_56 [0] : vector<2x512xf32> to vector<512xf32>
    %83 = vector.shape_cast %82 : vector<512xf32> to vector<1x512xf32>
    %cst_57 = arith.constant 2.000000e+00 : f32
    %84 = vector.broadcast %cst_57 : f32 to vector<1x512xf32>
    %85 = arith.divf %83, %84 : vector<1x512xf32>
    %c5 = arith.constant 5 : index
    %c0_58 = arith.constant 0 : index
    %c0_59 = arith.constant 0 : index
    %86 = vector.load %arg2[%c5, %c0_58, %c0_59] : memref<16x1x512xbf16, #tpu.memory_space<vmem>>, vector<1x1x512xbf16>
    %87 = vector.shape_cast %86 : vector<1x1x512xbf16> to vector<1x512xbf16>
    %88 = arith.extf %87 : vector<1x512xbf16> to vector<1x512xf32>
    %89 = arith.mulf %85, %88 : vector<1x512xf32>
    %90 = arith.addf %75, %89 : vector<1x512xf32>
    %c0_60 = arith.constant 0 : index
    %c1_61 = arith.constant 1 : index
    %c2_62 = arith.constant 2 : index
    %c0_63 = arith.constant 0 : index
    %91 = vector.load %arg1[%c0_60, %c1_61, %c2_62, %c0_63] : memref<1x5x5x512xbf16, #tpu.memory_space<vmem>>, vector<1x2x2x512xbf16>
    %92 = vector.shape_cast %91 : vector<1x2x2x512xbf16> to vector<2x2x512xbf16>
    %93 = arith.extf %92 : vector<2x2x512xbf16> to vector<2x2x512xf32>
    %cst_64 = arith.constant dense<0.000000e+00> : vector<2x512xf32>
    %94 = vector.multi_reduction <add>, %93, %cst_64 [0] : vector<2x2x512xf32> to vector<2x512xf32>
    %cst_65 = arith.constant 2.000000e+00 : f32
    %95 = vector.broadcast %cst_65 : f32 to vector<2x512xf32>
    %96 = arith.divf %94, %95 : vector<2x512xf32>
    %cst_66 = arith.constant dense<0.000000e+00> : vector<512xf32>
    %97 = vector.multi_reduction <add>, %96, %cst_66 [0] : vector<2x512xf32> to vector<512xf32>
    %98 = vector.shape_cast %97 : vector<512xf32> to vector<1x512xf32>
    %cst_67 = arith.constant 2.000000e+00 : f32
    %99 = vector.broadcast %cst_67 : f32 to vector<1x512xf32>
    %100 = arith.divf %98, %99 : vector<1x512xf32>
    %c6 = arith.constant 6 : index
    %c0_68 = arith.constant 0 : index
    %c0_69 = arith.constant 0 : index
    %101 = vector.load %arg2[%c6, %c0_68, %c0_69] : memref<16x1x512xbf16, #tpu.memory_space<vmem>>, vector<1x1x512xbf16>
    %102 = vector.shape_cast %101 : vector<1x1x512xbf16> to vector<1x512xbf16>
    %103 = arith.extf %102 : vector<1x512xbf16> to vector<1x512xf32>
    %104 = arith.mulf %100, %103 : vector<1x512xf32>
    %105 = arith.addf %90, %104 : vector<1x512xf32>
    %c0_70 = arith.constant 0 : index
    %c1_71 = arith.constant 1 : index
    %c3_72 = arith.constant 3 : index
    %c0_73 = arith.constant 0 : index
    %106 = vector.load %arg1[%c0_70, %c1_71, %c3_72, %c0_73] : memref<1x5x5x512xbf16, #tpu.memory_space<vmem>>, vector<1x2x2x512xbf16>
    %107 = vector.shape_cast %106 : vector<1x2x2x512xbf16> to vector<2x2x512xbf16>
    %108 = arith.extf %107 : vector<2x2x512xbf16> to vector<2x2x512xf32>
    %cst_74 = arith.constant dense<0.000000e+00> : vector<2x512xf32>
    %109 = vector.multi_reduction <add>, %108, %cst_74 [0] : vector<2x2x512xf32> to vector<2x512xf32>
    %cst_75 = arith.constant 2.000000e+00 : f32
    %110 = vector.broadcast %cst_75 : f32 to vector<2x512xf32>
    %111 = arith.divf %109, %110 : vector<2x512xf32>
    %cst_76 = arith.constant dense<0.000000e+00> : vector<512xf32>
    %112 = vector.multi_reduction <add>, %111, %cst_76 [0] : vector<2x512xf32> to vector<512xf32>
    %113 = vector.shape_cast %112 : vector<512xf32> to vector<1x512xf32>
    %cst_77 = arith.constant 2.000000e+00 : f32
    %114 = vector.broadcast %cst_77 : f32 to vector<1x512xf32>
    %115 = arith.divf %113, %114 : vector<1x512xf32>
    %c7 = arith.constant 7 : index
    %c0_78 = arith.constant 0 : index
    %c0_79 = arith.constant 0 : index
    %116 = vector.load %arg2[%c7, %c0_78, %c0_79] : memref<16x1x512xbf16, #tpu.memory_space<vmem>>, vector<1x1x512xbf16>
    %117 = vector.shape_cast %116 : vector<1x1x512xbf16> to vector<1x512xbf16>
    %118 = arith.extf %117 : vector<1x512xbf16> to vector<1x512xf32>
    %119 = arith.mulf %115, %118 : vector<1x512xf32>
    %120 = arith.addf %105, %119 : vector<1x512xf32>
    %c0_80 = arith.constant 0 : index
    %c2_81 = arith.constant 2 : index
    %c0_82 = arith.constant 0 : index
    %c0_83 = arith.constant 0 : index
    %121 = vector.load %arg1[%c0_80, %c2_81, %c0_82, %c0_83] : memref<1x5x5x512xbf16, #tpu.memory_space<vmem>>, vector<1x2x2x512xbf16>
    %122 = vector.shape_cast %121 : vector<1x2x2x512xbf16> to vector<2x2x512xbf16>
    %123 = arith.extf %122 : vector<2x2x512xbf16> to vector<2x2x512xf32>
    %cst_84 = arith.constant dense<0.000000e+00> : vector<2x512xf32>
    %124 = vector.multi_reduction <add>, %123, %cst_84 [0] : vector<2x2x512xf32> to vector<2x512xf32>
    %cst_85 = arith.constant 2.000000e+00 : f32
    %125 = vector.broadcast %cst_85 : f32 to vector<2x512xf32>
    %126 = arith.divf %124, %125 : vector<2x512xf32>
    %cst_86 = arith.constant dense<0.000000e+00> : vector<512xf32>
    %127 = vector.multi_reduction <add>, %126, %cst_86 [0] : vector<2x512xf32> to vector<512xf32>
    %128 = vector.shape_cast %127 : vector<512xf32> to vector<1x512xf32>
    %cst_87 = arith.constant 2.000000e+00 : f32
    %129 = vector.broadcast %cst_87 : f32 to vector<1x512xf32>
    %130 = arith.divf %128, %129 : vector<1x512xf32>
    %c8 = arith.constant 8 : index
    %c0_88 = arith.constant 0 : index
    %c0_89 = arith.constant 0 : index
    %131 = vector.load %arg2[%c8, %c0_88, %c0_89] : memref<16x1x512xbf16, #tpu.memory_space<vmem>>, vector<1x1x512xbf16>
    %132 = vector.shape_cast %131 : vector<1x1x512xbf16> to vector<1x512xbf16>
    %133 = arith.extf %132 : vector<1x512xbf16> to vector<1x512xf32>
    %134 = arith.mulf %130, %133 : vector<1x512xf32>
    %135 = arith.addf %120, %134 : vector<1x512xf32>
    %c0_90 = arith.constant 0 : index
    %c2_91 = arith.constant 2 : index
    %c1_92 = arith.constant 1 : index
    %c0_93 = arith.constant 0 : index
    %136 = vector.load %arg1[%c0_90, %c2_91, %c1_92, %c0_93] : memref<1x5x5x512xbf16, #tpu.memory_space<vmem>>, vector<1x2x2x512xbf16>
    %137 = vector.shape_cast %136 : vector<1x2x2x512xbf16> to vector<2x2x512xbf16>
    %138 = arith.extf %137 : vector<2x2x512xbf16> to vector<2x2x512xf32>
    %cst_94 = arith.constant dense<0.000000e+00> : vector<2x512xf32>
    %139 = vector.multi_reduction <add>, %138, %cst_94 [0] : vector<2x2x512xf32> to vector<2x512xf32>
    %cst_95 = arith.constant 2.000000e+00 : f32
    %140 = vector.broadcast %cst_95 : f32 to vector<2x512xf32>
    %141 = arith.divf %139, %140 : vector<2x512xf32>
    %cst_96 = arith.constant dense<0.000000e+00> : vector<512xf32>
    %142 = vector.multi_reduction <add>, %141, %cst_96 [0] : vector<2x512xf32> to vector<512xf32>
    %143 = vector.shape_cast %142 : vector<512xf32> to vector<1x512xf32>
    %cst_97 = arith.constant 2.000000e+00 : f32
    %144 = vector.broadcast %cst_97 : f32 to vector<1x512xf32>
    %145 = arith.divf %143, %144 : vector<1x512xf32>
    %c9 = arith.constant 9 : index
    %c0_98 = arith.constant 0 : index
    %c0_99 = arith.constant 0 : index
    %146 = vector.load %arg2[%c9, %c0_98, %c0_99] : memref<16x1x512xbf16, #tpu.memory_space<vmem>>, vector<1x1x512xbf16>
    %147 = vector.shape_cast %146 : vector<1x1x512xbf16> to vector<1x512xbf16>
    %148 = arith.extf %147 : vector<1x512xbf16> to vector<1x512xf32>
    %149 = arith.mulf %145, %148 : vector<1x512xf32>
    %150 = arith.addf %135, %149 : vector<1x512xf32>
    %c0_100 = arith.constant 0 : index
    %c2_101 = arith.constant 2 : index
    %c2_102 = arith.constant 2 : index
    %c0_103 = arith.constant 0 : index
    %151 = vector.load %arg1[%c0_100, %c2_101, %c2_102, %c0_103] : memref<1x5x5x512xbf16, #tpu.memory_space<vmem>>, vector<1x2x2x512xbf16>
    %152 = vector.shape_cast %151 : vector<1x2x2x512xbf16> to vector<2x2x512xbf16>
    %153 = arith.extf %152 : vector<2x2x512xbf16> to vector<2x2x512xf32>
    %cst_104 = arith.constant dense<0.000000e+00> : vector<2x512xf32>
    %154 = vector.multi_reduction <add>, %153, %cst_104 [0] : vector<2x2x512xf32> to vector<2x512xf32>
    %cst_105 = arith.constant 2.000000e+00 : f32
    %155 = vector.broadcast %cst_105 : f32 to vector<2x512xf32>
    %156 = arith.divf %154, %155 : vector<2x512xf32>
    %cst_106 = arith.constant dense<0.000000e+00> : vector<512xf32>
    %157 = vector.multi_reduction <add>, %156, %cst_106 [0] : vector<2x512xf32> to vector<512xf32>
    %158 = vector.shape_cast %157 : vector<512xf32> to vector<1x512xf32>
    %cst_107 = arith.constant 2.000000e+00 : f32
    %159 = vector.broadcast %cst_107 : f32 to vector<1x512xf32>
    %160 = arith.divf %158, %159 : vector<1x512xf32>
    %c10 = arith.constant 10 : index
    %c0_108 = arith.constant 0 : index
    %c0_109 = arith.constant 0 : index
    %161 = vector.load %arg2[%c10, %c0_108, %c0_109] : memref<16x1x512xbf16, #tpu.memory_space<vmem>>, vector<1x1x512xbf16>
    %162 = vector.shape_cast %161 : vector<1x1x512xbf16> to vector<1x512xbf16>
    %163 = arith.extf %162 : vector<1x512xbf16> to vector<1x512xf32>
    %164 = arith.mulf %160, %163 : vector<1x512xf32>
    %165 = arith.addf %150, %164 : vector<1x512xf32>
    %c0_110 = arith.constant 0 : index
    %c2_111 = arith.constant 2 : index
    %c3_112 = arith.constant 3 : index
    %c0_113 = arith.constant 0 : index
    %166 = vector.load %arg1[%c0_110, %c2_111, %c3_112, %c0_113] : memref<1x5x5x512xbf16, #tpu.memory_space<vmem>>, vector<1x2x2x512xbf16>
    %167 = vector.shape_cast %166 : vector<1x2x2x512xbf16> to vector<2x2x512xbf16>
    %168 = arith.extf %167 : vector<2x2x512xbf16> to vector<2x2x512xf32>
    %cst_114 = arith.constant dense<0.000000e+00> : vector<2x512xf32>
    %169 = vector.multi_reduction <add>, %168, %cst_114 [0] : vector<2x2x512xf32> to vector<2x512xf32>
    %cst_115 = arith.constant 2.000000e+00 : f32
    %170 = vector.broadcast %cst_115 : f32 to vector<2x512xf32>
    %171 = arith.divf %169, %170 : vector<2x512xf32>
    %cst_116 = arith.constant dense<0.000000e+00> : vector<512xf32>
    %172 = vector.multi_reduction <add>, %171, %cst_116 [0] : vector<2x512xf32> to vector<512xf32>
    %173 = vector.shape_cast %172 : vector<512xf32> to vector<1x512xf32>
    %cst_117 = arith.constant 2.000000e+00 : f32
    %174 = vector.broadcast %cst_117 : f32 to vector<1x512xf32>
    %175 = arith.divf %173, %174 : vector<1x512xf32>
    %c11 = arith.constant 11 : index
    %c0_118 = arith.constant 0 : index
    %c0_119 = arith.constant 0 : index
    %176 = vector.load %arg2[%c11, %c0_118, %c0_119] : memref<16x1x512xbf16, #tpu.memory_space<vmem>>, vector<1x1x512xbf16>
    %177 = vector.shape_cast %176 : vector<1x1x512xbf16> to vector<1x512xbf16>
    %178 = arith.extf %177 : vector<1x512xbf16> to vector<1x512xf32>
    %179 = arith.mulf %175, %178 : vector<1x512xf32>
    %180 = arith.addf %165, %179 : vector<1x512xf32>
    %c0_120 = arith.constant 0 : index
    %c3_121 = arith.constant 3 : index
    %c0_122 = arith.constant 0 : index
    %c0_123 = arith.constant 0 : index
    %181 = vector.load %arg1[%c0_120, %c3_121, %c0_122, %c0_123] : memref<1x5x5x512xbf16, #tpu.memory_space<vmem>>, vector<1x2x2x512xbf16>
    %182 = vector.shape_cast %181 : vector<1x2x2x512xbf16> to vector<2x2x512xbf16>
    %183 = arith.extf %182 : vector<2x2x512xbf16> to vector<2x2x512xf32>
    %cst_124 = arith.constant dense<0.000000e+00> : vector<2x512xf32>
    %184 = vector.multi_reduction <add>, %183, %cst_124 [0] : vector<2x2x512xf32> to vector<2x512xf32>
    %cst_125 = arith.constant 2.000000e+00 : f32
    %185 = vector.broadcast %cst_125 : f32 to vector<2x512xf32>
    %186 = arith.divf %184, %185 : vector<2x512xf32>
    %cst_126 = arith.constant dense<0.000000e+00> : vector<512xf32>
    %187 = vector.multi_reduction <add>, %186, %cst_126 [0] : vector<2x512xf32> to vector<512xf32>
    %188 = vector.shape_cast %187 : vector<512xf32> to vector<1x512xf32>
    %cst_127 = arith.constant 2.000000e+00 : f32
    %189 = vector.broadcast %cst_127 : f32 to vector<1x512xf32>
    %190 = arith.divf %188, %189 : vector<1x512xf32>
    %c12 = arith.constant 12 : index
    %c0_128 = arith.constant 0 : index
    %c0_129 = arith.constant 0 : index
    %191 = vector.load %arg2[%c12, %c0_128, %c0_129] : memref<16x1x512xbf16, #tpu.memory_space<vmem>>, vector<1x1x512xbf16>
    %192 = vector.shape_cast %191 : vector<1x1x512xbf16> to vector<1x512xbf16>
    %193 = arith.extf %192 : vector<1x512xbf16> to vector<1x512xf32>
    %194 = arith.mulf %190, %193 : vector<1x512xf32>
    %195 = arith.addf %180, %194 : vector<1x512xf32>
    %c0_130 = arith.constant 0 : index
    %c3_131 = arith.constant 3 : index
    %c1_132 = arith.constant 1 : index
    %c0_133 = arith.constant 0 : index
    %196 = vector.load %arg1[%c0_130, %c3_131, %c1_132, %c0_133] : memref<1x5x5x512xbf16, #tpu.memory_space<vmem>>, vector<1x2x2x512xbf16>
    %197 = vector.shape_cast %196 : vector<1x2x2x512xbf16> to vector<2x2x512xbf16>
    %198 = arith.extf %197 : vector<2x2x512xbf16> to vector<2x2x512xf32>
    %cst_134 = arith.constant dense<0.000000e+00> : vector<2x512xf32>
    %199 = vector.multi_reduction <add>, %198, %cst_134 [0] : vector<2x2x512xf32> to vector<2x512xf32>
    %cst_135 = arith.constant 2.000000e+00 : f32
    %200 = vector.broadcast %cst_135 : f32 to vector<2x512xf32>
    %201 = arith.divf %199, %200 : vector<2x512xf32>
    %cst_136 = arith.constant dense<0.000000e+00> : vector<512xf32>
    %202 = vector.multi_reduction <add>, %201, %cst_136 [0] : vector<2x512xf32> to vector<512xf32>
    %203 = vector.shape_cast %202 : vector<512xf32> to vector<1x512xf32>
    %cst_137 = arith.constant 2.000000e+00 : f32
    %204 = vector.broadcast %cst_137 : f32 to vector<1x512xf32>
    %205 = arith.divf %203, %204 : vector<1x512xf32>
    %c13 = arith.constant 13 : index
    %c0_138 = arith.constant 0 : index
    %c0_139 = arith.constant 0 : index
    %206 = vector.load %arg2[%c13, %c0_138, %c0_139] : memref<16x1x512xbf16, #tpu.memory_space<vmem>>, vector<1x1x512xbf16>
    %207 = vector.shape_cast %206 : vector<1x1x512xbf16> to vector<1x512xbf16>
    %208 = arith.extf %207 : vector<1x512xbf16> to vector<1x512xf32>
    %209 = arith.mulf %205, %208 : vector<1x512xf32>
    %210 = arith.addf %195, %209 : vector<1x512xf32>
    %c0_140 = arith.constant 0 : index
    %c3_141 = arith.constant 3 : index
    %c2_142 = arith.constant 2 : index
    %c0_143 = arith.constant 0 : index
    %211 = vector.load %arg1[%c0_140, %c3_141, %c2_142, %c0_143] : memref<1x5x5x512xbf16, #tpu.memory_space<vmem>>, vector<1x2x2x512xbf16>
    %212 = vector.shape_cast %211 : vector<1x2x2x512xbf16> to vector<2x2x512xbf16>
    %213 = arith.extf %212 : vector<2x2x512xbf16> to vector<2x2x512xf32>
    %cst_144 = arith.constant dense<0.000000e+00> : vector<2x512xf32>
    %214 = vector.multi_reduction <add>, %213, %cst_144 [0] : vector<2x2x512xf32> to vector<2x512xf32>
    %cst_145 = arith.constant 2.000000e+00 : f32
    %215 = vector.broadcast %cst_145 : f32 to vector<2x512xf32>
    %216 = arith.divf %214, %215 : vector<2x512xf32>
    %cst_146 = arith.constant dense<0.000000e+00> : vector<512xf32>
    %217 = vector.multi_reduction <add>, %216, %cst_146 [0] : vector<2x512xf32> to vector<512xf32>
    %218 = vector.shape_cast %217 : vector<512xf32> to vector<1x512xf32>
    %cst_147 = arith.constant 2.000000e+00 : f32
    %219 = vector.broadcast %cst_147 : f32 to vector<1x512xf32>
    %220 = arith.divf %218, %219 : vector<1x512xf32>
    %c14 = arith.constant 14 : index
    %c0_148 = arith.constant 0 : index
    %c0_149 = arith.constant 0 : index
    %221 = vector.load %arg2[%c14, %c0_148, %c0_149] : memref<16x1x512xbf16, #tpu.memory_space<vmem>>, vector<1x1x512xbf16>
    %222 = vector.shape_cast %221 : vector<1x1x512xbf16> to vector<1x512xbf16>
    %223 = arith.extf %222 : vector<1x512xbf16> to vector<1x512xf32>
    %224 = arith.mulf %220, %223 : vector<1x512xf32>
    %225 = arith.addf %210, %224 : vector<1x512xf32>
    %c0_150 = arith.constant 0 : index
    %c3_151 = arith.constant 3 : index
    %c3_152 = arith.constant 3 : index
    %c0_153 = arith.constant 0 : index
    %226 = vector.load %arg1[%c0_150, %c3_151, %c3_152, %c0_153] : memref<1x5x5x512xbf16, #tpu.memory_space<vmem>>, vector<1x2x2x512xbf16>
    %227 = vector.shape_cast %226 : vector<1x2x2x512xbf16> to vector<2x2x512xbf16>
    %228 = arith.extf %227 : vector<2x2x512xbf16> to vector<2x2x512xf32>
    %cst_154 = arith.constant dense<0.000000e+00> : vector<2x512xf32>
    %229 = vector.multi_reduction <add>, %228, %cst_154 [0] : vector<2x2x512xf32> to vector<2x512xf32>
    %cst_155 = arith.constant 2.000000e+00 : f32
    %230 = vector.broadcast %cst_155 : f32 to vector<2x512xf32>
    %231 = arith.divf %229, %230 : vector<2x512xf32>
    %cst_156 = arith.constant dense<0.000000e+00> : vector<512xf32>
    %232 = vector.multi_reduction <add>, %231, %cst_156 [0] : vector<2x512xf32> to vector<512xf32>
    %233 = vector.shape_cast %232 : vector<512xf32> to vector<1x512xf32>
    %cst_157 = arith.constant 2.000000e+00 : f32
    %234 = vector.broadcast %cst_157 : f32 to vector<1x512xf32>
    %235 = arith.divf %233, %234 : vector<1x512xf32>
    %c15 = arith.constant 15 : index
    %c0_158 = arith.constant 0 : index
    %c0_159 = arith.constant 0 : index
    %236 = vector.load %arg2[%c15, %c0_158, %c0_159] : memref<16x1x512xbf16, #tpu.memory_space<vmem>>, vector<1x1x512xbf16>
    %237 = vector.shape_cast %236 : vector<1x1x512xbf16> to vector<1x512xbf16>
    %238 = arith.extf %237 : vector<1x512xbf16> to vector<1x512xf32>
    %239 = arith.mulf %235, %238 : vector<1x512xf32>
    %240 = arith.addf %225, %239 : vector<1x512xf32>
    %cst_160 = arith.constant dense<0.000000e+00> : vector<1xf32>
    %241 = vector.multi_reduction <add>, %240, %cst_160 [1] : vector<1x512xf32> to vector<1xf32>
    %242 = vector.shape_cast %241 : vector<1xf32> to vector<1x1xf32>
    %c0_161 = arith.constant 0 : index
    %c0_162 = arith.constant 0 : index
    %243 = vector.load %arg3[%c0_161, %c0_162] : memref<1x1xf32, #tpu.memory_space<vmem>>, vector<1x1xf32>
    %244 = arith.addf %242, %243 : vector<1x1xf32>
    %245 = arith.index_cast %arg0 : i32 to index
    %c0_163 = arith.constant 0 : index
    %246 = vector.load %arg4[%245, %c0_163] : memref<2x1xf32, #tpu.memory_space<vmem>>, vector<1x1xf32>
    tpu.vector_store %arg4[%245, %c0_163], %244 {strides = array<i32>} : memref<2x1xf32, #tpu.memory_space<vmem>>, vector<1x1xf32>,
    return
  }
  func.func @transform_0(%arg0: i32) -> (i32, i32, i32, i32) {
    %c0_i32 = arith.constant 0 : i32
    %c0_i32_0 = arith.constant 0 : i32
    %c0_i32_1 = arith.constant 0 : i32
    %c0_i32_2 = arith.constant 0 : i32
    return %arg0, %c0_i32, %c0_i32_0, %c0_i32_1 : i32, i32, i32, i32
  }
  func.func @transform_1(%arg0: i32) -> (i32, i32, i32) {
    %c0_i32 = arith.constant 0 : i32
    %c0_i32_0 = arith.constant 0 : i32
    %c0_i32_1 = arith.constant 0 : i32
    %c0_i32_2 = arith.constant 0 : i32
    return %c0_i32, %c0_i32_0, %c0_i32_1 : i32, i32, i32
  }
  func.func @transform_2(%arg0: i32) -> (i32, i32) {
    %c0_i32 = arith.constant 0 : i32
    %c0_i32_0 = arith.constant 0 : i32
    %c0_i32_1 = arith.constant 0 : i32
    return %c0_i32, %c0_i32_0 : i32, i32
  }
  func.func @transform_3(%arg0: i32) -> (i32, i32) {
    %c0_i32 = arith.constant 0 : i32
    %c0_i32_0 = arith.constant 0 : i32
    %c0_i32_1 = arith.constant 0 : i32
    return %c0_i32, %c0_i32_0 : i32, i32
  }
}

</mosaic_0001>

<bundles_post_ra>
// kernel: discriminator_forward.5
= control target key start
LH: loop header
LB: loop body
LE: loop exit
PB: predicated region body
PF: predicated region fallthrough
CT: control target
= control target key end

     0   :  { %8 = vsyncpa [#allocation4], 0  ;;  %s1210_s12 = smov 0   ;;  %s1212_s13 = smov 0   ;;  %s1404_s0 = inlined_call_operand.vmem [shape: bf16[2,17,17,12], index: 0, kind: input, shape index: {}]   ;;  %s1405_s1 = inlined_call_operand.vmem [shape: bf16[4,12,64], index: 1, kind: input, shape index: {}]   ;;  %s1406_s2 = inlined_call_operand.hbm [shape: f32[1,64], index: 2, kind: input, shape index: {}]   ;;  %s1407_s3 = inlined_call_operand.vmem [shape: bf16[2,16,16,64], index: 3, kind: output, shape index: {}]  }
   0x1   :  { %s1214_s14 = smov 0  }
   0x2 LB: > { %s934_s15 = sadd.s32 4294967295, %s1181_s14   ;;  %s26_s16 = sadd.s32 1, %s1177_s13  ;;  %s1181_s14 = sphi %s1214_s14, %s14_s14   ;;  %s1177_s13 = sphi %s1212_s13, %s1417_s13   ;;  %s1173_s12 = sphi %s1210_s12, %s1416_s12  }
   0x3   : > { %p28_p0 = scmp.ge.s32.totalorder %s26_s16, 2  ;;  %p936_p1 = scmp.ge.s32.totalorder %s1181_s14, 1 }
   0x4   : > { %p137_p2 = scmp.lt.s32.totalorder %s1181_s14, 3  ;;  %p1235_p4 = scmp.eq.s32.totalorder %s934_s15, 0 }
   0x5   : > { %s1419_s16 = smov (%p28_p0, %s26_s16), 0  ;;  %s1187_s19 = smov [#allocation3]  }
   0x6   : > { %p1231_p3 = pnand %p936_p1, %p137_p2  ;;  %s159_s20 = sshll.u32 %s1187_s19, 4  ;;  %s160_s20 = int_to_ptr.vmem [resolvable:$true] %s159_s20 }
   0x7   : > { %s1412_s18 = scalar_select %p1235_p4, 1, 0 }
   0x8   : > { %s1411_s17 = scalar_select %p1231_p3, 1, 0 }
   0x9   : > { %p1074_p5 = pneg %p1231_p3  ;;  %s1123_s24 = scalar_lea.hbm %s1406_s2, 16 }
   0xa   : > { %p1124_p7 = scmp.ne.s32.totalorder %s1406_s2, %s1123_s24  ;;  %p1130_p11 = scmp.lt.u32.totalorder %s1123_s24, %s1406_s2 }
   0xb   : > { %p1243_p6 = pnand %p1235_p4, %p1074_p5 }
   0xd   : > { %p1125_p8 = pneg %p1243_p6 }
   0xf   : > { %p1126_p9 = pnand %p1125_p8, %p1124_p7 }
  0x11   : > { %p1127_p10 = pneg %p1126_p9 }
  0x13   : > { %p1132_p12 = pnand %p1130_p11, %p1127_p10 }
  0x15   : > { %1135 = shalt.err (!%p1132_p12)
}
  0x16   : > { %s1136_s29 = scalar_lea.vmem %s160_s20, 16  ;;  %s1143_s30 = scalar_lea.vmem %s160_s20, 32 }
  0x17   : > { %p1137_p13 = scmp.ne.s32.totalorder %s160_s20, %s1136_s29  ;;  %p1144_p2 = scmp.lt.s32.totalorder %s160_s20, %s160_s20 }
  0x18   : > { %p1145_p5 = scmp.lt.s32.totalorder %s1143_s30, %s1136_s29 }
  0x19   : > { %p1139_p0 = pnand %p1137_p13, %p1125_p8 }
  0x1a   : > { %p1146_p4 = por %p1145_p5, %p1144_p2 }
  0x1b   : > { %p1140_p1 = pneg %p1139_p0 }
  0x1d   : > { %p1147_p3 = pnand %p1146_p4, %p1140_p1 }
  0x1f   : > { %1150 = shalt.err (!%p1147_p3)
}
  0x20   : > { %1077 = dma.hbm_to_vmem [thread:$0]  (!%p1243_p6), %s1406_s2, 16, %s160_s20, [#allocation4]  }
  0x21   : > { %p1414_p7 = scmp.ne.s32.totalorder %s1411_s17, 0 }
  0x22   : > { %p1415_p9 = scmp.ne.s32.totalorder (!%p1414_p7), %s1412_s18, 0 }
  0x23   : > { %180 = sbr.rel (%p1414_p7) target bundleno = 334 (0x14e), region = 32 }
  0x2a   : > { %1168 = dma.done.wait (%p1415_p9), [#allocation4], 16  }
  0x2b   : > { %1170 = vsyncadd (%p1415_p9), [#allocation4], 4294967280  ;;  %p211_p8 = scmp.lt.s32.totalorder %s1173_s12, 1  ;;  %s1281_s19 = smov 0  }
  0x2d   : > { %s1421_s12 = smov (!%p211_p8, %s1173_s12), 1 }
  0x2e   : > { %s1069_s6 = smul.u32 204, %s1421_s12  ;;  %s1003_s7 = sshll.u32 %s1421_s12, 7 }
  0x2f   : > { %s1274_s10 = scalar_lea.vmem %s1407_s3, %s1003_s7 }
  0x30   : > { %s1279_s17 = scalar_lea.vmem %s1404_s0, %s1069_s6 }
  0x31 LB: >> { %vm276_vm0 = vcmask 1045504   ;;  %v1188_v0 = vmov 0.0   ;;  %v1115_v1 = vld [vmem:[%s1405_s1 + $0x8] sm:$0x3f]   ;;  %v1116_v2 = vld [vmem:[%s1405_s1] sm:$0x3f]   ;;  %s1185_s19 = sphi %s1281_s19, %s234_s19  }
  0x32   : >> { %1045 = vmatprep.subr.bf16.mxu0 %v1188_v0  ;;  %1051 = vmatprep.subr.bf16.mxu1 %v1188_v0  ;;  %s1004_s22 = smul.u32 12, %s1185_s19  ;;  %v278_v3 = vsel %vm276_vm0, %v1115_v1, 0  ;;  %vm1189_vm1 = vmmov 0   ;;  %v329_v4 = vsel %vm276_vm0, %v1116_v2, 0  ;;  %vm254_vm2 = vsmask.f32 7424 }
  0x33   : >> { %1053 = vmatprep.mubr.msk.bf16.mxu1 %vm1189_vm1, %v1188_v0  ;;  %1047 = vmatprep.mubr.msk.bf16.mxu0 %vm1189_vm1, %v1188_v0  ;;  %vm272_vm3 = vcmask 97280   ;;  %v1119_v7 = vld [vmem:[%s1405_s1 + $0x10] sm:$0x3f]   ;;  %v1120_v11 = vld [vmem:[%s1405_s1 + $0x18] sm:$0x3f]   ;;  %s968_s28 = sshll.u32 %s1185_s19, 4 }
  0x34   : >> { %1046 = vmatpush3.bf16.msra.mxu0 %v278_v3  ;;  %s237_s23 = scalar_lea.vmem %s1279_s17, %s1004_s22  ;;  %1052 = vmatpush3.bf16.msra.mxu1 %v329_v4  ;;  %v467_v15 = vsel %vm276_vm0, %v1120_v11, 0  ;;  %v396_v20 = vsel %vm276_vm0, %v1119_v7, 0  ;;  %v967_v44 = vld [vmem:[#allocation3] ss:$0 sm:$0xff]  ;;  %vm523_vm4 = vcmask 523264   ;;  %s522_s29 = scalar_lea.vmem [#allocation2], %s968_s28 }
  0x35   : >> { %v1117_v5 = vld [vmem:[%s237_s23] sm:$0xff]   ;;  %1057 = vmatprep.subr.bf16.mxu0 %v1188_v0  ;;  %v1118_v6 = vld [vmem:[%s237_s23 + $0x8] ss:$0 sps:$4 sm:$0x11]   ;;  %1063 = vmatprep.subr.bf16.mxu1 %v1188_v0  ;;  %v1121_v12 = vld [vmem:[%s237_s23 + $0xc] sm:$0xff]   ;;  %s234_s19 = sadd.s32 1, %s1185_s19  }
  0x36   : >> { %v256_v8 = vshrl.u32 %v1117_v5, 16  ;;  %v258_v9 = vshll.u32 %v1117_v5, 16  ;;  %v263_v10 = vshll.u32 %v1118_v6, 16  ;;  %v1122_v16 = vld [vmem:[%s237_s23 + $0x14] ss:$0 sps:$4 sm:$0x11]  }
  0x37   : >> { %1054 = vmatmul.mubr.msk.bf16.vlgmr.msra.gmra.mrb[0].mxu1 %vm272_vm3, %v1117_v5  ;;  %v447_v18 = vshrl.u32 %v1121_v12, 16  ;;  %v449_v19 = vshll.u32 %v1121_v12, 16  ;;  %v454_v21 = vshll.u32 %v1122_v16, 16  ;;  %p231_p3 = scmp.ge.s32.totalorder %s234_s19, 16  }
  0x38   : >> { %v260_v13 = vrot.slane %v258_v9, 1  ;;  %1065 = vmatprep.mubr.msk.bf16.mxu1 %vm1189_vm1, %v1188_v0  ;;  %v265_v14 = vrot.slane %v263_v10, 1  ;;  %1064 = vmatpush3.bf16.msra.mxu1 %v467_v15  ;;  %vm782_vm5 = vcmask (%p231_p3), 519168  }
  0x39   : >> { %v451_v23 = vrot.slane %v449_v19, 1  ;;  %v456_v24 = vrot.slane %v454_v21, 1 }
  0x3a   : >> { %v261_v17 = vor.u32 %v260_v13, %v256_v8 }
  0x3b   : >> { %v452_v25 = vor.u32 %v451_v23, %v447_v18 }
  0x3c   : >> { %v266_v22 = vsel %vm254_vm2, %v261_v17, %v265_v14 }
  0x3d   : >> { %1048 = vmatmul.mubr.msk.bf16.vlgmr.msra.gmra.mrb[0].mxu0 %vm272_vm3, %v266_v22  ;;  %v457_v26 = vsel %vm254_vm2, %v452_v25, %v456_v24 }
  0x3e   : >> { %1058 = vmatpush3.bf16.msra.mxu0 %v396_v20  ;;  %1059 = vmatprep.mubr.msk.bf16.mxu0 %vm1189_vm1, %v1188_v0 }
  0x3f   : >> { %1066 = vmatmul.mubr.msk.bf16.vlgmr.msra.gmra.mrb[4].mxu1 %vm272_vm3, %v457_v26 }
  0x45   : >> { %1060 = vmatmul.mubr.msk.bf16.vlgmr.msra.gmra.mrb[4].mxu0 %vm272_vm3, %v1121_v12 }
 0x10a   : >> { %v365_v27 = vpop.f32.mrb[0].mxu1 }
 0x10b   : >> { %v1055_v28 = vpop.f32.mrb[1].mxu1 }
 0x10c   : >> { %v368_v29 = vpop.f32.mrb[2].mxu1 }
 0x10d   : >> { %v1056_v30 = vpop.f32.mrb[3].mxu1 }
 0x110   : >> { %v314_v31 = vpop.f32.mrb[0].mxu0 }
 0x111   : >> { %v366_v32 = vadd.f32 %v365_v27, %v314_v31  ;;  %v1049_v33 = vpop.f32.mrb[1].mxu0 }
 0x112   : >> { %v317_v34 = vpop.f32.mrb[2].mxu0  ;;  %v503_v37 = vpop.f32.mrb[4].mxu1 }
 0x113   : >> { %v369_v35 = vadd.f32 %v368_v29, %v317_v34  ;;  %v1050_v36 = vpop.f32.mrb[3].mxu0  ;;  %v1067_v38 = vpop.f32.mrb[5].mxu1 }
 0x114   : >> { %v506_v39 = vpop.f32.mrb[6].mxu1 }
 0x115   : >> { %v1068_v40 = vpop.f32.mrb[7].mxu1 }
 0x118   : >> { %v432_v41 = vpop.f32.mrb[4].mxu0 }
 0x119   : >> { %v439_v42 = vadd.f32 %v432_v41, %v366_v32  ;;  %v1061_v43 = vpop.f32.mrb[5].mxu0 }
 0x11a   : >> { %v435_v45 = vpop.f32.mrb[6].mxu0 }
 0x11b   : >> { %v510_v46 = vadd.f32 %v503_v37, %v439_v42  ;;  %v440_v47 = vadd.f32 %v435_v45, %v369_v35  ;;  %v1062_v48 = vpop.f32.mrb[7].mxu0  ;;  %233 = sbr.rel (!%p231_p3) target bundleno = 49 (0x31), region = 84 }
 0x11d   : >> { %v519_v49 = vadd.f32 %v967_v44, %v510_v46  ;;  %v511_v50 = vadd.f32 %v506_v39, %v440_v47 }
 0x11f   : >> { %524 = vst.msk [vmem:[%s522_s29] sm:$0xff] %vm523_vm4, %v519_v49  ;;  %v520_v51 = vadd.f32 %v967_v44, %v511_v50 }
 0x121   : >> { %525 = vst.msk [vmem:[%s522_s29 + $0x8] sm:$0xff] %vm523_vm4, %v520_v51 }
 0x128   : > { %v526_v52 = vld [vmem:[#allocation2] sm:$0xff]  ;;  %v527_v53 = vld [vmem:[#allocation2 + $0x8] sm:$0xff]  ;;  %v528_v54 = vld [vmem:[#allocation2 + $0x10] sm:$0xff] }
 0x129   : > { %vm558_vm6 = vcmp.ge.f32.partialorder %v526_v52, 0.0  ;;  %v590_v55 = vmul.f32 0.2, %v526_v52  ;;  %vm559_vm7 = vcmp.ge.f32.partialorder %v527_v53, 0.0  ;;  %v591_v56 = vmul.f32 0.2, %v527_v53 }
 0x12a   : > { %vm560_vm8 = vcmp.ge.f32.partialorder %v528_v54, 0.0  ;;  %v592_v57 = vmul.f32 0.2, %v528_v54  ;;  %v529_v58 = vld [vmem:[#allocation2 + $0x18] sm:$0xff]  ;;  %v530_v59 = vld [vmem:[#allocation2 + $0x20] sm:$0xff]  ;;  %v531_v60 = vld [vmem:[#allocation2 + $0x28] sm:$0xff] }
 0x12b   : > { %v622_v61 = vsel %vm558_vm6, %v526_v52, %v590_v55  ;;  %v623_v62 = vsel %vm559_vm7, %v527_v53, %v591_v56  ;;  %vm561_vm9 = vcmp.ge.f32.partialorder %v529_v58, 0.0  ;;  %v593_v63 = vmul.f32 0.2, %v529_v58  ;;  %v532_v0 = vld [vmem:[#allocation2 + $0x30] sm:$0xff]  ;;  %v533_v4 = vld [vmem:[#allocation2 + $0x38] sm:$0xff]  ;;  %v534_v5 = vld [vmem:[#allocation2 + $0x40] sm:$0xff] }
 0x12c   : > { %v1005_v1 = vpack.c.bf16 %v622_v61, %v622_v61  ;;  %v1006_v2 = vpack.c.bf16 %v623_v62, %v623_v62  ;;  %v624_v3 = vsel %vm560_vm8, %v528_v54, %v592_v57  ;;  %vm562_vm10 = vcmp.ge.f32.partialorder %v530_v59, 0.0  ;;  %v535_v12 = vld [vmem:[#allocation2 + $0x48] sm:$0xff]  ;;  %v536_v15 = vld [vmem:[#allocation2 + $0x50] sm:$0xff]  ;;  %v537_v20 = vld [vmem:[#allocation2 + $0x58] sm:$0xff] }
 0x12d   : > { %v1007_v6 = vpack.c.bf16 %v624_v3, %v624_v3  ;;  %v625_v7 = vsel %vm561_vm9, %v529_v58, %v593_v63  ;;  %v594_v8 = vmul.f32 0.2, %v530_v59  ;;  %vm563_vm11 = vcmp.ge.f32.partialorder %v531_v60, 0.0  ;;  %v538_v24 = vld [vmem:[#allocation2 + $0x60] sm:$0xff]  ;;  %v539_v25 = vld [vmem:[#allocation2 + $0x68] sm:$0xff]  ;;  %v540_v32 = vld [vmem:[#allocation2 + $0x70] sm:$0xff] }
 0x12e   : > { %783 = vst.msk [vmem:[%s1274_s10] sm:$0xf] %vm782_vm5, %v1005_v1  ;;  %784 = vst.msk [vmem:[%s1274_s10 + $0x4] sm:$0xf] %vm782_vm5, %v1006_v2  ;;  %v1008_v9 = vpack.c.bf16 %v625_v7, %v625_v7  ;;  %v595_v10 = vmul.f32 0.2, %v531_v60 }
 0x12f   : > { %vm564_vm12 = vcmp.ge.f32.partialorder %v532_v0, 0.0  ;;  %v596_v11 = vmul.f32 0.2, %v532_v0  ;;  %785 = vst.msk [vmem:[%s1274_s10 + $0x8] sm:$0xf] %vm782_vm5, %v1007_v6  ;;  %v626_v13 = vsel %vm562_vm10, %v530_v59, %v594_v8  ;;  %vm565_vm13 = vcmp.ge.f32.partialorder %v533_v4, 0.0 }
 0x130   : > { %v597_v14 = vmul.f32 0.2, %v533_v4  ;;  %vm566_vm14 = vcmp.ge.f32.partialorder %v534_v5, 0.0  ;;  %786 = vst.msk [vmem:[%s1274_s10 + $0xc] sm:$0xf] %vm782_vm5, %v1008_v9  ;;  %v1009_v16 = vpack.c.bf16 %v626_v13, %v626_v13  ;;  %v627_v17 = vsel %vm563_vm11, %v531_v60, %v595_v10  ;;  %v541_v35 = vld [vmem:[#allocation2 + $0x78] sm:$0xff] }
 0x131   : > { %v628_v18 = vsel %vm564_vm12, %v532_v0, %v596_v11  ;;  %v598_v19 = vmul.f32 0.2, %v534_v5  ;;  %v1010_v21 = vpack.c.bf16 %v627_v17, %v627_v17  ;;  %vm567_vm15 = vcmp.ge.f32.partialorder %v535_v12, 0.0  ;;  %v542_v40 = vld [vmem:[#allocation2 + $0x80] sm:$0xff]  ;;  %v543_v44 = vld [vmem:[#allocation2 + $0x88] sm:$0xff]  ;;  %v544_v45 = vld [vmem:[#allocation2 + $0x90] sm:$0xff] }
 0x132   : > { %v1011_v22 = vpack.c.bf16 %v628_v18, %v628_v18  ;;  %v629_v23 = vsel %vm565_vm13, %v533_v4, %v597_v14  ;;  %787 = vst.msk [vmem:[%s1274_s10 + $0x10] sm:$0xf] %vm782_vm5, %v1009_v16  ;;  %v599_v28 = vmul.f32 0.2, %v535_v12  ;;  %vm568_vm0 = vcmp.ge.f32.partialorder %v536_v15, 0.0  ;;  %v545_v52 = vld [vmem:[#allocation2 + $0x98] sm:$0xff] }
 0x133   : > { %v1012_v26 = vpack.c.bf16 %v629_v23, %v629_v23  ;;  %v630_v27 = vsel %vm566_vm14, %v534_v5, %v598_v19  ;;  %788 = vst.msk [vmem:[%s1274_s10 + $0x14] sm:$0xf] %vm782_vm5, %v1010_v21  ;;  %v600_v30 = vmul.f32 0.2, %v536_v15  ;;  %vm569_vm1 = vcmp.ge.f32.partialorder %v537_v20, 0.0  ;;  %v546_v55 = vld [vmem:[#allocation2 + $0xa0] sm:$0xff] }
 0x134   : > { %789 = vst.msk [vmem:[%s1274_s10 + $0x18] sm:$0xf] %vm782_vm5, %v1011_v22  ;;  %v1013_v29 = vpack.c.bf16 %v630_v27, %v630_v27  ;;  %v601_v31 = vmul.f32 0.2, %v537_v20  ;;  %v631_v33 = vsel %vm567_vm15, %v535_v12, %v599_v28  ;;  %vm570_vm2 = vcmp.ge.f32.partialorder %v538_v24, 0.0  ;;  %v547_v60 = vld [vmem:[#allocation2 + $0xa8] sm:$0xff] }
 0x135   : > { %790 = vst.msk [vmem:[%s1274_s10 + $0x1c] sm:$0xf] %vm782_vm5, %v1012_v26  ;;  %v602_v34 = vmul.f32 0.2, %v538_v24  ;;  %vm571_vm3 = vcmp.ge.f32.partialorder %v539_v25, 0.0  ;;  %v1014_v36 = vpack.c.bf16 %v631_v33, %v631_v33  ;;  %v632_v37 = vsel %vm568_vm0, %v536_v15, %v600_v30  ;;  %v548_v0 = vld [vmem:[#allocation2 + $0xb0] sm:$0xff] }
 0x136   : > { %791 = vst.msk [vmem:[%s1274_s10 + $0x20] sm:$0xf] %vm782_vm5, %v1013_v29  ;;  %v633_v38 = vsel %vm569_vm1, %v537_v20, %v601_v31  ;;  %v603_v39 = vmul.f32 0.2, %v539_v25  ;;  %v1015_v41 = vpack.c.bf16 %v632_v37, %v632_v37  ;;  %vm572_vm4 = vcmp.ge.f32.partialorder %v540_v32, 0.0  ;;  %v549_v1 = vld [vmem:[#allocation2 + $0xb8] sm:$0xff] }
 0x137   : > { %v1016_v42 = vpack.c.bf16 %v633_v38, %v633_v38  ;;  %v634_v43 = vsel %vm570_vm2, %v538_v24, %v602_v34  ;;  %792 = vst.msk [vmem:[%s1274_s10 + $0x24] sm:$0xf] %vm782_vm5, %v1014_v36  ;;  %v604_v48 = vmul.f32 0.2, %v540_v32  ;;  %vm573_vm6 = vcmp.ge.f32.partialorder %v541_v35, 0.0  ;;  %v550_v8 = vld [vmem:[#allocation2 + $0xc0] sm:$0xff] }
 0x138   : > { %v1017_v46 = vpack.c.bf16 %v634_v43, %v634_v43  ;;  %v635_v47 = vsel %vm571_vm3, %v539_v25, %v603_v39  ;;  %793 = vst.msk [vmem:[%s1274_s10 + $0x28] sm:$0xf] %vm782_vm5, %v1015_v41  ;;  %v605_v50 = vmul.f32 0.2, %v541_v35  ;;  %vm574_vm7 = vcmp.ge.f32.partialorder %v542_v40, 0.0  ;;  %v551_v11 = vld [vmem:[#allocation2 + $0xc8] sm:$0xff] }
 0x139   : > { %794 = vst.msk [vmem:[%s1274_s10 + $0x2c] sm:$0xf] %vm782_vm5, %v1016_v42  ;;  %v1018_v49 = vpack.c.bf16 %v635_v47, %v635_v47  ;;  %v606_v51 = vmul.f32 0.2, %v542_v40  ;;  %v636_v53 = vsel %vm572_vm4, %v540_v32, %v604_v48  ;;  %vm575_vm8 = vcmp.ge.f32.partialorder %v543_v44, 0.0  ;;  %v552_v16 = vld [vmem:[#allocation2 + $0xd0] sm:$0xff] }
 0x13a   : > { %795 = vst.msk [vmem:[%s1274_s10 + $0x30] sm:$0xf] %vm782_vm5, %v1017_v46  ;;  %v607_v54 = vmul.f32 0.2, %v543_v44  ;;  %vm576_vm9 = vcmp.ge.f32.partialorder %v544_v45, 0.0  ;;  %v1019_v56 = vpack.c.bf16 %v636_v53, %v636_v53  ;;  %v637_v57 = vsel %vm573_vm6, %v541_v35, %v605_v50  ;;  %v553_v20 = vld [vmem:[#allocation2 + $0xd8] sm:$0xff] }
 0x13b   : > { %796 = vst.msk [vmem:[%s1274_s10 + $0x34] sm:$0xf] %vm782_vm5, %v1018_v49  ;;  %v638_v58 = vsel %vm574_vm7, %v542_v40, %v606_v51  ;;  %v608_v59 = vmul.f32 0.2, %v544_v45  ;;  %v1020_v61 = vpack.c.bf16 %v637_v57, %v637_v57  ;;  %vm577_vm10 = vcmp.ge.f32.partialorder %v545_v52, 0.0  ;;  %v554_v21 = vld [vmem:[#allocation2 + $0xe0] sm:$0xff] }
 0x13c   : > { %v1021_v62 = vpack.c.bf16 %v638_v58, %v638_v58  ;;  %v639_v63 = vsel %vm575_vm8, %v543_v44, %v607_v54  ;;  %797 = vst.msk [vmem:[%s1274_s10 + $0x38] sm:$0xf] %vm782_vm5, %v1019_v56  ;;  %v609_v4 = vmul.f32 0.2, %v545_v52  ;;  %vm578_vm11 = vcmp.ge.f32.partialorder %v546_v55, 0.0  ;;  %v555_v28 = vld [vmem:[#allocation2 + $0xe8] sm:$0xff] }
 0x13d   : > { %v1022_v2 = vpack.c.bf16 %v639_v63, %v639_v63  ;;  %v640_v3 = vsel %vm576_vm9, %v544_v45, %v608_v59  ;;  %798 = vst.msk [vmem:[%s1274_s10 + $0x3c] sm:$0xf] %vm782_vm5, %v1020_v61  ;;  %v610_v6 = vmul.f32 0.2, %v546_v55  ;;  %vm579_vm12 = vcmp.ge.f32.partialorder %v547_v60, 0.0  ;;  %v556_v31 = vld [vmem:[#allocation2 + $0xf0] sm:$0xff] }
 0x13e   : > { %799 = vst.msk [vmem:[%s1274_s10 + $0x40] sm:$0xf] %vm782_vm5, %v1021_v62  ;;  %v1023_v5 = vpack.c.bf16 %v640_v3, %v640_v3  ;;  %v611_v7 = vmul.f32 0.2, %v547_v60  ;;  %v641_v9 = vsel %vm577_vm10, %v545_v52, %v609_v4  ;;  %vm580_vm13 = vcmp.ge.f32.partialorder %v548_v0, 0.0  ;;  %v557_v36 = vld [vmem:[#allocation2 + $0xf8] sm:$0xff] }
 0x13f   : > { %800 = vst.msk [vmem:[%s1274_s10 + $0x44] sm:$0xf] %vm782_vm5, %v1022_v2  ;;  %v612_v10 = vmul.f32 0.2, %v548_v0  ;;  %vm581_vm14 = vcmp.ge.f32.partialorder %v549_v1, 0.0  ;;  %v1024_v12 = vpack.c.bf16 %v641_v9, %v641_v9  ;;  %v642_v13 = vsel %vm578_vm11, %v546_v55, %v610_v6 }
 0x140   : > { %801 = vst.msk [vmem:[%s1274_s10 + $0x48] sm:$0xf] %vm782_vm5, %v1023_v5  ;;  %v643_v14 = vsel %vm579_vm12, %v547_v60, %v611_v7  ;;  %v613_v15 = vmul.f32 0.2, %v549_v1  ;;  %v1025_v17 = vpack.c.bf16 %v642_v13, %v642_v13  ;;  %vm582_vm15 = vcmp.ge.f32.partialorder %v550_v8, 0.0 }
 0x141   : > { %v1026_v18 = vpack.c.bf16 %v643_v14, %v643_v14  ;;  %v644_v19 = vsel %vm580_vm13, %v548_v0, %v612_v10  ;;  %802 = vst.msk [vmem:[%s1274_s10 + $0x4c] sm:$0xf] %vm782_vm5, %v1024_v12  ;;  %v614_v24 = vmul.f32 0.2, %v550_v8  ;;  %vm583_vm0 = vcmp.ge.f32.partialorder %v551_v11, 0.0 }
 0x142   : > { %v1027_v22 = vpack.c.bf16 %v644_v19, %v644_v19  ;;  %v645_v23 = vsel %vm581_vm14, %v549_v1, %v613_v15  ;;  %803 = vst.msk [vmem:[%s1274_s10 + $0x50] sm:$0xf] %vm782_vm5, %v1025_v17  ;;  %v615_v26 = vmul.f32 0.2, %v551_v11  ;;  %vm584_vm1 = vcmp.ge.f32.partialorder %v552_v16, 0.0 }
 0x143   : > { %804 = vst.msk [vmem:[%s1274_s10 + $0x54] sm:$0xf] %vm782_vm5, %v1026_v18  ;;  %v1028_v25 = vpack.c.bf16 %v645_v23, %v645_v23  ;;  %v616_v27 = vmul.f32 0.2, %v552_v16  ;;  %v646_v29 = vsel %vm582_vm15, %v550_v8, %v614_v24  ;;  %vm585_vm2 = vcmp.ge.f32.partialorder %v553_v20, 0.0 }
 0x144   : > { %805 = vst.msk [vmem:[%s1274_s10 + $0x58] sm:$0xf] %vm782_vm5, %v1027_v22  ;;  %v617_v30 = vmul.f32 0.2, %v553_v20  ;;  %vm586_vm3 = vcmp.ge.f32.partialorder %v554_v21, 0.0  ;;  %v1029_v32 = vpack.c.bf16 %v646_v29, %v646_v29  ;;  %v647_v33 = vsel %vm583_vm0, %v551_v11, %v615_v26 }
 0x145   : > { %806 = vst.msk [vmem:[%s1274_s10 + $0x5c] sm:$0xf] %vm782_vm5, %v1028_v25  ;;  %v648_v34 = vsel %vm584_vm1, %v552_v16, %v616_v27  ;;  %v618_v35 = vmul.f32 0.2, %v554_v21  ;;  %v1030_v37 = vpack.c.bf16 %v647_v33, %v647_v33  ;;  %vm587_vm4 = vcmp.ge.f32.partialorder %v555_v28, 0.0 }
 0x146   : > { %v1031_v38 = vpack.c.bf16 %v648_v34, %v648_v34  ;;  %v649_v39 = vsel %vm585_vm2, %v553_v20, %v617_v30  ;;  %807 = vst.msk [vmem:[%s1274_s10 + $0x60] sm:$0xf] %vm782_vm5, %v1029_v32  ;;  %v619_v42 = vmul.f32 0.2, %v555_v28  ;;  %vm588_vm6 = vcmp.ge.f32.partialorder %v556_v31, 0.0 }
 0x147   : > { %v1032_v40 = vpack.c.bf16 %v649_v39, %v649_v39  ;;  %v650_v41 = vsel %vm586_vm3, %v554_v21, %v618_v35  ;;  %808 = vst.msk [vmem:[%s1274_s10 + $0x64] sm:$0xf] %vm782_vm5, %v1030_v37  ;;  %v620_v44 = vmul.f32 0.2, %v556_v31  ;;  %vm589_vm7 = vcmp.ge.f32.partialorder %v557_v36, 0.0 }
 0x148   : > { %809 = vst.msk [vmem:[%s1274_s10 + $0x68] sm:$0xf] %vm782_vm5, %v1031_v38  ;;  %v1033_v43 = vpack.c.bf16 %v650_v41, %v650_v41  ;;  %v621_v45 = vmul.f32 0.2, %v557_v36  ;;  %v651_v46 = vsel %vm587_vm4, %v555_v28, %v619_v42 }
 0x149   : > { %810 = vst.msk [vmem:[%s1274_s10 + $0x6c] sm:$0xf] %vm782_vm5, %v1032_v40  ;;  %v1034_v47 = vpack.c.bf16 %v651_v46, %v651_v46  ;;  %v652_v48 = vsel %vm588_vm6, %v556_v31, %v620_v44 }
 0x14a   : > { %811 = vst.msk [vmem:[%s1274_s10 + $0x70] sm:$0xf] %vm782_vm5, %v1033_v43  ;;  %v653_v49 = vsel %vm589_vm7, %v557_v36, %v621_v45  ;;  %v1035_v50 = vpack.c.bf16 %v652_v48, %v652_v48 }
 0x14b   : > { %v1036_v51 = vpack.c.bf16 %v653_v49, %v653_v49  ;;  %812 = vst.msk [vmem:[%s1274_s10 + $0x74] sm:$0xf] %vm782_vm5, %v1034_v47 }
 0x14c   : > { %813 = vst.msk [vmem:[%s1274_s10 + $0x78] sm:$0xf] %vm782_vm5, %v1035_v50 }
 0x14d   : > { %814 = vst.msk [vmem:[%s1274_s10 + $0x7c] sm:$0xf] %vm782_vm5, %v1036_v51 }
 0x14e PF: > { %s14_s14 = sadd.s32 1, %s1181_s14   ;;  %s1416_s12 = smov %s1177_s13 }
 0x14f   : > { %p11_p4 = scmp.ge.s32.totalorder %s14_s14, 4   ;;  %s1417_s13 = smov %s1419_s16 }
 0x151   :  { %13 = sbr.rel (!%p11_p4) target bundleno = 2 (0x2), region = 95 }
 0x158   :  { %842 = vsyncpa [#allocation4], 1 }
 0x159   :  { %844 = vsyncpa [#allocation4 + $0x1], 1 }

// kernel: discriminator_forward.6
= control target key start
LH: loop header
LB: loop body
LE: loop exit
PB: predicated region body
PF: predicated region fallthrough
CT: control target
= control target key end

     0   :  { %s1595_s9 = smov 0   ;;  %s1597_s10 = smov 0   ;;  %s1845_s0 = inlined_call_operand.vmem [shape: bf16[2,9,9,256], index: 0, kind: input, shape index: {}]   ;;  %s1846_s1 = inlined_call_operand.vmem [shape: bf16[4,256,128], index: 1, kind: input, shape index: {}]   ;;  %s1847_s2 = inlined_call_operand.vmem [shape: bf16[2,8,8,128], index: 2, kind: output, shape index: {}]  }
   0x1   :  { %s1599_s11 = smov 0  }
   0x2 LB: > { %s24_s12 = sadd.s32 1, %s1570_s10  ;;  %p1148_p0 = scmp.ge.s32.totalorder %s1574_s11, 1  ;;  %s1574_s11 = sphi %s1599_s11, %s12_s11   ;;  %s1570_s10 = sphi %s1597_s10, %s1849_s10   ;;  %s1566_s9 = sphi %s1595_s9, %s1848_s9  }
   0x3   : > { %p26_p1 = scmp.ge.s32.totalorder %s24_s12, 2  ;;  %p135_p2 = scmp.lt.s32.totalorder %s1574_s11, 3 }
   0x5   : > { %s1851_s12 = smov (%p26_p1, %s24_s12), 0  ;;  %p136_p3 = pnand %p1148_p0, %p135_p2 }
   0x6   : > { %p164_p4 = scmp.lt.s32.totalorder (!%p136_p3), %s1566_s9, 1  ;;  %s1623_s21 = smov (!%p136_p3), 0  }
   0x7   : > { %139 = sbr.rel (%p136_p3) target bundleno = 397 (0x18d), region = 28 }
   0xe   : > { %s1853_s9 = smov (!%p164_p4, %s1566_s9), 1 }
   0xf   : > { %s1441_s13 = smul.u32 144, %s1853_s9  ;;  %s1328_s14 = sshll.u32 %s1853_s9, 5 }
  0x10   : > { %s1616_s17 = scalar_lea.vmem %s1847_s2, %s1328_s14 }
  0x11   : > { %s1621_s20 = scalar_lea.vmem %s1845_s0, %s1441_s13 }
  0x12 LB: >> { %v1474_v0 = vld [vmem:[%s1846_s1 + $0xc0] sm:$0xff]   ;;  %v1478_v4 = vld [vmem:[%s1846_s1 + $0xc8] sm:$0xff]   ;;  %v1482_v8 = vld [vmem:[%s1846_s1 + $0xd0] sm:$0xff]   ;;  %s1329_s4 = sshll.u32 %s1578_s21, 4  ;;  %s1578_s21 = sphi %s1623_s21, %s187_s21  }
  0x13   : >> { %v1475_v1 = vld [vmem:[%s1846_s1 + $0x40] sm:$0xff]   ;;  %1353 = vmatprep.subr.bf16.mxu0 %v1474_v0  ;;  %v1479_v5 = vld [vmem:[%s1846_s1 + $0x48] sm:$0xff]   ;;  %v1483_v9 = vld [vmem:[%s1846_s1 + $0x50] sm:$0xff]   ;;  %s1720_s14 = scalar_lea.vmem %s1621_s20, %s1329_s4 }
  0x14   : >> { %v1476_v2 = vld [vmem:[%s1846_s1 + $0x80] sm:$0xff]   ;;  %1375 = vmatprep.subr.bf16.mxu1 %v1475_v1  ;;  %v1480_v6 = vld [vmem:[%s1846_s1 + $0x88] sm:$0xff]   ;;  %v1484_v10 = vld [vmem:[%s1846_s1 + $0x90] sm:$0xff]  }
  0x15   : >> { %v1477_v3 = vld [vmem:[%s1846_s1] sm:$0xff]   ;;  %1354 = vmatpush3.bf16.msra.mxu0 %v1476_v2  ;;  %v1481_v7 = vld [vmem:[%s1846_s1 + $0x8] sm:$0xff]   ;;  %v1485_v11 = vld [vmem:[%s1846_s1 + $0x10] sm:$0xff]  }
  0x16   : >> { %1376 = vmatpush3.bf16.msra.mxu1 %v1477_v3  ;;  %1355 = vmatprep.subr.bf16.mxu0 %v1478_v4  ;;  %v1486_v12 = vld [vmem:[%s1846_s1 + $0xd8] sm:$0xff]   ;;  %v1490_v16 = vld [vmem:[%s1846_s1 + $0xe0] sm:$0xff]   ;;  %v1494_v20 = vld [vmem:[%s1846_s1 + $0xe8] sm:$0xff]  }
  0x17   : >> { %1377 = vmatprep.subr.bf16.mxu1 %v1479_v5  ;;  %v1487_v13 = vld [vmem:[%s1846_s1 + $0x58] sm:$0xff]   ;;  %v1491_v17 = vld [vmem:[%s1846_s1 + $0x60] sm:$0xff]   ;;  %v1495_v21 = vld [vmem:[%s1846_s1 + $0x68] sm:$0xff]  }
  0x18   : >> { %v1488_v14 = vld [vmem:[%s1846_s1 + $0x98] sm:$0xff]   ;;  %v1492_v18 = vld [vmem:[%s1846_s1 + $0xa0] sm:$0xff]   ;;  %v1496_v22 = vld [vmem:[%s1846_s1 + $0xa8] sm:$0xff]  }
  0x19   : >> { %1356 = vmatpush3.bf16.msra.mxu0 %v1480_v6  ;;  %v1489_v15 = vld [vmem:[%s1846_s1 + $0x18] sm:$0xff]   ;;  %v1493_v19 = vld [vmem:[%s1846_s1 + $0x20] sm:$0xff]   ;;  %v1497_v23 = vld [vmem:[%s1846_s1 + $0x28] sm:$0xff]  }
  0x1a   : >> { %1378 = vmatpush3.bf16.msra.mxu1 %v1481_v7  ;;  %1357 = vmatprep.subr.bf16.mxu0 %v1482_v8  ;;  %v1498_v24 = vld [vmem:[%s1846_s1 + $0xf0] sm:$0xff]   ;;  %v1502_v28 = vld [vmem:[%s1846_s1 + $0xf8] sm:$0xff]   ;;  %v191_v32 = vld [vmem:[%s1720_s14] sm:$0xff] }
  0x1b   : >> { %1379 = vmatprep.subr.bf16.mxu1 %v1483_v9  ;;  %v1499_v25 = vld [vmem:[%s1846_s1 + $0x70] sm:$0xff]   ;;  %v1503_v29 = vld [vmem:[%s1846_s1 + $0x78] sm:$0xff]   ;;  %v192_v33 = vld [vmem:[%s1720_s14 + $0x8] sm:$0x11]  ;;  %v1205_v36 = vcombine.high %v191_v32, %v191_v32  ;;  %v1204_v37 = vcombine.low %v191_v32, %v191_v32 }
  0x1c   : >> { %v1500_v26 = vld [vmem:[%s1846_s1 + $0xb0] sm:$0xff]   ;;  %v1504_v30 = vld [vmem:[%s1846_s1 + $0xb8] sm:$0xff]   ;;  %v1186_v34 = vcombine.low %v191_v32, %v192_v33  ;;  %v1187_v35 = vcombine.high %v191_v32, %v192_v33  ;;  %v1510_v38 = vld [vmem:[%s1846_s1 + $0x140] sm:$0xff]  }
  0x1d   : >> { %1358 = vmatpush3.bf16.msra.mxu0 %v1484_v10  ;;  %v1501_v27 = vld [vmem:[%s1846_s1 + $0x30] sm:$0xff]   ;;  %v1505_v31 = vld [vmem:[%s1846_s1 + $0x38] sm:$0xff]   ;;  %v1511_v39 = vld [vmem:[%s1846_s1 + $0x1c0] sm:$0xff]   ;;  %550 = vmatprep.mubr.bf16.mxu1 %v1205_v36 }
  0x1e   : >> { %1380 = vmatpush3.bf16.msra.mxu1 %v1485_v11  ;;  %1359 = vmatprep.subr.bf16.mxu0 %v1486_v12  ;;  %v274_v40 = vshrl.u32 %v1187_v35, 16  ;;  %v276_v41 = vshll.u32 %v1187_v35, 16  ;;  %v267_v42 = vshrl.u32 %v1186_v34, 16  ;;  %v269_v43 = vshll.u32 %v1186_v34, 16  ;;  %v1512_v46 = vld [vmem:[%s1846_s1 + $0x100] sm:$0xff]   ;;  %v1515_v50 = vld [vmem:[%s1846_s1 + $0x1c8] sm:$0xff]  }
  0x1f   : >> { %1381 = vmatprep.subr.bf16.mxu1 %v1487_v13  ;;  %v1513_v47 = vld [vmem:[%s1846_s1 + $0x180] sm:$0xff]   ;;  %v1514_v51 = vld [vmem:[%s1846_s1 + $0x148] sm:$0xff]   ;;  %v1519_v54 = vld [vmem:[%s1846_s1 + $0x1d0] sm:$0xff]  }
  0x20   : >> { %v278_v44 = vrot.slane %v276_v41, 1  ;;  %v271_v45 = vrot.slane %v269_v43, 1  ;;  %v1517_v52 = vld [vmem:[%s1846_s1 + $0x188] sm:$0xff]   ;;  %v1518_v55 = vld [vmem:[%s1846_s1 + $0x150] sm:$0xff]   ;;  %v1523_v58 = vld [vmem:[%s1846_s1 + $0x1d8] sm:$0xff]  }
  0x21   : >> { %1360 = vmatpush3.bf16.msra.mxu0 %v1488_v14  ;;  %v1516_v53 = vld [vmem:[%s1846_s1 + $0x108] sm:$0xff]   ;;  %v1521_v56 = vld [vmem:[%s1846_s1 + $0x190] sm:$0xff]   ;;  %v1522_v59 = vld [vmem:[%s1846_s1 + $0x158] sm:$0xff]  }
  0x22   : >> { %1382 = vmatpush3.bf16.msra.mxu1 %v1489_v15  ;;  %1361 = vmatprep.subr.bf16.mxu0 %v1490_v16  ;;  %v279_v48 = vor.u32 %v278_v44, %v274_v40  ;;  %v272_v49 = vor.u32 %v271_v45, %v267_v42  ;;  %v1520_v57 = vld [vmem:[%s1846_s1 + $0x110] sm:$0xff]   ;;  %v1525_v60 = vld [vmem:[%s1846_s1 + $0x198] sm:$0xff]   ;;  %v1527_v62 = vld [vmem:[%s1846_s1 + $0x1e0] sm:$0xff]  }
  0x23   : >> { %1383 = vmatprep.subr.bf16.mxu1 %v1491_v17  ;;  %v1524_v61 = vld [vmem:[%s1846_s1 + $0x118] sm:$0xff]   ;;  %v1526_v63 = vld [vmem:[%s1846_s1 + $0x160] sm:$0xff]   ;;  %v1531_v2 = vld [vmem:[%s1846_s1 + $0x1e8] sm:$0xff]  }
  0x24   : >> { %410 = vmatprep.mubr.bf16.mxu0 %v279_v48  ;;  %v1529_v0 = vld [vmem:[%s1846_s1 + $0x1a0] sm:$0xff]   ;;  %v1530_v3 = vld [vmem:[%s1846_s1 + $0x168] sm:$0xff]   ;;  %v1535_v6 = vld [vmem:[%s1846_s1 + $0x1f0] sm:$0xff]  }
  0x25   : >> { %1362 = vmatpush3.bf16.msra.mxu0 %v1492_v18  ;;  %v1528_v1 = vld [vmem:[%s1846_s1 + $0x120] sm:$0xff]   ;;  %v1533_v4 = vld [vmem:[%s1846_s1 + $0x1a8] sm:$0xff]   ;;  %v1534_v7 = vld [vmem:[%s1846_s1 + $0x170] sm:$0xff]  }
  0x26   : >> { %1384 = vmatpush3.bf16.msra.mxu1 %v1493_v19  ;;  %1363 = vmatprep.subr.bf16.mxu0 %v1494_v20  ;;  %v1532_v5 = vld [vmem:[%s1846_s1 + $0x128] sm:$0xff]   ;;  %v1537_v8 = vld [vmem:[%s1846_s1 + $0x1b0] sm:$0xff]   ;;  %v1539_v10 = vld [vmem:[%s1846_s1 + $0x1f8] sm:$0xff]  }
  0x27   : >> { %1385 = vmatprep.subr.bf16.mxu1 %v1495_v21  ;;  %v1536_v9 = vld [vmem:[%s1846_s1 + $0x130] sm:$0xff]   ;;  %v1538_v11 = vld [vmem:[%s1846_s1 + $0x178] sm:$0xff]  }
  0x28   : >> { %v1541_v12 = vld [vmem:[%s1846_s1 + $0x1b8] sm:$0xff]   ;;  %v1223_v13 = vld [vmem:[%s1720_s14 + $0x10] sm:$0xff] }
  0x29   : >> { %1364 = vmatpush3.bf16.msra.mxu0 %v1496_v22  ;;  %v1224_v14 = vld [vmem:[%s1720_s14 + $0x18] sm:$0x11]  ;;  %v1258_v15 = vcombine.high %v1223_v13, %v1223_v13  ;;  %s1325_s14 = sshll.u32 %s1578_s21, 3  ;;  %s187_s21 = sadd.s32 1, %s1578_s21  }
  0x2a   : >> { %1386 = vmatpush3.bf16.msra.mxu1 %v1497_v23  ;;  %1365 = vmatprep.subr.bf16.mxu0 %v1498_v24  ;;  %v1307_v16 = vcombine.low %v1223_v13, %v1224_v14  ;;  %v1308_v17 = vcombine.high %v1223_v13, %v1224_v14  ;;  %v1540_v18 = vld [vmem:[%s1846_s1 + $0x138] sm:$0xff]   ;;  %v1257_v24 = vcombine.low %v1223_v13, %v1223_v13  ;;  %s933_s23 = scalar_lea.vmem [#allocation2], %s1325_s14  ;;  %p184_p5 = scmp.ge.s32.totalorder %s187_s21, 8  }
  0x2b   : >> { %1387 = vmatprep.subr.bf16.mxu1 %v1499_v25 }
  0x2c   : >> { %v787_v19 = vshrl.u32 %v1308_v17, 16  ;;  %v789_v20 = vshll.u32 %v1308_v17, 16  ;;  %v780_v21 = vshrl.u32 %v1307_v16, 16  ;;  %v782_v22 = vshll.u32 %v1307_v16, 16 }
  0x2d   : >> { %1366 = vmatpush3.bf16.msra.mxu0 %v1500_v26 }
  0x2e   : >> { %1388 = vmatpush3.bf16.msra.mxu1 %v1501_v27  ;;  %1367 = vmatprep.subr.bf16.mxu0 %v1502_v28  ;;  %v791_v23 = vrot.slane %v789_v20, 1  ;;  %v784_v25 = vrot.slane %v782_v22, 1 }
  0x2f   : >> { %1389 = vmatprep.subr.bf16.mxu1 %v1503_v29 }
  0x30   : >> { %v792_v26 = vor.u32 %v791_v23, %v787_v19  ;;  %v785_v27 = vor.u32 %v784_v25, %v780_v21 }
  0x31   : >> { %1368 = vmatpush3.bf16.msra.mxu0 %v1504_v30 }
  0x32   : >> { %1390 = vmatpush3.bf16.msra.mxu1 %v1505_v31  ;;  %1397 = vmatprep.subr.bf16.mxu0 %v1510_v38 }
  0x33   : >> { %1419 = vmatprep.subr.bf16.mxu1 %v1511_v39 }
  0x34   : >> { %411 = vmatmul.mubr.bf16.vlgmr.msra.gmra.mrb[0].mxu0 %v272_v49 }
  0x35   : >> { %551 = vmatmul.mubr.bf16.vlgmr.msra.gmra.mrb[0].mxu1 %v1204_v37  ;;  %1398 = vmatpush3.bf16.msra.mxu0 %v1512_v46 }
  0x36   : >> { %1420 = vmatpush3.bf16.msra.mxu1 %v1513_v47  ;;  %1399 = vmatprep.subr.bf16.mxu0 %v1514_v51 }
  0x37   : >> { %1421 = vmatprep.subr.bf16.mxu1 %v1515_v50  ;;  %732 = vmatprep.mubr.bf16.mxu0 %v1258_v15 }
  0x38   : >> { %923 = vmatprep.mubr.bf16.mxu1 %v792_v26 }
  0x39   : >> { %1400 = vmatpush3.bf16.msra.mxu0 %v1516_v53 }
  0x3a   : >> { %1422 = vmatpush3.bf16.msra.mxu1 %v1517_v52  ;;  %1401 = vmatprep.subr.bf16.mxu0 %v1518_v55 }
  0x3b   : >> { %1423 = vmatprep.subr.bf16.mxu1 %v1519_v54 }
  0x3d   : >> { %1402 = vmatpush3.bf16.msra.mxu0 %v1520_v57 }
  0x3e   : >> { %1424 = vmatpush3.bf16.msra.mxu1 %v1521_v56  ;;  %1403 = vmatprep.subr.bf16.mxu0 %v1522_v59 }
  0x3f   : >> { %1425 = vmatprep.subr.bf16.mxu1 %v1523_v58 }
  0x41   : >> { %1404 = vmatpush3.bf16.msra.mxu0 %v1524_v61 }
  0x42   : >> { %1426 = vmatpush3.bf16.msra.mxu1 %v1525_v60  ;;  %1405 = vmatprep.subr.bf16.mxu0 %v1526_v63 }
  0x43   : >> { %1427 = vmatprep.subr.bf16.mxu1 %v1527_v62 }
  0x45   : >> { %1406 = vmatpush3.bf16.msra.mxu0 %v1528_v1 }
  0x46   : >> { %1428 = vmatpush3.bf16.msra.mxu1 %v1529_v0  ;;  %1407 = vmatprep.subr.bf16.mxu0 %v1530_v3 }
  0x47   : >> { %1429 = vmatprep.subr.bf16.mxu1 %v1531_v2 }
  0x49   : >> { %1408 = vmatpush3.bf16.msra.mxu0 %v1532_v5 }
  0x4a   : >> { %1430 = vmatpush3.bf16.msra.mxu1 %v1533_v4  ;;  %1409 = vmatprep.subr.bf16.mxu0 %v1534_v7 }
  0x4b   : >> { %1431 = vmatprep.subr.bf16.mxu1 %v1535_v6 }
  0x4d   : >> { %1410 = vmatpush3.bf16.msra.mxu0 %v1536_v9 }
  0x4e   : >> { %1432 = vmatpush3.bf16.msra.mxu1 %v1537_v8  ;;  %1411 = vmatprep.subr.bf16.mxu0 %v1538_v11 }
  0x4f   : >> { %1433 = vmatprep.subr.bf16.mxu1 %v1539_v10 }
  0x51   : >> { %1412 = vmatpush3.bf16.msra.mxu0 %v1540_v18 }
  0x52   : >> { %1434 = vmatpush3.bf16.msra.mxu1 %v1541_v12 }
  0x54   : >> { %733 = vmatmul.mubr.bf16.vlgmr.msra.gmra.mrb[4].mxu0 %v1257_v24 }
  0x55   : >> { %924 = vmatmul.mubr.bf16.vlgmr.msra.gmra.mrb[4].mxu1 %v785_v27 }
 0x107   : >> { %v1369_v33 = vpop.f32.mrb[0].mxu0 }
 0x108   : >> { %v1391_v28 = vpop.f32.mrb[0].mxu1  ;;  %v1370_v34 = vpop.f32.mrb[1].mxu0 }
 0x109   : >> { %v1392_v29 = vpop.f32.mrb[1].mxu1  ;;  %v1371_v35 = vadd.f32 %v1370_v34, %v1369_v33  ;;  %v1372_v36 = vpop.f32.mrb[2].mxu0 }
 0x10a   : >> { %v1393_v30 = vadd.f32 %v1392_v29, %v1391_v28  ;;  %v1394_v31 = vpop.f32.mrb[2].mxu1  ;;  %v1373_v37 = vpop.f32.mrb[3].mxu0 }
 0x10b   : >> { %v1395_v32 = vpop.f32.mrb[3].mxu1 }
 0x10c   : >> { %v553_v38 = vadd.f32 %v1393_v30, %v1371_v35 }
 0x127   : >> { %v1413_v39 = vpop.f32.mrb[4].mxu0 }
 0x128   : >> { %v1435_v40 = vpop.f32.mrb[4].mxu1  ;;  %v1414_v41 = vpop.f32.mrb[5].mxu0 }
 0x129   : >> { %v1415_v42 = vadd.f32 %v1414_v41, %v1413_v39  ;;  %v1436_v43 = vpop.f32.mrb[5].mxu1  ;;  %v1416_v44 = vpop.f32.mrb[6].mxu0  ;;  %186 = sbr.rel (!%p184_p5) target bundleno = 18 (0x12), region = 74 }
 0x12a   : >> { %v1437_v45 = vadd.f32 %v1436_v43, %v1435_v40  ;;  %v1438_v46 = vpop.f32.mrb[6].mxu1  ;;  %v1417_v47 = vpop.f32.mrb[7].mxu0 }
 0x12b   : >> { %v740_v48 = vadd.f32 %v1415_v42, %v553_v38  ;;  %v1439_v49 = vpop.f32.mrb[7].mxu1 }
 0x12d   : >> { %v931_v50 = vadd.f32 %v1437_v45, %v740_v48 }
 0x12f   : >> { %934 = vst [vmem:[%s933_s23] sm:$0xff] %v931_v50 }
 0x136   : > { %v935_v51 = vld [vmem:[#allocation2] sm:$0xff]  ;;  %v936_v52 = vld [vmem:[#allocation2 + $0x8] sm:$0xff]  ;;  %v937_v53 = vld [vmem:[#allocation2 + $0x10] sm:$0xff] }
 0x137   : > { %v943_v54 = vadd.f32 %v936_v52, %v935_v51  ;;  %v938_v55 = vld [vmem:[#allocation2 + $0x18] sm:$0xff]  ;;  %v939_v57 = vld [vmem:[#allocation2 + $0x20] sm:$0xff]  ;;  %v940_v59 = vld [vmem:[#allocation2 + $0x28] sm:$0xff] }
 0x138   : > { %v941_v61 = vld [vmem:[#allocation2 + $0x30] sm:$0xff]  ;;  %v942_v63 = vld [vmem:[#allocation2 + $0x38] sm:$0xff] }
 0x139   : > { %v944_v56 = vadd.f32 %v943_v54, %v937_v53 }
 0x13b   : > { %v945_v58 = vadd.f32 %v944_v56, %v938_v55 }
 0x13d   : > { %v946_v60 = vadd.f32 %v945_v58, %v939_v57 }
 0x13f   : > { %v947_v62 = vadd.f32 %v946_v60, %v940_v59 }
 0x141   : > { %v948_v0 = vadd.f32 %v947_v62, %v941_v61 }
 0x143   : > { %v949_v1 = vadd.f32 %v948_v0, %v942_v63 }
 0x145   : > { %v950_v2 = vrot.slane %v949_v1, 4 }
 0x147   : > { %v951_v3 = vadd.f32 %v950_v2, %v949_v1 }
 0x149   : > { %v952_v4 = vrot.slane %v951_v3, 2 }
 0x14b   : > { %v953_v5 = vadd.f32 %v952_v4, %v951_v3 }
 0x14d   : > { %v954_v6 = vrot.slane %v953_v5, 1 }
 0x14f   : > { %v955_v7 = vadd.f32 %v954_v6, %v953_v5 }
 0x151   : > { %v957_v8 = vmul.f32 0.015625, %v955_v7 }
 0x153   : > { %v958_v9 = vsub.f32 %v935_v51, %v957_v8  ;;  %v959_v10 = vsub.f32 %v936_v52, %v957_v8  ;;  %v960_v11 = vsub.f32 %v937_v53, %v957_v8  ;;  %v961_v12 = vsub.f32 %v938_v55, %v957_v8 }
 0x154   : > { %v962_v13 = vsub.f32 %v939_v57, %v957_v8  ;;  %v963_v17 = vsub.f32 %v940_v59, %v957_v8  ;;  %v964_v20 = vsub.f32 %v941_v61, %v957_v8  ;;  %v965_v23 = vsub.f32 %v942_v63, %v957_v8 }
 0x155   : > { %v966_v14 = vmul.f32 %v958_v9, %v958_v9  ;;  %v967_v15 = vmul.f32 %v959_v10, %v959_v10  ;;  %v968_v16 = vmul.f32 %v960_v11, %v960_v11  ;;  %v969_v18 = vmul.f32 %v961_v12, %v961_v12 }
 0x156   : > { %v970_v21 = vmul.f32 %v962_v13, %v962_v13  ;;  %v971_v24 = vmul.f32 %v963_v17, %v963_v17  ;;  %v972_v26 = vmul.f32 %v964_v20, %v964_v20  ;;  %v973_v28 = vmul.f32 %v965_v23, %v965_v23 }
 0x157   : > { %v974_v19 = vadd.f32 %v967_v15, %v966_v14 }
 0x159   : > { %v975_v22 = vadd.f32 %v974_v19, %v968_v16 }
 0x15b   : > { %v976_v25 = vadd.f32 %v975_v22, %v969_v18 }
 0x15d   : > { %v977_v27 = vadd.f32 %v976_v25, %v970_v21 }
 0x15f   : > { %v978_v29 = vadd.f32 %v977_v27, %v971_v24 }
 0x161   : > { %v979_v30 = vadd.f32 %v978_v29, %v972_v26 }
 0x163   : > { %v980_v31 = vadd.f32 %v979_v30, %v973_v28 }
 0x165   : > { %v981_v32 = vrot.slane %v980_v31, 4 }
 0x167   : > { %v982_v33 = vadd.f32 %v981_v32, %v980_v31 }
 0x169   : > { %v983_v34 = vrot.slane %v982_v33, 2 }
 0x16b   : > { %v984_v35 = vadd.f32 %v983_v34, %v982_v33 }
 0x16d   : > { %v985_v36 = vrot.slane %v984_v35, 1 }
 0x16f   : > { %v986_v37 = vadd.f32 %v985_v36, %v984_v35 }
 0x171   : > { %v987_v38 = vmul.f32 0.015625, %v986_v37 }
 0x173   : > { %v988_v39 = vadd.f32 1e-05, %v987_v38 }
 0x175   : > { %1546 = vrsqrt.f32 %v988_v39 }
 0x17f   : > { %v1547_v40 = vpop.eup %1546 }
 0x180   : > { %v990_v41 = vmul.f32 %v1547_v40, %v958_v9  ;;  %v991_v42 = vmul.f32 %v1547_v40, %v959_v10  ;;  %v992_v43 = vmul.f32 %v1547_v40, %v960_v11  ;;  %v993_v44 = vmul.f32 %v1547_v40, %v961_v12 }
 0x181   : > { %v994_v45 = vmul.f32 %v1547_v40, %v962_v13  ;;  %v995_v46 = vmul.f32 %v1547_v40, %v963_v17  ;;  %v996_v47 = vmul.f32 %v1547_v40, %v964_v20  ;;  %v997_v48 = vmul.f32 %v1547_v40, %v965_v23 }
 0x182   : > { %vm998_vm0 = vcmp.ge.f32.partialorder %v990_v41, 0.0  ;;  %vm999_vm1 = vcmp.ge.f32.partialorder %v991_v42, 0.0  ;;  %v1006_v49 = vmul.f32 0.2, %v990_v41  ;;  %v1007_v50 = vmul.f32 0.2, %v991_v42 }
 0x183   : > { %vm1000_vm2 = vcmp.ge.f32.partialorder %v992_v43, 0.0  ;;  %vm1001_vm3 = vcmp.ge.f32.partialorder %v993_v44, 0.0  ;;  %v1008_v51 = vmul.f32 0.2, %v992_v43  ;;  %v1009_v52 = vmul.f32 0.2, %v993_v44 }
 0x184   : > { %v1014_v53 = vsel %vm998_vm0, %v990_v41, %v1006_v49  ;;  %v1015_v54 = vsel %vm999_vm1, %v991_v42, %v1007_v50  ;;  %vm1002_vm4 = vcmp.ge.f32.partialorder %v994_v45, 0.0  ;;  %vm1003_vm5 = vcmp.ge.f32.partialorder %v995_v46, 0.0 }
 0x185   : > { %v1333_v55 = vpack.c.bf16 %v1015_v54, %v1014_v53  ;;  %v1016_v56 = vsel %vm1000_vm2, %v992_v43, %v1008_v51  ;;  %v1017_v57 = vsel %vm1001_vm3, %v993_v44, %v1009_v52  ;;  %v1010_v58 = vmul.f32 0.2, %v994_v45 }
 0x186   : > { %v1338_v59 = vpack.c.bf16 %v1017_v57, %v1016_v56  ;;  %v1011_v60 = vmul.f32 0.2, %v995_v46  ;;  %vm1004_vm6 = vcmp.ge.f32.partialorder %v996_v47, 0.0  ;;  %vm1005_vm7 = vcmp.ge.f32.partialorder %v997_v48, 0.0 }
 0x187   : > { %1334 = vst [vmem:[%s1616_s17] sm:$0xff] %v1333_v55   ;;  %v1018_v61 = vsel %vm1002_vm4, %v994_v45, %v1010_v58  ;;  %v1012_v62 = vmul.f32 0.2, %v996_v47  ;;  %v1013_v63 = vmul.f32 0.2, %v997_v48 }
 0x188   : > { %1350 = vst [vmem:[%s1616_s17 + $0x8] sm:$0xff] %v1338_v59   ;;  %v1019_v0 = vsel %vm1003_vm5, %v995_v46, %v1011_v60 }
 0x189   : > { %v1343_v1 = vpack.c.bf16 %v1019_v0, %v1018_v61  ;;  %v1020_v2 = vsel %vm1004_vm6, %v996_v47, %v1012_v62  ;;  %v1021_v3 = vsel %vm1005_vm7, %v997_v48, %v1013_v63 }
 0x18a   : > { %v1348_v4 = vpack.c.bf16 %v1021_v3, %v1020_v2 }
 0x18b   : > { %1351 = vst [vmem:[%s1616_s17 + $0x10] sm:$0xff] %v1343_v1  }
 0x18c   : > { %1352 = vst [vmem:[%s1616_s17 + $0x18] sm:$0xff] %v1348_v4  }
 0x18d PF: > { %s12_s11 = sadd.s32 1, %s1574_s11   ;;  %s1848_s9 = smov %s1570_s10 }
 0x18e   : > { %p9_p6 = scmp.ge.s32.totalorder %s12_s11, 4   ;;  %s1849_s10 = smov %s1851_s12 }
 0x190   :  { %11 = sbr.rel (!%p9_p6) target bundleno = 2 (0x2), region = 85 }

// kernel: discriminator_forward.7
= control target key start
LH: loop header
LB: loop body
LE: loop exit
PB: predicated region body
PF: predicated region fallthrough
CT: control target
= control target key end

     0   :  { %s3757_s9 = smov 0   ;;  %s3759_s10 = smov 0   ;;  %s4583_s0 = inlined_call_operand.vmem [shape: bf16[2,5,5,512], index: 0, kind: input, shape index: {}]   ;;  %s4584_s1 = inlined_call_operand.vmem [shape: bf16[4,512,256], index: 1, kind: input, shape index: {}]   ;;  %s4585_s2 = inlined_call_operand.vmem [shape: bf16[2,4,4,256], index: 2, kind: output, shape index: {}]  }
   0x1   :  { %s3761_s11 = smov 0   ;;  %s3763_s12 = smov 0  }
   0x2   :  { %s3765_s13 = smov 0   ;;  %s3767_s14 = smov 0  }
   0x3   :  { %s3769_s15 = smov 0   ;;  %s3771_s16 = smov 0  }
   0x4   :  { %s3773_s17 = smov 0  }
   0x5 LB: > { %s2918_s18 = sadd.s32 4294967295, %s3736_s17   ;;  %s21_s19 = sadd.s32 1, %s3728_s15  ;;  %s3736_s17 = sphi %s3773_s17, %s12_s17   ;;  %s3732_s16 = sphi %s3771_s16, %s4594_s16   ;;  %s3728_s15 = sphi %s3769_s15, %s4593_s15   ;;  %s3724_s14 = sphi %s3767_s14, %s4592_s14   ;;  %s3720_s13 = sphi %s3765_s13, %s4591_s13   ;;  %s3716_s12 = sphi %s3763_s12, %s4590_s12   ;;  %s3712_s11 = sphi %s3761_s11, %s4589_s11   ;;  %s3708_s10 = sphi %s3759_s10, %s4588_s10   ;;  %s3704_s9 = sphi %s3757_s9, %s4587_s9  }
   0x6   : > { %p22_p0 = scmp.ge.s32.totalorder %s21_s19, 2  ;;  %s24_s20 = sadd.s32 1, %s3732_s16 }
   0x7   : > { %s57_s21 = sadd.s32 1, %s3716_s12  ;;  %p64_p1 = scmp.ne.s32.totalorder %s3716_s12, %s3712_s11 }
   0x8   : > { %s4596_s19 = smov (%p22_p0, %s21_s19), 0  ;;  %s4598_s20 = smov (!%p22_p0, %s24_s20), %s3732_s16 }
   0x9   : > { %s54_s22 = ssub.s32 %s3728_s15, %s4596_s19  ;;  %p65_p2 = scmp.eq.s32.totalorder %s3736_s17, 0 }
   0xa   : > { %p26_p3 = scmp.ge.s32.totalorder %s4598_s20, 2  ;;  %p55_p4 = scmp.eq.s32.totalorder %s54_s22, 0 }
   0xb   : > { %p66_p5 = por %p65_p2, %p64_p1  ;;  %s85_s23 = sadd.s32 1, %s3708_s10 }
   0xc   : > { %s4600_s20 = smov (%p26_p3, %s4598_s20), 0  ;;  %p95_p6 = scmp.ne.s32.totalorder %s3708_s10, %s3704_s9 }
   0xd   : > { %s3818_s24 = scalar_select %p55_p4, %s3716_s12, %s57_s21  }
   0xe   : > { %s80_s25 = ssub.s32 %s3732_s16, %s4600_s20  ;;  %p96_p7 = scmp.eq.s32.totalorder %s2918_s18, 3 }
   0xf   : > { %s82_s26 = sor.u32 %s80_s25, %s54_s22  ;;  %p2921_p10 = scmp.ge.s32.totalorder %s3736_s17, 4 }
  0x10   : > { %p83_p8 = scmp.eq.s32.totalorder %s82_s26, 0  ;;  %p3824_p9 = por %p96_p7, %p95_p6 }
  0x11   : > { %118 = sbr.rel (%p2921_p10) target bundleno = 198 (0xc6), region = 16 }
  0x12   : > { %s3829_s28 = scalar_select %p83_p8, %s3708_s10, %s85_s23  }
  0x18   : > { %129 = sbr.rel (!%p66_p5) target bundleno = 198 (0xc6), region = 24  ;;  %s131_s29 = sand.u32 (%p66_p5), 1, %s3716_s12  }
  0x19   : > { %s2923_s30 = sshll.u32 (%p66_p5), %s3728_s15, 2  ;;  %s2922_s3 = sshll.u32 (%p66_p5), %s131_s29, 10 }
  0x1a   : > { %s3837_s6 = scalar_lea.vmem (%p66_p5), %s4584_s1, %s2923_s30  ;;  %s3841_s7 = scalar_lea.vmem (%p66_p5), [#allocation3], %s2922_s3 }
  0x1b   : > { %v151_v0 = vld [vmem:[%s3837_s6] sm:$0xf] (%p66_p5)  ;;  %v153_v1 = vld [vmem:[%s3837_s6 + $0x8] sm:$0xf] (%p66_p5)  ;;  %v155_v2 = vld [vmem:[%s3837_s6 + $0x10] sm:$0xf] (%p66_p5) }
  0x1c   : > { %152 = vst [vmem:[%s3841_s7] sm:$0xf] (%p66_p5), %v151_v0  ;;  %154 = vst [vmem:[%s3841_s7 + $0x4] sm:$0xf] (%p66_p5), %v153_v1  ;;  %v157_v3 = vld [vmem:[%s3837_s6 + $0x18] sm:$0xf] (%p66_p5) }
  0x1d   : > { %v159_v4 = vld [vmem:[%s3837_s6 + $0x20] sm:$0xf] (%p66_p5)  ;;  %156 = vst [vmem:[%s3841_s7 + $0x8] sm:$0xf] (%p66_p5), %v155_v2  ;;  %158 = vst [vmem:[%s3841_s7 + $0xc] sm:$0xf] (%p66_p5), %v157_v3 }
  0x1e   : > { %160 = vst [vmem:[%s3841_s7 + $0x10] sm:$0xf] (%p66_p5), %v159_v4  ;;  %v161_v5 = vld [vmem:[%s3837_s6 + $0x28] sm:$0xf] (%p66_p5)  ;;  %v163_v6 = vld [vmem:[%s3837_s6 + $0x30] sm:$0xf] (%p66_p5) }
  0x1f   : > { %v165_v7 = vld [vmem:[%s3837_s6 + $0x38] sm:$0xf]  ;;  %162 = vst [vmem:[%s3841_s7 + $0x14] sm:$0xf] %v161_v5  ;;  %164 = vst [vmem:[%s3841_s7 + $0x18] sm:$0xf] %v163_v6 }
  0x20   : > { %166 = vst [vmem:[%s3841_s7 + $0x1c] sm:$0xf] %v165_v7  ;;  %v167_v8 = vld [vmem:[%s3837_s6 + $0x40] sm:$0xf]  ;;  %v169_v9 = vld [vmem:[%s3837_s6 + $0x48] sm:$0xf] }
  0x21   : > { %v171_v10 = vld [vmem:[%s3837_s6 + $0x50] sm:$0xf]  ;;  %168 = vst [vmem:[%s3841_s7 + $0x20] sm:$0xf] %v167_v8  ;;  %170 = vst [vmem:[%s3841_s7 + $0x24] sm:$0xf] %v169_v9 }
  0x22   : > { %172 = vst [vmem:[%s3841_s7 + $0x28] sm:$0xf] %v171_v10  ;;  %v173_v11 = vld [vmem:[%s3837_s6 + $0x58] sm:$0xf]  ;;  %v175_v12 = vld [vmem:[%s3837_s6 + $0x60] sm:$0xf] }
  0x23   : > { %v177_v13 = vld [vmem:[%s3837_s6 + $0x68] sm:$0xf]  ;;  %174 = vst [vmem:[%s3841_s7 + $0x2c] sm:$0xf] %v173_v11  ;;  %176 = vst [vmem:[%s3841_s7 + $0x30] sm:$0xf] %v175_v12 }
  0x24   : > { %178 = vst [vmem:[%s3841_s7 + $0x34] sm:$0xf] %v177_v13  ;;  %v179_v14 = vld [vmem:[%s3837_s6 + $0x70] sm:$0xf]  ;;  %v181_v15 = vld [vmem:[%s3837_s6 + $0x78] sm:$0xf] }
  0x25   : > { %v183_v16 = vld [vmem:[%s3837_s6 + $0x80] sm:$0xf]  ;;  %180 = vst [vmem:[%s3841_s7 + $0x38] sm:$0xf] %v179_v14  ;;  %182 = vst [vmem:[%s3841_s7 + $0x3c] sm:$0xf] %v181_v15 }
  0x26   : > { %184 = vst [vmem:[%s3841_s7 + $0x40] sm:$0xf] %v183_v16  ;;  %v185_v17 = vld [vmem:[%s3837_s6 + $0x88] sm:$0xf]  ;;  %v187_v18 = vld [vmem:[%s3837_s6 + $0x90] sm:$0xf] }
  0x27   : > { %v189_v19 = vld [vmem:[%s3837_s6 + $0x98] sm:$0xf]  ;;  %186 = vst [vmem:[%s3841_s7 + $0x44] sm:$0xf] %v185_v17  ;;  %188 = vst [vmem:[%s3841_s7 + $0x48] sm:$0xf] %v187_v18 }
  0x28   : > { %190 = vst [vmem:[%s3841_s7 + $0x4c] sm:$0xf] %v189_v19  ;;  %v191_v20 = vld [vmem:[%s3837_s6 + $0xa0] sm:$0xf]  ;;  %v193_v21 = vld [vmem:[%s3837_s6 + $0xa8] sm:$0xf] }
  0x29   : > { %v195_v22 = vld [vmem:[%s3837_s6 + $0xb0] sm:$0xf]  ;;  %192 = vst [vmem:[%s3841_s7 + $0x50] sm:$0xf] %v191_v20  ;;  %194 = vst [vmem:[%s3841_s7 + $0x54] sm:$0xf] %v193_v21 }
  0x2a   : > { %196 = vst [vmem:[%s3841_s7 + $0x58] sm:$0xf] %v195_v22  ;;  %v197_v23 = vld [vmem:[%s3837_s6 + $0xb8] sm:$0xf]  ;;  %v199_v24 = vld [vmem:[%s3837_s6 + $0xc0] sm:$0xf] }
  0x2b   : > { %v201_v25 = vld [vmem:[%s3837_s6 + $0xc8] sm:$0xf]  ;;  %198 = vst [vmem:[%s3841_s7 + $0x5c] sm:$0xf] %v197_v23  ;;  %200 = vst [vmem:[%s3841_s7 + $0x60] sm:$0xf] %v199_v24 }
  0x2c   : > { %202 = vst [vmem:[%s3841_s7 + $0x64] sm:$0xf] %v201_v25  ;;  %v203_v26 = vld [vmem:[%s3837_s6 + $0xd0] sm:$0xf]  ;;  %v205_v27 = vld [vmem:[%s3837_s6 + $0xd8] sm:$0xf] }
  0x2d   : > { %v207_v28 = vld [vmem:[%s3837_s6 + $0xe0] sm:$0xf]  ;;  %204 = vst [vmem:[%s3841_s7 + $0x68] sm:$0xf] %v203_v26  ;;  %206 = vst [vmem:[%s3841_s7 + $0x6c] sm:$0xf] %v205_v27 }
  0x2e   : > { %208 = vst [vmem:[%s3841_s7 + $0x70] sm:$0xf] %v207_v28  ;;  %v209_v29 = vld [vmem:[%s3837_s6 + $0xe8] sm:$0xf]  ;;  %v211_v30 = vld [vmem:[%s3837_s6 + $0xf0] sm:$0xf] }
  0x2f   : > { %v213_v31 = vld [vmem:[%s3837_s6 + $0xf8] sm:$0xf]  ;;  %210 = vst [vmem:[%s3841_s7 + $0x74] sm:$0xf] %v209_v29  ;;  %212 = vst [vmem:[%s3841_s7 + $0x78] sm:$0xf] %v211_v30 }
  0x30   : > { %214 = vst [vmem:[%s3841_s7 + $0x7c] sm:$0xf] %v213_v31  ;;  %v215_v32 = vld [vmem:[%s3837_s6 + $0x100] sm:$0xf]  ;;  %v217_v33 = vld [vmem:[%s3837_s6 + $0x108] sm:$0xf] }
  0x31   : > { %v219_v34 = vld [vmem:[%s3837_s6 + $0x110] sm:$0xf]  ;;  %216 = vst [vmem:[%s3841_s7 + $0x80] sm:$0xf] %v215_v32  ;;  %218 = vst [vmem:[%s3841_s7 + $0x84] sm:$0xf] %v217_v33 }
  0x32   : > { %220 = vst [vmem:[%s3841_s7 + $0x88] sm:$0xf] %v219_v34  ;;  %v221_v35 = vld [vmem:[%s3837_s6 + $0x118] sm:$0xf]  ;;  %v223_v36 = vld [vmem:[%s3837_s6 + $0x120] sm:$0xf] }
  0x33   : > { %v225_v37 = vld [vmem:[%s3837_s6 + $0x128] sm:$0xf]  ;;  %222 = vst [vmem:[%s3841_s7 + $0x8c] sm:$0xf] %v221_v35  ;;  %224 = vst [vmem:[%s3841_s7 + $0x90] sm:$0xf] %v223_v36 }
  0x34   : > { %226 = vst [vmem:[%s3841_s7 + $0x94] sm:$0xf] %v225_v37  ;;  %v227_v38 = vld [vmem:[%s3837_s6 + $0x130] sm:$0xf]  ;;  %v229_v39 = vld [vmem:[%s3837_s6 + $0x138] sm:$0xf] }
  0x35   : > { %v231_v40 = vld [vmem:[%s3837_s6 + $0x140] sm:$0xf]  ;;  %228 = vst [vmem:[%s3841_s7 + $0x98] sm:$0xf] %v227_v38  ;;  %230 = vst [vmem:[%s3841_s7 + $0x9c] sm:$0xf] %v229_v39 }
  0x36   : > { %232 = vst [vmem:[%s3841_s7 + $0xa0] sm:$0xf] %v231_v40  ;;  %v233_v41 = vld [vmem:[%s3837_s6 + $0x148] sm:$0xf]  ;;  %v235_v42 = vld [vmem:[%s3837_s6 + $0x150] sm:$0xf] }
  0x37   : > { %v237_v43 = vld [vmem:[%s3837_s6 + $0x158] sm:$0xf]  ;;  %234 = vst [vmem:[%s3841_s7 + $0xa4] sm:$0xf] %v233_v41  ;;  %236 = vst [vmem:[%s3841_s7 + $0xa8] sm:$0xf] %v235_v42 }
  0x38   : > { %238 = vst [vmem:[%s3841_s7 + $0xac] sm:$0xf] %v237_v43  ;;  %v239_v44 = vld [vmem:[%s3837_s6 + $0x160] sm:$0xf]  ;;  %v241_v45 = vld [vmem:[%s3837_s6 + $0x168] sm:$0xf] }
  0x39   : > { %v243_v46 = vld [vmem:[%s3837_s6 + $0x170] sm:$0xf]  ;;  %240 = vst [vmem:[%s3841_s7 + $0xb0] sm:$0xf] %v239_v44  ;;  %242 = vst [vmem:[%s3841_s7 + $0xb4] sm:$0xf] %v241_v45 }
  0x3a   : > { %244 = vst [vmem:[%s3841_s7 + $0xb8] sm:$0xf] %v243_v46  ;;  %v245_v47 = vld [vmem:[%s3837_s6 + $0x178] sm:$0xf]  ;;  %v247_v48 = vld [vmem:[%s3837_s6 + $0x180] sm:$0xf] }
  0x3b   : > { %v249_v49 = vld [vmem:[%s3837_s6 + $0x188] sm:$0xf]  ;;  %246 = vst [vmem:[%s3841_s7 + $0xbc] sm:$0xf] %v245_v47  ;;  %248 = vst [vmem:[%s3841_s7 + $0xc0] sm:$0xf] %v247_v48 }
  0x3c   : > { %250 = vst [vmem:[%s3841_s7 + $0xc4] sm:$0xf] %v249_v49  ;;  %v251_v50 = vld [vmem:[%s3837_s6 + $0x190] sm:$0xf]  ;;  %v253_v51 = vld [vmem:[%s3837_s6 + $0x198] sm:$0xf] }
  0x3d   : > { %v255_v52 = vld [vmem:[%s3837_s6 + $0x1a0] sm:$0xf]  ;;  %252 = vst [vmem:[%s3841_s7 + $0xc8] sm:$0xf] %v251_v50  ;;  %254 = vst [vmem:[%s3841_s7 + $0xcc] sm:$0xf] %v253_v51 }
  0x3e   : > { %256 = vst [vmem:[%s3841_s7 + $0xd0] sm:$0xf] %v255_v52  ;;  %v257_v53 = vld [vmem:[%s3837_s6 + $0x1a8] sm:$0xf]  ;;  %v259_v54 = vld [vmem:[%s3837_s6 + $0x1b0] sm:$0xf] }
  0x3f   : > { %v261_v55 = vld [vmem:[%s3837_s6 + $0x1b8] sm:$0xf]  ;;  %258 = vst [vmem:[%s3841_s7 + $0xd4] sm:$0xf] %v257_v53  ;;  %260 = vst [vmem:[%s3841_s7 + $0xd8] sm:$0xf] %v259_v54 }
  0x40   : > { %262 = vst [vmem:[%s3841_s7 + $0xdc] sm:$0xf] %v261_v55  ;;  %v263_v56 = vld [vmem:[%s3837_s6 + $0x1c0] sm:$0xf]  ;;  %v265_v57 = vld [vmem:[%s3837_s6 + $0x1c8] sm:$0xf] }
  0x41   : > { %v267_v58 = vld [vmem:[%s3837_s6 + $0x1d0] sm:$0xf]  ;;  %264 = vst [vmem:[%s3841_s7 + $0xe0] sm:$0xf] %v263_v56  ;;  %266 = vst [vmem:[%s3841_s7 + $0xe4] sm:$0xf] %v265_v57 }
  0x42   : > { %268 = vst [vmem:[%s3841_s7 + $0xe8] sm:$0xf] %v267_v58  ;;  %v269_v59 = vld [vmem:[%s3837_s6 + $0x1d8] sm:$0xf]  ;;  %v271_v60 = vld [vmem:[%s3837_s6 + $0x1e0] sm:$0xf] }
  0x43   : > { %v273_v61 = vld [vmem:[%s3837_s6 + $0x1e8] sm:$0xf]  ;;  %270 = vst [vmem:[%s3841_s7 + $0xec] sm:$0xf] %v269_v59  ;;  %272 = vst [vmem:[%s3841_s7 + $0xf0] sm:$0xf] %v271_v60 }
  0x44   : > { %274 = vst [vmem:[%s3841_s7 + $0xf4] sm:$0xf] %v273_v61  ;;  %v275_v62 = vld [vmem:[%s3837_s6 + $0x1f0] sm:$0xf]  ;;  %v277_v63 = vld [vmem:[%s3837_s6 + $0x1f8] sm:$0xf] }
  0x45   : > { %v279_v0 = vld [vmem:[%s3837_s6 + $0x200] sm:$0xf]  ;;  %276 = vst [vmem:[%s3841_s7 + $0xf8] sm:$0xf] %v275_v62  ;;  %278 = vst [vmem:[%s3841_s7 + $0xfc] sm:$0xf] %v277_v63 }
  0x46   : > { %280 = vst [vmem:[%s3841_s7 + $0x100] sm:$0xf] %v279_v0  ;;  %v281_v1 = vld [vmem:[%s3837_s6 + $0x208] sm:$0xf]  ;;  %v283_v2 = vld [vmem:[%s3837_s6 + $0x210] sm:$0xf] }
  0x47   : > { %v285_v3 = vld [vmem:[%s3837_s6 + $0x218] sm:$0xf]  ;;  %282 = vst [vmem:[%s3841_s7 + $0x104] sm:$0xf] %v281_v1  ;;  %284 = vst [vmem:[%s3841_s7 + $0x108] sm:$0xf] %v283_v2 }
  0x48   : > { %286 = vst [vmem:[%s3841_s7 + $0x10c] sm:$0xf] %v285_v3  ;;  %v287_v4 = vld [vmem:[%s3837_s6 + $0x220] sm:$0xf]  ;;  %v289_v5 = vld [vmem:[%s3837_s6 + $0x228] sm:$0xf] }
  0x49   : > { %v291_v6 = vld [vmem:[%s3837_s6 + $0x230] sm:$0xf]  ;;  %288 = vst [vmem:[%s3841_s7 + $0x110] sm:$0xf] %v287_v4  ;;  %290 = vst [vmem:[%s3841_s7 + $0x114] sm:$0xf] %v289_v5 }
  0x4a   : > { %292 = vst [vmem:[%s3841_s7 + $0x118] sm:$0xf] %v291_v6  ;;  %v293_v7 = vld [vmem:[%s3837_s6 + $0x238] sm:$0xf]  ;;  %v295_v8 = vld [vmem:[%s3837_s6 + $0x240] sm:$0xf] }
  0x4b   : > { %v297_v9 = vld [vmem:[%s3837_s6 + $0x248] sm:$0xf]  ;;  %294 = vst [vmem:[%s3841_s7 + $0x11c] sm:$0xf] %v293_v7  ;;  %296 = vst [vmem:[%s3841_s7 + $0x120] sm:$0xf] %v295_v8 }
  0x4c   : > { %298 = vst [vmem:[%s3841_s7 + $0x124] sm:$0xf] %v297_v9  ;;  %v299_v10 = vld [vmem:[%s3837_s6 + $0x250] sm:$0xf]  ;;  %v301_v11 = vld [vmem:[%s3837_s6 + $0x258] sm:$0xf] }
  0x4d   : > { %v303_v12 = vld [vmem:[%s3837_s6 + $0x260] sm:$0xf]  ;;  %300 = vst [vmem:[%s3841_s7 + $0x128] sm:$0xf] %v299_v10  ;;  %302 = vst [vmem:[%s3841_s7 + $0x12c] sm:$0xf] %v301_v11 }
  0x4e   : > { %304 = vst [vmem:[%s3841_s7 + $0x130] sm:$0xf] %v303_v12  ;;  %v305_v13 = vld [vmem:[%s3837_s6 + $0x268] sm:$0xf]  ;;  %v307_v14 = vld [vmem:[%s3837_s6 + $0x270] sm:$0xf] }
  0x4f   : > { %v309_v15 = vld [vmem:[%s3837_s6 + $0x278] sm:$0xf]  ;;  %306 = vst [vmem:[%s3841_s7 + $0x134] sm:$0xf] %v305_v13  ;;  %308 = vst [vmem:[%s3841_s7 + $0x138] sm:$0xf] %v307_v14 }
  0x50   : > { %310 = vst [vmem:[%s3841_s7 + $0x13c] sm:$0xf] %v309_v15  ;;  %v311_v16 = vld [vmem:[%s3837_s6 + $0x280] sm:$0xf]  ;;  %v313_v17 = vld [vmem:[%s3837_s6 + $0x288] sm:$0xf] }
  0x51   : > { %v315_v18 = vld [vmem:[%s3837_s6 + $0x290] sm:$0xf]  ;;  %312 = vst [vmem:[%s3841_s7 + $0x140] sm:$0xf] %v311_v16  ;;  %314 = vst [vmem:[%s3841_s7 + $0x144] sm:$0xf] %v313_v17 }
  0x52   : > { %316 = vst [vmem:[%s3841_s7 + $0x148] sm:$0xf] %v315_v18  ;;  %v317_v19 = vld [vmem:[%s3837_s6 + $0x298] sm:$0xf]  ;;  %v319_v20 = vld [vmem:[%s3837_s6 + $0x2a0] sm:$0xf] }
  0x53   : > { %v321_v21 = vld [vmem:[%s3837_s6 + $0x2a8] sm:$0xf]  ;;  %318 = vst [vmem:[%s3841_s7 + $0x14c] sm:$0xf] %v317_v19  ;;  %320 = vst [vmem:[%s3841_s7 + $0x150] sm:$0xf] %v319_v20 }
  0x54   : > { %322 = vst [vmem:[%s3841_s7 + $0x154] sm:$0xf] %v321_v21  ;;  %v323_v22 = vld [vmem:[%s3837_s6 + $0x2b0] sm:$0xf]  ;;  %v325_v23 = vld [vmem:[%s3837_s6 + $0x2b8] sm:$0xf] }
  0x55   : > { %v327_v24 = vld [vmem:[%s3837_s6 + $0x2c0] sm:$0xf]  ;;  %324 = vst [vmem:[%s3841_s7 + $0x158] sm:$0xf] %v323_v22  ;;  %326 = vst [vmem:[%s3841_s7 + $0x15c] sm:$0xf] %v325_v23 }
  0x56   : > { %328 = vst [vmem:[%s3841_s7 + $0x160] sm:$0xf] %v327_v24  ;;  %v329_v25 = vld [vmem:[%s3837_s6 + $0x2c8] sm:$0xf]  ;;  %v331_v26 = vld [vmem:[%s3837_s6 + $0x2d0] sm:$0xf] }
  0x57   : > { %v333_v27 = vld [vmem:[%s3837_s6 + $0x2d8] sm:$0xf]  ;;  %330 = vst [vmem:[%s3841_s7 + $0x164] sm:$0xf] %v329_v25  ;;  %332 = vst [vmem:[%s3841_s7 + $0x168] sm:$0xf] %v331_v26 }
  0x58   : > { %334 = vst [vmem:[%s3841_s7 + $0x16c] sm:$0xf] %v333_v27  ;;  %v335_v28 = vld [vmem:[%s3837_s6 + $0x2e0] sm:$0xf]  ;;  %v337_v29 = vld [vmem:[%s3837_s6 + $0x2e8] sm:$0xf] }
  0x59   : > { %v339_v30 = vld [vmem:[%s3837_s6 + $0x2f0] sm:$0xf]  ;;  %336 = vst [vmem:[%s3841_s7 + $0x170] sm:$0xf] %v335_v28  ;;  %338 = vst [vmem:[%s3841_s7 + $0x174] sm:$0xf] %v337_v29 }
  0x5a   : > { %340 = vst [vmem:[%s3841_s7 + $0x178] sm:$0xf] %v339_v30  ;;  %v341_v31 = vld [vmem:[%s3837_s6 + $0x2f8] sm:$0xf]  ;;  %v343_v32 = vld [vmem:[%s3837_s6 + $0x300] sm:$0xf] }
  0x5b   : > { %v345_v33 = vld [vmem:[%s3837_s6 + $0x308] sm:$0xf]  ;;  %342 = vst [vmem:[%s3841_s7 + $0x17c] sm:$0xf] %v341_v31  ;;  %344 = vst [vmem:[%s3841_s7 + $0x180] sm:$0xf] %v343_v32 }
  0x5c   : > { %346 = vst [vmem:[%s3841_s7 + $0x184] sm:$0xf] %v345_v33  ;;  %v347_v34 = vld [vmem:[%s3837_s6 + $0x310] sm:$0xf]  ;;  %v349_v35 = vld [vmem:[%s3837_s6 + $0x318] sm:$0xf] }
  0x5d   : > { %v351_v36 = vld [vmem:[%s3837_s6 + $0x320] sm:$0xf]  ;;  %348 = vst [vmem:[%s3841_s7 + $0x188] sm:$0xf] %v347_v34  ;;  %350 = vst [vmem:[%s3841_s7 + $0x18c] sm:$0xf] %v349_v35 }
  0x5e   : > { %352 = vst [vmem:[%s3841_s7 + $0x190] sm:$0xf] %v351_v36  ;;  %v353_v37 = vld [vmem:[%s3837_s6 + $0x328] sm:$0xf]  ;;  %v355_v38 = vld [vmem:[%s3837_s6 + $0x330] sm:$0xf] }
  0x5f   : > { %v357_v39 = vld [vmem:[%s3837_s6 + $0x338] sm:$0xf]  ;;  %354 = vst [vmem:[%s3841_s7 + $0x194] sm:$0xf] %v353_v37  ;;  %356 = vst [vmem:[%s3841_s7 + $0x198] sm:$0xf] %v355_v38 }
  0x60   : > { %358 = vst [vmem:[%s3841_s7 + $0x19c] sm:$0xf] %v357_v39  ;;  %v359_v40 = vld [vmem:[%s3837_s6 + $0x340] sm:$0xf]  ;;  %v361_v41 = vld [vmem:[%s3837_s6 + $0x348] sm:$0xf] }
  0x61   : > { %v363_v42 = vld [vmem:[%s3837_s6 + $0x350] sm:$0xf]  ;;  %360 = vst [vmem:[%s3841_s7 + $0x1a0] sm:$0xf] %v359_v40  ;;  %362 = vst [vmem:[%s3841_s7 + $0x1a4] sm:$0xf] %v361_v41 }
  0x62   : > { %364 = vst [vmem:[%s3841_s7 + $0x1a8] sm:$0xf] %v363_v42  ;;  %v365_v43 = vld [vmem:[%s3837_s6 + $0x358] sm:$0xf]  ;;  %v367_v44 = vld [vmem:[%s3837_s6 + $0x360] sm:$0xf] }
  0x63   : > { %v369_v45 = vld [vmem:[%s3837_s6 + $0x368] sm:$0xf]  ;;  %366 = vst [vmem:[%s3841_s7 + $0x1ac] sm:$0xf] %v365_v43  ;;  %368 = vst [vmem:[%s3841_s7 + $0x1b0] sm:$0xf] %v367_v44 }
  0x64   : > { %370 = vst [vmem:[%s3841_s7 + $0x1b4] sm:$0xf] %v369_v45  ;;  %v371_v46 = vld [vmem:[%s3837_s6 + $0x370] sm:$0xf]  ;;  %v373_v47 = vld [vmem:[%s3837_s6 + $0x378] sm:$0xf] }
  0x65   : > { %v375_v48 = vld [vmem:[%s3837_s6 + $0x380] sm:$0xf]  ;;  %372 = vst [vmem:[%s3841_s7 + $0x1b8] sm:$0xf] %v371_v46  ;;  %374 = vst [vmem:[%s3841_s7 + $0x1bc] sm:$0xf] %v373_v47 }
  0x66   : > { %376 = vst [vmem:[%s3841_s7 + $0x1c0] sm:$0xf] %v375_v48  ;;  %v377_v49 = vld [vmem:[%s3837_s6 + $0x388] sm:$0xf]  ;;  %v379_v50 = vld [vmem:[%s3837_s6 + $0x390] sm:$0xf] }
  0x67   : > { %v381_v51 = vld [vmem:[%s3837_s6 + $0x398] sm:$0xf]  ;;  %378 = vst [vmem:[%s3841_s7 + $0x1c4] sm:$0xf] %v377_v49  ;;  %380 = vst [vmem:[%s3841_s7 + $0x1c8] sm:$0xf] %v379_v50 }
  0x68   : > { %382 = vst [vmem:[%s3841_s7 + $0x1cc] sm:$0xf] %v381_v51  ;;  %v383_v52 = vld [vmem:[%s3837_s6 + $0x3a0] sm:$0xf]  ;;  %v385_v53 = vld [vmem:[%s3837_s6 + $0x3a8] sm:$0xf] }
  0x69   : > { %v387_v54 = vld [vmem:[%s3837_s6 + $0x3b0] sm:$0xf]  ;;  %384 = vst [vmem:[%s3841_s7 + $0x1d0] sm:$0xf] %v383_v52  ;;  %386 = vst [vmem:[%s3841_s7 + $0x1d4] sm:$0xf] %v385_v53 }
  0x6a   : > { %388 = vst [vmem:[%s3841_s7 + $0x1d8] sm:$0xf] %v387_v54  ;;  %v389_v55 = vld [vmem:[%s3837_s6 + $0x3b8] sm:$0xf]  ;;  %v391_v56 = vld [vmem:[%s3837_s6 + $0x3c0] sm:$0xf] }
  0x6b   : > { %v393_v57 = vld [vmem:[%s3837_s6 + $0x3c8] sm:$0xf]  ;;  %390 = vst [vmem:[%s3841_s7 + $0x1dc] sm:$0xf] %v389_v55  ;;  %392 = vst [vmem:[%s3841_s7 + $0x1e0] sm:$0xf] %v391_v56 }
  0x6c   : > { %394 = vst [vmem:[%s3841_s7 + $0x1e4] sm:$0xf] %v393_v57  ;;  %v395_v58 = vld [vmem:[%s3837_s6 + $0x3d0] sm:$0xf]  ;;  %v397_v59 = vld [vmem:[%s3837_s6 + $0x3d8] sm:$0xf] }
  0x6d   : > { %v399_v60 = vld [vmem:[%s3837_s6 + $0x3e0] sm:$0xf]  ;;  %396 = vst [vmem:[%s3841_s7 + $0x1e8] sm:$0xf] %v395_v58  ;;  %398 = vst [vmem:[%s3841_s7 + $0x1ec] sm:$0xf] %v397_v59 }
  0x6e   : > { %400 = vst [vmem:[%s3841_s7 + $0x1f0] sm:$0xf] %v399_v60  ;;  %v401_v61 = vld [vmem:[%s3837_s6 + $0x3e8] sm:$0xf]  ;;  %v403_v62 = vld [vmem:[%s3837_s6 + $0x3f0] sm:$0xf] }
  0x6f   : > { %v405_v63 = vld [vmem:[%s3837_s6 + $0x3f8] sm:$0xf]  ;;  %402 = vst [vmem:[%s3841_s7 + $0x1f4] sm:$0xf] %v401_v61  ;;  %404 = vst [vmem:[%s3841_s7 + $0x1f8] sm:$0xf] %v403_v62 }
  0x70   : > { %406 = vst [vmem:[%s3841_s7 + $0x1fc] sm:$0xf] %v405_v63  ;;  %v407_v0 = vld [vmem:[%s3837_s6 + $0x400] sm:$0xf]  ;;  %v409_v1 = vld [vmem:[%s3837_s6 + $0x408] sm:$0xf] }
  0x71   : > { %v411_v2 = vld [vmem:[%s3837_s6 + $0x410] sm:$0xf]  ;;  %408 = vst [vmem:[%s3841_s7 + $0x200] sm:$0xf] %v407_v0  ;;  %410 = vst [vmem:[%s3841_s7 + $0x204] sm:$0xf] %v409_v1 }
  0x72   : > { %412 = vst [vmem:[%s3841_s7 + $0x208] sm:$0xf] %v411_v2  ;;  %v413_v3 = vld [vmem:[%s3837_s6 + $0x418] sm:$0xf]  ;;  %v415_v4 = vld [vmem:[%s3837_s6 + $0x420] sm:$0xf] }
  0x73   : > { %v417_v5 = vld [vmem:[%s3837_s6 + $0x428] sm:$0xf]  ;;  %414 = vst [vmem:[%s3841_s7 + $0x20c] sm:$0xf] %v413_v3  ;;  %416 = vst [vmem:[%s3841_s7 + $0x210] sm:$0xf] %v415_v4 }
  0x74   : > { %418 = vst [vmem:[%s3841_s7 + $0x214] sm:$0xf] %v417_v5  ;;  %v419_v6 = vld [vmem:[%s3837_s6 + $0x430] sm:$0xf]  ;;  %v421_v7 = vld [vmem:[%s3837_s6 + $0x438] sm:$0xf] }
  0x75   : > { %v423_v8 = vld [vmem:[%s3837_s6 + $0x440] sm:$0xf]  ;;  %420 = vst [vmem:[%s3841_s7 + $0x218] sm:$0xf] %v419_v6  ;;  %422 = vst [vmem:[%s3841_s7 + $0x21c] sm:$0xf] %v421_v7 }
  0x76   : > { %424 = vst [vmem:[%s3841_s7 + $0x220] sm:$0xf] %v423_v8  ;;  %v425_v9 = vld [vmem:[%s3837_s6 + $0x448] sm:$0xf]  ;;  %v427_v10 = vld [vmem:[%s3837_s6 + $0x450] sm:$0xf] }
  0x77   : > { %v429_v11 = vld [vmem:[%s3837_s6 + $0x458] sm:$0xf]  ;;  %426 = vst [vmem:[%s3841_s7 + $0x224] sm:$0xf] %v425_v9  ;;  %428 = vst [vmem:[%s3841_s7 + $0x228] sm:$0xf] %v427_v10 }
  0x78   : > { %430 = vst [vmem:[%s3841_s7 + $0x22c] sm:$0xf] %v429_v11  ;;  %v431_v12 = vld [vmem:[%s3837_s6 + $0x460] sm:$0xf]  ;;  %v433_v13 = vld [vmem:[%s3837_s6 + $0x468] sm:$0xf] }
  0x79   : > { %v435_v14 = vld [vmem:[%s3837_s6 + $0x470] sm:$0xf]  ;;  %432 = vst [vmem:[%s3841_s7 + $0x230] sm:$0xf] %v431_v12  ;;  %434 = vst [vmem:[%s3841_s7 + $0x234] sm:$0xf] %v433_v13 }
  0x7a   : > { %436 = vst [vmem:[%s3841_s7 + $0x238] sm:$0xf] %v435_v14  ;;  %v437_v15 = vld [vmem:[%s3837_s6 + $0x478] sm:$0xf]  ;;  %v439_v16 = vld [vmem:[%s3837_s6 + $0x480] sm:$0xf] }
  0x7b   : > { %v441_v17 = vld [vmem:[%s3837_s6 + $0x488] sm:$0xf]  ;;  %438 = vst [vmem:[%s3841_s7 + $0x23c] sm:$0xf] %v437_v15  ;;  %440 = vst [vmem:[%s3841_s7 + $0x240] sm:$0xf] %v439_v16 }
  0x7c   : > { %442 = vst [vmem:[%s3841_s7 + $0x244] sm:$0xf] %v441_v17  ;;  %v443_v18 = vld [vmem:[%s3837_s6 + $0x490] sm:$0xf]  ;;  %v445_v19 = vld [vmem:[%s3837_s6 + $0x498] sm:$0xf] }
  0x7d   : > { %v447_v20 = vld [vmem:[%s3837_s6 + $0x4a0] sm:$0xf]  ;;  %444 = vst [vmem:[%s3841_s7 + $0x248] sm:$0xf] %v443_v18  ;;  %446 = vst [vmem:[%s3841_s7 + $0x24c] sm:$0xf] %v445_v19 }
  0x7e   : > { %448 = vst [vmem:[%s3841_s7 + $0x250] sm:$0xf] %v447_v20  ;;  %v449_v21 = vld [vmem:[%s3837_s6 + $0x4a8] sm:$0xf]  ;;  %v451_v22 = vld [vmem:[%s3837_s6 + $0x4b0] sm:$0xf] }
  0x7f   : > { %v453_v23 = vld [vmem:[%s3837_s6 + $0x4b8] sm:$0xf]  ;;  %450 = vst [vmem:[%s3841_s7 + $0x254] sm:$0xf] %v449_v21  ;;  %452 = vst [vmem:[%s3841_s7 + $0x258] sm:$0xf] %v451_v22 }
  0x80   : > { %454 = vst [vmem:[%s3841_s7 + $0x25c] sm:$0xf] %v453_v23  ;;  %v455_v24 = vld [vmem:[%s3837_s6 + $0x4c0] sm:$0xf]  ;;  %v457_v25 = vld [vmem:[%s3837_s6 + $0x4c8] sm:$0xf] }
  0x81   : > { %v459_v26 = vld [vmem:[%s3837_s6 + $0x4d0] sm:$0xf]  ;;  %456 = vst [vmem:[%s3841_s7 + $0x260] sm:$0xf] %v455_v24  ;;  %458 = vst [vmem:[%s3841_s7 + $0x264] sm:$0xf] %v457_v25 }
  0x82   : > { %460 = vst [vmem:[%s3841_s7 + $0x268] sm:$0xf] %v459_v26  ;;  %v461_v27 = vld [vmem:[%s3837_s6 + $0x4d8] sm:$0xf]  ;;  %v463_v28 = vld [vmem:[%s3837_s6 + $0x4e0] sm:$0xf] }
  0x83   : > { %v465_v29 = vld [vmem:[%s3837_s6 + $0x4e8] sm:$0xf]  ;;  %462 = vst [vmem:[%s3841_s7 + $0x26c] sm:$0xf] %v461_v27  ;;  %464 = vst [vmem:[%s3841_s7 + $0x270] sm:$0xf] %v463_v28 }
  0x84   : > { %466 = vst [vmem:[%s3841_s7 + $0x274] sm:$0xf] %v465_v29  ;;  %v467_v30 = vld [vmem:[%s3837_s6 + $0x4f0] sm:$0xf]  ;;  %v469_v31 = vld [vmem:[%s3837_s6 + $0x4f8] sm:$0xf] }
  0x85   : > { %v471_v32 = vld [vmem:[%s3837_s6 + $0x500] sm:$0xf]  ;;  %468 = vst [vmem:[%s3841_s7 + $0x278] sm:$0xf] %v467_v30  ;;  %470 = vst [vmem:[%s3841_s7 + $0x27c] sm:$0xf] %v469_v31 }
  0x86   : > { %472 = vst [vmem:[%s3841_s7 + $0x280] sm:$0xf] %v471_v32  ;;  %v473_v33 = vld [vmem:[%s3837_s6 + $0x508] sm:$0xf]  ;;  %v475_v34 = vld [vmem:[%s3837_s6 + $0x510] sm:$0xf] }
  0x87   : > { %v477_v35 = vld [vmem:[%s3837_s6 + $0x518] sm:$0xf]  ;;  %474 = vst [vmem:[%s3841_s7 + $0x284] sm:$0xf] %v473_v33  ;;  %476 = vst [vmem:[%s3841_s7 + $0x288] sm:$0xf] %v475_v34 }
  0x88   : > { %478 = vst [vmem:[%s3841_s7 + $0x28c] sm:$0xf] %v477_v35  ;;  %v479_v36 = vld [vmem:[%s3837_s6 + $0x520] sm:$0xf]  ;;  %v481_v37 = vld [vmem:[%s3837_s6 + $0x528] sm:$0xf] }
  0x89   : > { %v483_v38 = vld [vmem:[%s3837_s6 + $0x530] sm:$0xf]  ;;  %480 = vst [vmem:[%s3841_s7 + $0x290] sm:$0xf] %v479_v36  ;;  %482 = vst [vmem:[%s3841_s7 + $0x294] sm:$0xf] %v481_v37 }
  0x8a   : > { %484 = vst [vmem:[%s3841_s7 + $0x298] sm:$0xf] %v483_v38  ;;  %v485_v39 = vld [vmem:[%s3837_s6 + $0x538] sm:$0xf]  ;;  %v487_v40 = vld [vmem:[%s3837_s6 + $0x540] sm:$0xf] }
  0x8b   : > { %v489_v41 = vld [vmem:[%s3837_s6 + $0x548] sm:$0xf]  ;;  %486 = vst [vmem:[%s3841_s7 + $0x29c] sm:$0xf] %v485_v39  ;;  %488 = vst [vmem:[%s3841_s7 + $0x2a0] sm:$0xf] %v487_v40 }
  0x8c   : > { %490 = vst [vmem:[%s3841_s7 + $0x2a4] sm:$0xf] %v489_v41  ;;  %v491_v42 = vld [vmem:[%s3837_s6 + $0x550] sm:$0xf]  ;;  %v493_v43 = vld [vmem:[%s3837_s6 + $0x558] sm:$0xf] }
  0x8d   : > { %v495_v44 = vld [vmem:[%s3837_s6 + $0x560] sm:$0xf]  ;;  %492 = vst [vmem:[%s3841_s7 + $0x2a8] sm:$0xf] %v491_v42  ;;  %494 = vst [vmem:[%s3841_s7 + $0x2ac] sm:$0xf] %v493_v43 }
  0x8e   : > { %496 = vst [vmem:[%s3841_s7 + $0x2b0] sm:$0xf] %v495_v44  ;;  %v497_v45 = vld [vmem:[%s3837_s6 + $0x568] sm:$0xf]  ;;  %v499_v46 = vld [vmem:[%s3837_s6 + $0x570] sm:$0xf] }
  0x8f   : > { %v501_v47 = vld [vmem:[%s3837_s6 + $0x578] sm:$0xf]  ;;  %498 = vst [vmem:[%s3841_s7 + $0x2b4] sm:$0xf] %v497_v45  ;;  %500 = vst [vmem:[%s3841_s7 + $0x2b8] sm:$0xf] %v499_v46 }
  0x90   : > { %502 = vst [vmem:[%s3841_s7 + $0x2bc] sm:$0xf] %v501_v47  ;;  %v503_v48 = vld [vmem:[%s3837_s6 + $0x580] sm:$0xf]  ;;  %v505_v49 = vld [vmem:[%s3837_s6 + $0x588] sm:$0xf] }
  0x91   : > { %v507_v50 = vld [vmem:[%s3837_s6 + $0x590] sm:$0xf]  ;;  %504 = vst [vmem:[%s3841_s7 + $0x2c0] sm:$0xf] %v503_v48  ;;  %506 = vst [vmem:[%s3841_s7 + $0x2c4] sm:$0xf] %v505_v49 }
  0x92   : > { %508 = vst [vmem:[%s3841_s7 + $0x2c8] sm:$0xf] %v507_v50  ;;  %v509_v51 = vld [vmem:[%s3837_s6 + $0x598] sm:$0xf]  ;;  %v511_v52 = vld [vmem:[%s3837_s6 + $0x5a0] sm:$0xf] }
  0x93   : > { %v513_v53 = vld [vmem:[%s3837_s6 + $0x5a8] sm:$0xf]  ;;  %510 = vst [vmem:[%s3841_s7 + $0x2cc] sm:$0xf] %v509_v51  ;;  %512 = vst [vmem:[%s3841_s7 + $0x2d0] sm:$0xf] %v511_v52 }
  0x94   : > { %514 = vst [vmem:[%s3841_s7 + $0x2d4] sm:$0xf] %v513_v53  ;;  %v515_v54 = vld [vmem:[%s3837_s6 + $0x5b0] sm:$0xf]  ;;  %v517_v55 = vld [vmem:[%s3837_s6 + $0x5b8] sm:$0xf] }
  0x95   : > { %v519_v56 = vld [vmem:[%s3837_s6 + $0x5c0] sm:$0xf]  ;;  %516 = vst [vmem:[%s3841_s7 + $0x2d8] sm:$0xf] %v515_v54  ;;  %518 = vst [vmem:[%s3841_s7 + $0x2dc] sm:$0xf] %v517_v55 }
  0x96   : > { %520 = vst [vmem:[%s3841_s7 + $0x2e0] sm:$0xf] %v519_v56  ;;  %v521_v57 = vld [vmem:[%s3837_s6 + $0x5c8] sm:$0xf]  ;;  %v523_v58 = vld [vmem:[%s3837_s6 + $0x5d0] sm:$0xf] }
  0x97   : > { %v525_v59 = vld [vmem:[%s3837_s6 + $0x5d8] sm:$0xf]  ;;  %522 = vst [vmem:[%s3841_s7 + $0x2e4] sm:$0xf] %v521_v57  ;;  %524 = vst [vmem:[%s3841_s7 + $0x2e8] sm:$0xf] %v523_v58 }
  0x98   : > { %526 = vst [vmem:[%s3841_s7 + $0x2ec] sm:$0xf] %v525_v59  ;;  %v527_v60 = vld [vmem:[%s3837_s6 + $0x5e0] sm:$0xf]  ;;  %v529_v61 = vld [vmem:[%s3837_s6 + $0x5e8] sm:$0xf] }
  0x99   : > { %v531_v62 = vld [vmem:[%s3837_s6 + $0x5f0] sm:$0xf]  ;;  %528 = vst [vmem:[%s3841_s7 + $0x2f0] sm:$0xf] %v527_v60  ;;  %530 = vst [vmem:[%s3841_s7 + $0x2f4] sm:$0xf] %v529_v61 }
  0x9a   : > { %532 = vst [vmem:[%s3841_s7 + $0x2f8] sm:$0xf] %v531_v62  ;;  %v533_v63 = vld [vmem:[%s3837_s6 + $0x5f8] sm:$0xf]  ;;  %v535_v0 = vld [vmem:[%s3837_s6 + $0x600] sm:$0xf] }
  0x9b   : > { %v537_v1 = vld [vmem:[%s3837_s6 + $0x608] sm:$0xf]  ;;  %534 = vst [vmem:[%s3841_s7 + $0x2fc] sm:$0xf] %v533_v63  ;;  %536 = vst [vmem:[%s3841_s7 + $0x300] sm:$0xf] %v535_v0 }
  0x9c   : > { %538 = vst [vmem:[%s3841_s7 + $0x304] sm:$0xf] %v537_v1  ;;  %v539_v2 = vld [vmem:[%s3837_s6 + $0x610] sm:$0xf]  ;;  %v541_v3 = vld [vmem:[%s3837_s6 + $0x618] sm:$0xf] }
  0x9d   : > { %v543_v4 = vld [vmem:[%s3837_s6 + $0x620] sm:$0xf]  ;;  %540 = vst [vmem:[%s3841_s7 + $0x308] sm:$0xf] %v539_v2  ;;  %542 = vst [vmem:[%s3841_s7 + $0x30c] sm:$0xf] %v541_v3 }
  0x9e   : > { %544 = vst [vmem:[%s3841_s7 + $0x310] sm:$0xf] %v543_v4  ;;  %v545_v5 = vld [vmem:[%s3837_s6 + $0x628] sm:$0xf]  ;;  %v547_v6 = vld [vmem:[%s3837_s6 + $0x630] sm:$0xf] }
  0x9f   : > { %v549_v7 = vld [vmem:[%s3837_s6 + $0x638] sm:$0xf]  ;;  %546 = vst [vmem:[%s3841_s7 + $0x314] sm:$0xf] %v545_v5  ;;  %548 = vst [vmem:[%s3841_s7 + $0x318] sm:$0xf] %v547_v6 }
  0xa0   : > { %550 = vst [vmem:[%s3841_s7 + $0x31c] sm:$0xf] %v549_v7  ;;  %v551_v8 = vld [vmem:[%s3837_s6 + $0x640] sm:$0xf]  ;;  %v553_v9 = vld [vmem:[%s3837_s6 + $0x648] sm:$0xf] }
  0xa1   : > { %v555_v10 = vld [vmem:[%s3837_s6 + $0x650] sm:$0xf]  ;;  %552 = vst [vmem:[%s3841_s7 + $0x320] sm:$0xf] %v551_v8  ;;  %554 = vst [vmem:[%s3841_s7 + $0x324] sm:$0xf] %v553_v9 }
  0xa2   : > { %556 = vst [vmem:[%s3841_s7 + $0x328] sm:$0xf] %v555_v10  ;;  %v557_v11 = vld [vmem:[%s3837_s6 + $0x658] sm:$0xf]  ;;  %v559_v12 = vld [vmem:[%s3837_s6 + $0x660] sm:$0xf] }
  0xa3   : > { %v561_v13 = vld [vmem:[%s3837_s6 + $0x668] sm:$0xf]  ;;  %558 = vst [vmem:[%s3841_s7 + $0x32c] sm:$0xf] %v557_v11  ;;  %560 = vst [vmem:[%s3841_s7 + $0x330] sm:$0xf] %v559_v12 }
  0xa4   : > { %562 = vst [vmem:[%s3841_s7 + $0x334] sm:$0xf] %v561_v13  ;;  %v563_v14 = vld [vmem:[%s3837_s6 + $0x670] sm:$0xf]  ;;  %v565_v15 = vld [vmem:[%s3837_s6 + $0x678] sm:$0xf] }
  0xa5   : > { %v567_v16 = vld [vmem:[%s3837_s6 + $0x680] sm:$0xf]  ;;  %564 = vst [vmem:[%s3841_s7 + $0x338] sm:$0xf] %v563_v14  ;;  %566 = vst [vmem:[%s3841_s7 + $0x33c] sm:$0xf] %v565_v15 }
  0xa6   : > { %568 = vst [vmem:[%s3841_s7 + $0x340] sm:$0xf] %v567_v16  ;;  %v569_v17 = vld [vmem:[%s3837_s6 + $0x688] sm:$0xf]  ;;  %v571_v18 = vld [vmem:[%s3837_s6 + $0x690] sm:$0xf] }
  0xa7   : > { %v573_v19 = vld [vmem:[%s3837_s6 + $0x698] sm:$0xf]  ;;  %570 = vst [vmem:[%s3841_s7 + $0x344] sm:$0xf] %v569_v17  ;;  %572 = vst [vmem:[%s3841_s7 + $0x348] sm:$0xf] %v571_v18 }
  0xa8   : > { %574 = vst [vmem:[%s3841_s7 + $0x34c] sm:$0xf] %v573_v19  ;;  %v575_v20 = vld [vmem:[%s3837_s6 + $0x6a0] sm:$0xf]  ;;  %v577_v21 = vld [vmem:[%s3837_s6 + $0x6a8] sm:$0xf] }
  0xa9   : > { %v579_v22 = vld [vmem:[%s3837_s6 + $0x6b0] sm:$0xf]  ;;  %576 = vst [vmem:[%s3841_s7 + $0x350] sm:$0xf] %v575_v20  ;;  %578 = vst [vmem:[%s3841_s7 + $0x354] sm:$0xf] %v577_v21 }
  0xaa   : > { %580 = vst [vmem:[%s3841_s7 + $0x358] sm:$0xf] %v579_v22  ;;  %v581_v23 = vld [vmem:[%s3837_s6 + $0x6b8] sm:$0xf]  ;;  %v583_v24 = vld [vmem:[%s3837_s6 + $0x6c0] sm:$0xf] }
  0xab   : > { %v585_v25 = vld [vmem:[%s3837_s6 + $0x6c8] sm:$0xf]  ;;  %582 = vst [vmem:[%s3841_s7 + $0x35c] sm:$0xf] %v581_v23  ;;  %584 = vst [vmem:[%s3841_s7 + $0x360] sm:$0xf] %v583_v24 }
  0xac   : > { %586 = vst [vmem:[%s3841_s7 + $0x364] sm:$0xf] %v585_v25  ;;  %v587_v26 = vld [vmem:[%s3837_s6 + $0x6d0] sm:$0xf]  ;;  %v589_v27 = vld [vmem:[%s3837_s6 + $0x6d8] sm:$0xf] }
  0xad   : > { %v591_v28 = vld [vmem:[%s3837_s6 + $0x6e0] sm:$0xf]  ;;  %588 = vst [vmem:[%s3841_s7 + $0x368] sm:$0xf] %v587_v26  ;;  %590 = vst [vmem:[%s3841_s7 + $0x36c] sm:$0xf] %v589_v27 }
  0xae   : > { %592 = vst [vmem:[%s3841_s7 + $0x370] sm:$0xf] %v591_v28  ;;  %v593_v29 = vld [vmem:[%s3837_s6 + $0x6e8] sm:$0xf]  ;;  %v595_v30 = vld [vmem:[%s3837_s6 + $0x6f0] sm:$0xf] }
  0xaf   : > { %v597_v31 = vld [vmem:[%s3837_s6 + $0x6f8] sm:$0xf]  ;;  %594 = vst [vmem:[%s3841_s7 + $0x374] sm:$0xf] %v593_v29  ;;  %596 = vst [vmem:[%s3841_s7 + $0x378] sm:$0xf] %v595_v30 }
  0xb0   : > { %598 = vst [vmem:[%s3841_s7 + $0x37c] sm:$0xf] %v597_v31  ;;  %v599_v32 = vld [vmem:[%s3837_s6 + $0x700] sm:$0xf]  ;;  %v601_v33 = vld [vmem:[%s3837_s6 + $0x708] sm:$0xf] }
  0xb1   : > { %v603_v34 = vld [vmem:[%s3837_s6 + $0x710] sm:$0xf]  ;;  %600 = vst [vmem:[%s3841_s7 + $0x380] sm:$0xf] %v599_v32  ;;  %602 = vst [vmem:[%s3841_s7 + $0x384] sm:$0xf] %v601_v33 }
  0xb2   : > { %604 = vst [vmem:[%s3841_s7 + $0x388] sm:$0xf] %v603_v34  ;;  %v605_v35 = vld [vmem:[%s3837_s6 + $0x718] sm:$0xf]  ;;  %v607_v36 = vld [vmem:[%s3837_s6 + $0x720] sm:$0xf] }
  0xb3   : > { %v609_v37 = vld [vmem:[%s3837_s6 + $0x728] sm:$0xf]  ;;  %606 = vst [vmem:[%s3841_s7 + $0x38c] sm:$0xf] %v605_v35  ;;  %608 = vst [vmem:[%s3841_s7 + $0x390] sm:$0xf] %v607_v36 }
  0xb4   : > { %610 = vst [vmem:[%s3841_s7 + $0x394] sm:$0xf] %v609_v37  ;;  %v611_v38 = vld [vmem:[%s3837_s6 + $0x730] sm:$0xf]  ;;  %v613_v39 = vld [vmem:[%s3837_s6 + $0x738] sm:$0xf] }
  0xb5   : > { %v615_v40 = vld [vmem:[%s3837_s6 + $0x740] sm:$0xf]  ;;  %612 = vst [vmem:[%s3841_s7 + $0x398] sm:$0xf] %v611_v38  ;;  %614 = vst [vmem:[%s3841_s7 + $0x39c] sm:$0xf] %v613_v39 }
  0xb6   : > { %616 = vst [vmem:[%s3841_s7 + $0x3a0] sm:$0xf] %v615_v40  ;;  %v617_v41 = vld [vmem:[%s3837_s6 + $0x748] sm:$0xf]  ;;  %v619_v42 = vld [vmem:[%s3837_s6 + $0x750] sm:$0xf] }
  0xb7   : > { %v621_v43 = vld [vmem:[%s3837_s6 + $0x758] sm:$0xf]  ;;  %618 = vst [vmem:[%s3841_s7 + $0x3a4] sm:$0xf] %v617_v41  ;;  %620 = vst [vmem:[%s3841_s7 + $0x3a8] sm:$0xf] %v619_v42 }
  0xb8   : > { %622 = vst [vmem:[%s3841_s7 + $0x3ac] sm:$0xf] %v621_v43  ;;  %v623_v44 = vld [vmem:[%s3837_s6 + $0x760] sm:$0xf]  ;;  %v625_v45 = vld [vmem:[%s3837_s6 + $0x768] sm:$0xf] }
  0xb9   : > { %v627_v46 = vld [vmem:[%s3837_s6 + $0x770] sm:$0xf]  ;;  %624 = vst [vmem:[%s3841_s7 + $0x3b0] sm:$0xf] %v623_v44  ;;  %626 = vst [vmem:[%s3841_s7 + $0x3b4] sm:$0xf] %v625_v45 }
  0xba   : > { %628 = vst [vmem:[%s3841_s7 + $0x3b8] sm:$0xf] %v627_v46  ;;  %v629_v47 = vld [vmem:[%s3837_s6 + $0x778] sm:$0xf]  ;;  %v631_v48 = vld [vmem:[%s3837_s6 + $0x780] sm:$0xf] }
  0xbb   : > { %v633_v49 = vld [vmem:[%s3837_s6 + $0x788] sm:$0xf]  ;;  %630 = vst [vmem:[%s3841_s7 + $0x3bc] sm:$0xf] %v629_v47  ;;  %632 = vst [vmem:[%s3841_s7 + $0x3c0] sm:$0xf] %v631_v48 }
  0xbc   : > { %634 = vst [vmem:[%s3841_s7 + $0x3c4] sm:$0xf] %v633_v49  ;;  %v635_v50 = vld [vmem:[%s3837_s6 + $0x790] sm:$0xf]  ;;  %v637_v51 = vld [vmem:[%s3837_s6 + $0x798] sm:$0xf] }
  0xbd   : > { %v639_v52 = vld [vmem:[%s3837_s6 + $0x7a0] sm:$0xf]  ;;  %636 = vst [vmem:[%s3841_s7 + $0x3c8] sm:$0xf] %v635_v50  ;;  %638 = vst [vmem:[%s3841_s7 + $0x3cc] sm:$0xf] %v637_v51 }
  0xbe   : > { %640 = vst [vmem:[%s3841_s7 + $0x3d0] sm:$0xf] %v639_v52  ;;  %v641_v53 = vld [vmem:[%s3837_s6 + $0x7a8] sm:$0xf]  ;;  %v643_v54 = vld [vmem:[%s3837_s6 + $0x7b0] sm:$0xf] }
  0xbf   : > { %v645_v55 = vld [vmem:[%s3837_s6 + $0x7b8] sm:$0xf]  ;;  %642 = vst [vmem:[%s3841_s7 + $0x3d4] sm:$0xf] %v641_v53  ;;  %644 = vst [vmem:[%s3841_s7 + $0x3d8] sm:$0xf] %v643_v54 }
  0xc0   : > { %646 = vst [vmem:[%s3841_s7 + $0x3dc] sm:$0xf] %v645_v55  ;;  %v647_v56 = vld [vmem:[%s3837_s6 + $0x7c0] sm:$0xf]  ;;  %v649_v57 = vld [vmem:[%s3837_s6 + $0x7c8] sm:$0xf] }
  0xc1   : > { %v651_v58 = vld [vmem:[%s3837_s6 + $0x7d0] sm:$0xf]  ;;  %648 = vst [vmem:[%s3841_s7 + $0x3e0] sm:$0xf] %v647_v56  ;;  %650 = vst [vmem:[%s3841_s7 + $0x3e4] sm:$0xf] %v649_v57 }
  0xc2   : > { %652 = vst [vmem:[%s3841_s7 + $0x3e8] sm:$0xf] %v651_v58  ;;  %v653_v59 = vld [vmem:[%s3837_s6 + $0x7d8] sm:$0xf]  ;;  %v655_v60 = vld [vmem:[%s3837_s6 + $0x7e0] sm:$0xf] }
  0xc3   : > { %v657_v61 = vld [vmem:[%s3837_s6 + $0x7e8] sm:$0xf]  ;;  %654 = vst [vmem:[%s3841_s7 + $0x3ec] sm:$0xf] %v653_v59  ;;  %656 = vst [vmem:[%s3841_s7 + $0x3f0] sm:$0xf] %v655_v60 }
  0xc4   : > { %658 = vst [vmem:[%s3841_s7 + $0x3f4] sm:$0xf] %v657_v61  ;;  %v659_v62 = vld [vmem:[%s3837_s6 + $0x7f0] sm:$0xf]  ;;  %v661_v63 = vld [vmem:[%s3837_s6 + $0x7f8] sm:$0xf] }
  0xc5   : > { %660 = vst [vmem:[%s3841_s7 + $0x3f8] sm:$0xf] %v659_v62  ;;  %662 = vst [vmem:[%s3841_s7 + $0x3fc] sm:$0xf] %v661_v63 }
  0xc6 PF: > { %p2924_p11 = scmp.ge.s32.totalorder %s3736_s17, 1  ;;  %p1196_p12 = scmp.lt.s32.totalorder %s3736_s17, 5 }
  0xc8   : > { %p1197_p13 = pnand %p2924_p11, %p1196_p12 }
  0xc9   : > { %s1203_s8 = sand.u32 (!%p1197_p13), 1, %s3712_s11   ;;  %s1225_s18 = sand.u32 (!%p1197_p13), 1, %s3704_s9  }
  0xca   : > { %1200 = sbr.rel (%p1197_p13) target bundleno = 649 (0x289), region = 65  ;;  %s2925_s21 = sshll.u32 (!%p1197_p13), %s1203_s8, 10 }
  0xcb   : > { %s2926_s22 = sshll.u32 (!%p1197_p13), %s1225_s18, 3  ;;  %p1228_p0 = scmp.lt.s32.totalorder (!%p1197_p13), %s3724_s14, 1 }
  0xcc   : > { %s4364_s3 = scalar_lea.vmem (!%p1197_p13), [#allocation3], %s2925_s21  ;;  %s4366_s4 = scalar_lea.vmem (!%p1197_p13), [#allocation4], %s2926_s22 }
  0xcd   : > { %s4368_s5 = smov (!%p1197_p13), 0  }
  0xd1   : > { %s1229_s23 = scalar_select %p1228_p0, %s3724_s14, 1 }
  0xd3   : > { %s3443_s25 = smul.u32 80, %s1229_s23 }
  0xd5   : > { %s4362_s30 = scalar_lea.vmem %s4583_s0, %s3443_s25 }
  0xd6 LB: >> { %v3524_v0 = vld [vmem:[%s4364_s3 + $0x140] sm:$0xff]   ;;  %v3528_v4 = vld [vmem:[%s4364_s3 + $0x148] sm:$0xff]   ;;  %v3532_v8 = vld [vmem:[%s4364_s3 + $0x150] sm:$0xff]   ;;  %s3266_s9 = sshll.u32 %s3740_s5, 4  ;;  %s2928_s6 = sshll.u32 %s3740_s5, 2  ;;  %s3740_s5 = sphi %s4368_s5, %s1239_s5  }
  0xd7   : >> { %v3525_v1 = vld [vmem:[%s4364_s3 + $0x1c0] sm:$0xff]   ;;  %3267 = vmatprep.subr.bf16.mxu0 %v3524_v0  ;;  %v3529_v5 = vld [vmem:[%s4364_s3 + $0x1c8] sm:$0xff]   ;;  %v3533_v9 = vld [vmem:[%s4364_s3 + $0x1d0] sm:$0xff]   ;;  %s4405_s11 = scalar_lea.vmem %s4362_s30, %s3266_s9  ;;  %s2692_s7 = scalar_lea.vmem [#allocation2], %s2928_s6 }
  0xd8   : >> { %v3526_v2 = vld [vmem:[%s4364_s3 + $0x100] sm:$0xff]   ;;  %3289 = vmatprep.subr.bf16.mxu1 %v3525_v1  ;;  %v3530_v6 = vld [vmem:[%s4364_s3 + $0x108] sm:$0xff]   ;;  %v3534_v10 = vld [vmem:[%s4364_s3 + $0x110] sm:$0xff]   ;;  %s1239_s5 = sadd.s32 1, %s3740_s5  }
  0xd9   : >> { %v3527_v3 = vld [vmem:[%s4364_s3 + $0x180] sm:$0xff]   ;;  %3268 = vmatpush3.bf16.msra.mxu0 %v3526_v2  ;;  %v3531_v7 = vld [vmem:[%s4364_s3 + $0x188] sm:$0xff]   ;;  %v3535_v11 = vld [vmem:[%s4364_s3 + $0x190] sm:$0xff]   ;;  %p1236_p1 = scmp.ge.s32.totalorder %s1239_s5, 4  }
  0xda   : >> { %3290 = vmatpush3.bf16.msra.mxu1 %v3527_v3  ;;  %3269 = vmatprep.subr.bf16.mxu0 %v3528_v4  ;;  %v3536_v12 = vld [vmem:[%s4364_s3 + $0x158] sm:$0xff]   ;;  %v3540_v16 = vld [vmem:[%s4364_s3 + $0x160] sm:$0xff]   ;;  %v3544_v20 = vld [vmem:[%s4364_s3 + $0x168] sm:$0xff]   ;;  %vm2698_vm0 = vcmask (%p1236_p1), 1043456  }
  0xdb   : >> { %3291 = vmatprep.subr.bf16.mxu1 %v3529_v5  ;;  %v3537_v13 = vld [vmem:[%s4364_s3 + $0x1d8] sm:$0xff]   ;;  %v3541_v17 = vld [vmem:[%s4364_s3 + $0x1e0] sm:$0xff]   ;;  %v3545_v21 = vld [vmem:[%s4364_s3 + $0x1e8] sm:$0xff]  }
  0xdc   : >> { %v3538_v14 = vld [vmem:[%s4364_s3 + $0x118] sm:$0xff]   ;;  %v3542_v18 = vld [vmem:[%s4364_s3 + $0x120] sm:$0xff]   ;;  %v3546_v22 = vld [vmem:[%s4364_s3 + $0x128] sm:$0xff]  }
  0xdd   : >> { %3270 = vmatpush3.bf16.msra.mxu0 %v3530_v6  ;;  %v3539_v15 = vld [vmem:[%s4364_s3 + $0x198] sm:$0xff]   ;;  %v3543_v19 = vld [vmem:[%s4364_s3 + $0x1a0] sm:$0xff]   ;;  %v3547_v23 = vld [vmem:[%s4364_s3 + $0x1a8] sm:$0xff]  }
  0xde   : >> { %3292 = vmatpush3.bf16.msra.mxu1 %v3531_v7  ;;  %3271 = vmatprep.subr.bf16.mxu0 %v3532_v8  ;;  %v3548_v24 = vld [vmem:[%s4364_s3 + $0x170] sm:$0xff]   ;;  %v3552_v28 = vld [vmem:[%s4364_s3 + $0x178] sm:$0xff]   ;;  %v3560_v38 = vld [vmem:[%s4364_s3 + $0x40] sm:$0xff]  }
  0xdf   : >> { %3293 = vmatprep.subr.bf16.mxu1 %v3533_v9  ;;  %v3549_v25 = vld [vmem:[%s4364_s3 + $0x1f0] sm:$0xff]   ;;  %v3553_v29 = vld [vmem:[%s4364_s3 + $0x1f8] sm:$0xff]   ;;  %v3561_v39 = vld [vmem:[%s4364_s3 + $0xc0] sm:$0xff]  }
  0xe0   : >> { %v3550_v26 = vld [vmem:[%s4364_s3 + $0x130] sm:$0xff]   ;;  %v3554_v30 = vld [vmem:[%s4364_s3 + $0x138] sm:$0xff]   ;;  %v3562_v50 = vld [vmem:[%s4364_s3] sm:$0xff]  }
  0xe1   : >> { %3272 = vmatpush3.bf16.msra.mxu0 %v3534_v10  ;;  %v3551_v27 = vld [vmem:[%s4364_s3 + $0x1b0] sm:$0xff]   ;;  %v3555_v31 = vld [vmem:[%s4364_s3 + $0x1b8] sm:$0xff]   ;;  %v3563_v51 = vld [vmem:[%s4364_s3 + $0x80] sm:$0xff]  }
  0xe2   : >> { %3294 = vmatpush3.bf16.msra.mxu1 %v3535_v11  ;;  %3273 = vmatprep.subr.bf16.mxu0 %v3536_v12  ;;  %v1243_v32 = vld [vmem:[%s4405_s11] sm:$0x77]  ;;  %v1244_v33 = vld [vmem:[%s4405_s11 + $0x8] sm:$0x77]  ;;  %v3564_v56 = vld [vmem:[%s4364_s3 + $0x48] sm:$0xff]  }
  0xe3   : >> { %3295 = vmatprep.subr.bf16.mxu1 %v3537_v13  ;;  %v4411_v34 = vcombine.low %v1243_v32, %v1243_v32  ;;  %v2995_v35 = vcombine.high %v1243_v32, %v1243_v32  ;;  %v4413_v36 = vcombine.low %v1244_v33, %v1244_v33  ;;  %v2997_v37 = vcombine.high %v1244_v33, %v1244_v33  ;;  %v3565_v59 = vld [vmem:[%s4364_s3 + $0xc8] sm:$0xff]   ;;  %v3568_v62 = vld [vmem:[%s4364_s3 + $0x50] sm:$0xff]   ;;  %v3572_v2 = vld [vmem:[%s4364_s3 + $0x58] sm:$0xff]  }
  0xe4   : >> { %v3566_v60 = vld [vmem:[%s4364_s3 + $0x8] sm:$0xff]   ;;  %v3569_v63 = vld [vmem:[%s4364_s3 + $0xd0] sm:$0xff]   ;;  %v3573_v3 = vld [vmem:[%s4364_s3 + $0xd8] sm:$0xff]  }
  0xe5   : >> { %3274 = vmatpush3.bf16.msra.mxu0 %v3538_v14  ;;  %v1392_v40 = vshrl.u32 %v2995_v35, 16  ;;  %v1394_v41 = vshll.u32 %v2995_v35, 16  ;;  %v1406_v42 = vshrl.u32 %v2997_v37, 16  ;;  %v1408_v43 = vshll.u32 %v2997_v37, 16  ;;  %v3567_v61 = vld [vmem:[%s4364_s3 + $0x88] sm:$0xff]   ;;  %v3570_v0 = vld [vmem:[%s4364_s3 + $0x10] sm:$0xff]  }
  0xe6   : >> { %3296 = vmatpush3.bf16.msra.mxu1 %v3539_v15  ;;  %3275 = vmatprep.subr.bf16.mxu0 %v3540_v16  ;;  %v1385_v44 = vshrl.u32 %v4411_v34, 16  ;;  %v1387_v45 = vshll.u32 %v4411_v34, 16  ;;  %v1399_v46 = vshrl.u32 %v4413_v36, 16  ;;  %v1401_v47 = vshll.u32 %v4413_v36, 16  ;;  %v3571_v1 = vld [vmem:[%s4364_s3 + $0x90] sm:$0xff]   ;;  %v3574_v4 = vld [vmem:[%s4364_s3 + $0x18] sm:$0xff]  }
  0xe7   : >> { %3297 = vmatprep.subr.bf16.mxu1 %v3541_v17  ;;  %v1396_v48 = vrot.slane %v1394_v41, 1  ;;  %v1410_v49 = vrot.slane %v1408_v43, 1  ;;  %v3575_v5 = vld [vmem:[%s4364_s3 + $0x98] sm:$0xff]   ;;  %v3576_v6 = vld [vmem:[%s4364_s3 + $0x60] sm:$0xff]   ;;  %v3580_v10 = vld [vmem:[%s4364_s3 + $0x68] sm:$0xff]  }
  0xe8   : >> { %v1389_v52 = vrot.slane %v1387_v45, 1  ;;  %v1403_v53 = vrot.slane %v1401_v47, 1  ;;  %v3577_v7 = vld [vmem:[%s4364_s3 + $0xe0] sm:$0xff]   ;;  %v3581_v11 = vld [vmem:[%s4364_s3 + $0xe8] sm:$0xff]   ;;  %v3584_v14 = vld [vmem:[%s4364_s3 + $0x70] sm:$0xff]  }
  0xe9   : >> { %3276 = vmatpush3.bf16.msra.mxu0 %v3542_v18  ;;  %v1397_v54 = vor.u32 %v1396_v48, %v1392_v40  ;;  %v1411_v55 = vor.u32 %v1410_v49, %v1406_v42  ;;  %v3578_v8 = vld [vmem:[%s4364_s3 + $0x20] sm:$0xff]   ;;  %v3582_v12 = vld [vmem:[%s4364_s3 + $0x28] sm:$0xff]   ;;  %v3585_v15 = vld [vmem:[%s4364_s3 + $0xf0] sm:$0xff]  }
  0xea   : >> { %3298 = vmatpush3.bf16.msra.mxu1 %v3543_v19  ;;  %3277 = vmatprep.subr.bf16.mxu0 %v3544_v20  ;;  %v1390_v57 = vor.u32 %v1389_v52, %v1385_v44  ;;  %v1404_v58 = vor.u32 %v1403_v53, %v1399_v46  ;;  %v3579_v9 = vld [vmem:[%s4364_s3 + $0xa0] sm:$0xff]   ;;  %v3583_v13 = vld [vmem:[%s4364_s3 + $0xa8] sm:$0xff]   ;;  %v3586_v16 = vld [vmem:[%s4364_s3 + $0x30] sm:$0xff]  }
  0xeb   : >> { %3299 = vmatprep.subr.bf16.mxu1 %v3545_v21  ;;  %1640 = vmatprep.mubr.bf16.mxu0 %v1397_v54  ;;  %v3587_v17 = vld [vmem:[%s4364_s3 + $0xb0] sm:$0xff]   ;;  %v3588_v18 = vld [vmem:[%s4364_s3 + $0x78] sm:$0xff]   ;;  %v3610_v40 = vld [vmem:[%s4364_s3 + $0x220] sm:$0xff]  }
  0xec   : >> { %1680 = vmatprep.mubr.bf16.mxu1 %v1411_v55  ;;  %v3589_v19 = vld [vmem:[%s4364_s3 + $0xf8] sm:$0xff]   ;;  %v3602_v32 = vld [vmem:[%s4364_s3 + $0x210] sm:$0xff]   ;;  %v3611_v41 = vld [vmem:[%s4364_s3 + $0x2a0] sm:$0xff]  }
  0xed   : >> { %3278 = vmatpush3.bf16.msra.mxu0 %v3546_v22  ;;  %v3590_v20 = vld [vmem:[%s4364_s3 + $0x38] sm:$0xff]   ;;  %v3592_v22 = vld [vmem:[%s4364_s3 + $0x240] sm:$0xff]   ;;  %v3603_v33 = vld [vmem:[%s4364_s3 + $0x290] sm:$0xff]  }
  0xee   : >> { %3300 = vmatpush3.bf16.msra.mxu1 %v3547_v23  ;;  %3279 = vmatprep.subr.bf16.mxu0 %v3548_v24  ;;  %v3591_v21 = vld [vmem:[%s4364_s3 + $0xb8] sm:$0xff]   ;;  %v3593_v23 = vld [vmem:[%s4364_s3 + $0x2c0] sm:$0xff]   ;;  %v3612_v42 = vld [vmem:[%s4364_s3 + $0x268] sm:$0xff]  }
  0xef   : >> { %3301 = vmatprep.subr.bf16.mxu1 %v3549_v25  ;;  %v3594_v24 = vld [vmem:[%s4364_s3 + $0x200] sm:$0xff]   ;;  %v3613_v43 = vld [vmem:[%s4364_s3 + $0x2e8] sm:$0xff]   ;;  %v3616_v46 = vld [vmem:[%s4364_s3 + $0x270] sm:$0xff]  }
  0xf0   : >> { %v3595_v25 = vld [vmem:[%s4364_s3 + $0x280] sm:$0xff]   ;;  %v3614_v44 = vld [vmem:[%s4364_s3 + $0x228] sm:$0xff]   ;;  %v3617_v47 = vld [vmem:[%s4364_s3 + $0x2f0] sm:$0xff]  }
  0xf1   : >> { %3280 = vmatpush3.bf16.msra.mxu0 %v3550_v26  ;;  %v3596_v26 = vld [vmem:[%s4364_s3 + $0x248] sm:$0xff]   ;;  %v3618_v48 = vld [vmem:[%s4364_s3 + $0x230] sm:$0xff]   ;;  %v3622_v52 = vld [vmem:[%s4364_s3 + $0x238] sm:$0xff]  }
  0xf2   : >> { %3302 = vmatpush3.bf16.msra.mxu1 %v3551_v27  ;;  %3281 = vmatprep.subr.bf16.mxu0 %v3552_v28  ;;  %v3597_v27 = vld [vmem:[%s4364_s3 + $0x2c8] sm:$0xff]   ;;  %v3619_v49 = vld [vmem:[%s4364_s3 + $0x2b0] sm:$0xff]   ;;  %v3623_v53 = vld [vmem:[%s4364_s3 + $0x2b8] sm:$0xff]  }
  0xf3   : >> { %3303 = vmatprep.subr.bf16.mxu1 %v3553_v29  ;;  %v3598_v28 = vld [vmem:[%s4364_s3 + $0x208] sm:$0xff]   ;;  %v3063_v54 = vld [vmem:[%s4405_s11 + $0x10] sm:$0x77] }
  0xf4   : >> { %v3599_v29 = vld [vmem:[%s4364_s3 + $0x288] sm:$0xff]  }
  0xf5   : >> { %3282 = vmatpush3.bf16.msra.mxu0 %v3554_v30  ;;  %v3600_v30 = vld [vmem:[%s4364_s3 + $0x250] sm:$0xff]   ;;  %v3615_v45 = vld [vmem:[%s4364_s3 + $0x2a8] sm:$0xff]  }
  0xf6   : >> { %3304 = vmatpush3.bf16.msra.mxu1 %v3555_v31  ;;  %3311 = vmatprep.subr.bf16.mxu0 %v3560_v38  ;;  %v3601_v31 = vld [vmem:[%s4364_s3 + $0x2d0] sm:$0xff]   ;;  %v3608_v38 = vld [vmem:[%s4364_s3 + $0x260] sm:$0xff]   ;;  %v3064_v55 = vld [vmem:[%s4405_s11 + $0x18] sm:$0x77] }
  0xf7   : >> { %3333 = vmatprep.subr.bf16.mxu1 %v3561_v39  ;;  %v3609_v39 = vld [vmem:[%s4364_s3 + $0x2e0] sm:$0xff]  }
  0xf8   : >> { %1641 = vmatmul.mubr.bf16.vlgmr.msra.gmra.mrb[0].mxu0 %v1390_v57  ;;  %v3628_v57 = vld [vmem:[%s4364_s3 + $0x340] sm:$0xff]  }
  0xf9   : >> { %1681 = vmatmul.mubr.bf16.vlgmr.msra.gmra.mrb[0].mxu1 %v1404_v58  ;;  %3312 = vmatpush3.bf16.msra.mxu0 %v3562_v50  ;;  %v3620_v50 = vld [vmem:[%s4364_s3 + $0x278] sm:$0xff]   ;;  %v3132_v58 = vcombine.high %v3064_v55, %v3064_v55 }
  0xfa   : >> { %3334 = vmatpush3.bf16.msra.mxu1 %v3563_v51  ;;  %3313 = vmatprep.subr.bf16.mxu0 %v3564_v56  ;;  %v3621_v51 = vld [vmem:[%s4364_s3 + $0x2f8] sm:$0xff]   ;;  %v3130_v56 = vcombine.high %v3063_v54, %v3063_v54 }
  0xfb   : >> { %3335 = vmatprep.subr.bf16.mxu1 %v3565_v59  ;;  %1916 = vmatprep.mubr.bf16.mxu0 %v2995_v35  ;;  %v3605_v35 = vld [vmem:[%s4364_s3 + $0x2d8] sm:$0xff]   ;;  %v3629_v59 = vld [vmem:[%s4364_s3 + $0x3c0] sm:$0xff]  }
  0xfc   : >> { %1956 = vmatprep.mubr.bf16.mxu1 %v2997_v37  ;;  %v3607_v37 = vld [vmem:[%s4364_s3 + $0x298] sm:$0xff]  }
  0xfd   : >> { %3314 = vmatpush3.bf16.msra.mxu0 %v3566_v60  ;;  %v3630_v60 = vld [vmem:[%s4364_s3 + $0x300] sm:$0xff]  }
  0xfe   : >> { %3336 = vmatpush3.bf16.msra.mxu1 %v3567_v61  ;;  %3315 = vmatprep.subr.bf16.mxu0 %v3568_v62  ;;  %v2395_v61 = vshrl.u32 %v3130_v56, 16  ;;  %v4490_v62 = vcombine.low %v3063_v54, %v3063_v54 }
  0xff   : >> { %3337 = vmatprep.subr.bf16.mxu1 %v3569_v63  ;;  %v4492_v63 = vcombine.low %v3064_v55, %v3064_v55 }
 0x101   : >> { %3316 = vmatpush3.bf16.msra.mxu0 %v3570_v0  ;;  %v3631_v0 = vld [vmem:[%s4364_s3 + $0x380] sm:$0xff]  }
 0x102   : >> { %3338 = vmatpush3.bf16.msra.mxu1 %v3571_v1  ;;  %3317 = vmatprep.subr.bf16.mxu0 %v3572_v2  ;;  %v2397_v1 = vshll.u32 %v3130_v56, 16  ;;  %v3632_v2 = vld [vmem:[%s4364_s3 + $0x348] sm:$0xff]  }
 0x103   : >> { %3339 = vmatprep.subr.bf16.mxu1 %v3573_v3  ;;  %v2409_v3 = vshrl.u32 %v3132_v58, 16 }
 0x105   : >> { %3318 = vmatpush3.bf16.msra.mxu0 %v3574_v4  ;;  %v3633_v4 = vld [vmem:[%s4364_s3 + $0x3c8] sm:$0xff]  }
 0x106   : >> { %3340 = vmatpush3.bf16.msra.mxu1 %v3575_v5  ;;  %3319 = vmatprep.subr.bf16.mxu0 %v3576_v6  ;;  %v2399_v5 = vrot.slane %v2397_v1, 1  ;;  %v3634_v6 = vld [vmem:[%s4364_s3 + $0x308] sm:$0xff]  }
 0x107   : >> { %3341 = vmatprep.subr.bf16.mxu1 %v3577_v7  ;;  %v2411_v7 = vshll.u32 %v3132_v58, 16 }
 0x109   : >> { %3320 = vmatpush3.bf16.msra.mxu0 %v3578_v8  ;;  %v3635_v8 = vld [vmem:[%s4364_s3 + $0x388] sm:$0xff]  }
 0x10a   : >> { %3342 = vmatpush3.bf16.msra.mxu1 %v3579_v9  ;;  %3321 = vmatprep.subr.bf16.mxu0 %v3580_v10  ;;  %v2400_v9 = vor.u32 %v2399_v5, %v2395_v61  ;;  %v3636_v10 = vld [vmem:[%s4364_s3 + $0x350] sm:$0xff]  }
 0x10b   : >> { %3343 = vmatprep.subr.bf16.mxu1 %v3581_v11  ;;  %v2413_v11 = vrot.slane %v2411_v7, 1 }
 0x10d   : >> { %3322 = vmatpush3.bf16.msra.mxu0 %v3582_v12  ;;  %v3637_v12 = vld [vmem:[%s4364_s3 + $0x3d0] sm:$0xff]  }
 0x10e   : >> { %3344 = vmatpush3.bf16.msra.mxu1 %v3583_v13  ;;  %3323 = vmatprep.subr.bf16.mxu0 %v3584_v14  ;;  %v3638_v13 = vld [vmem:[%s4364_s3 + $0x310] sm:$0xff]   ;;  %v2414_v14 = vor.u32 %v2413_v11, %v2409_v3 }
 0x10f   : >> { %3345 = vmatprep.subr.bf16.mxu1 %v3585_v15  ;;  %v3639_v15 = vld [vmem:[%s4364_s3 + $0x390] sm:$0xff]  }
 0x111   : >> { %3324 = vmatpush3.bf16.msra.mxu0 %v3586_v16  ;;  %v3640_v16 = vld [vmem:[%s4364_s3 + $0x358] sm:$0xff]  }
 0x112   : >> { %3346 = vmatpush3.bf16.msra.mxu1 %v3587_v17  ;;  %3325 = vmatprep.subr.bf16.mxu0 %v3588_v18  ;;  %v3641_v17 = vld [vmem:[%s4364_s3 + $0x3d8] sm:$0xff]  }
 0x113   : >> { %3347 = vmatprep.subr.bf16.mxu1 %v3589_v19  ;;  %v3642_v18 = vld [vmem:[%s4364_s3 + $0x318] sm:$0xff]  }
 0x114   : >> { %v3643_v19 = vld [vmem:[%s4364_s3 + $0x398] sm:$0xff]  }
 0x115   : >> { %3326 = vmatpush3.bf16.msra.mxu0 %v3590_v20  ;;  %v3644_v20 = vld [vmem:[%s4364_s3 + $0x360] sm:$0xff]  }
 0x116   : >> { %3348 = vmatpush3.bf16.msra.mxu1 %v3591_v21  ;;  %3355 = vmatprep.subr.bf16.mxu0 %v3592_v22  ;;  %v3645_v21 = vld [vmem:[%s4364_s3 + $0x3e0] sm:$0xff]  }
 0x117   : >> { %3377 = vmatprep.subr.bf16.mxu1 %v3593_v23  ;;  %v3646_v22 = vld [vmem:[%s4364_s3 + $0x320] sm:$0xff]  }
 0x118   : >> { %1917 = vmatmul.mubr.bf16.vlgmr.msra.gmra.mrb[4].mxu0 %v4411_v34  ;;  %v3604_v34 = vld [vmem:[%s4364_s3 + $0x258] sm:$0xff]   ;;  %v3647_v23 = vld [vmem:[%s4364_s3 + $0x3a0] sm:$0xff]  }
 0x119   : >> { %1957 = vmatmul.mubr.bf16.vlgmr.msra.gmra.mrb[4].mxu1 %v4413_v36  ;;  %3356 = vmatpush3.bf16.msra.mxu0 %v3594_v24  ;;  %v3606_v36 = vld [vmem:[%s4364_s3 + $0x218] sm:$0xff]   ;;  %v3648_v24 = vld [vmem:[%s4364_s3 + $0x368] sm:$0xff]  }
 0x11a   : >> { %3378 = vmatpush3.bf16.msra.mxu1 %v3595_v25  ;;  %3357 = vmatprep.subr.bf16.mxu0 %v3596_v26  ;;  %v3649_v25 = vld [vmem:[%s4364_s3 + $0x3e8] sm:$0xff]  }
 0x11b   : >> { %3379 = vmatprep.subr.bf16.mxu1 %v3597_v27  ;;  %2273 = vmatprep.mubr.bf16.mxu0 %v3130_v56  ;;  %v3650_v26 = vld [vmem:[%s4364_s3 + $0x328] sm:$0xff]  }
 0x11c   : >> { %2313 = vmatprep.mubr.bf16.mxu1 %v3132_v58  ;;  %v3651_v27 = vld [vmem:[%s4364_s3 + $0x3a8] sm:$0xff]  }
 0x11d   : >> { %3358 = vmatpush3.bf16.msra.mxu0 %v3598_v28  ;;  %v3652_v28 = vld [vmem:[%s4364_s3 + $0x370] sm:$0xff]  }
 0x11e   : >> { %3380 = vmatpush3.bf16.msra.mxu1 %v3599_v29  ;;  %3359 = vmatprep.subr.bf16.mxu0 %v3600_v30  ;;  %v3653_v29 = vld [vmem:[%s4364_s3 + $0x3f0] sm:$0xff]  }
 0x11f   : >> { %3381 = vmatprep.subr.bf16.mxu1 %v3601_v31  ;;  %v3654_v30 = vld [vmem:[%s4364_s3 + $0x330] sm:$0xff]   ;;  %v2390_v31 = vshll.u32 %v4490_v62, 16 }
 0x121   : >> { %3360 = vmatpush3.bf16.msra.mxu0 %v3602_v32  ;;  %v3655_v32 = vld [vmem:[%s4364_s3 + $0x3b0] sm:$0xff]  }
 0x122   : >> { %3382 = vmatpush3.bf16.msra.mxu1 %v3603_v33  ;;  %3361 = vmatprep.subr.bf16.mxu0 %v3604_v34  ;;  %v2404_v33 = vshll.u32 %v4492_v63, 16  ;;  %v3656_v34 = vld [vmem:[%s4364_s3 + $0x378] sm:$0xff]  }
 0x123   : >> { %3383 = vmatprep.subr.bf16.mxu1 %v3605_v35  ;;  %v3657_v35 = vld [vmem:[%s4364_s3 + $0x3f8] sm:$0xff]  }
 0x125   : >> { %3362 = vmatpush3.bf16.msra.mxu0 %v3606_v36  ;;  %v2388_v36 = vshrl.u32 %v4490_v62, 16 }
 0x126   : >> { %3384 = vmatpush3.bf16.msra.mxu1 %v3607_v37  ;;  %3363 = vmatprep.subr.bf16.mxu0 %v3608_v38  ;;  %v2402_v37 = vshrl.u32 %v4492_v63, 16  ;;  %v2392_v38 = vrot.slane %v2390_v31, 1 }
 0x127   : >> { %3385 = vmatprep.subr.bf16.mxu1 %v3609_v39  ;;  %v2406_v39 = vrot.slane %v2404_v33, 1 }
 0x129   : >> { %3364 = vmatpush3.bf16.msra.mxu0 %v3610_v40  ;;  %v3658_v40 = vld [vmem:[%s4364_s3 + $0x338] sm:$0xff]  }
 0x12a   : >> { %3386 = vmatpush3.bf16.msra.mxu1 %v3611_v41  ;;  %3365 = vmatprep.subr.bf16.mxu0 %v3612_v42  ;;  %v3659_v41 = vld [vmem:[%s4364_s3 + $0x3b8] sm:$0xff]   ;;  %v2393_v42 = vor.u32 %v2392_v38, %v2388_v36 }
 0x12b   : >> { %3387 = vmatprep.subr.bf16.mxu1 %v3613_v43  ;;  %v2407_v43 = vor.u32 %v2406_v39, %v2402_v37 }
 0x12d   : >> { %3366 = vmatpush3.bf16.msra.mxu0 %v3614_v44 }
 0x12e   : >> { %3388 = vmatpush3.bf16.msra.mxu1 %v3615_v45  ;;  %3367 = vmatprep.subr.bf16.mxu0 %v3616_v46 }
 0x12f   : >> { %3389 = vmatprep.subr.bf16.mxu1 %v3617_v47 }
 0x131   : >> { %3368 = vmatpush3.bf16.msra.mxu0 %v3618_v48 }
 0x132   : >> { %3390 = vmatpush3.bf16.msra.mxu1 %v3619_v49  ;;  %3369 = vmatprep.subr.bf16.mxu0 %v3620_v50 }
 0x133   : >> { %3391 = vmatprep.subr.bf16.mxu1 %v3621_v51 }
 0x135   : >> { %3370 = vmatpush3.bf16.msra.mxu0 %v3622_v52 }
 0x136   : >> { %3392 = vmatpush3.bf16.msra.mxu1 %v3623_v53  ;;  %3399 = vmatprep.subr.bf16.mxu0 %v3628_v57 }
 0x137   : >> { %3421 = vmatprep.subr.bf16.mxu1 %v3629_v59 }
 0x138   : >> { %2274 = vmatmul.mubr.bf16.vlgmr.msra.gmra.mrb[8].mxu0 %v4490_v62 }
 0x139   : >> { %2314 = vmatmul.mubr.bf16.vlgmr.msra.gmra.mrb[8].mxu1 %v4492_v63  ;;  %3400 = vmatpush3.bf16.msra.mxu0 %v3630_v60 }
 0x13a   : >> { %3422 = vmatpush3.bf16.msra.mxu1 %v3631_v0  ;;  %3401 = vmatprep.subr.bf16.mxu0 %v3632_v2 }
 0x13b   : >> { %3423 = vmatprep.subr.bf16.mxu1 %v3633_v4  ;;  %2643 = vmatprep.mubr.bf16.mxu0 %v2400_v9 }
 0x13c   : >> { %2683 = vmatprep.mubr.bf16.mxu1 %v2414_v14 }
 0x13d   : >> { %3402 = vmatpush3.bf16.msra.mxu0 %v3634_v6 }
 0x13e   : >> { %3424 = vmatpush3.bf16.msra.mxu1 %v3635_v8  ;;  %3403 = vmatprep.subr.bf16.mxu0 %v3636_v10 }
 0x13f   : >> { %3425 = vmatprep.subr.bf16.mxu1 %v3637_v12 }
 0x141   : >> { %3404 = vmatpush3.bf16.msra.mxu0 %v3638_v13 }
 0x142   : >> { %3426 = vmatpush3.bf16.msra.mxu1 %v3639_v15  ;;  %3405 = vmatprep.subr.bf16.mxu0 %v3640_v16 }
 0x143   : >> { %3427 = vmatprep.subr.bf16.mxu1 %v3641_v17 }
 0x145   : >> { %3406 = vmatpush3.bf16.msra.mxu0 %v3642_v18 }
 0x146   : >> { %3428 = vmatpush3.bf16.msra.mxu1 %v3643_v19  ;;  %3407 = vmatprep.subr.bf16.mxu0 %v3644_v20 }
 0x147   : >> { %3429 = vmatprep.subr.bf16.mxu1 %v3645_v21 }
 0x149   : >> { %3408 = vmatpush3.bf16.msra.mxu0 %v3646_v22 }
 0x14a   : >> { %3430 = vmatpush3.bf16.msra.mxu1 %v3647_v23  ;;  %3409 = vmatprep.subr.bf16.mxu0 %v3648_v24 }
 0x14b   : >> { %3431 = vmatprep.subr.bf16.mxu1 %v3649_v25 }
 0x14d   : >> { %3410 = vmatpush3.bf16.msra.mxu0 %v3650_v26 }
 0x14e   : >> { %3432 = vmatpush3.bf16.msra.mxu1 %v3651_v27  ;;  %3411 = vmatprep.subr.bf16.mxu0 %v3652_v28 }
 0x14f   : >> { %3433 = vmatprep.subr.bf16.mxu1 %v3653_v29 }
 0x151   : >> { %3412 = vmatpush3.bf16.msra.mxu0 %v3654_v30 }
 0x152   : >> { %3434 = vmatpush3.bf16.msra.mxu1 %v3655_v32  ;;  %3413 = vmatprep.subr.bf16.mxu0 %v3656_v34 }
 0x153   : >> { %3435 = vmatprep.subr.bf16.mxu1 %v3657_v35 }
 0x155   : >> { %3414 = vmatpush3.bf16.msra.mxu0 %v3658_v40 }
 0x156   : >> { %3436 = vmatpush3.bf16.msra.mxu1 %v3659_v41 }
 0x158   : >> { %2644 = vmatmul.mubr.bf16.vlgmr.msra.gmra.mrb[12].mxu0 %v2393_v42 }
 0x159   : >> { %2684 = vmatmul.mubr.bf16.vlgmr.msra.gmra.mrb[12].mxu1 %v2407_v43 }
 0x1cb   : >> { %v3283_v44 = vpop.f32.mrb[0].mxu0 }
 0x1cc   : >> { %v3305_v45 = vpop.f32.mrb[0].mxu1  ;;  %v3284_v46 = vpop.f32.mrb[1].mxu0 }
 0x1cd   : >> { %v3306_v47 = vpop.f32.mrb[1].mxu1  ;;  %v3285_v48 = vadd.f32 %v3284_v46, %v3283_v44  ;;  %v3286_v50 = vpop.f32.mrb[2].mxu0 }
 0x1ce   : >> { %v3307_v49 = vadd.f32 %v3306_v47, %v3305_v45  ;;  %v3308_v51 = vpop.f32.mrb[2].mxu1  ;;  %v3287_v52 = vpop.f32.mrb[3].mxu0 }
 0x1cf   : >> { %v3309_v53 = vpop.f32.mrb[3].mxu1 }
 0x1d0   : >> { %v1683_v54 = vadd.f32 %v3307_v49, %v3285_v48 }
 0x1eb   : >> { %v3327_v55 = vpop.f32.mrb[4].mxu0 }
 0x1ec   : >> { %v3349_v56 = vpop.f32.mrb[4].mxu1  ;;  %v3328_v57 = vpop.f32.mrb[5].mxu0 }
 0x1ed   : >> { %v3350_v58 = vpop.f32.mrb[5].mxu1  ;;  %v3329_v59 = vadd.f32 %v3328_v57, %v3327_v55  ;;  %v3330_v61 = vpop.f32.mrb[6].mxu0 }
 0x1ee   : >> { %v3351_v60 = vadd.f32 %v3350_v58, %v3349_v56  ;;  %v3352_v62 = vpop.f32.mrb[6].mxu1  ;;  %v3331_v63 = vpop.f32.mrb[7].mxu0 }
 0x1ef   : >> { %v3353_v0 = vpop.f32.mrb[7].mxu1  ;;  %v1919_v1 = vadd.f32 %v3329_v59, %v1683_v54 }
 0x1f1   : >> { %v1959_v2 = vadd.f32 %v3351_v60, %v1919_v1 }
 0x20b   : >> { %v3371_v3 = vpop.f32.mrb[8].mxu0 }
 0x20c   : >> { %v3393_v4 = vpop.f32.mrb[8].mxu1  ;;  %v3372_v5 = vpop.f32.mrb[9].mxu0 }
 0x20d   : >> { %v3394_v6 = vpop.f32.mrb[9].mxu1  ;;  %v3373_v7 = vadd.f32 %v3372_v5, %v3371_v3  ;;  %v3374_v9 = vpop.f32.mrb[10].mxu0 }
 0x20e   : >> { %v3395_v8 = vadd.f32 %v3394_v6, %v3393_v4  ;;  %v3396_v10 = vpop.f32.mrb[10].mxu1  ;;  %v3375_v11 = vpop.f32.mrb[11].mxu0 }
 0x20f   : >> { %v3397_v12 = vpop.f32.mrb[11].mxu1 }
 0x210   : >> { %v2316_v13 = vadd.f32 %v3395_v8, %v3373_v7 }
 0x212   : >> { %v2321_v14 = vadd.f32 %v2316_v13, %v1959_v2 }
 0x22b   : >> { %v3415_v15 = vpop.f32.mrb[12].mxu0 }
 0x22c   : >> { %v3437_v16 = vpop.f32.mrb[12].mxu1  ;;  %v3416_v17 = vpop.f32.mrb[13].mxu0 }
 0x22d   : >> { %v3438_v18 = vpop.f32.mrb[13].mxu1  ;;  %v3417_v19 = vadd.f32 %v3416_v17, %v3415_v15  ;;  %v3418_v21 = vpop.f32.mrb[14].mxu0 }
 0x22e   : >> { %v3439_v20 = vadd.f32 %v3438_v18, %v3437_v16  ;;  %v3440_v22 = vpop.f32.mrb[14].mxu1  ;;  %v3419_v23 = vpop.f32.mrb[15].mxu0  ;;  %1238 = sbr.rel (!%p1236_p1) target bundleno = 214 (0xd6), region = 161 }
 0x22f   : >> { %v3441_v24 = vpop.f32.mrb[15].mxu1 }
 0x230   : >> { %v2686_v25 = vadd.f32 %v3439_v20, %v3417_v19 }
 0x232   : >> { %v2691_v26 = vadd.f32 %v2686_v25, %v2321_v14 }
 0x234   : >> { %2693 = vst [vmem:[%s2692_s7] sm:$0xf] %v2691_v26 }
 0x235   : > { %s3262_s8 = sshll.u32 (%p3824_p9), %s3724_s14, 3 }
 0x236   : > { %s2770_s18 = sadd.s32 (%p3824_p9), %s3720_s13, %s3262_s8 }
 0x237   : > { %s3263_s21 = sshll.u32 (%p3824_p9), %s2770_s18, 1 }
 0x238   : > { %s2772_s25 = scalar_lea.vmem (%p3824_p9), %s4585_s2, %s3263_s21 }
 0x23b   : > { %v2694_v27 = vld [vmem:[#allocation2] sm:$0xf]  ;;  %v2695_v28 = vld [vmem:[#allocation2 + $0x4] sm:$0xf]  ;;  %v2696_v29 = vld [vmem:[#allocation2 + $0x8] sm:$0xf] }
 0x23c   : > { %v2697_v30 = vld [vmem:[#allocation2 + $0xc] sm:$0xf]  ;;  %v2699_v31 = vsel %vm2698_vm0, %v2694_v27, 0.0  ;;  %v2700_v32 = vsel %vm2698_vm0, %v2695_v28, 0.0  ;;  %v2702_v33 = vsel %vm2698_vm0, %v2696_v29, 0.0 }
 0x23d   : > { %v2701_v34 = vadd.f32 %v2700_v32, %v2699_v31  ;;  %v2704_v35 = vsel %vm2698_vm0, %v2697_v30, 0.0 }
 0x23f   : > { %v2703_v36 = vadd.f32 %v2702_v33, %v2701_v34 }
 0x241   : > { %v2705_v37 = vadd.f32 %v2704_v35, %v2703_v36 }
 0x243   : > { %v2706_v38 = vrot.slane %v2705_v37, 4 }
 0x245   : > { %v2707_v39 = vadd.f32 %v2706_v38, %v2705_v37 }
 0x247   : > { %v2708_v40 = vrot.slane %v2707_v39, 2 }
 0x249   : > { %v2709_v41 = vadd.f32 %v2708_v40, %v2707_v39 }
 0x24b   : > { %v2710_v42 = vrot.slane %v2709_v41, 1 }
 0x24d   : > { %v2711_v43 = vadd.f32 %v2710_v42, %v2709_v41 }
 0x24f   : > { %v2713_v44 = vmul.f32 0.0625, %v2711_v43 }
 0x251   : > { %v2714_v45 = vsub.f32 %v2694_v27, %v2713_v44  ;;  %v2715_v46 = vsub.f32 %v2695_v28, %v2713_v44  ;;  %v2716_v47 = vsub.f32 %v2696_v29, %v2713_v44  ;;  %v2717_v48 = vsub.f32 %v2697_v30, %v2713_v44 }
 0x253   : > { %v2718_v49 = vmul.f32 %v2714_v45, %v2714_v45  ;;  %v2719_v50 = vmul.f32 %v2715_v46, %v2715_v46  ;;  %v2720_v51 = vmul.f32 %v2716_v47, %v2716_v47  ;;  %v2721_v52 = vmul.f32 %v2717_v48, %v2717_v48 }
 0x255   : > { %v2722_v53 = vsel %vm2698_vm0, %v2718_v49, 0.0  ;;  %v2723_v54 = vsel %vm2698_vm0, %v2719_v50, 0.0  ;;  %v2725_v55 = vsel %vm2698_vm0, %v2720_v51, 0.0  ;;  %v2727_v57 = vsel %vm2698_vm0, %v2721_v52, 0.0 }
 0x256   : > { %v2724_v56 = vadd.f32 %v2723_v54, %v2722_v53 }
 0x258   : > { %v2726_v58 = vadd.f32 %v2725_v55, %v2724_v56 }
 0x25a   : > { %v2728_v59 = vadd.f32 %v2727_v57, %v2726_v58 }
 0x25c   : > { %v2729_v60 = vrot.slane %v2728_v59, 4 }
 0x25e   : > { %v2730_v61 = vadd.f32 %v2729_v60, %v2728_v59 }
 0x260   : > { %v2731_v62 = vrot.slane %v2730_v61, 2 }
 0x262   : > { %v2732_v63 = vadd.f32 %v2731_v62, %v2730_v61 }
 0x264   : > { %v2733_v0 = vrot.slane %v2732_v63, 1 }
 0x266   : > { %v2734_v1 = vadd.f32 %v2733_v0, %v2732_v63 }
 0x268   : > { %v2735_v2 = vmul.f32 0.0625, %v2734_v1 }
 0x26a   : > { %v2736_v3 = vadd.f32 1e-05, %v2735_v2 }
 0x26c   : > { %3660 = vrsqrt.f32 %v2736_v3 }
 0x276   : > { %v3661_v4 = vpop.eup %3660 }
 0x277   : > { %v2738_v5 = vmul.f32 %v3661_v4, %v2714_v45  ;;  %v2739_v6 = vmul.f32 %v3661_v4, %v2715_v46  ;;  %v2740_v7 = vmul.f32 %v3661_v4, %v2716_v47  ;;  %v2741_v8 = vmul.f32 %v3661_v4, %v2717_v48 }
 0x279   : > { %vm2742_vm1 = vcmp.ge.f32.partialorder %v2738_v5, 0.0  ;;  %v2746_v9 = vmul.f32 0.2, %v2738_v5  ;;  %vm2743_vm2 = vcmp.ge.f32.partialorder %v2739_v6, 0.0  ;;  %v2747_v10 = vmul.f32 0.2, %v2739_v6 }
 0x27a   : > { %vm2744_vm3 = vcmp.ge.f32.partialorder %v2740_v7, 0.0  ;;  %v2748_v11 = vmul.f32 0.2, %v2740_v7  ;;  %vm2745_vm4 = vcmp.ge.f32.partialorder %v2741_v8, 0.0  ;;  %v2749_v12 = vmul.f32 0.2, %v2741_v8 }
 0x27b   : > { %v2750_v13 = vsel %vm2742_vm1, %v2738_v5, %v2746_v9  ;;  %v2751_v14 = vsel %vm2743_vm2, %v2739_v6, %v2747_v10  ;;  %2768 = sbr.rel (!%p3824_p9) target bundleno = 649 (0x289), region = 80 }
 0x27c   : > { %v2754_v15 = vpack.c.bf16 %v2750_v13, %v2750_v13  ;;  %v2755_v16 = vpack.c.bf16 %v2751_v14, %v2751_v14  ;;  %v2752_v17 = vsel %vm2744_vm3, %v2740_v7, %v2748_v11  ;;  %v2753_v18 = vsel %vm2745_vm4, %v2741_v8, %v2749_v12 }
 0x27d   : > { %v2756_v19 = vpack.c.bf16 %v2752_v17, %v2752_v17  ;;  %v2757_v20 = vpack.c.bf16 %v2753_v18, %v2753_v18 }
 0x27e   : > { %2758 = vst [vmem:[%s4366_s4] sm:$0x3] %v2754_v15  ;;  %2759 = vst [vmem:[%s4366_s4 + $0x2] sm:$0x3] %v2755_v16 }
 0x27f   : > { %2760 = vst [vmem:[%s4366_s4 + $0x4] sm:$0x3] %v2756_v19  ;;  %2761 = vst [vmem:[%s4366_s4 + $0x6] sm:$0x3] %v2757_v20 }
 0x285   : > { %v2788_v21 = vld [vmem:[%s4366_s4] sm:$0x3]  ;;  %v2790_v22 = vld [vmem:[%s4366_s4 + $0x2] sm:$0x3] }
 0x286   : > { %v2792_v23 = vld [vmem:[%s4366_s4 + $0x4] sm:$0x3]  ;;  %v2794_v24 = vld [vmem:[%s4366_s4 + $0x6] sm:$0x3]  ;;  %2789 = vst [vmem:[%s2772_s25] sm:$0x3] %v2788_v21 }
 0x287   : > { %2791 = vst [vmem:[%s2772_s25 + $0x4] sm:$0x3] %v2790_v22  ;;  %2793 = vst [vmem:[%s2772_s25 + $0x8] sm:$0x3] %v2792_v23 }
 0x288   : > { %2795 = vst [vmem:[%s2772_s25 + $0xc] sm:$0x3] %v2794_v24 }
 0x289 PF: > { %s12_s17 = sadd.s32 1, %s3736_s17   ;;  %s4587_s9 = smov %s3708_s10 }
 0x28a   : > { %p9_p2 = scmp.ge.s32.totalorder %s12_s17, 6   ;;  %s4588_s10 = smov %s3829_s28 }
 0x28b   : > { %s4589_s11 = smov %s3716_s12  ;;  %s4590_s12 = smov %s3818_s24 }
 0x28c   : > { %s4591_s13 = smov %s3728_s15  ;;  %s4592_s14 = smov %s3732_s16 }
 0x28d   : > { %s4593_s15 = smov %s4596_s19  ;;  %s4594_s16 = smov %s4600_s20 }
 0x28e   :  { %11 = sbr.rel (!%p9_p2) target bundleno = 5 (0x5), region = 172 }

// kernel: discriminator_forward.9
= control target key start
LH: loop header
LB: loop body
LE: loop exit
PB: predicated region body
PF: predicated region fallthrough
CT: control target
= control target key end

     0   :  { %s1935_s14 = smov 0   ;;  %s2531_s0 = inlined_call_operand.vmem [shape: bf16[2,5,5,512], index: 0, kind: input, shape index: {}]   ;;  %s2532_s1 = inlined_call_operand.vmem [shape: bf16[16,1,512], index: 1, kind: input, shape index: {}]   ;;  %s2533_s2 = inlined_call_operand.<no memory space> [shape: f32[1,1], index: 2, kind: input, shape index: {}]   ;;  %s2534_s3 = inlined_call_operand.vmem [shape: f32[2,1], index: 3, kind: output, shape index: {}]  }
   0x1   :  { %v8_v0 = vstv %s2533_s2 }
   0x2   :  { %9 = vst [vmem:[#allocation2] sm:$0x1] %v8_v0 }
   0x3 LB: > { %s1941_s15 = sadd.s32 4294967295, %s1910_s14   ;;  %p1828_p0 = scmp.ge.s32.totalorder %s1910_s14, 1  ;;  %s1910_s14 = sphi %s1935_s14, %s15_s14  }
   0x4   : > { %p134_p1 = scmp.lt.s32.totalorder %s1910_s14, 3 }
   0x6   : > { %p135_p2 = pnand %p1828_p0, %p134_p1 }
   0x7   : > { %p153_p3 = scmp.lt.s32.totalorder (!%p135_p2), %s1941_s15, 1  ;;  %v220_v1 = vld [vmem:[%s2532_s1] sm:$0xff] (!%p135_p2)   ;;  %vm170_vm0 = vcmask (!%p135_p2), 1041408   ;;  %v223_v6 = vlaneseq (!%p135_p2)  ;;  %vm263_vm1 = vcmask (!%p135_p2), 1042433   ;;  %v1831_v48 = vld [vmem:[%s2532_s1 + $0x8] sm:$0xff] (!%p135_p2)   ;;  %v1837_v49 = vld [vmem:[%s2532_s1 + $0x10] sm:$0xff] (!%p135_p2)   ;;  %s1793_s11 = scalar_lea.vmem (!%p135_p2), %s2534_s3, %s1941_s15 }
   0x8   : > { %138 = sbr.rel (%p135_p2) target bundleno = 462 (0x1ce), region = 32  ;;  %v1958_v5 = vunpack.c.l.bf16 (!%p135_p2), %v220_v1  ;;  %v1973_v35 = vunpack.c.h.bf16 (!%p135_p2), %v220_v1  ;;  %v1989_v59 = vunpack.c.l.bf16 (!%p135_p2), %v1831_v48  ;;  %v1991_v60 = vunpack.c.h.bf16 (!%p135_p2), %v1831_v48 }
   0x9   : > { %v224_v58 = vshrl.u32 (!%p135_p2), %v223_v6, 7  ;;  %v1993_v61 = vunpack.c.l.bf16 (!%p135_p2), %v1837_v49  ;;  %vm368_vm2 = vcmask (!%p135_p2), 1043458   ;;  %vm473_vm3 = vcmask (!%p135_p2), 1044483  }
   0xa   : > { %vm1781_vm4 = vcmask (!%p135_p2), 1040384   ;;  %vm1794_vm5 = vcmask (!%p135_p2), 0  }
   0xf   : > { %s154_s2 = scalar_select %p153_p3, %s1941_s15, 1 }
  0x11   : > { %s1895_s16 = smul.u32 80, %s154_s2 }
  0x13   : > { %s1953_s21 = scalar_lea.vmem %s2531_s0, %s1895_s16 }
  0x14   : > { %v158_v2 = vld [vmem:[%s1953_s21] sm:$0x11]  ;;  %v159_v3 = vld [vmem:[%s1953_s21 + $0x8] sm:$0x11]  ;;  %v160_v4 = vld [vmem:[%s1953_s21 + $0x10] sm:$0x11] }
  0x15   : > { %v161_v7 = vld [vmem:[%s1953_s21 + $0x18] sm:$0x11]  ;;  %v162_v8 = vunpack.c.l.bf16 %v158_v2  ;;  %v163_v9 = vunpack.c.h.bf16 %v158_v2  ;;  %v164_v10 = vunpack.c.l.bf16 %v159_v3  ;;  %v165_v11 = vunpack.c.h.bf16 %v159_v3  ;;  %v251_v16 = vld [vmem:[%s1953_s21] sm:$0x33]  ;;  %v252_v21 = vld [vmem:[%s1953_s21 + $0x8] sm:$0x33] }
  0x16   : > { %v166_v12 = vunpack.c.l.bf16 %v160_v4  ;;  %v167_v13 = vunpack.c.h.bf16 %v160_v4  ;;  %v168_v14 = vunpack.c.l.bf16 %v161_v7  ;;  %v169_v15 = vunpack.c.h.bf16 %v161_v7  ;;  %v253_v30 = vld [vmem:[%s1953_s21 + $0x10] sm:$0x33]  ;;  %v254_v31 = vld [vmem:[%s1953_s21 + $0x18] sm:$0x33] }
  0x17   : > { %v171_v17 = vsel %vm170_vm0, %v162_v8, 0.0  ;;  %v174_v18 = vsel %vm170_vm0, %v163_v9, 0.0  ;;  %v177_v19 = vsel %vm170_vm0, %v164_v10, 0.0  ;;  %v180_v20 = vsel %vm170_vm0, %v165_v11, 0.0 }
  0x18   : > { %v172_v22 = vsel %vm170_vm0, %v166_v12, 0.0  ;;  %v175_v23 = vsel %vm170_vm0, %v167_v13, 0.0  ;;  %v178_v24 = vsel %vm170_vm0, %v168_v14, 0.0  ;;  %v181_v25 = vsel %vm170_vm0, %v169_v15, 0.0 }
  0x19   : > { %v173_v26 = vadd.f32 %v172_v22, %v171_v17  ;;  %v176_v27 = vadd.f32 %v175_v23, %v174_v18  ;;  %v179_v28 = vadd.f32 %v178_v24, %v177_v19  ;;  %v182_v29 = vadd.f32 %v181_v25, %v180_v20 }
  0x1a   : > { %v255_v32 = vunpack.c.l.bf16 %v251_v16  ;;  %v256_v33 = vunpack.c.h.bf16 %v251_v16  ;;  %v257_v34 = vunpack.c.l.bf16 %v252_v21  ;;  %v258_v40 = vunpack.c.h.bf16 %v252_v21 }
  0x1b   : > { %v184_v36 = vmul.f32 0.5, %v173_v26  ;;  %v185_v37 = vmul.f32 0.5, %v176_v27  ;;  %v186_v38 = vmul.f32 0.5, %v179_v28  ;;  %v187_v39 = vmul.f32 0.5, %v182_v29 }
  0x1c   : > { %v259_v41 = vunpack.c.l.bf16 %v253_v30  ;;  %v260_v42 = vunpack.c.h.bf16 %v253_v30  ;;  %v261_v43 = vunpack.c.l.bf16 %v254_v31  ;;  %v262_v47 = vunpack.c.h.bf16 %v254_v31 }
  0x1d   : > { %v188_v44 = vsel %vm170_vm0, %v184_v36, 0.0  ;;  %v195_v45 = vsel %vm170_vm0, %v185_v37, 0.0  ;;  %v202_v46 = vsel %vm170_vm0, %v186_v38, 0.0  ;;  %v209_v53 = vsel %vm170_vm0, %v187_v39, 0.0 }
  0x1e   : > { %v189_v50 = vrot.slane %v188_v44, 4  ;;  %v196_v51 = vrot.slane %v195_v45, 4  ;;  %v203_v52 = vrot.slane %v202_v46, 4  ;;  %v264_v54 = vsel %vm263_vm1, %v255_v32, 0.0 }
  0x1f   : > { %v265_v55 = vsel %vm263_vm1, %v259_v41, 0.0  ;;  %v267_v56 = vsel %vm263_vm1, %v256_v33, 0.0  ;;  %v268_v57 = vsel %vm263_vm1, %v260_v42, 0.0  ;;  %v270_v0 = vsel %vm263_vm1, %v257_v34, 0.0 }
  0x20   : > { %v266_v62 = vadd.f32 %v265_v55, %v264_v54  ;;  %v269_v63 = vadd.f32 %v268_v57, %v267_v56  ;;  %v271_v1 = vsel %vm263_vm1, %v261_v43, 0.0  ;;  %v190_v2 = vadd.f32 %v189_v50, %v188_v44  ;;  %v356_v44 = vld [vmem:[%s1953_s21] sm:$0x22]  ;;  %v358_v54 = vld [vmem:[%s1953_s21 + $0x10] sm:$0x22] }
  0x21   : > { %v197_v3 = vadd.f32 %v196_v51, %v195_v45  ;;  %v204_v4 = vadd.f32 %v203_v52, %v202_v46  ;;  %v210_v7 = vrot.slane %v209_v53, 4  ;;  %v272_v8 = vadd.f32 %v271_v1, %v270_v0  ;;  %v359_v55 = vld [vmem:[%s1953_s21 + $0x18] sm:$0x22] }
  0x22   : > { %v273_v9 = vsel %vm263_vm1, %v258_v40, 0.0  ;;  %v274_v6 = vsel %vm263_vm1, %v262_v47, 0.0  ;;  %v276_v10 = vmul.f32 0.5, %v266_v62  ;;  %v1999_v11 = vsub.s32 0, %v224_v58 }
  0x23   : > { %v2001_v12 = vsub.s32 2, %v224_v58  ;;  %v2003_v13 = vsub.s32 4, %v224_v58  ;;  %v2005_v14 = vunpack.c.h.bf16 %v1837_v49  ;;  %v275_v15 = vadd.f32 %v274_v6, %v273_v9  ;;  %v357_v49 = vld [vmem:[%s1953_s21 + $0x8] sm:$0x22] }
  0x24   : > { %v277_v16 = vmul.f32 0.5, %v269_v63  ;;  %v278_v17 = vmul.f32 0.5, %v272_v8  ;;  %v284_v18 = vrot.slane %v276_v10, 1  ;;  %v191_v19 = vrot.slane %v190_v2, 2 }
  0x25   : > { %v198_v20 = vrot.slane %v197_v3, 2  ;;  %v205_v21 = vrot.slane %v204_v4, 2  ;;  %v211_v22 = vadd.f32 %v210_v7, %v209_v53  ;;  %v279_v23 = vmul.f32 0.5, %v275_v15 }
  0x26   : > { %v285_v24 = vrot.slane %v277_v16, 1  ;;  %v286_v25 = vrot.slane %v278_v17, 1  ;;  %v292_v26 = vsel %vm170_vm0, %v284_v18, 0.0  ;;  %v226_v27 = vrot.slane %v1958_v5, %v1999_v11 }
  0x27   : > { %v230_v28 = vrot.slane %v1958_v5, %v2001_v12  ;;  %v234_v29 = vrot.slane %v1958_v5, %v2003_v13  ;;  %v2014_v30 = vsub.s32 6, %v224_v58  ;;  %v287_v31 = vrot.slane %v279_v23, 1 }
  0x28   : > { %v293_v32 = vrot.slane %v292_v26, 4  ;;  %v299_v33 = vsel %vm170_vm0, %v285_v24, 0.0  ;;  %v306_v34 = vsel %vm170_vm0, %v286_v25, 0.0  ;;  %v192_v36 = vadd.f32 %v191_v19, %v190_v2 }
  0x29   : > { %v199_v37 = vadd.f32 %v198_v20, %v197_v3  ;;  %v206_v38 = vadd.f32 %v205_v21, %v204_v4  ;;  %v212_v39 = vrot.slane %v211_v22, 2  ;;  %v300_v41 = vrot.slane %v299_v33, 4 }
  0x2a   : > { %v294_v40 = vadd.f32 %v293_v32, %v292_v26  ;;  %v307_v42 = vrot.slane %v306_v34, 4  ;;  %v313_v43 = vsel %vm170_vm0, %v287_v31, 0.0  ;;  %v238_v45 = vrot.slane %v1958_v5, %v2014_v30 }
  0x2b   : > { %v331_v46 = vrot.slane %v1973_v35, %v1999_v11  ;;  %v335_v47 = vrot.slane %v1973_v35, %v2001_v12  ;;  %v339_v48 = vrot.slane %v1973_v35, %v2003_v13  ;;  %v301_v51 = vadd.f32 %v300_v41, %v299_v33 }
  0x2c   : > { %v295_v50 = vrot.slane %v294_v40, 2  ;;  %v308_v52 = vadd.f32 %v307_v42, %v306_v34  ;;  %v314_v53 = vrot.slane %v313_v43, 4  ;;  %v193_v56 = vrot.slane %v192_v36, 1 }
  0x2d   : > { %v213_v57 = vadd.f32 %v212_v39, %v211_v22  ;;  %v360_v58 = vunpack.c.l.bf16 %v356_v44  ;;  %v361_v62 = vunpack.c.h.bf16 %v356_v44  ;;  %v200_v63 = vrot.slane %v199_v37, 1 }
  0x2e   : > { %v207_v0 = vrot.slane %v206_v38, 1  ;;  %v302_v1 = vrot.slane %v301_v51, 2  ;;  %v315_v2 = vadd.f32 %v314_v53, %v313_v43  ;;  %v362_v3 = vunpack.c.l.bf16 %v357_v49 }
  0x2f   : > { %v364_v4 = vunpack.c.l.bf16 %v358_v54  ;;  %v365_v7 = vunpack.c.h.bf16 %v358_v54  ;;  %v366_v8 = vunpack.c.l.bf16 %v359_v55  ;;  %v296_v9 = vadd.f32 %v295_v50, %v294_v40 }
  0x30   : > { %v309_v6 = vrot.slane %v308_v52, 2  ;;  %v363_v10 = vunpack.c.h.bf16 %v357_v49  ;;  %v367_v15 = vunpack.c.h.bf16 %v359_v55  ;;  %v369_v16 = vsel %vm368_vm2, %v360_v58, 0.0 }
  0x31   : > { %v370_v17 = vsel %vm368_vm2, %v364_v4, 0.0  ;;  %v372_v18 = vsel %vm368_vm2, %v361_v62, 0.0  ;;  %v373_v19 = vsel %vm368_vm2, %v365_v7, 0.0  ;;  %v194_v20 = vadd.f32 %v193_v56, %v192_v36 }
  0x32   : > { %v214_v21 = vrot.slane %v213_v57, 1  ;;  %v303_v22 = vadd.f32 %v302_v1, %v301_v51  ;;  %v316_v23 = vrot.slane %v315_v2, 2  ;;  %v371_v24 = vadd.f32 %v370_v17, %v369_v16  ;;  %v461_v17 = vld [vmem:[%s1953_s21] sm:$0x66] }
  0x33   : > { %v374_v25 = vadd.f32 %v373_v19, %v372_v18  ;;  %v375_v26 = vsel %vm368_vm2, %v362_v3, 0.0  ;;  %v376_v31 = vsel %vm368_vm2, %v366_v8, 0.0  ;;  %v201_v32 = vadd.f32 %v200_v63, %v199_v37 }
  0x34   : > { %v208_v33 = vadd.f32 %v207_v0, %v206_v38  ;;  %v297_v34 = vrot.slane %v296_v9, 1  ;;  %v310_v39 = vadd.f32 %v309_v6, %v308_v52  ;;  %v377_v40 = vadd.f32 %v376_v31, %v375_v26  ;;  %v463_v31 = vld [vmem:[%s1953_s21 + $0x10] sm:$0x66] }
  0x35   : > { %v378_v41 = vsel %vm368_vm2, %v363_v10, 0.0  ;;  %v379_v42 = vsel %vm368_vm2, %v367_v15, 0.0  ;;  %v381_v43 = vmul.f32 0.5, %v371_v24  ;;  %v215_v36 = vadd.f32 %v214_v21, %v213_v57 }
  0x36   : > { %v216_v44 = vmul.f32 0.5, %v194_v20  ;;  %v304_v49 = vrot.slane %v303_v22, 1  ;;  %v317_v50 = vadd.f32 %v316_v23, %v315_v2  ;;  %v380_v51 = vadd.f32 %v379_v42, %v378_v41 }
  0x37   : > { %v382_v53 = vmul.f32 0.5, %v374_v25  ;;  %v383_v54 = vmul.f32 0.5, %v377_v40  ;;  %v389_v55 = vrot.slane %v381_v43, 2  ;;  %v217_v56 = vmul.f32 0.5, %v201_v32 }
  0x38   : > { %v218_v58 = vmul.f32 0.5, %v208_v33  ;;  %v298_v37 = vadd.f32 %v297_v34, %v296_v9  ;;  %v311_v38 = vrot.slane %v310_v39, 1  ;;  %v384_v52 = vmul.f32 0.5, %v380_v51 }
  0x39   : > { %v390_v62 = vrot.slane %v382_v53, 2  ;;  %v391_v63 = vrot.slane %v383_v54, 2  ;;  %v397_v0 = vsel %vm170_vm0, %v389_v55, 0.0  ;;  %v219_v1 = vmul.f32 0.5, %v215_v36 }
  0x3a   : > { %v305_v57 = vadd.f32 %v304_v49, %v303_v22  ;;  %v343_v2 = vrot.slane %v1973_v35, %v2014_v30  ;;  %v398_v3 = vrot.slane %v397_v0, 4  ;;  %v318_v4 = vrot.slane %v317_v50, 1  ;;  %v462_v22 = vld [vmem:[%s1953_s21 + $0x8] sm:$0x66] }
  0x3b   : > { %v392_v7 = vrot.slane %v384_v52, 2  ;;  %v404_v8 = vsel %vm170_vm0, %v390_v62, 0.0  ;;  %v411_v9 = vsel %vm170_vm0, %v391_v63, 0.0  ;;  %v312_v6 = vadd.f32 %v311_v38, %v310_v39 }
  0x3c   : > { %v320_v10 = vmul.f32 0.5, %v298_v37  ;;  %v405_v15 = vrot.slane %v404_v8, 4  ;;  %v412_v16 = vrot.slane %v411_v9, 4  ;;  %v243_v18 = vmul.f32 %v226_v27, %v216_v44  ;;  %v464_v27 = vld [vmem:[%s1953_s21 + $0x18] sm:$0x66] }
  0x3d   : > { %v244_v19 = vmul.f32 %v230_v28, %v217_v56  ;;  %v245_v20 = vmul.f32 %v234_v29, %v218_v58  ;;  %v418_v21 = vsel %vm170_vm0, %v392_v7, 0.0  ;;  %v246_v23 = vmul.f32 %v238_v45, %v219_v1 }
  0x3e   : > { %v399_v24 = vadd.f32 %v398_v3, %v397_v0  ;;  %v406_v25 = vadd.f32 %v405_v15, %v404_v8  ;;  %v419_v26 = vrot.slane %v418_v21, 4  ;;  %v319_v32 = vadd.f32 %v318_v4, %v317_v50 }
  0x3f   : > { %v321_v33 = vmul.f32 0.5, %v305_v57  ;;  %v465_v34 = vunpack.c.l.bf16 %v461_v17  ;;  %v466_v28 = vunpack.c.h.bf16 %v461_v17  ;;  %v322_v39 = vmul.f32 0.5, %v312_v6 }
  0x40   : > { %v348_v29 = vmul.f32 %v331_v46, %v320_v10  ;;  %v413_v40 = vadd.f32 %v412_v16, %v411_v9  ;;  %v420_v41 = vadd.f32 %v419_v26, %v418_v21  ;;  %v467_v42 = vunpack.c.l.bf16 %v462_v22 }
  0x41   : > { %v469_v43 = vunpack.c.l.bf16 %v463_v31  ;;  %v470_v5 = vunpack.c.h.bf16 %v463_v31  ;;  %v471_v45 = vunpack.c.l.bf16 %v464_v27  ;;  %v400_v36 = vrot.slane %v399_v24, 2 }
  0x42   : > { %v407_v44 = vrot.slane %v406_v25, 2  ;;  %v468_v49 = vunpack.c.h.bf16 %v462_v22  ;;  %v472_v51 = vunpack.c.h.bf16 %v464_v27  ;;  %v474_v50 = vsel %vm473_vm3, %v465_v34, 0.0 }
  0x43   : > { %v475_v53 = vsel %vm473_vm3, %v469_v43, 0.0  ;;  %v477_v54 = vsel %vm473_vm3, %v466_v28, 0.0  ;;  %v478_v55 = vsel %vm473_vm3, %v470_v5, 0.0  ;;  %v323_v56 = vmul.f32 0.5, %v319_v32 }
  0x44   : > { %v349_v46 = vmul.f32 %v335_v47, %v321_v33  ;;  %v414_v58 = vrot.slane %v413_v40, 2  ;;  %v421_v37 = vrot.slane %v420_v41, 2  ;;  %v476_v38 = vadd.f32 %v475_v53, %v474_v50 }
  0x45   : > { %v479_v52 = vadd.f32 %v478_v55, %v477_v54  ;;  %v480_v62 = vsel %vm473_vm3, %v467_v42, 0.0  ;;  %v481_v63 = vsel %vm473_vm3, %v471_v45, 0.0  ;;  %v350_v0 = vmul.f32 %v339_v48, %v322_v39  ;;  %v1833_v42 = vld [vmem:[%s1953_s21 + $0x10] sm:$0x11]  ;;  %v1835_v54 = vld [vmem:[%s1953_s21 + $0x20] sm:$0x11] }
  0x46   : > { %v2076_v1 = vadd.f32 %v348_v29, %v243_v18  ;;  %v401_v57 = vadd.f32 %v400_v36, %v399_v24  ;;  %v408_v3 = vadd.f32 %v407_v44, %v406_v25  ;;  %v482_v4 = vadd.f32 %v481_v63, %v480_v62  ;;  %v1834_v44 = vld [vmem:[%s1953_s21 + $0x18] sm:$0x11]  ;;  %v1836_v55 = vld [vmem:[%s1953_s21 + $0x28] sm:$0x11] }
  0x47   : > { %v483_v7 = vsel %vm473_vm3, %v468_v49, 0.0  ;;  %v484_v47 = vsel %vm473_vm3, %v472_v51, 0.0  ;;  %v486_v8 = vmul.f32 0.5, %v476_v38  ;;  %v351_v9 = vmul.f32 %v343_v2, %v323_v56 }
  0x48   : > { %v2080_v6 = vadd.f32 %v349_v46, %v244_v19  ;;  %v415_v10 = vadd.f32 %v414_v58, %v413_v40  ;;  %v422_v15 = vadd.f32 %v421_v37, %v420_v41  ;;  %v485_v16 = vadd.f32 %v484_v47, %v483_v7 }
  0x49   : > { %v487_v17 = vmul.f32 0.5, %v479_v52  ;;  %v488_v21 = vmul.f32 0.5, %v482_v4  ;;  %v494_v35 = vrot.slane %v486_v8, 3  ;;  %v2082_v48 = vadd.f32 %v350_v0, %v245_v20 }
  0x4a   : > { %v402_v18 = vrot.slane %v401_v57, 1  ;;  %v409_v22 = vrot.slane %v408_v3, 1  ;;  %v436_v24 = vrot.slane %v1989_v59, %v1999_v11  ;;  %v489_v25 = vmul.f32 0.5, %v485_v16 }
  0x4b   : > { %v495_v26 = vrot.slane %v487_v17, 3  ;;  %v496_v31 = vrot.slane %v488_v21, 3  ;;  %v502_v2 = vsel %vm170_vm0, %v494_v35, 0.0  ;;  %v2087_v19 = vadd.f32 %v351_v9, %v246_v23 }
  0x4c   : > { %v416_v27 = vrot.slane %v415_v10, 1  ;;  %v440_v32 = vrot.slane %v1989_v59, %v2001_v12  ;;  %v503_v20 = vrot.slane %v502_v2, 4  ;;  %v423_v33 = vrot.slane %v422_v15, 1 }
  0x4d   : > { %v497_v34 = vrot.slane %v489_v25, 3  ;;  %v509_v28 = vsel %vm170_vm0, %v495_v26, 0.0  ;;  %v516_v39 = vsel %vm170_vm0, %v496_v31, 0.0  ;;  %v444_v29 = vrot.slane %v1989_v59, %v2003_v13 }
  0x4e   : > { %v504_v40 = vadd.f32 %v503_v20, %v502_v2  ;;  %v510_v23 = vrot.slane %v509_v28, 4  ;;  %v517_v41 = vrot.slane %v516_v39, 4  ;;  %v403_v43 = vadd.f32 %v402_v18, %v401_v57 }
  0x4f   : > { %v410_v5 = vadd.f32 %v409_v22, %v408_v3  ;;  %v448_v45 = vrot.slane %v1989_v59, %v2014_v30  ;;  %v523_v36 = vsel %vm170_vm0, %v497_v34, 0.0  ;;  %v417_v56 = vadd.f32 %v416_v27, %v415_v10 }
  0x50   : > { %v505_v49 = vrot.slane %v504_v40, 2  ;;  %v511_v51 = vadd.f32 %v510_v23, %v509_v28  ;;  %v518_v50 = vadd.f32 %v517_v41, %v516_v39  ;;  %v524_v53 = vrot.slane %v523_v36, 4 }
  0x51   : > { %v424_v46 = vadd.f32 %v423_v33, %v422_v15  ;;  %v571_v58 = vunpack.c.l.bf16 %v1833_v42  ;;  %v572_v37 = vunpack.c.h.bf16 %v1833_v42  ;;  %v573_v0 = vunpack.c.l.bf16 %v1834_v44 }
  0x52   : > { %v506_v38 = vadd.f32 %v505_v49, %v504_v40  ;;  %v512_v52 = vrot.slane %v511_v51, 2  ;;  %v519_v62 = vrot.slane %v518_v50, 2  ;;  %v525_v63 = vadd.f32 %v524_v53, %v523_v36 }
  0x53   : > { %v575_v57 = vunpack.c.l.bf16 %v1835_v54  ;;  %v576_v3 = vunpack.c.h.bf16 %v1835_v54  ;;  %v577_v4 = vunpack.c.l.bf16 %v1836_v55  ;;  %v574_v8 = vunpack.c.h.bf16 %v1834_v44 }
  0x54   : > { %v513_v7 = vadd.f32 %v512_v52, %v511_v51  ;;  %v526_v47 = vrot.slane %v525_v63, 2  ;;  %v578_v9 = vunpack.c.h.bf16 %v1836_v55  ;;  %v579_v16 = vsel %vm170_vm0, %v571_v58, 0.0 }
  0x55   : > { %v580_v17 = vsel %vm170_vm0, %v575_v57, 0.0  ;;  %v582_v10 = vsel %vm170_vm0, %v572_v37, 0.0  ;;  %v583_v15 = vsel %vm170_vm0, %v576_v3, 0.0  ;;  %v425_v21 = vmul.f32 0.5, %v403_v43 }
  0x56   : > { %v426_v35 = vmul.f32 0.5, %v410_v5  ;;  %v507_v18 = vrot.slane %v506_v38, 1  ;;  %v520_v22 = vadd.f32 %v519_v62, %v518_v50  ;;  %v581_v25 = vadd.f32 %v580_v17, %v579_v16  ;;  %v2117_v50 = vld [vmem:[%s2532_s1 + $0x18] sm:$0xff]   ;;  %v1840_v17 = vld [vmem:[%s1953_s21 + $0x20] sm:$0x33] }
  0x57   : > { %v584_v26 = vadd.f32 %v583_v15, %v582_v10  ;;  %v585_v31 = vsel %vm170_vm0, %v573_v0, 0.0  ;;  %v586_v2 = vsel %vm170_vm0, %v577_v4, 0.0  ;;  %v427_v27 = vmul.f32 0.5, %v417_v56  ;;  %v1838_v0 = vld [vmem:[%s1953_s21 + $0x10] sm:$0x33] }
  0x58   : > { %v428_v20 = vmul.f32 0.5, %v424_v46  ;;  %v514_v33 = vrot.slane %v513_v7, 1  ;;  %v527_v34 = vadd.f32 %v526_v47, %v525_v63  ;;  %v587_v28 = vadd.f32 %v586_v2, %v585_v31  ;;  %v1839_v16 = vld [vmem:[%s1953_s21 + $0x18] sm:$0x33] }
  0x59   : > { %v588_v39 = vsel %vm170_vm0, %v574_v8, 0.0  ;;  %v589_v40 = vsel %vm170_vm0, %v578_v9, 0.0  ;;  %v591_v23 = vmul.f32 0.5, %v581_v25  ;;  %v453_v41 = vmul.f32 %v436_v24, %v425_v21  ;;  %v1841_v21 = vld [vmem:[%s1953_s21 + $0x28] sm:$0x33] }
  0x5a   : > { %v454_v42 = vmul.f32 %v440_v32, %v426_v35  ;;  %v508_v43 = vadd.f32 %v507_v18, %v506_v38  ;;  %v521_v5 = vrot.slane %v520_v22, 1  ;;  %v590_v36 = vadd.f32 %v589_v40, %v588_v39 }
  0x5b   : > { %v592_v44 = vmul.f32 0.5, %v584_v26  ;;  %v593_v49 = vmul.f32 0.5, %v587_v28  ;;  %v595_v51 = vsel %vm170_vm0, %v591_v23, 0.0  ;;  %v455_v53 = vmul.f32 %v444_v29, %v427_v27 }
  0x5c   : > { %v456_v54 = vmul.f32 %v448_v45, %v428_v20  ;;  %v515_v55 = vadd.f32 %v514_v33, %v513_v7  ;;  %v528_v56 = vrot.slane %v527_v34, 1  ;;  %v594_v59 = vmul.f32 0.5, %v590_v36 }
  0x5d   : > { %v596_v24 = vrot.slane %v595_v51, 4  ;;  %v602_v32 = vsel %vm170_vm0, %v592_v44, 0.0  ;;  %v609_v46 = vsel %vm170_vm0, %v593_v49, 0.0  ;;  %v457_v58 = vadd.f32 %v453_v41, %v2076_v1 }
  0x5e   : > { %v541_v37 = vrot.slane %v1991_v60, %v1999_v11  ;;  %v603_v38 = vrot.slane %v602_v32, 4  ;;  %v2125_v29 = vunpack.c.l.bf16 %v2117_v50  ;;  %v522_v45 = vadd.f32 %v521_v5, %v520_v22 }
  0x5f   : > { %v530_v52 = vmul.f32 0.5, %v508_v43  ;;  %v597_v62 = vadd.f32 %v596_v24, %v595_v51  ;;  %v616_v63 = vsel %vm170_vm0, %v594_v59, 0.0  ;;  %v458_v57 = vadd.f32 %v454_v42, %v2080_v6 }
  0x60   : > { %v459_v1 = vadd.f32 %v455_v53, %v2082_v48  ;;  %v460_v3 = vadd.f32 %v456_v54, %v2087_v19  ;;  %v610_v4 = vrot.slane %v609_v46, 4  ;;  %v529_v7 = vadd.f32 %v528_v56, %v527_v34 }
  0x61   : > { %v531_v47 = vmul.f32 0.5, %v515_v55  ;;  %v545_v8 = vrot.slane %v1991_v60, %v2001_v12  ;;  %v604_v9 = vadd.f32 %v603_v38, %v602_v32  ;;  %v549_v10 = vrot.slane %v1991_v60, %v2003_v13 }
  0x62   : > { %v553_v15 = vrot.slane %v1991_v60, %v2014_v30  ;;  %v617_v6 = vrot.slane %v616_v63, 4  ;;  %v663_v48 = vunpack.c.l.bf16 %v1838_v0  ;;  %v532_v35 = vmul.f32 0.5, %v522_v45 }
  0x63   : > { %v558_v19 = vmul.f32 %v541_v37, %v530_v52  ;;  %v598_v18 = vrot.slane %v597_v62, 2  ;;  %v664_v22 = vunpack.c.h.bf16 %v1838_v0  ;;  %v611_v25 = vadd.f32 %v610_v4, %v609_v46 }
  0x64   : > { %v665_v26 = vunpack.c.l.bf16 %v1839_v16  ;;  %v667_v31 = vunpack.c.l.bf16 %v1840_v17  ;;  %v668_v2 = vunpack.c.h.bf16 %v1840_v17  ;;  %v533_v27 = vmul.f32 0.5, %v529_v7 }
  0x65   : > { %v559_v20 = vmul.f32 %v545_v8, %v531_v47  ;;  %v605_v33 = vrot.slane %v604_v9, 2  ;;  %v669_v34 = vunpack.c.l.bf16 %v1841_v21  ;;  %v618_v28 = vadd.f32 %v617_v6, %v616_v63 }
  0x66   : > { %v666_v39 = vunpack.c.h.bf16 %v1839_v16  ;;  %v671_v40 = vsel %vm263_vm1, %v663_v48, 0.0  ;;  %v672_v60 = vsel %vm263_vm1, %v667_v31, 0.0  ;;  %v599_v23 = vadd.f32 %v598_v18, %v597_v62 }
  0x67   : > { %v670_v41 = vunpack.c.h.bf16 %v1841_v21  ;;  %v673_v42 = vadd.f32 %v672_v60, %v671_v40  ;;  %v674_v43 = vsel %vm263_vm1, %v664_v22, 0.0  ;;  %v560_v5 = vmul.f32 %v549_v10, %v532_v35  ;;  %v1843_v35 = vld [vmem:[%s1953_s21 + $0x10] sm:$0x22]  ;;  %v1846_v40 = vld [vmem:[%s1953_s21 + $0x28] sm:$0x22] }
  0x68   : > { %v612_v36 = vrot.slane %v611_v25, 2  ;;  %v675_v44 = vsel %vm263_vm1, %v668_v2, 0.0  ;;  %v677_v49 = vsel %vm263_vm1, %v665_v26, 0.0  ;;  %v561_v51 = vmul.f32 %v553_v15, %v533_v27  ;;  %v1844_v26 = vld [vmem:[%s1953_s21 + $0x18] sm:$0x22] }
  0x69   : > { %v2146_v53 = vadd.f32 %v558_v19, %v457_v58  ;;  %v676_v54 = vadd.f32 %v675_v44, %v674_v43  ;;  %v678_v55 = vsel %vm263_vm1, %v669_v34, 0.0  ;;  %v2149_v56 = vadd.f32 %v559_v20, %v458_v57 }
  0x6a   : > { %v619_v59 = vrot.slane %v618_v28, 2  ;;  %v679_v24 = vadd.f32 %v678_v55, %v677_v49  ;;  %v680_v32 = vsel %vm263_vm1, %v666_v39, 0.0  ;;  %v600_v46 = vrot.slane %v599_v23, 1 }
  0x6b   : > { %v606_v37 = vadd.f32 %v605_v33, %v604_v9  ;;  %v681_v38 = vsel %vm263_vm1, %v670_v41, 0.0  ;;  %v683_v45 = vmul.f32 0.5, %v673_v42  ;;  %v2153_v52 = vadd.f32 %v560_v5, %v459_v1  ;;  %v1845_v33 = vld [vmem:[%s1953_s21 + $0x20] sm:$0x22] }
  0x6c   : > { %v613_v62 = vadd.f32 %v612_v36, %v611_v25  ;;  %v682_v63 = vadd.f32 %v681_v38, %v680_v32  ;;  %v684_v58 = vmul.f32 0.5, %v676_v54  ;;  %v2155_v0 = vadd.f32 %v561_v51, %v460_v3 }
  0x6d   : > { %v634_v57 = vrot.slane %v1993_v61, %v1999_v11  ;;  %v685_v4 = vmul.f32 0.5, %v679_v24  ;;  %v691_v7 = vrot.slane %v683_v45, 1  ;;  %v620_v47 = vadd.f32 %v619_v59, %v618_v28 }
  0x6e   : > { %v638_v8 = vrot.slane %v1993_v61, %v2001_v12  ;;  %v686_v9 = vmul.f32 0.5, %v682_v63  ;;  %v692_v16 = vrot.slane %v684_v58, 1  ;;  %v601_v1 = vadd.f32 %v600_v46, %v599_v23 }
  0x6f   : > { %v607_v17 = vrot.slane %v606_v37, 1  ;;  %v693_v10 = vrot.slane %v685_v4, 1  ;;  %v699_v3 = vsel %vm170_vm0, %v691_v7, 0.0  ;;  %v614_v15 = vrot.slane %v613_v62, 1 }
  0x70   : > { %v694_v6 = vrot.slane %v686_v9, 1  ;;  %v700_v21 = vrot.slane %v699_v3, 4  ;;  %v706_v48 = vsel %vm170_vm0, %v692_v16, 0.0  ;;  %v642_v19 = vrot.slane %v1993_v61, %v2003_v13 }
  0x71   : > { %v646_v18 = vrot.slane %v1993_v61, %v2014_v30  ;;  %v707_v22 = vrot.slane %v706_v48, 4  ;;  %v713_v25 = vsel %vm170_vm0, %v693_v10, 0.0  ;;  %v621_v31 = vrot.slane %v620_v47, 1 }
  0x72   : > { %v701_v2 = vadd.f32 %v700_v21, %v699_v3  ;;  %v714_v27 = vrot.slane %v713_v25, 4  ;;  %v720_v20 = vsel %vm170_vm0, %v694_v6, 0.0  ;;  %v608_v34 = vadd.f32 %v607_v17, %v606_v37 }
  0x73   : > { %v708_v28 = vadd.f32 %v707_v22, %v706_v48  ;;  %v721_v39 = vrot.slane %v720_v20, 4  ;;  %v767_v60 = vunpack.c.l.bf16 %v1843_v35  ;;  %v615_v23 = vadd.f32 %v614_v15, %v613_v62 }
  0x74   : > { %v623_v41 = vmul.f32 0.5, %v601_v1  ;;  %v715_v42 = vadd.f32 %v714_v27, %v713_v25  ;;  %v768_v43 = vunpack.c.h.bf16 %v1843_v35  ;;  %v702_v61 = vrot.slane %v701_v2, 2 }
  0x75   : > { %v769_v5 = vunpack.c.l.bf16 %v1844_v26  ;;  %v771_v36 = vunpack.c.l.bf16 %v1845_v33  ;;  %v772_v44 = vunpack.c.h.bf16 %v1845_v33  ;;  %v622_v49 = vadd.f32 %v621_v31, %v620_v47 }
  0x76   : > { %v709_v51 = vrot.slane %v708_v28, 2  ;;  %v722_v54 = vadd.f32 %v721_v39, %v720_v20  ;;  %v773_v55 = vunpack.c.l.bf16 %v1846_v40  ;;  %v716_v59 = vrot.slane %v715_v42, 2 }
  0x77   : > { %v770_v24 = vunpack.c.h.bf16 %v1844_v26  ;;  %v775_v32 = vsel %vm368_vm2, %v767_v60, 0.0  ;;  %v776_v46 = vsel %vm368_vm2, %v771_v36, 0.0  ;;  %v624_v37 = vmul.f32 0.5, %v608_v34 }
  0x78   : > { %v774_v38 = vunpack.c.h.bf16 %v1846_v40  ;;  %v777_v45 = vadd.f32 %v776_v46, %v775_v32  ;;  %v778_v62 = vsel %vm368_vm2, %v768_v43, 0.0  ;;  %v625_v63 = vmul.f32 0.5, %v615_v23 }
  0x79   : > { %v703_v58 = vadd.f32 %v702_v61, %v701_v2  ;;  %v779_v4 = vsel %vm368_vm2, %v772_v44, 0.0  ;;  %v781_v7 = vsel %vm368_vm2, %v769_v5, 0.0  ;;  %v710_v47 = vadd.f32 %v709_v51, %v708_v28  ;;  %v1848_v51 = vld [vmem:[%s1953_s21 + $0x10] sm:$0x66] }
  0x7a   : > { %v723_v9 = vrot.slane %v722_v54, 2  ;;  %v780_v16 = vadd.f32 %v779_v4, %v778_v62  ;;  %v782_v1 = vsel %vm368_vm2, %v773_v55, 0.0  ;;  %v651_v17 = vmul.f32 %v634_v57, %v623_v41 }
  0x7b   : > { %v717_v10 = vadd.f32 %v716_v59, %v715_v42  ;;  %v783_v3 = vadd.f32 %v782_v1, %v781_v7  ;;  %v784_v15 = vsel %vm368_vm2, %v770_v24, 0.0  ;;  %v626_v6 = vmul.f32 0.5, %v622_v49  ;;  %v1849_v24 = vld [vmem:[%s1953_s21 + $0x18] sm:$0x66] }
  0x7c   : > { %v652_v21 = vmul.f32 %v638_v8, %v624_v37  ;;  %v785_v48 = vsel %vm368_vm2, %v774_v38, 0.0  ;;  %v787_v35 = vmul.f32 0.5, %v777_v45  ;;  %v653_v22 = vmul.f32 %v642_v19, %v625_v63  ;;  %v1850_v45 = vld [vmem:[%s1953_s21 + $0x20] sm:$0x66] }
  0x7d   : > { %v704_v25 = vrot.slane %v703_v58, 1  ;;  %v786_v26 = vadd.f32 %v785_v48, %v784_v15  ;;  %v788_v31 = vmul.f32 0.5, %v780_v16  ;;  %v711_v2 = vrot.slane %v710_v47, 1 }
  0x7e   : > { %v724_v27 = vadd.f32 %v723_v9, %v722_v54  ;;  %v789_v20 = vmul.f32 0.5, %v783_v3  ;;  %v795_v33 = vrot.slane %v787_v35, 2  ;;  %v2182_v34 = vadd.f32 %v651_v17, %v2146_v53 }
  0x7f   : > { %v718_v57 = vrot.slane %v717_v10, 1  ;;  %v790_v28 = vmul.f32 0.5, %v786_v26  ;;  %v796_v39 = vrot.slane %v788_v31, 2  ;;  %v654_v40 = vmul.f32 %v646_v18, %v626_v6 }
  0x80   : > { %v2185_v8 = vadd.f32 %v652_v21, %v2149_v56  ;;  %v797_v60 = vrot.slane %v789_v20, 2  ;;  %v803_v19 = vsel %vm170_vm0, %v795_v33, 0.0  ;;  %v2189_v23 = vadd.f32 %v653_v22, %v2153_v52 }
  0x81   : > { %v705_v41 = vadd.f32 %v704_v25, %v703_v58  ;;  %v798_v42 = vrot.slane %v790_v28, 2  ;;  %v804_v43 = vrot.slane %v803_v19, 4  ;;  %v712_v53 = vadd.f32 %v711_v2, %v710_v47 }
  0x82   : > { %v725_v61 = vrot.slane %v724_v27, 1  ;;  %v810_v5 = vsel %vm170_vm0, %v796_v39, 0.0  ;;  %v817_v18 = vsel %vm170_vm0, %v797_v60, 0.0  ;;  %v719_v56 = vadd.f32 %v718_v57, %v717_v10 }
  0x83   : > { %v805_v36 = vadd.f32 %v804_v43, %v803_v19  ;;  %v811_v44 = vrot.slane %v810_v5, 4  ;;  %v818_v49 = vrot.slane %v817_v18, 4  ;;  %v2195_v52 = vadd.f32 %v654_v40, %v2155_v0  ;;  %v1851_v0 = vld [vmem:[%s1953_s21 + $0x28] sm:$0x66] }
  0x84   : > { %v738_v54 = vrot.slane %v2005_v14, %v1999_v11  ;;  %v742_v55 = vrot.slane %v2005_v14, %v2001_v12  ;;  %v824_v59 = vsel %vm170_vm0, %v798_v42, 0.0  ;;  %v746_v32 = vrot.slane %v2005_v14, %v2003_v13 }
  0x85   : > { %v750_v46 = vrot.slane %v2005_v14, %v2014_v30  ;;  %v812_v37 = vadd.f32 %v811_v44, %v810_v5  ;;  %v825_v38 = vrot.slane %v824_v59, 4  ;;  %v726_v62 = vadd.f32 %v725_v61, %v724_v27 }
  0x86   : > { %v727_v63 = vmul.f32 0.5, %v705_v41  ;;  %v871_v58 = vunpack.c.l.bf16 %v1848_v51  ;;  %v872_v4 = vunpack.c.h.bf16 %v1848_v51  ;;  %v728_v7 = vmul.f32 0.5, %v712_v53 }
  0x87   : > { %v729_v47 = vmul.f32 0.5, %v719_v56  ;;  %v806_v9 = vrot.slane %v805_v36, 2  ;;  %v819_v16 = vadd.f32 %v818_v49, %v817_v18  ;;  %v873_v1 = vunpack.c.l.bf16 %v1849_v24 }
  0x88   : > { %v875_v17 = vunpack.c.l.bf16 %v1850_v45  ;;  %v876_v10 = vunpack.c.h.bf16 %v1850_v45  ;;  %v877_v3 = vunpack.c.l.bf16 %v1851_v0  ;;  %v813_v15 = vrot.slane %v812_v37, 2 }
  0x89   : > { %v826_v6 = vadd.f32 %v825_v38, %v824_v59  ;;  %v874_v21 = vunpack.c.h.bf16 %v1849_v24  ;;  %v878_v14 = vunpack.c.h.bf16 %v1851_v0  ;;  %v879_v48 = vsel %vm473_vm3, %v871_v58, 0.0 }
  0x8a   : > { %v880_v35 = vsel %vm473_vm3, %v875_v17, 0.0  ;;  %v882_v22 = vsel %vm473_vm3, %v872_v4, 0.0  ;;  %v883_v25 = vsel %vm473_vm3, %v876_v10, 0.0  ;;  %v730_v26 = vmul.f32 0.5, %v726_v62 }
  0x8b   : > { %v755_v31 = vmul.f32 %v738_v54, %v727_v63  ;;  %v807_v2 = vadd.f32 %v806_v9, %v805_v36  ;;  %v820_v27 = vrot.slane %v819_v16, 2  ;;  %v881_v20 = vadd.f32 %v880_v35, %v879_v48  ;;  %v1855_v48 = vld [vmem:[%s1953_s21 + $0x30] sm:$0x11]  ;;  %v1856_v35 = vld [vmem:[%s1953_s21 + $0x38] sm:$0x11] }
  0x8c   : > { %v884_v33 = vadd.f32 %v883_v25, %v882_v22  ;;  %v885_v57 = vsel %vm473_vm3, %v873_v1, 0.0  ;;  %v886_v28 = vsel %vm473_vm3, %v877_v3, 0.0  ;;  %v756_v39 = vmul.f32 %v742_v55, %v728_v7  ;;  %v1854_v3 = vld [vmem:[%s1953_s21 + $0x28] sm:$0x11] }
  0x8d   : > { %v757_v40 = vmul.f32 %v746_v32, %v729_v47  ;;  %v814_v60 = vadd.f32 %v813_v15, %v812_v37  ;;  %v827_v19 = vrot.slane %v826_v6, 2  ;;  %v887_v41 = vadd.f32 %v886_v28, %v885_v57 }
  0x8e   : > { %v888_v42 = vsel %vm473_vm3, %v874_v21, 0.0  ;;  %v889_v43 = vsel %vm473_vm3, %v878_v14, 0.0  ;;  %v891_v53 = vmul.f32 0.5, %v881_v20  ;;  %v758_v61 = vmul.f32 %v750_v46, %v730_v26 }
  0x8f   : > { %v2218_v5 = vadd.f32 %v755_v31, %v2182_v34  ;;  %v808_v18 = vrot.slane %v807_v2, 1  ;;  %v821_v56 = vadd.f32 %v820_v27, %v819_v16  ;;  %v890_v36 = vadd.f32 %v889_v43, %v888_v42 }
  0x90   : > { %v892_v44 = vmul.f32 0.5, %v884_v33  ;;  %v893_v49 = vmul.f32 0.5, %v887_v41  ;;  %v899_v51 = vrot.slane %v891_v53, 3  ;;  %v2221_v54 = vadd.f32 %v756_v39, %v2185_v8 }
  0x91   : > { %v2224_v55 = vadd.f32 %v757_v40, %v2189_v23  ;;  %v815_v59 = vrot.slane %v814_v60, 1  ;;  %v828_v24 = vadd.f32 %v827_v19, %v826_v6  ;;  %v894_v32 = vmul.f32 0.5, %v890_v36 }
  0x92   : > { %v900_v46 = vrot.slane %v892_v44, 3  ;;  %v901_v37 = vrot.slane %v893_v49, 3  ;;  %v907_v34 = vsel %vm170_vm0, %v899_v51, 0.0  ;;  %v2228_v38 = vadd.f32 %v758_v61, %v2195_v52  ;;  %v1853_v52 = vld [vmem:[%s1953_s21 + $0x20] sm:$0x11] }
  0x93   : > { %v809_v45 = vadd.f32 %v808_v18, %v807_v2  ;;  %v842_v8 = vrot.slane %v2125_v29, %v1999_v11  ;;  %v908_v0 = vrot.slane %v907_v34, 4  ;;  %v822_v62 = vrot.slane %v821_v56, 1 }
  0x94   : > { %v902_v23 = vrot.slane %v894_v32, 3  ;;  %v914_v63 = vsel %vm170_vm0, %v900_v46, 0.0  ;;  %v921_v58 = vsel %vm170_vm0, %v901_v37, 0.0  ;;  %v829_v4 = vrot.slane %v828_v24, 1 }
  0x95   : > { %v909_v7 = vadd.f32 %v908_v0, %v907_v34  ;;  %v915_v47 = vrot.slane %v914_v63, 4  ;;  %v922_v9 = vrot.slane %v921_v58, 4  ;;  %v816_v16 = vadd.f32 %v815_v59, %v814_v60 }
  0x96   : > { %v846_v1 = vrot.slane %v2125_v29, %v2001_v12  ;;  %v850_v17 = vrot.slane %v2125_v29, %v2003_v13  ;;  %v928_v10 = vsel %vm170_vm0, %v902_v23, 0.0  ;;  %v823_v22 = vadd.f32 %v822_v62, %v821_v56 }
  0x97   : > { %v910_v15 = vrot.slane %v909_v7, 2  ;;  %v916_v6 = vadd.f32 %v915_v47, %v914_v63  ;;  %v923_v21 = vadd.f32 %v922_v9, %v921_v58  ;;  %v929_v14 = vrot.slane %v928_v10, 4 }
  0x98   : > { %v831_v25 = vmul.f32 0.5, %v809_v45  ;;  %v854_v26 = vrot.slane %v2125_v29, %v2014_v30  ;;  %v976_v31 = vunpack.c.l.bf16 %v1853_v52  ;;  %v830_v2 = vadd.f32 %v829_v4, %v828_v24 }
  0x99   : > { %v917_v27 = vrot.slane %v916_v6, 2  ;;  %v930_v20 = vadd.f32 %v929_v14, %v928_v10  ;;  %v977_v33 = vunpack.c.h.bf16 %v1853_v52  ;;  %v978_v57 = vunpack.c.l.bf16 %v1854_v3 }
  0x9a   : > { %v980_v28 = vunpack.c.l.bf16 %v1855_v48  ;;  %v981_v39 = vunpack.c.h.bf16 %v1855_v48  ;;  %v982_v40 = vunpack.c.l.bf16 %v1856_v35  ;;  %v832_v60 = vmul.f32 0.5, %v816_v16 }
  0x9b   : > { %v911_v19 = vadd.f32 %v910_v15, %v909_v7  ;;  %v924_v41 = vrot.slane %v923_v21, 2  ;;  %v931_v42 = vrot.slane %v930_v20, 2  ;;  %v979_v43 = vunpack.c.h.bf16 %v1854_v3 }
  0x9c   : > { %v983_v53 = vunpack.c.h.bf16 %v1856_v35  ;;  %v984_v61 = vsel %vm170_vm0, %v976_v31, 0.0  ;;  %v985_v18 = vsel %vm170_vm0, %v980_v28, 0.0  ;;  %v833_v29 = vmul.f32 0.5, %v823_v22  ;;  %v1858_v31 = vld [vmem:[%s1953_s21 + $0x20] sm:$0x33] }
  0x9d   : > { %v834_v56 = vmul.f32 0.5, %v830_v2  ;;  %v918_v36 = vadd.f32 %v917_v27, %v916_v6  ;;  %v987_v44 = vsel %vm170_vm0, %v977_v33, 0.0  ;;  %v986_v49 = vadd.f32 %v985_v18, %v984_v61  ;;  %v1861_v61 = vld [vmem:[%s1953_s21 + $0x38] sm:$0x33] }
  0x9e   : > { %v988_v51 = vsel %vm170_vm0, %v981_v39, 0.0  ;;  %v990_v59 = vsel %vm170_vm0, %v978_v57, 0.0  ;;  %v991_v24 = vsel %vm170_vm0, %v982_v40, 0.0  ;;  %v859_v32 = vmul.f32 %v842_v8, %v831_v25  ;;  %v1860_v39 = vld [vmem:[%s1953_s21 + $0x30] sm:$0x33] }
  0x9f   : > { %v912_v46 = vrot.slane %v911_v19, 1  ;;  %v925_v37 = vadd.f32 %v924_v41, %v923_v21  ;;  %v932_v34 = vadd.f32 %v931_v42, %v930_v20  ;;  %v989_v45 = vadd.f32 %v988_v51, %v987_v44 }
  0xa0   : > { %v992_v0 = vadd.f32 %v991_v24, %v990_v59  ;;  %v993_v62 = vsel %vm170_vm0, %v979_v43, 0.0  ;;  %v994_v23 = vsel %vm170_vm0, %v983_v53, 0.0  ;;  %v860_v63 = vmul.f32 %v846_v1, %v832_v60 }
  0xa1   : > { %v861_v58 = vmul.f32 %v850_v17, %v833_v29  ;;  %v862_v4 = vmul.f32 %v854_v26, %v834_v56  ;;  %v919_v7 = vrot.slane %v918_v36, 1  ;;  %v995_v47 = vadd.f32 %v994_v23, %v993_v62 }
  0xa2   : > { %v996_v9 = vmul.f32 0.5, %v986_v49  ;;  %v997_v52 = vmul.f32 0.5, %v989_v45  ;;  %v998_v16 = vmul.f32 0.5, %v992_v0  ;;  %v913_v10 = vadd.f32 %v912_v46, %v911_v19  ;;  %v1859_v19 = vld [vmem:[%s1953_s21 + $0x28] sm:$0x33] }
  0xa3   : > { %v926_v8 = vrot.slane %v925_v37, 1  ;;  %v933_v3 = vrot.slane %v932_v34, 1  ;;  %v941_v15 = vunpack.c.h.bf16 %v2117_v50  ;;  %v999_v6 = vmul.f32 0.5, %v995_v47  ;;  %v2277_v47 = vld [vmem:[%s2532_s1 + $0x20] sm:$0xff]  }
  0xa4   : > { %v1000_v21 = vsel %vm170_vm0, %v996_v9, 0.0  ;;  %v1007_v14 = vsel %vm170_vm0, %v997_v52, 0.0  ;;  %v1014_v1 = vsel %vm170_vm0, %v998_v16, 0.0  ;;  %v863_v17 = vadd.f32 %v859_v32, %v2218_v5 }
  0xa5   : > { %v1001_v48 = vrot.slane %v1000_v21, 4  ;;  %v864_v35 = vadd.f32 %v860_v63, %v2221_v54  ;;  %v920_v22 = vadd.f32 %v919_v7, %v918_v36  ;;  %v1008_v25 = vrot.slane %v1007_v14, 4 }
  0xa6   : > { %v1021_v26 = vsel %vm170_vm0, %v999_v6, 0.0  ;;  %v927_v50 = vadd.f32 %v926_v8, %v925_v37  ;;  %v935_v2 = vmul.f32 0.5, %v913_v10  ;;  %v946_v27 = vrot.slane %v941_v15, %v1999_v11 }
  0xa7   : > { %v1015_v20 = vrot.slane %v1014_v1, 4  ;;  %v865_v33 = vadd.f32 %v861_v58, %v2224_v55  ;;  %v866_v57 = vadd.f32 %v862_v4, %v2228_v38  ;;  %v934_v5 = vadd.f32 %v933_v3, %v932_v34 }
  0xa8   : > { %v1022_v28 = vrot.slane %v1021_v26, 4  ;;  %v950_v54 = vrot.slane %v941_v15, %v2001_v12  ;;  %v954_v40 = vrot.slane %v941_v15, %v2003_v13  ;;  %v1002_v60 = vadd.f32 %v1001_v48, %v1000_v21 }
  0xa9   : > { %v1068_v41 = vunpack.c.l.bf16 %v1858_v31  ;;  %v936_v42 = vmul.f32 0.5, %v920_v22  ;;  %v958_v43 = vrot.slane %v941_v15, %v2014_v30  ;;  %v1009_v53 = vadd.f32 %v1008_v25, %v1007_v14 }
  0xaa   : > { %v1069_v18 = vunpack.c.h.bf16 %v1858_v31  ;;  %v937_v29 = vmul.f32 0.5, %v927_v50  ;;  %v963_v55 = vmul.f32 %v946_v27, %v935_v2  ;;  %v1016_v56 = vadd.f32 %v1015_v20, %v1014_v1 }
  0xab   : > { %v1072_v38 = vunpack.c.l.bf16 %v1860_v39  ;;  %v938_v36 = vmul.f32 0.5, %v934_v5  ;;  %v1023_v44 = vadd.f32 %v1022_v28, %v1021_v26  ;;  %v1070_v49 = vunpack.c.l.bf16 %v1859_v19 }
  0xac   : > { %v1073_v51 = vunpack.c.h.bf16 %v1860_v39  ;;  %v1003_v59 = vrot.slane %v1002_v60, 2  ;;  %v1071_v24 = vunpack.c.h.bf16 %v1859_v19  ;;  %v1074_v32 = vunpack.c.l.bf16 %v1861_v61 }
  0xad   : > { %v1076_v46 = vsel %vm263_vm1, %v1068_v41, 0.0  ;;  %v1010_v37 = vrot.slane %v1009_v53, 2  ;;  %v1075_v34 = vunpack.c.h.bf16 %v1861_v61  ;;  %v1077_v45 = vsel %vm263_vm1, %v1072_v38, 0.0 }
  0xae   : > { %v1079_v0 = vsel %vm263_vm1, %v1069_v18, 0.0  ;;  %v964_v62 = vmul.f32 %v950_v54, %v936_v42  ;;  %v1017_v23 = vrot.slane %v1016_v56, 2  ;;  %v1078_v63 = vadd.f32 %v1077_v45, %v1076_v46  ;;  %v1866_v46 = vld [vmem:[%s1953_s21 + $0x38] sm:$0x22] }
  0xaf   : > { %v1080_v58 = vsel %vm263_vm1, %v1073_v51, 0.0  ;;  %v965_v4 = vmul.f32 %v954_v40, %v937_v29  ;;  %v1024_v7 = vrot.slane %v1023_v44, 2  ;;  %v1082_v52 = vsel %vm263_vm1, %v1070_v49, 0.0  ;;  %v1864_v49 = vld [vmem:[%s1953_s21 + $0x28] sm:$0x22] }
  0xb0   : > { %v1081_v9 = vadd.f32 %v1080_v58, %v1079_v0  ;;  %v966_v16 = vmul.f32 %v958_v43, %v938_v36  ;;  %v2280_v10 = vadd.f32 %v963_v55, %v863_v17  ;;  %v1083_v8 = vsel %vm263_vm1, %v1074_v32, 0.0  ;;  %v1865_v51 = vld [vmem:[%s1953_s21 + $0x30] sm:$0x22] }
  0xb1   : > { %v1085_v3 = vsel %vm263_vm1, %v1071_v24, 0.0  ;;  %v1004_v15 = vadd.f32 %v1003_v59, %v1002_v60  ;;  %v1011_v6 = vadd.f32 %v1010_v37, %v1009_v53  ;;  %v1084_v21 = vadd.f32 %v1083_v8, %v1082_v52  ;;  %v1863_v53 = vld [vmem:[%s1953_s21 + $0x20] sm:$0x22] }
  0xb2   : > { %v1086_v14 = vsel %vm263_vm1, %v1075_v34, 0.0  ;;  %v1018_v1 = vadd.f32 %v1017_v23, %v1016_v56  ;;  %v2286_v48 = vunpack.c.l.bf16 %v2277_v47  ;;  %v1088_v25 = vmul.f32 0.5, %v1078_v63 }
  0xb3   : > { %v1087_v22 = vadd.f32 %v1086_v14, %v1085_v3  ;;  %v2288_v26 = vadd.f32 %v964_v62, %v864_v35  ;;  %v1025_v31 = vadd.f32 %v1024_v7, %v1023_v44  ;;  %v1089_v17 = vmul.f32 0.5, %v1081_v9 }
  0xb4   : > { %v1090_v50 = vmul.f32 0.5, %v1084_v21  ;;  %v2290_v2 = vadd.f32 %v965_v4, %v865_v33  ;;  %v2292_v27 = vadd.f32 %v966_v16, %v866_v57  ;;  %v1096_v5 = vrot.slane %v1088_v25, 1 }
  0xb5   : > { %v1091_v20 = vmul.f32 0.5, %v1087_v22  ;;  %v1005_v28 = vrot.slane %v1004_v15, 1  ;;  %v1012_v39 = vrot.slane %v1011_v6, 1  ;;  %v1097_v54 = vrot.slane %v1089_v17, 1 }
  0xb6   : > { %v1098_v40 = vrot.slane %v1090_v50, 1  ;;  %v1019_v60 = vrot.slane %v1018_v1, 1  ;;  %v1039_v19 = vrot.slane %v2286_v48, %v1999_v11  ;;  %v1104_v41 = vsel %vm170_vm0, %v1096_v5, 0.0 }
  0xb7   : > { %v1099_v35 = vrot.slane %v1091_v20, 1  ;;  %v1026_v33 = vrot.slane %v1025_v31, 1  ;;  %v1105_v42 = vrot.slane %v1104_v41, 4  ;;  %v1111_v57 = vsel %vm170_vm0, %v1097_v54, 0.0 }
  0xb8   : > { %v1118_v43 = vsel %vm170_vm0, %v1098_v40, 0.0  ;;  %v1043_v61 = vrot.slane %v2286_v48, %v2001_v12  ;;  %v1112_v18 = vrot.slane %v1111_v57, 4  ;;  %v1006_v56 = vadd.f32 %v1005_v28, %v1004_v15 }
  0xb9   : > { %v1119_v29 = vrot.slane %v1118_v43, 4  ;;  %v1125_v55 = vsel %vm170_vm0, %v1099_v35, 0.0  ;;  %v1013_v38 = vadd.f32 %v1012_v39, %v1011_v6  ;;  %v1106_v36 = vadd.f32 %v1105_v42, %v1104_v41 }
  0xba   : > { %v1126_v44 = vrot.slane %v1125_v55, 4  ;;  %v1020_v59 = vadd.f32 %v1019_v60, %v1018_v1  ;;  %v1047_v24 = vrot.slane %v2286_v48, %v2003_v13  ;;  %v1051_v32 = vrot.slane %v2286_v48, %v2014_v30 }
  0xbb   : > { %v1172_v37 = vunpack.c.l.bf16 %v1863_v53  ;;  %v1027_v34 = vadd.f32 %v1026_v33, %v1025_v31  ;;  %v1113_v45 = vadd.f32 %v1112_v18, %v1111_v57  ;;  %v1120_v0 = vadd.f32 %v1119_v29, %v1118_v43 }
  0xbc   : > { %v1173_v62 = vunpack.c.h.bf16 %v1863_v53  ;;  %v1127_v23 = vadd.f32 %v1126_v44, %v1125_v55  ;;  %v1174_v63 = vunpack.c.l.bf16 %v1864_v49  ;;  %v1176_v58 = vunpack.c.l.bf16 %v1865_v51 }
  0xbd   : > { %v1177_v4 = vunpack.c.h.bf16 %v1865_v51  ;;  %v1028_v7 = vmul.f32 0.5, %v1006_v56  ;;  %v1029_v9 = vmul.f32 0.5, %v1013_v38  ;;  %v1107_v52 = vrot.slane %v1106_v36, 2 }
  0xbe   : > { %v1178_v16 = vunpack.c.l.bf16 %v1866_v46  ;;  %v1030_v8 = vmul.f32 0.5, %v1020_v59  ;;  %v1175_v3 = vunpack.c.h.bf16 %v1864_v49  ;;  %v1180_v15 = vsel %vm368_vm2, %v1172_v37, 0.0 }
  0xbf   : > { %v1181_v6 = vsel %vm368_vm2, %v1176_v58, 0.0  ;;  %v1114_v21 = vrot.slane %v1113_v45, 2  ;;  %v1179_v14 = vunpack.c.h.bf16 %v1866_v46  ;;  %v1183_v48 = vsel %vm368_vm2, %v1173_v62, 0.0  ;;  %v1868_v58 = vld [vmem:[%s1953_s21 + $0x20] sm:$0x66] }
  0xc0   : > { %v1182_v1 = vadd.f32 %v1181_v6, %v1180_v15  ;;  %v1121_v22 = vrot.slane %v1120_v0, 2  ;;  %v1128_v25 = vrot.slane %v1127_v23, 2  ;;  %v1184_v31 = vsel %vm368_vm2, %v1177_v4, 0.0  ;;  %v1869_v15 = vld [vmem:[%s1953_s21 + $0x28] sm:$0x66] }
  0xc1   : > { %v1186_v17 = vsel %vm368_vm2, %v1174_v63, 0.0  ;;  %v1031_v50 = vmul.f32 0.5, %v1027_v34  ;;  %v1108_v20 = vadd.f32 %v1107_v52, %v1106_v36  ;;  %v1185_v5 = vadd.f32 %v1184_v31, %v1183_v48  ;;  %v1870_v6 = vld [vmem:[%s1953_s21 + $0x30] sm:$0x66] }
  0xc2   : > { %v1187_v28 = vsel %vm368_vm2, %v1178_v16, 0.0  ;;  %v1056_v39 = vmul.f32 %v1039_v19, %v1028_v7  ;;  %v1057_v54 = vmul.f32 %v1043_v61, %v1029_v9  ;;  %v1189_v60 = vsel %vm368_vm2, %v1175_v3, 0.0 }
  0xc3   : > { %v1188_v40 = vadd.f32 %v1187_v28, %v1186_v17  ;;  %v1058_v35 = vmul.f32 %v1047_v24, %v1030_v8  ;;  %v1115_v41 = vadd.f32 %v1114_v21, %v1113_v45  ;;  %v1190_v33 = vsel %vm368_vm2, %v1179_v14, 0.0  ;;  %v1871_v21 = vld [vmem:[%s1953_s21 + $0x38] sm:$0x66] }
  0xc4   : > { %v1192_v42 = vmul.f32 0.5, %v1182_v1  ;;  %v1122_v57 = vadd.f32 %v1121_v22, %v1120_v0  ;;  %v1129_v43 = vadd.f32 %v1128_v25, %v1127_v23  ;;  %v1191_v53 = vadd.f32 %v1190_v33, %v1189_v60 }
  0xc5   : > { %v1193_v18 = vmul.f32 0.5, %v1185_v5  ;;  %v1059_v29 = vmul.f32 %v1051_v32, %v1031_v50  ;;  %v1109_v55 = vrot.slane %v1108_v20, 1  ;;  %v1194_v56 = vmul.f32 0.5, %v1188_v40 }
  0xc6   : > { %v1200_v38 = vrot.slane %v1192_v42, 2  ;;  %v2319_v36 = vadd.f32 %v1056_v39, %v2280_v10  ;;  %v2322_v19 = vadd.f32 %v1057_v54, %v2288_v26  ;;  %v1195_v61 = vmul.f32 0.5, %v1191_v53 }
  0xc7   : > { %v1201_v44 = vrot.slane %v1193_v18, 2  ;;  %v1116_v49 = vrot.slane %v1115_v41, 1  ;;  %v1138_v51 = vunpack.c.h.bf16 %v2277_v47  ;;  %v1202_v59 = vrot.slane %v1194_v56, 2 }
  0xc8   : > { %v1208_v24 = vsel %vm170_vm0, %v1200_v38, 0.0  ;;  %v1123_v46 = vrot.slane %v1122_v57, 1  ;;  %v1130_v32 = vrot.slane %v1129_v43, 1  ;;  %v1203_v37 = vrot.slane %v1195_v61, 2 }
  0xc9   : > { %v1209_v34 = vrot.slane %v1208_v24, 4  ;;  %v2327_v45 = vadd.f32 %v1058_v35, %v2290_v2  ;;  %v1110_v10 = vadd.f32 %v1109_v55, %v1108_v20  ;;  %v1215_v26 = vsel %vm170_vm0, %v1201_v44, 0.0 }
  0xca   : > { %v1222_v0 = vsel %vm170_vm0, %v1202_v59, 0.0  ;;  %v1216_v47 = vrot.slane %v1215_v26, 4  ;;  %v1229_v63 = vsel %vm170_vm0, %v1203_v37, 0.0  ;;  %v2334_v4 = vadd.f32 %v1059_v29, %v2292_v27 }
  0xcb   : > { %v1210_v62 = vadd.f32 %v1209_v34, %v1208_v24  ;;  %v1223_v23 = vrot.slane %v1222_v0, 4  ;;  %v1143_v2 = vrot.slane %v1138_v51, %v1999_v11  ;;  %v1147_v7 = vrot.slane %v1138_v51, %v2001_v12 }
  0xcc   : > { %v1230_v9 = vrot.slane %v1229_v63, 4  ;;  %v1117_v52 = vadd.f32 %v1116_v49, %v1115_v41  ;;  %v1124_v16 = vadd.f32 %v1123_v46, %v1122_v57  ;;  %v1131_v8 = vadd.f32 %v1130_v32, %v1129_v43 }
  0xcd   : > { %v1151_v3 = vrot.slane %v1138_v51, %v2003_v13  ;;  %v1132_v14 = vmul.f32 0.5, %v1110_v10  ;;  %v1155_v1 = vrot.slane %v1138_v51, %v2014_v30  ;;  %v1276_v48 = vunpack.c.l.bf16 %v1868_v58 }
  0xce   : > { %v1277_v22 = vunpack.c.h.bf16 %v1868_v58  ;;  %v1211_v27 = vrot.slane %v1210_v62, 2  ;;  %v1217_v25 = vadd.f32 %v1216_v47, %v1215_v26  ;;  %v1224_v31 = vadd.f32 %v1223_v23, %v1222_v0  ;;  %v2354_v26 = vld [vmem:[%s2532_s1 + $0x28] sm:$0xff]  }
  0xcf   : > { %v1231_v17 = vadd.f32 %v1230_v9, %v1229_v63  ;;  %v1278_v50 = vunpack.c.l.bf16 %v1869_v15  ;;  %v1280_v20 = vunpack.c.l.bf16 %v1870_v6  ;;  %v1281_v5 = vunpack.c.h.bf16 %v1870_v6 }
  0xd0   : > { %v1282_v28 = vunpack.c.l.bf16 %v1871_v21  ;;  %v1133_v39 = vmul.f32 0.5, %v1117_v52  ;;  %v1134_v54 = vmul.f32 0.5, %v1124_v16  ;;  %v1135_v40 = vmul.f32 0.5, %v1131_v8 }
  0xd1   : > { %v1279_v60 = vunpack.c.h.bf16 %v1869_v15  ;;  %v1283_v35 = vunpack.c.h.bf16 %v1871_v21  ;;  %v1284_v41 = vsel %vm473_vm3, %v1276_v48, 0.0  ;;  %v1285_v33 = vsel %vm473_vm3, %v1280_v20, 0.0 }
  0xd2   : > { %v1287_v42 = vsel %vm473_vm3, %v1277_v22, 0.0  ;;  %v1212_v57 = vadd.f32 %v1211_v27, %v1210_v62  ;;  %v1218_v43 = vrot.slane %v1217_v25, 2  ;;  %v1225_v53 = vrot.slane %v1224_v31, 2 }
  0xd3   : > { %v1232_v18 = vrot.slane %v1231_v17, 2  ;;  %v1286_v29 = vadd.f32 %v1285_v33, %v1284_v41  ;;  %v1288_v55 = vsel %vm473_vm3, %v1281_v5, 0.0  ;;  %v1290_v56 = vsel %vm473_vm3, %v1278_v50, 0.0  ;;  %v1876_v41 = vld [vmem:[%s1953_s21 + $0x48] sm:$0x11] }
  0xd4   : > { %v1291_v38 = vsel %vm473_vm3, %v1282_v28, 0.0  ;;  %v1160_v61 = vmul.f32 %v1143_v2, %v1132_v14  ;;  %v1161_v44 = vmul.f32 %v1147_v7, %v1133_v39  ;;  %v1162_v49 = vmul.f32 %v1151_v3, %v1134_v54 }
  0xd5   : > { %v1289_v51 = vadd.f32 %v1288_v55, %v1287_v42  ;;  %v1163_v59 = vmul.f32 %v1155_v1, %v1135_v40  ;;  %v1292_v24 = vadd.f32 %v1291_v38, %v1290_v56  ;;  %v1293_v46 = vsel %vm473_vm3, %v1279_v60, 0.0  ;;  %v1874_v60 = vld [vmem:[%s1953_s21 + $0x38] sm:$0x11] }
  0xd6   : > { %v1294_v32 = vsel %vm473_vm3, %v1283_v35, 0.0  ;;  %v1213_v37 = vrot.slane %v1212_v57, 1  ;;  %v1219_v34 = vadd.f32 %v1218_v43, %v1217_v25  ;;  %v1226_v10 = vadd.f32 %v1225_v53, %v1224_v31  ;;  %v1873_v31 = vld [vmem:[%s1953_s21 + $0x30] sm:$0x11]  ;;  %v1875_v35 = vld [vmem:[%s1953_s21 + $0x40] sm:$0x11] }
  0xd7   : > { %v1295_v0 = vadd.f32 %v1294_v32, %v1293_v46  ;;  %v1233_v62 = vadd.f32 %v1232_v18, %v1231_v17  ;;  %v1296_v47 = vmul.f32 0.5, %v1286_v29  ;;  %v1297_v23 = vmul.f32 0.5, %v1289_v51 }
  0xd8   : > { %v1298_v63 = vmul.f32 0.5, %v1292_v24  ;;  %v2357_v58 = vadd.f32 %v1160_v61, %v2319_v36  ;;  %v2360_v2 = vadd.f32 %v1161_v44, %v2322_v19  ;;  %v2363_v7 = vadd.f32 %v1162_v49, %v2327_v45 }
  0xd9   : > { %v1299_v9 = vmul.f32 0.5, %v1295_v0  ;;  %v2366_v52 = vunpack.c.l.bf16 %v2354_v26  ;;  %v1304_v16 = vrot.slane %v1296_v47, 3  ;;  %v1305_v8 = vrot.slane %v1297_v23, 3 }
  0xda   : > { %v1306_v3 = vrot.slane %v1298_v63, 3  ;;  %v1214_v15 = vadd.f32 %v1213_v37, %v1212_v57  ;;  %v1220_v6 = vrot.slane %v1219_v34, 1  ;;  %v1227_v21 = vrot.slane %v1226_v10, 1 }
  0xdb   : > { %v1307_v14 = vrot.slane %v1299_v9, 3  ;;  %v1234_v36 = vrot.slane %v1233_v62, 1  ;;  %v1312_v1 = vsel %vm170_vm0, %v1304_v16, 0.0  ;;  %v1319_v19 = vsel %vm170_vm0, %v1305_v8, 0.0 }
  0xdc   : > { %v1326_v45 = vsel %vm170_vm0, %v1306_v3, 0.0  ;;  %v1313_v48 = vrot.slane %v1312_v1, 4  ;;  %v1320_v22 = vrot.slane %v1319_v19, 4  ;;  %v2374_v17 = vadd.f32 %v1163_v59, %v2334_v4 }
  0xdd   : > { %v1327_v27 = vrot.slane %v1326_v45, 4  ;;  %v1333_v25 = vsel %vm170_vm0, %v1307_v14, 0.0  ;;  %v1247_v50 = vrot.slane %v2366_v52, %v1999_v11  ;;  %v1251_v20 = vrot.slane %v2366_v52, %v2001_v12 }
  0xde   : > { %v1334_v5 = vrot.slane %v1333_v25, 4  ;;  %v1221_v28 = vadd.f32 %v1220_v6, %v1219_v34  ;;  %v1255_v39 = vrot.slane %v2366_v52, %v2003_v13  ;;  %v1314_v54 = vadd.f32 %v1313_v48, %v1312_v1 }
  0xdf   : > { %v1321_v40 = vadd.f32 %v1320_v22, %v1319_v19  ;;  %v1228_v33 = vadd.f32 %v1227_v21, %v1226_v10  ;;  %v1259_v4 = vrot.slane %v2366_v52, %v2014_v30  ;;  %v1381_v42 = vunpack.c.l.bf16 %v1873_v31 }
  0xe0   : > { %v1382_v57 = vunpack.c.h.bf16 %v1873_v31  ;;  %v1235_v43 = vadd.f32 %v1234_v36, %v1233_v62  ;;  %v1236_v53 = vmul.f32 0.5, %v1214_v15  ;;  %v1328_v18 = vadd.f32 %v1327_v27, %v1326_v45 }
  0xe1   : > { %v1335_v29 = vadd.f32 %v1334_v5, %v1333_v25  ;;  %v1383_v55 = vunpack.c.l.bf16 %v1874_v60  ;;  %v1385_v56 = vunpack.c.l.bf16 %v1875_v35  ;;  %v1386_v38 = vunpack.c.h.bf16 %v1875_v35 }
  0xe2   : > { %v1387_v61 = vunpack.c.l.bf16 %v1876_v41  ;;  %v1237_v44 = vmul.f32 0.5, %v1221_v28  ;;  %v1315_v49 = vrot.slane %v1314_v54, 2  ;;  %v1322_v51 = vrot.slane %v1321_v40, 2 }
  0xe3   : > { %v1384_v59 = vunpack.c.h.bf16 %v1874_v60  ;;  %v1388_v24 = vunpack.c.h.bf16 %v1876_v41  ;;  %v1389_v46 = vsel %vm170_vm0, %v1381_v42, 0.0  ;;  %v1390_v32 = vsel %vm170_vm0, %v1385_v56, 0.0 }
  0xe4   : > { %v1392_v37 = vsel %vm170_vm0, %v1382_v57, 0.0  ;;  %v1238_v34 = vmul.f32 0.5, %v1228_v33  ;;  %v1264_v10 = vmul.f32 %v1247_v50, %v1236_v53  ;;  %v1329_v0 = vrot.slane %v1328_v18, 2  ;;  %v1878_v57 = vld [vmem:[%s1953_s21 + $0x30] sm:$0x33] }
  0xe5   : > { %v1336_v62 = vrot.slane %v1335_v29, 2  ;;  %v1391_v47 = vadd.f32 %v1390_v32, %v1389_v46  ;;  %v1393_v23 = vsel %vm170_vm0, %v1386_v38, 0.0  ;;  %v1395_v63 = vsel %vm170_vm0, %v1383_v55, 0.0  ;;  %v1880_v38 = vld [vmem:[%s1953_s21 + $0x40] sm:$0x33] }
  0xe6   : > { %v1396_v9 = vsel %vm170_vm0, %v1387_v61, 0.0  ;;  %v1239_v52 = vmul.f32 0.5, %v1235_v43  ;;  %v1265_v16 = vmul.f32 %v1251_v20, %v1237_v44  ;;  %v1316_v8 = vadd.f32 %v1315_v49, %v1314_v54  ;;  %v1881_v32 = vld [vmem:[%s1953_s21 + $0x48] sm:$0x33] }
  0xe7   : > { %v1394_v3 = vadd.f32 %v1393_v23, %v1392_v37  ;;  %v1323_v15 = vadd.f32 %v1322_v51, %v1321_v40  ;;  %v1397_v6 = vadd.f32 %v1396_v9, %v1395_v63  ;;  %v1398_v21 = vsel %vm170_vm0, %v1384_v59, 0.0 }
  0xe8   : > { %v1399_v14 = vsel %vm170_vm0, %v1388_v24, 0.0  ;;  %v1266_v36 = vmul.f32 %v1255_v39, %v1238_v34  ;;  %v2396_v1 = vadd.f32 %v1264_v10, %v2357_v58  ;;  %v1330_v19 = vadd.f32 %v1329_v0, %v1328_v18 }
  0xe9   : > { %v1400_v45 = vadd.f32 %v1399_v14, %v1398_v21  ;;  %v1337_v48 = vadd.f32 %v1336_v62, %v1335_v29  ;;  %v1401_v22 = vmul.f32 0.5, %v1391_v47  ;;  %v1402_v27 = vmul.f32 0.5, %v1394_v3 }
  0xea   : > { %v1403_v25 = vmul.f32 0.5, %v1397_v6  ;;  %v1267_v31 = vmul.f32 %v1259_v4, %v1239_v52  ;;  %v1317_v50 = vrot.slane %v1316_v8, 1  ;;  %v2399_v20 = vunpack.c.h.bf16 %v2354_v26 }
  0xeb   : > { %v1404_v5 = vmul.f32 0.5, %v1400_v45  ;;  %v1324_v28 = vrot.slane %v1323_v15, 1  ;;  %v1405_v54 = vsel %vm170_vm0, %v1401_v22, 0.0  ;;  %v1412_v39 = vsel %vm170_vm0, %v1402_v27, 0.0 }
  0xec   : > { %v1419_v58 = vsel %vm170_vm0, %v1403_v25, 0.0  ;;  %v2405_v40 = vadd.f32 %v1265_v16, %v2360_v2  ;;  %v2408_v60 = vadd.f32 %v1266_v36, %v2363_v7  ;;  %v1331_v35 = vrot.slane %v1330_v19, 1 }
  0xed   : > { %v1406_v41 = vrot.slane %v1405_v54, 4  ;;  %v1338_v33 = vrot.slane %v1337_v48, 1  ;;  %v1413_v26 = vrot.slane %v1412_v39, 4  ;;  %v1420_v4 = vrot.slane %v1419_v58, 4 }
  0xee   : > { %v1426_v42 = vsel %vm170_vm0, %v1404_v5, 0.0  ;;  %v2413_v43 = vadd.f32 %v1267_v31, %v2374_v17  ;;  %v1318_v53 = vadd.f32 %v1317_v50, %v1316_v8  ;;  %v1325_v29 = vadd.f32 %v1324_v28, %v1323_v15  ;;  %v1879_v17 = vld [vmem:[%s1953_s21 + $0x38] sm:$0x33] }
  0xef   : > { %v1407_v2 = vadd.f32 %v1406_v41, %v1405_v54  ;;  %v1427_v18 = vrot.slane %v1426_v42, 4  ;;  %v1351_v7 = vrot.slane %v2399_v20, %v1999_v11  ;;  %v1414_v55 = vadd.f32 %v1413_v26, %v1412_v39 }
  0xf0   : > { %v1421_v56 = vadd.f32 %v1420_v4, %v1419_v58  ;;  %v1332_v61 = vadd.f32 %v1331_v35, %v1330_v19  ;;  %v1355_v44 = vrot.slane %v2399_v20, %v2001_v12  ;;  %v1359_v49 = vrot.slane %v2399_v20, %v2003_v13  ;;  %v2436_v58 = vld [vmem:[%s2532_s1 + $0x30] sm:$0xff]  }
  0xf1   : > { %v1473_v51 = vunpack.c.l.bf16 %v1878_v57  ;;  %v1339_v59 = vadd.f32 %v1338_v33, %v1337_v48  ;;  %v1363_v24 = vrot.slane %v2399_v20, %v2014_v30  ;;  %v1428_v46 = vadd.f32 %v1427_v18, %v1426_v42 }
  0xf2   : > { %v1474_v37 = vunpack.c.h.bf16 %v1878_v57  ;;  %v1340_v34 = vmul.f32 0.5, %v1318_v53  ;;  %v1408_v10 = vrot.slane %v1407_v2, 2  ;;  %v1415_v0 = vrot.slane %v1414_v55, 2 }
  0xf3   : > { %v1477_v62 = vunpack.c.l.bf16 %v1880_v38  ;;  %v1341_v47 = vmul.f32 0.5, %v1325_v29  ;;  %v1422_v23 = vrot.slane %v1421_v56, 2  ;;  %v1475_v63 = vunpack.c.l.bf16 %v1879_v17 }
  0xf4   : > { %v1478_v9 = vunpack.c.h.bf16 %v1880_v38  ;;  %v1342_v52 = vmul.f32 0.5, %v1332_v61  ;;  %v1476_v16 = vunpack.c.h.bf16 %v1879_v17  ;;  %v1479_v8 = vunpack.c.l.bf16 %v1881_v32 }
  0xf5   : > { %v1481_v3 = vsel %vm263_vm1, %v1473_v51, 0.0  ;;  %v1429_v15 = vrot.slane %v1428_v46, 2  ;;  %v1480_v6 = vunpack.c.h.bf16 %v1881_v32  ;;  %v1482_v21 = vsel %vm263_vm1, %v1477_v62, 0.0 }
  0xf6   : > { %v1484_v14 = vsel %vm263_vm1, %v1474_v37, 0.0  ;;  %v1409_v36 = vadd.f32 %v1408_v10, %v1407_v2  ;;  %v1416_v19 = vadd.f32 %v1415_v0, %v1414_v55  ;;  %v1483_v45 = vadd.f32 %v1482_v21, %v1481_v3 }
  0xf7   : > { %v1485_v48 = vsel %vm263_vm1, %v1478_v9, 0.0  ;;  %v1343_v22 = vmul.f32 0.5, %v1339_v59  ;;  %v1423_v27 = vadd.f32 %v1422_v23, %v1421_v56  ;;  %v1487_v31 = vsel %vm263_vm1, %v1475_v63, 0.0 }
  0xf8   : > { %v1486_v25 = vadd.f32 %v1485_v48, %v1484_v14  ;;  %v1368_v50 = vmul.f32 %v1351_v7, %v1340_v34  ;;  %v1369_v20 = vmul.f32 %v1355_v44, %v1341_v47  ;;  %v1488_v5 = vsel %vm263_vm1, %v1479_v8, 0.0  ;;  %v1883_v34 = vld [vmem:[%s1953_s21 + $0x30] sm:$0x22]  ;;  %v1885_v47 = vld [vmem:[%s1953_s21 + $0x40] sm:$0x22] }
  0xf9   : > { %v1490_v28 = vsel %vm263_vm1, %v1476_v16, 0.0  ;;  %v1370_v54 = vmul.f32 %v1359_v49, %v1342_v52  ;;  %v1430_v39 = vadd.f32 %v1429_v15, %v1428_v46  ;;  %v1489_v35 = vadd.f32 %v1488_v5, %v1487_v31  ;;  %v1884_v16 = vld [vmem:[%s1953_s21 + $0x38] sm:$0x22] }
  0xfa   : > { %v1491_v41 = vsel %vm263_vm1, %v1480_v6, 0.0  ;;  %v1410_v33 = vrot.slane %v1409_v36, 1  ;;  %v1417_v26 = vrot.slane %v1416_v19, 1  ;;  %v1493_v42 = vmul.f32 0.5, %v1483_v45  ;;  %v1886_v6 = vld [vmem:[%s1953_s21 + $0x48] sm:$0x22] }
  0xfb   : > { %v1492_v4 = vadd.f32 %v1491_v41, %v1490_v28  ;;  %v1371_v57 = vmul.f32 %v1363_v24, %v1343_v22  ;;  %v1424_v53 = vrot.slane %v1423_v27, 1  ;;  %v1494_v2 = vmul.f32 0.5, %v1486_v25 }
  0xfc   : > { %v1495_v18 = vmul.f32 0.5, %v1489_v35  ;;  %v2440_v29 = vadd.f32 %v1368_v50, %v2396_v1  ;;  %v1439_v7 = vunpack.c.l.bf16 %v2436_v58  ;;  %v1501_v56 = vrot.slane %v1493_v42, 1 }
  0xfd   : > { %v1496_v55 = vmul.f32 0.5, %v1492_v4  ;;  %v2444_v38 = vadd.f32 %v1369_v20, %v2405_v40  ;;  %v1431_v61 = vrot.slane %v1430_v39, 1  ;;  %v1502_v44 = vrot.slane %v1494_v2, 1 }
  0xfe   : > { %v1503_v49 = vrot.slane %v1495_v18, 1  ;;  %v1411_v17 = vadd.f32 %v1410_v33, %v1409_v36  ;;  %v1418_v51 = vadd.f32 %v1417_v26, %v1416_v19  ;;  %v1509_v24 = vsel %vm170_vm0, %v1501_v56, 0.0 }
  0xff   : > { %v1504_v59 = vrot.slane %v1496_v55, 1  ;;  %v1425_v1 = vadd.f32 %v1424_v53, %v1423_v27  ;;  %v1510_v46 = vrot.slane %v1509_v24, 4  ;;  %v1516_v32 = vsel %vm170_vm0, %v1502_v44, 0.0 }
 0x100   : > { %v1523_v37 = vsel %vm170_vm0, %v1503_v49, 0.0  ;;  %v1374_v40 = vadd.f32 %v1370_v54, %v2408_v60  ;;  %v1375_v10 = vadd.f32 %v1371_v57, %v2413_v43  ;;  %v1444_v0 = vrot.slane %v1439_v7, %v1999_v11 }
 0x101   : > { %v1448_v62 = vrot.slane %v1439_v7, %v2001_v12  ;;  %v1432_v23 = vadd.f32 %v1431_v61, %v1430_v39  ;;  %v1517_v63 = vrot.slane %v1516_v32, 4  ;;  %v1524_v9 = vrot.slane %v1523_v37, 4 }
 0x102   : > { %v1530_v52 = vsel %vm170_vm0, %v1504_v59, 0.0  ;;  %v1433_v8 = vmul.f32 0.5, %v1411_v17  ;;  %v1452_v3 = vrot.slane %v1439_v7, %v2003_v13  ;;  %v1456_v15 = vrot.slane %v1439_v7, %v2014_v30 }
 0x103   : > { %v1577_v60 = vunpack.c.l.bf16 %v1883_v34  ;;  %v1434_v21 = vmul.f32 0.5, %v1418_v51  ;;  %v1435_v43 = vmul.f32 0.5, %v1425_v1  ;;  %v1511_v14 = vadd.f32 %v1510_v46, %v1509_v24 }
 0x104   : > { %v1578_v36 = vunpack.c.h.bf16 %v1883_v34  ;;  %v1531_v19 = vrot.slane %v1530_v52, 4  ;;  %v1579_v45 = vunpack.c.l.bf16 %v1884_v16  ;;  %v1581_v48 = vunpack.c.l.bf16 %v1885_v47 }
 0x105   : > { %v1582_v22 = vunpack.c.h.bf16 %v1885_v47  ;;  %v1436_v27 = vmul.f32 0.5, %v1432_v23  ;;  %v1518_v25 = vadd.f32 %v1517_v63, %v1516_v32  ;;  %v1525_v31 = vadd.f32 %v1524_v9, %v1523_v37 }
 0x106   : > { %v1583_v50 = vunpack.c.l.bf16 %v1886_v6  ;;  %v1461_v20 = vmul.f32 %v1444_v0, %v1433_v8  ;;  %v1580_v5 = vunpack.c.h.bf16 %v1884_v16  ;;  %v1585_v28 = vsel %vm368_vm2, %v1577_v60, 0.0 }
 0x107   : > { %v1586_v54 = vsel %vm368_vm2, %v1581_v48, 0.0  ;;  %v1462_v39 = vmul.f32 %v1448_v62, %v1434_v21  ;;  %v1584_v35 = vunpack.c.h.bf16 %v1886_v6  ;;  %v1588_v33 = vsel %vm368_vm2, %v1578_v36, 0.0 }
 0x108   : > { %v1587_v41 = vadd.f32 %v1586_v54, %v1585_v28  ;;  %v1512_v26 = vrot.slane %v1511_v14, 2  ;;  %v1532_v4 = vadd.f32 %v1531_v19, %v1530_v52  ;;  %v1589_v42 = vsel %vm368_vm2, %v1582_v22, 0.0  ;;  %v1888_v19 = vld [vmem:[%s1953_s21 + $0x30] sm:$0x66]  ;;  %v1889_v28 = vld [vmem:[%s1953_s21 + $0x38] sm:$0x66] }
 0x109   : > { %v1591_v57 = vsel %vm368_vm2, %v1579_v45, 0.0  ;;  %v1519_v53 = vrot.slane %v1518_v25, 2  ;;  %v1526_v2 = vrot.slane %v1525_v31, 2  ;;  %v1590_v18 = vadd.f32 %v1589_v42, %v1588_v33  ;;  %v1891_v54 = vld [vmem:[%s1953_s21 + $0x48] sm:$0x66] }
 0x10a   : > { %v1592_v7 = vsel %vm368_vm2, %v1583_v50, 0.0  ;;  %v1463_v55 = vmul.f32 %v1452_v3, %v1435_v43  ;;  %v1464_v56 = vmul.f32 %v1456_v15, %v1436_v27  ;;  %v1594_v44 = vsel %vm368_vm2, %v1580_v5, 0.0 }
 0x10b   : > { %v1593_v61 = vadd.f32 %v1592_v7, %v1591_v57  ;;  %v2468_v49 = vadd.f32 %v1461_v20, %v2440_v29  ;;  %v2471_v17 = vunpack.c.h.bf16 %v2436_v58  ;;  %v1595_v51 = vsel %vm368_vm2, %v1584_v35, 0.0 }
 0x10c   : > { %v1597_v59 = vmul.f32 0.5, %v1587_v41  ;;  %v1513_v24 = vadd.f32 %v1512_v26, %v1511_v14  ;;  %v1533_v1 = vrot.slane %v1532_v4, 2  ;;  %v1596_v46 = vadd.f32 %v1595_v51, %v1594_v44 }
 0x10d   : > { %v1598_v32 = vmul.f32 0.5, %v1590_v18  ;;  %v1520_v37 = vadd.f32 %v1519_v53, %v1518_v25  ;;  %v1527_v34 = vadd.f32 %v1526_v2, %v1525_v31  ;;  %v1599_v0 = vmul.f32 0.5, %v1593_v61  ;;  %v1890_v25 = vld [vmem:[%s1953_s21 + $0x40] sm:$0x66] }
 0x10e   : > { %v1605_v62 = vrot.slane %v1597_v59, 2  ;;  %v2475_v47 = vadd.f32 %v1462_v39, %v2444_v38  ;;  %v2477_v23 = vadd.f32 %v1463_v55, %v1374_v40  ;;  %v1600_v29 = vmul.f32 0.5, %v1596_v46 }
 0x10f   : > { %v1606_v63 = vrot.slane %v1598_v32, 2  ;;  %v2479_v58 = vadd.f32 %v1464_v56, %v1375_v10  ;;  %v1548_v9 = vrot.slane %v2471_v17, %v1999_v11  ;;  %v1607_v52 = vrot.slane %v1599_v0, 2 }
 0x110   : > { %v1613_v16 = vsel %vm170_vm0, %v1605_v62, 0.0  ;;  %v1514_v8 = vrot.slane %v1513_v24, 1  ;;  %v1534_v3 = vadd.f32 %v1533_v1, %v1532_v4  ;;  %v1608_v15 = vrot.slane %v1600_v29, 2 }
 0x111   : > { %v1614_v6 = vrot.slane %v1613_v16, 4  ;;  %v1521_v38 = vrot.slane %v1520_v37, 1  ;;  %v1528_v60 = vrot.slane %v1527_v34, 1  ;;  %v1620_v40 = vsel %vm170_vm0, %v1606_v63, 0.0 }
 0x112   : > { %v1627_v10 = vsel %vm170_vm0, %v1607_v52, 0.0  ;;  %v1621_v43 = vrot.slane %v1620_v40, 4  ;;  %v1634_v36 = vsel %vm170_vm0, %v1608_v15, 0.0  ;;  %v1552_v45 = vrot.slane %v2471_v17, %v2001_v12  ;;  %v1887_v15 = vld [vmem:[%s2532_s1 + $0x38] sm:$0xff]  }
 0x113   : > { %v1615_v21 = vadd.f32 %v1614_v6, %v1613_v16  ;;  %v1628_v14 = vrot.slane %v1627_v10, 4  ;;  %v1556_v48 = vrot.slane %v2471_v17, %v2003_v13  ;;  %v1560_v22 = vrot.slane %v2471_v17, %v2014_v30 }
 0x114   : > { %v1635_v27 = vrot.slane %v1634_v36, 4  ;;  %v1515_v31 = vadd.f32 %v1514_v8, %v1513_v24  ;;  %v1535_v50 = vrot.slane %v1534_v3, 1  ;;  %v1622_v20 = vadd.f32 %v1621_v43, %v1620_v40 }
 0x115   : > { %v1629_v5 = vadd.f32 %v1628_v14, %v1627_v10  ;;  %v1522_v39 = vadd.f32 %v1521_v38, %v1520_v37  ;;  %v1681_v41 = vunpack.c.l.bf16 %v1888_v19  ;;  %v1682_v33 = vunpack.c.h.bf16 %v1888_v19 }
 0x116   : > { %v1636_v35 = vadd.f32 %v1635_v27, %v1634_v36  ;;  %v1529_v26 = vadd.f32 %v1528_v60, %v1527_v34  ;;  %v1616_v4 = vrot.slane %v1615_v21, 2  ;;  %v1623_v42 = vrot.slane %v1622_v20, 2 }
 0x117   : > { %v1630_v57 = vrot.slane %v1629_v5, 2  ;;  %v1683_v53 = vunpack.c.l.bf16 %v1889_v28  ;;  %v1685_v2 = vunpack.c.l.bf16 %v1890_v25  ;;  %v1686_v18 = vunpack.c.h.bf16 %v1890_v25 }
 0x118   : > { %v1687_v7 = vunpack.c.l.bf16 %v1891_v54  ;;  %v1536_v55 = vadd.f32 %v1535_v50, %v1534_v3  ;;  %v1537_v56 = vmul.f32 0.5, %v1515_v31  ;;  %v1637_v61 = vrot.slane %v1636_v35, 2 }
 0x119   : > { %v1684_v44 = vunpack.c.h.bf16 %v1889_v28  ;;  %v1688_v17 = vunpack.c.h.bf16 %v1891_v54  ;;  %v1689_v51 = vsel %vm473_vm3, %v1681_v41, 0.0  ;;  %v1690_v59 = vsel %vm473_vm3, %v1685_v2, 0.0 }
 0x11a   : > { %v1692_v24 = vsel %vm473_vm3, %v1682_v33, 0.0  ;;  %v1538_v1 = vmul.f32 0.5, %v1522_v39  ;;  %v1617_v46 = vadd.f32 %v1616_v4, %v1615_v21  ;;  %v1624_v32 = vadd.f32 %v1623_v42, %v1622_v20 }
 0x11b   : > { %v1631_v37 = vadd.f32 %v1630_v57, %v1629_v5  ;;  %v1691_v34 = vadd.f32 %v1690_v59, %v1689_v51  ;;  %v1693_v0 = vsel %vm473_vm3, %v1686_v18, 0.0  ;;  %v1695_v62 = vsel %vm473_vm3, %v1683_v53, 0.0 }
 0x11c   : > { %v1696_v29 = vsel %vm473_vm3, %v1687_v7, 0.0  ;;  %v1539_v63 = vmul.f32 0.5, %v1529_v26  ;;  %v1540_v52 = vmul.f32 0.5, %v1536_v55  ;;  %v1565_v16 = vmul.f32 %v1548_v9, %v1537_v56 }
 0x11d   : > { %v1694_v8 = vadd.f32 %v1693_v0, %v1692_v24  ;;  %v1638_v3 = vadd.f32 %v1637_v61, %v1636_v35  ;;  %v1697_v6 = vadd.f32 %v1696_v29, %v1695_v62  ;;  %v1698_v38 = vsel %vm473_vm3, %v1684_v44, 0.0 }
 0x11e   : > { %v1699_v60 = vsel %vm473_vm3, %v1688_v17, 0.0  ;;  %v1566_v40 = vmul.f32 %v1552_v45, %v1538_v1  ;;  %v1618_v10 = vrot.slane %v1617_v46, 1  ;;  %v1625_v21 = vrot.slane %v1624_v32, 1 }
 0x11f   : > { %v1700_v43 = vadd.f32 %v1699_v60, %v1698_v38  ;;  %v1632_v14 = vrot.slane %v1631_v37, 1  ;;  %v1701_v36 = vmul.f32 0.5, %v1691_v34  ;;  %v1702_v19 = vmul.f32 0.5, %v1694_v8 }
 0x120   : > { %v1703_v27 = vmul.f32 0.5, %v1697_v6  ;;  %v1567_v9 = vmul.f32 %v1556_v48, %v1539_v63  ;;  %v1568_v25 = vmul.f32 %v1560_v22, %v1540_v52  ;;  %v1647_v31 = vunpack.c.l.bf16 %v1887_v15 }
 0x121   : > { %v1704_v50 = vmul.f32 0.5, %v1700_v43  ;;  %v1639_v20 = vrot.slane %v1638_v3, 1  ;;  %v1709_v5 = vrot.slane %v1701_v36, 3  ;;  %v1710_v28 = vrot.slane %v1702_v19, 3 }
 0x122   : > { %v1711_v54 = vrot.slane %v1703_v27, 3  ;;  %v1569_v39 = vadd.f32 %v1565_v16, %v2468_v49  ;;  %v1619_v35 = vadd.f32 %v1618_v10, %v1617_v46  ;;  %v1626_v41 = vadd.f32 %v1625_v21, %v1624_v32 }
 0x123   : > { %v1712_v45 = vrot.slane %v1704_v50, 3  ;;  %v1633_v33 = vadd.f32 %v1632_v14, %v1631_v37  ;;  %v1717_v26 = vsel %vm170_vm0, %v1709_v5, 0.0  ;;  %v1724_v4 = vsel %vm170_vm0, %v1710_v28, 0.0 }
 0x124   : > { %v1731_v42 = vsel %vm170_vm0, %v1711_v54, 0.0  ;;  %v1718_v48 = vrot.slane %v1717_v26, 4  ;;  %v1725_v22 = vrot.slane %v1724_v4, 4  ;;  %v1570_v2 = vadd.f32 %v1566_v40, %v2475_v47 }
 0x125   : > { %v1732_v57 = vrot.slane %v1731_v42, 4  ;;  %v1738_v53 = vsel %vm170_vm0, %v1712_v45, 0.0  ;;  %v1640_v18 = vadd.f32 %v1639_v20, %v1638_v3  ;;  %v1652_v49 = vrot.slane %v1647_v31, %v1999_v11 }
 0x126   : > { %v1739_v7 = vrot.slane %v1738_v53, 4  ;;  %v1656_v55 = vrot.slane %v1647_v31, %v2001_v12  ;;  %v1719_v56 = vadd.f32 %v1718_v48, %v1717_v26  ;;  %v1726_v61 = vadd.f32 %v1725_v22, %v1724_v4 }
 0x127   : > { %v1733_v44 = vadd.f32 %v1732_v57, %v1731_v42  ;;  %v1641_v17 = vmul.f32 0.5, %v1619_v35  ;;  %v1642_v51 = vmul.f32 0.5, %v1626_v41  ;;  %v1660_v59 = vrot.slane %v1647_v31, %v2003_v13 }
 0x128   : > { %v1740_v24 = vadd.f32 %v1739_v7, %v1738_v53  ;;  %v1643_v1 = vmul.f32 0.5, %v1633_v33  ;;  %v1720_v46 = vrot.slane %v1719_v56, 2  ;;  %v1727_v32 = vrot.slane %v1726_v61, 2 }
 0x129   : > { %v1734_v37 = vrot.slane %v1733_v44, 2  ;;  %v1644_v34 = vmul.f32 0.5, %v1640_v18  ;;  %v1664_v47 = vrot.slane %v1647_v31, %v2014_v30  ;;  %v1751_v62 = vunpack.c.h.bf16 %v1887_v15  ;;  %v1791_v18 = vld [vmem:[#allocation2] sm:$0x1] }
 0x12a   : > { %v1741_v0 = vrot.slane %v1740_v24, 2  ;;  %v1571_v29 = vadd.f32 %v1567_v9, %v2477_v23  ;;  %v1721_v63 = vadd.f32 %v1720_v46, %v1719_v56  ;;  %v1728_v52 = vadd.f32 %v1727_v32, %v1726_v61 }
 0x12b   : > { %v1735_v16 = vadd.f32 %v1734_v37, %v1733_v44  ;;  %v1572_v8 = vadd.f32 %v1568_v25, %v2479_v58  ;;  %v1669_v3 = vmul.f32 %v1652_v49, %v1641_v17  ;;  %v1670_v6 = vmul.f32 %v1656_v55, %v1642_v51 }
 0x12c   : > { %v1742_v38 = vadd.f32 %v1741_v0, %v1740_v24  ;;  %v1671_v60 = vmul.f32 %v1660_v59, %v1643_v1  ;;  %v1722_v40 = vrot.slane %v1721_v63, 1  ;;  %v1729_v10 = vrot.slane %v1728_v52, 1 }
 0x12d   : > { %v1736_v21 = vrot.slane %v1735_v16, 1  ;;  %v1672_v43 = vmul.f32 %v1664_v47, %v1644_v34  ;;  %v1756_v36 = vrot.slane %v1751_v62, %v1999_v11  ;;  %v1760_v15 = vrot.slane %v1751_v62, %v2001_v12 }
 0x12e   : > { %v1743_v14 = vrot.slane %v1742_v38, 1  ;;  %v1723_v19 = vadd.f32 %v1722_v40, %v1721_v63  ;;  %v1730_v23 = vadd.f32 %v1729_v10, %v1728_v52  ;;  %v1764_v9 = vrot.slane %v1751_v62, %v2003_v13 }
 0x12f   : > { %v1737_v27 = vadd.f32 %v1736_v21, %v1735_v16  ;;  %v1673_v31 = vadd.f32 %v1669_v3, %v1569_v39  ;;  %v1674_v58 = vadd.f32 %v1670_v6, %v1570_v2  ;;  %v1768_v50 = vrot.slane %v1751_v62, %v2014_v30 }
 0x130   : > { %v1744_v25 = vadd.f32 %v1743_v14, %v1742_v38  ;;  %v1675_v20 = vadd.f32 %v1671_v60, %v1571_v29  ;;  %v1745_v5 = vmul.f32 0.5, %v1723_v19  ;;  %v1746_v28 = vmul.f32 0.5, %v1730_v23 }
 0x131   : > { %v1747_v54 = vmul.f32 0.5, %v1737_v27  ;;  %v1676_v35 = vadd.f32 %v1672_v43, %v1572_v8 }
 0x132   : > { %v1748_v41 = vmul.f32 0.5, %v1744_v25  ;;  %v1773_v45 = vmul.f32 %v1756_v36, %v1745_v5  ;;  %v1774_v11 = vmul.f32 %v1760_v15, %v1746_v28 }
 0x133   : > { %v1775_v33 = vmul.f32 %v1764_v9, %v1747_v54 }
 0x134   : > { %v1776_v12 = vmul.f32 %v1768_v50, %v1748_v41  ;;  %v1777_v26 = vadd.f32 %v1773_v45, %v1673_v31  ;;  %v1778_v4 = vadd.f32 %v1774_v11, %v1674_v58 }
 0x135   : > { %v1779_v13 = vadd.f32 %v1775_v33, %v1675_v20 }
 0x136   : > { %v1780_v39 = vadd.f32 %v1776_v12, %v1676_v35  ;;  %v1782_v42 = vsel %vm1781_vm4, %v1777_v26, 0.0  ;;  %v1783_v48 = vsel %vm1781_vm4, %v1778_v4, 0.0 }
 0x137   : > { %v1785_v22 = vsel %vm1781_vm4, %v1779_v13, 0.0  ;;  %v1784_v30 = vadd.f32 %v1783_v48, %v1782_v42 }
 0x138   : > { %v1787_v57 = vsel %vm1781_vm4, %v1780_v39, 0.0 }
 0x139   : > { %v1786_v53 = vadd.f32 %v1785_v22, %v1784_v30 }
 0x13b   : > { %v1788_v2 = vadd.f32 %v1787_v57, %v1786_v53 }
 0x13d   : > { %1789 = vadd.xlane.f32.xlu0 %v1788_v2 }
 0x1ca   : > { %v1790_v49 = vpop.xlane.xlu0 %1789 }
 0x1cb   : > { %v1792_v7 = vadd.f32 %v1791_v18, %v1790_v49 }
 0x1cd   : > { %1795 = vst.msk [vmem:[%s1793_s11] sm:$0x1] %vm1794_vm5, %v1792_v7 }
 0x1ce PF: > { %s15_s14 = sadd.s32 1, %s1910_s14  }
 0x1cf   : > { %p12_p4 = scmp.ge.s32.totalorder %s15_s14, 4  }
 0x1d1   :  { %14 = sbr.rel (!%p12_p4) target bundleno = 3 (0x3), region = 77 }

// kernel: discriminator_forward.8
= control target key start
LH: loop header
LB: loop body
LE: loop exit
PB: predicated region body
PF: predicated region fallthrough
CT: control target
= control target key end

     0   :  { %s9005_s9 = smov 0   ;;  %s9007_s10 = smov 0   ;;  %s10502_s0 = inlined_call_operand.vmem [shape: bf16[2,6,6,256], index: 0, kind: input, shape index: {}]   ;;  %s10503_s1 = inlined_call_operand.vmem [shape: bf16[16,256,512], index: 1, kind: input, shape index: {}]   ;;  %s10504_s2 = inlined_call_operand.vmem [shape: bf16[2,3,3,512], index: 2, kind: output, shape index: {}]  }
   0x1   :  { %s9009_s11 = smov 0   ;;  %s9011_s12 = smov 0  }
   0x2   :  { %s9013_s13 = smov 0   ;;  %s9015_s14 = smov 0  }
   0x3   :  { %s9017_s15 = smov 0   ;;  %s9019_s16 = smov 0  }
   0x4   :  { %s9021_s17 = smov 0  }
   0x5 LB: > { %s7443_s18 = sadd.s32 4294967295, %s8984_s17   ;;  %s21_s19 = sadd.s32 1, %s8976_s15  ;;  %s8984_s17 = sphi %s9021_s17, %s12_s17   ;;  %s8980_s16 = sphi %s9019_s16, %s10513_s16   ;;  %s8976_s15 = sphi %s9017_s15, %s10512_s15   ;;  %s8972_s14 = sphi %s9015_s14, %s10511_s14   ;;  %s8968_s13 = sphi %s9013_s13, %s10510_s13   ;;  %s8964_s12 = sphi %s9011_s12, %s10509_s12   ;;  %s8960_s11 = sphi %s9009_s11, %s10508_s11   ;;  %s8956_s10 = sphi %s9007_s10, %s10507_s10   ;;  %s8952_s9 = sphi %s9005_s9, %s10506_s9  }
   0x6   : > { %p22_p0 = scmp.ge.s32.totalorder %s21_s19, 4  ;;  %s24_s20 = sadd.s32 1, %s8980_s16 }
   0x7   : > { %s57_s21 = sadd.s32 1, %s8964_s12  ;;  %p64_p1 = scmp.ne.s32.totalorder %s8964_s12, %s8960_s11 }
   0x8   : > { %s10515_s19 = smov (%p22_p0, %s21_s19), 0  ;;  %s10517_s20 = smov (!%p22_p0, %s24_s20), %s8980_s16 }
   0x9   : > { %s54_s22 = ssub.s32 %s8976_s15, %s10515_s19  ;;  %p65_p2 = scmp.eq.s32.totalorder %s8984_s17, 0 }
   0xa   : > { %p26_p3 = scmp.ge.s32.totalorder %s10517_s20, 2  ;;  %p55_p4 = scmp.eq.s32.totalorder %s54_s22, 0 }
   0xb   : > { %p66_p5 = por %p65_p2, %p64_p1  ;;  %s85_s23 = sadd.s32 1, %s8956_s10 }
   0xc   : > { %s10519_s20 = smov (%p26_p3, %s10517_s20), 0  ;;  %p95_p6 = scmp.ne.s32.totalorder %s8956_s10, %s8952_s9 }
   0xd   : > { %s9066_s24 = scalar_select %p55_p4, %s8964_s12, %s57_s21  }
   0xe   : > { %s80_s25 = ssub.s32 %s8980_s16, %s10519_s20  ;;  %p96_p7 = scmp.eq.s32.totalorder %s7443_s18, 7 }
   0xf   : > { %s82_s26 = sor.u32 %s80_s25, %s54_s22  ;;  %p7446_p10 = scmp.ge.s32.totalorder %s8984_s17, 8 }
  0x10   : > { %p83_p8 = scmp.eq.s32.totalorder %s82_s26, 0  ;;  %p9072_p9 = por %p96_p7, %p95_p6 }
  0x11   : > { %118 = sbr.rel (%p7446_p10) target bundleno = 369 (0x171), region = 16 }
  0x12   : > { %s9077_s28 = scalar_select %p83_p8, %s8956_s10, %s85_s23  }
  0x18   : > { %129 = sbr.rel (!%p66_p5) target bundleno = 369 (0x171), region = 24  ;;  %s131_s29 = sand.u32 (%p66_p5), 1, %s8964_s12  }
  0x19   : > { %s7448_s30 = sshll.u32 (%p66_p5), %s8976_s15, 2  ;;  %s7447_s3 = sshll.u32 (%p66_p5), %s131_s29, 11 }
  0x1a   : > { %s9085_s6 = scalar_lea.vmem (%p66_p5), %s10503_s1, %s7448_s30  ;;  %s9089_s7 = scalar_lea.vmem (%p66_p5), [#allocation3], %s7447_s3 }
  0x1b   : > { %v151_v0 = vld [vmem:[%s9085_s6] sm:$0xf] (%p66_p5)  ;;  %v153_v1 = vld [vmem:[%s9085_s6 + $0x10] sm:$0xf] (%p66_p5) }
  0x1c   : > { %152 = vst [vmem:[%s9089_s7] sm:$0xf] (%p66_p5), %v151_v0  ;;  %154 = vst [vmem:[%s9089_s7 + $0x4] sm:$0xf] (%p66_p5), %v153_v1  ;;  %v155_v2 = vld [vmem:[%s9085_s6 + $0x20] sm:$0xf] (%p66_p5) }
  0x1d   : > { %v157_v3 = vld [vmem:[%s9085_s6 + $0x30] sm:$0xf] (%p66_p5)  ;;  %v159_v4 = vld [vmem:[%s9085_s6 + $0x40] sm:$0xf] (%p66_p5)  ;;  %156 = vst [vmem:[%s9089_s7 + $0x8] sm:$0xf] (%p66_p5), %v155_v2 }
  0x1e   : > { %158 = vst [vmem:[%s9089_s7 + $0xc] sm:$0xf] (%p66_p5), %v157_v3  ;;  %160 = vst [vmem:[%s9089_s7 + $0x10] sm:$0xf] (%p66_p5), %v159_v4  ;;  %v161_v5 = vld [vmem:[%s9085_s6 + $0x50] sm:$0xf] (%p66_p5) }
  0x1f   : > { %v163_v6 = vld [vmem:[%s9085_s6 + $0x60] sm:$0xf]  ;;  %v165_v7 = vld [vmem:[%s9085_s6 + $0x70] sm:$0xf]  ;;  %162 = vst [vmem:[%s9089_s7 + $0x14] sm:$0xf] %v161_v5 }
  0x20   : > { %164 = vst [vmem:[%s9089_s7 + $0x18] sm:$0xf] %v163_v6  ;;  %166 = vst [vmem:[%s9089_s7 + $0x1c] sm:$0xf] %v165_v7  ;;  %v167_v8 = vld [vmem:[%s9085_s6 + $0x80] sm:$0xf] }
  0x21   : > { %v169_v9 = vld [vmem:[%s9085_s6 + $0x90] sm:$0xf]  ;;  %v171_v10 = vld [vmem:[%s9085_s6 + $0xa0] sm:$0xf]  ;;  %168 = vst [vmem:[%s9089_s7 + $0x20] sm:$0xf] %v167_v8 }
  0x22   : > { %170 = vst [vmem:[%s9089_s7 + $0x24] sm:$0xf] %v169_v9  ;;  %172 = vst [vmem:[%s9089_s7 + $0x28] sm:$0xf] %v171_v10  ;;  %v173_v11 = vld [vmem:[%s9085_s6 + $0xb0] sm:$0xf] }
  0x23   : > { %v175_v12 = vld [vmem:[%s9085_s6 + $0xc0] sm:$0xf]  ;;  %v177_v13 = vld [vmem:[%s9085_s6 + $0xd0] sm:$0xf]  ;;  %174 = vst [vmem:[%s9089_s7 + $0x2c] sm:$0xf] %v173_v11 }
  0x24   : > { %176 = vst [vmem:[%s9089_s7 + $0x30] sm:$0xf] %v175_v12  ;;  %178 = vst [vmem:[%s9089_s7 + $0x34] sm:$0xf] %v177_v13  ;;  %v179_v14 = vld [vmem:[%s9085_s6 + $0xe0] sm:$0xf] }
  0x25   : > { %v181_v15 = vld [vmem:[%s9085_s6 + $0xf0] sm:$0xf]  ;;  %v183_v16 = vld [vmem:[%s9085_s6 + $0x100] sm:$0xf]  ;;  %180 = vst [vmem:[%s9089_s7 + $0x38] sm:$0xf] %v179_v14 }
  0x26   : > { %182 = vst [vmem:[%s9089_s7 + $0x3c] sm:$0xf] %v181_v15  ;;  %184 = vst [vmem:[%s9089_s7 + $0x40] sm:$0xf] %v183_v16  ;;  %v185_v17 = vld [vmem:[%s9085_s6 + $0x110] sm:$0xf] }
  0x27   : > { %v187_v18 = vld [vmem:[%s9085_s6 + $0x120] sm:$0xf]  ;;  %v189_v19 = vld [vmem:[%s9085_s6 + $0x130] sm:$0xf]  ;;  %186 = vst [vmem:[%s9089_s7 + $0x44] sm:$0xf] %v185_v17 }
  0x28   : > { %188 = vst [vmem:[%s9089_s7 + $0x48] sm:$0xf] %v187_v18  ;;  %190 = vst [vmem:[%s9089_s7 + $0x4c] sm:$0xf] %v189_v19  ;;  %v191_v20 = vld [vmem:[%s9085_s6 + $0x140] sm:$0xf] }
  0x29   : > { %v193_v21 = vld [vmem:[%s9085_s6 + $0x150] sm:$0xf]  ;;  %v195_v22 = vld [vmem:[%s9085_s6 + $0x160] sm:$0xf]  ;;  %192 = vst [vmem:[%s9089_s7 + $0x50] sm:$0xf] %v191_v20 }
  0x2a   : > { %194 = vst [vmem:[%s9089_s7 + $0x54] sm:$0xf] %v193_v21  ;;  %196 = vst [vmem:[%s9089_s7 + $0x58] sm:$0xf] %v195_v22  ;;  %v197_v23 = vld [vmem:[%s9085_s6 + $0x170] sm:$0xf] }
  0x2b   : > { %v199_v24 = vld [vmem:[%s9085_s6 + $0x180] sm:$0xf]  ;;  %v201_v25 = vld [vmem:[%s9085_s6 + $0x190] sm:$0xf]  ;;  %198 = vst [vmem:[%s9089_s7 + $0x5c] sm:$0xf] %v197_v23 }
  0x2c   : > { %200 = vst [vmem:[%s9089_s7 + $0x60] sm:$0xf] %v199_v24  ;;  %202 = vst [vmem:[%s9089_s7 + $0x64] sm:$0xf] %v201_v25  ;;  %v203_v26 = vld [vmem:[%s9085_s6 + $0x1a0] sm:$0xf] }
  0x2d   : > { %v205_v27 = vld [vmem:[%s9085_s6 + $0x1b0] sm:$0xf]  ;;  %v207_v28 = vld [vmem:[%s9085_s6 + $0x1c0] sm:$0xf]  ;;  %204 = vst [vmem:[%s9089_s7 + $0x68] sm:$0xf] %v203_v26 }
  0x2e   : > { %206 = vst [vmem:[%s9089_s7 + $0x6c] sm:$0xf] %v205_v27  ;;  %208 = vst [vmem:[%s9089_s7 + $0x70] sm:$0xf] %v207_v28  ;;  %v209_v29 = vld [vmem:[%s9085_s6 + $0x1d0] sm:$0xf] }
  0x2f   : > { %v211_v30 = vld [vmem:[%s9085_s6 + $0x1e0] sm:$0xf]  ;;  %v213_v31 = vld [vmem:[%s9085_s6 + $0x1f0] sm:$0xf]  ;;  %210 = vst [vmem:[%s9089_s7 + $0x74] sm:$0xf] %v209_v29 }
  0x30   : > { %212 = vst [vmem:[%s9089_s7 + $0x78] sm:$0xf] %v211_v30  ;;  %214 = vst [vmem:[%s9089_s7 + $0x7c] sm:$0xf] %v213_v31  ;;  %v215_v32 = vld [vmem:[%s9085_s6 + $0x200] sm:$0xf] }
  0x31   : > { %v217_v33 = vld [vmem:[%s9085_s6 + $0x210] sm:$0xf]  ;;  %v219_v34 = vld [vmem:[%s9085_s6 + $0x220] sm:$0xf]  ;;  %216 = vst [vmem:[%s9089_s7 + $0x80] sm:$0xf] %v215_v32 }
  0x32   : > { %218 = vst [vmem:[%s9089_s7 + $0x84] sm:$0xf] %v217_v33  ;;  %220 = vst [vmem:[%s9089_s7 + $0x88] sm:$0xf] %v219_v34  ;;  %v221_v35 = vld [vmem:[%s9085_s6 + $0x230] sm:$0xf] }
  0x33   : > { %v223_v36 = vld [vmem:[%s9085_s6 + $0x240] sm:$0xf]  ;;  %v225_v37 = vld [vmem:[%s9085_s6 + $0x250] sm:$0xf]  ;;  %222 = vst [vmem:[%s9089_s7 + $0x8c] sm:$0xf] %v221_v35 }
  0x34   : > { %224 = vst [vmem:[%s9089_s7 + $0x90] sm:$0xf] %v223_v36  ;;  %226 = vst [vmem:[%s9089_s7 + $0x94] sm:$0xf] %v225_v37  ;;  %v227_v38 = vld [vmem:[%s9085_s6 + $0x260] sm:$0xf] }
  0x35   : > { %v229_v39 = vld [vmem:[%s9085_s6 + $0x270] sm:$0xf]  ;;  %v231_v40 = vld [vmem:[%s9085_s6 + $0x280] sm:$0xf]  ;;  %228 = vst [vmem:[%s9089_s7 + $0x98] sm:$0xf] %v227_v38 }
  0x36   : > { %230 = vst [vmem:[%s9089_s7 + $0x9c] sm:$0xf] %v229_v39  ;;  %232 = vst [vmem:[%s9089_s7 + $0xa0] sm:$0xf] %v231_v40  ;;  %v233_v41 = vld [vmem:[%s9085_s6 + $0x290] sm:$0xf] }
  0x37   : > { %v235_v42 = vld [vmem:[%s9085_s6 + $0x2a0] sm:$0xf]  ;;  %v237_v43 = vld [vmem:[%s9085_s6 + $0x2b0] sm:$0xf]  ;;  %234 = vst [vmem:[%s9089_s7 + $0xa4] sm:$0xf] %v233_v41 }
  0x38   : > { %236 = vst [vmem:[%s9089_s7 + $0xa8] sm:$0xf] %v235_v42  ;;  %238 = vst [vmem:[%s9089_s7 + $0xac] sm:$0xf] %v237_v43  ;;  %v239_v44 = vld [vmem:[%s9085_s6 + $0x2c0] sm:$0xf] }
  0x39   : > { %v241_v45 = vld [vmem:[%s9085_s6 + $0x2d0] sm:$0xf]  ;;  %v243_v46 = vld [vmem:[%s9085_s6 + $0x2e0] sm:$0xf]  ;;  %240 = vst [vmem:[%s9089_s7 + $0xb0] sm:$0xf] %v239_v44 }
  0x3a   : > { %242 = vst [vmem:[%s9089_s7 + $0xb4] sm:$0xf] %v241_v45  ;;  %244 = vst [vmem:[%s9089_s7 + $0xb8] sm:$0xf] %v243_v46  ;;  %v245_v47 = vld [vmem:[%s9085_s6 + $0x2f0] sm:$0xf] }
  0x3b   : > { %v247_v48 = vld [vmem:[%s9085_s6 + $0x300] sm:$0xf]  ;;  %v249_v49 = vld [vmem:[%s9085_s6 + $0x310] sm:$0xf]  ;;  %246 = vst [vmem:[%s9089_s7 + $0xbc] sm:$0xf] %v245_v47 }
  0x3c   : > { %248 = vst [vmem:[%s9089_s7 + $0xc0] sm:$0xf] %v247_v48  ;;  %250 = vst [vmem:[%s9089_s7 + $0xc4] sm:$0xf] %v249_v49  ;;  %v251_v50 = vld [vmem:[%s9085_s6 + $0x320] sm:$0xf] }
  0x3d   : > { %v253_v51 = vld [vmem:[%s9085_s6 + $0x330] sm:$0xf]  ;;  %v255_v52 = vld [vmem:[%s9085_s6 + $0x340] sm:$0xf]  ;;  %252 = vst [vmem:[%s9089_s7 + $0xc8] sm:$0xf] %v251_v50 }
  0x3e   : > { %254 = vst [vmem:[%s9089_s7 + $0xcc] sm:$0xf] %v253_v51  ;;  %256 = vst [vmem:[%s9089_s7 + $0xd0] sm:$0xf] %v255_v52  ;;  %v257_v53 = vld [vmem:[%s9085_s6 + $0x350] sm:$0xf] }
  0x3f   : > { %v259_v54 = vld [vmem:[%s9085_s6 + $0x360] sm:$0xf]  ;;  %v261_v55 = vld [vmem:[%s9085_s6 + $0x370] sm:$0xf]  ;;  %258 = vst [vmem:[%s9089_s7 + $0xd4] sm:$0xf] %v257_v53 }
  0x40   : > { %260 = vst [vmem:[%s9089_s7 + $0xd8] sm:$0xf] %v259_v54  ;;  %262 = vst [vmem:[%s9089_s7 + $0xdc] sm:$0xf] %v261_v55  ;;  %v263_v56 = vld [vmem:[%s9085_s6 + $0x380] sm:$0xf] }
  0x41   : > { %v265_v57 = vld [vmem:[%s9085_s6 + $0x390] sm:$0xf]  ;;  %v267_v58 = vld [vmem:[%s9085_s6 + $0x3a0] sm:$0xf]  ;;  %264 = vst [vmem:[%s9089_s7 + $0xe0] sm:$0xf] %v263_v56 }
  0x42   : > { %266 = vst [vmem:[%s9089_s7 + $0xe4] sm:$0xf] %v265_v57  ;;  %268 = vst [vmem:[%s9089_s7 + $0xe8] sm:$0xf] %v267_v58  ;;  %v269_v59 = vld [vmem:[%s9085_s6 + $0x3b0] sm:$0xf] }
  0x43   : > { %v271_v60 = vld [vmem:[%s9085_s6 + $0x3c0] sm:$0xf]  ;;  %v273_v61 = vld [vmem:[%s9085_s6 + $0x3d0] sm:$0xf]  ;;  %270 = vst [vmem:[%s9089_s7 + $0xec] sm:$0xf] %v269_v59 }
  0x44   : > { %272 = vst [vmem:[%s9089_s7 + $0xf0] sm:$0xf] %v271_v60  ;;  %274 = vst [vmem:[%s9089_s7 + $0xf4] sm:$0xf] %v273_v61  ;;  %v275_v62 = vld [vmem:[%s9085_s6 + $0x3e0] sm:$0xf] }
  0x45   : > { %v277_v63 = vld [vmem:[%s9085_s6 + $0x3f0] sm:$0xf]  ;;  %v279_v0 = vld [vmem:[%s9085_s6 + $0x400] sm:$0xf]  ;;  %276 = vst [vmem:[%s9089_s7 + $0xf8] sm:$0xf] %v275_v62 }
  0x46   : > { %278 = vst [vmem:[%s9089_s7 + $0xfc] sm:$0xf] %v277_v63  ;;  %280 = vst [vmem:[%s9089_s7 + $0x100] sm:$0xf] %v279_v0  ;;  %v281_v1 = vld [vmem:[%s9085_s6 + $0x410] sm:$0xf] }
  0x47   : > { %v283_v2 = vld [vmem:[%s9085_s6 + $0x420] sm:$0xf]  ;;  %v285_v3 = vld [vmem:[%s9085_s6 + $0x430] sm:$0xf]  ;;  %282 = vst [vmem:[%s9089_s7 + $0x104] sm:$0xf] %v281_v1 }
  0x48   : > { %284 = vst [vmem:[%s9089_s7 + $0x108] sm:$0xf] %v283_v2  ;;  %286 = vst [vmem:[%s9089_s7 + $0x10c] sm:$0xf] %v285_v3  ;;  %v287_v4 = vld [vmem:[%s9085_s6 + $0x440] sm:$0xf] }
  0x49   : > { %v289_v5 = vld [vmem:[%s9085_s6 + $0x450] sm:$0xf]  ;;  %v291_v6 = vld [vmem:[%s9085_s6 + $0x460] sm:$0xf]  ;;  %288 = vst [vmem:[%s9089_s7 + $0x110] sm:$0xf] %v287_v4 }
  0x4a   : > { %290 = vst [vmem:[%s9089_s7 + $0x114] sm:$0xf] %v289_v5  ;;  %292 = vst [vmem:[%s9089_s7 + $0x118] sm:$0xf] %v291_v6  ;;  %v293_v7 = vld [vmem:[%s9085_s6 + $0x470] sm:$0xf] }
  0x4b   : > { %v295_v8 = vld [vmem:[%s9085_s6 + $0x480] sm:$0xf]  ;;  %v297_v9 = vld [vmem:[%s9085_s6 + $0x490] sm:$0xf]  ;;  %294 = vst [vmem:[%s9089_s7 + $0x11c] sm:$0xf] %v293_v7 }
  0x4c   : > { %296 = vst [vmem:[%s9089_s7 + $0x120] sm:$0xf] %v295_v8  ;;  %298 = vst [vmem:[%s9089_s7 + $0x124] sm:$0xf] %v297_v9  ;;  %v299_v10 = vld [vmem:[%s9085_s6 + $0x4a0] sm:$0xf] }
  0x4d   : > { %v301_v11 = vld [vmem:[%s9085_s6 + $0x4b0] sm:$0xf]  ;;  %v303_v12 = vld [vmem:[%s9085_s6 + $0x4c0] sm:$0xf]  ;;  %300 = vst [vmem:[%s9089_s7 + $0x128] sm:$0xf] %v299_v10 }
  0x4e   : > { %302 = vst [vmem:[%s9089_s7 + $0x12c] sm:$0xf] %v301_v11  ;;  %304 = vst [vmem:[%s9089_s7 + $0x130] sm:$0xf] %v303_v12  ;;  %v305_v13 = vld [vmem:[%s9085_s6 + $0x4d0] sm:$0xf] }
  0x4f   : > { %v307_v14 = vld [vmem:[%s9085_s6 + $0x4e0] sm:$0xf]  ;;  %v309_v15 = vld [vmem:[%s9085_s6 + $0x4f0] sm:$0xf]  ;;  %306 = vst [vmem:[%s9089_s7 + $0x134] sm:$0xf] %v305_v13 }
  0x50   : > { %308 = vst [vmem:[%s9089_s7 + $0x138] sm:$0xf] %v307_v14  ;;  %310 = vst [vmem:[%s9089_s7 + $0x13c] sm:$0xf] %v309_v15  ;;  %v311_v16 = vld [vmem:[%s9085_s6 + $0x500] sm:$0xf] }
  0x51   : > { %v313_v17 = vld [vmem:[%s9085_s6 + $0x510] sm:$0xf]  ;;  %v315_v18 = vld [vmem:[%s9085_s6 + $0x520] sm:$0xf]  ;;  %312 = vst [vmem:[%s9089_s7 + $0x140] sm:$0xf] %v311_v16 }
  0x52   : > { %314 = vst [vmem:[%s9089_s7 + $0x144] sm:$0xf] %v313_v17  ;;  %316 = vst [vmem:[%s9089_s7 + $0x148] sm:$0xf] %v315_v18  ;;  %v317_v19 = vld [vmem:[%s9085_s6 + $0x530] sm:$0xf] }
  0x53   : > { %v319_v20 = vld [vmem:[%s9085_s6 + $0x540] sm:$0xf]  ;;  %v321_v21 = vld [vmem:[%s9085_s6 + $0x550] sm:$0xf]  ;;  %318 = vst [vmem:[%s9089_s7 + $0x14c] sm:$0xf] %v317_v19 }
  0x54   : > { %320 = vst [vmem:[%s9089_s7 + $0x150] sm:$0xf] %v319_v20  ;;  %322 = vst [vmem:[%s9089_s7 + $0x154] sm:$0xf] %v321_v21  ;;  %v323_v22 = vld [vmem:[%s9085_s6 + $0x560] sm:$0xf] }
  0x55   : > { %v325_v23 = vld [vmem:[%s9085_s6 + $0x570] sm:$0xf]  ;;  %v327_v24 = vld [vmem:[%s9085_s6 + $0x580] sm:$0xf]  ;;  %324 = vst [vmem:[%s9089_s7 + $0x158] sm:$0xf] %v323_v22 }
  0x56   : > { %326 = vst [vmem:[%s9089_s7 + $0x15c] sm:$0xf] %v325_v23  ;;  %328 = vst [vmem:[%s9089_s7 + $0x160] sm:$0xf] %v327_v24  ;;  %v329_v25 = vld [vmem:[%s9085_s6 + $0x590] sm:$0xf] }
  0x57   : > { %v331_v26 = vld [vmem:[%s9085_s6 + $0x5a0] sm:$0xf]  ;;  %v333_v27 = vld [vmem:[%s9085_s6 + $0x5b0] sm:$0xf]  ;;  %330 = vst [vmem:[%s9089_s7 + $0x164] sm:$0xf] %v329_v25 }
  0x58   : > { %332 = vst [vmem:[%s9089_s7 + $0x168] sm:$0xf] %v331_v26  ;;  %334 = vst [vmem:[%s9089_s7 + $0x16c] sm:$0xf] %v333_v27  ;;  %v335_v28 = vld [vmem:[%s9085_s6 + $0x5c0] sm:$0xf] }
  0x59   : > { %v337_v29 = vld [vmem:[%s9085_s6 + $0x5d0] sm:$0xf]  ;;  %v339_v30 = vld [vmem:[%s9085_s6 + $0x5e0] sm:$0xf]  ;;  %336 = vst [vmem:[%s9089_s7 + $0x170] sm:$0xf] %v335_v28 }
  0x5a   : > { %338 = vst [vmem:[%s9089_s7 + $0x174] sm:$0xf] %v337_v29  ;;  %340 = vst [vmem:[%s9089_s7 + $0x178] sm:$0xf] %v339_v30  ;;  %v341_v31 = vld [vmem:[%s9085_s6 + $0x5f0] sm:$0xf] }
  0x5b   : > { %v343_v32 = vld [vmem:[%s9085_s6 + $0x600] sm:$0xf]  ;;  %v345_v33 = vld [vmem:[%s9085_s6 + $0x610] sm:$0xf]  ;;  %342 = vst [vmem:[%s9089_s7 + $0x17c] sm:$0xf] %v341_v31 }
  0x5c   : > { %344 = vst [vmem:[%s9089_s7 + $0x180] sm:$0xf] %v343_v32  ;;  %346 = vst [vmem:[%s9089_s7 + $0x184] sm:$0xf] %v345_v33  ;;  %v347_v34 = vld [vmem:[%s9085_s6 + $0x620] sm:$0xf] }
  0x5d   : > { %v349_v35 = vld [vmem:[%s9085_s6 + $0x630] sm:$0xf]  ;;  %v351_v36 = vld [vmem:[%s9085_s6 + $0x640] sm:$0xf]  ;;  %348 = vst [vmem:[%s9089_s7 + $0x188] sm:$0xf] %v347_v34 }
  0x5e   : > { %350 = vst [vmem:[%s9089_s7 + $0x18c] sm:$0xf] %v349_v35  ;;  %352 = vst [vmem:[%s9089_s7 + $0x190] sm:$0xf] %v351_v36  ;;  %v353_v37 = vld [vmem:[%s9085_s6 + $0x650] sm:$0xf] }
  0x5f   : > { %v355_v38 = vld [vmem:[%s9085_s6 + $0x660] sm:$0xf]  ;;  %v357_v39 = vld [vmem:[%s9085_s6 + $0x670] sm:$0xf]  ;;  %354 = vst [vmem:[%s9089_s7 + $0x194] sm:$0xf] %v353_v37 }
  0x60   : > { %356 = vst [vmem:[%s9089_s7 + $0x198] sm:$0xf] %v355_v38  ;;  %358 = vst [vmem:[%s9089_s7 + $0x19c] sm:$0xf] %v357_v39  ;;  %v359_v40 = vld [vmem:[%s9085_s6 + $0x680] sm:$0xf] }
  0x61   : > { %v361_v41 = vld [vmem:[%s9085_s6 + $0x690] sm:$0xf]  ;;  %v363_v42 = vld [vmem:[%s9085_s6 + $0x6a0] sm:$0xf]  ;;  %360 = vst [vmem:[%s9089_s7 + $0x1a0] sm:$0xf] %v359_v40 }
  0x62   : > { %362 = vst [vmem:[%s9089_s7 + $0x1a4] sm:$0xf] %v361_v41  ;;  %364 = vst [vmem:[%s9089_s7 + $0x1a8] sm:$0xf] %v363_v42  ;;  %v365_v43 = vld [vmem:[%s9085_s6 + $0x6b0] sm:$0xf] }
  0x63   : > { %v367_v44 = vld [vmem:[%s9085_s6 + $0x6c0] sm:$0xf]  ;;  %v369_v45 = vld [vmem:[%s9085_s6 + $0x6d0] sm:$0xf]  ;;  %366 = vst [vmem:[%s9089_s7 + $0x1ac] sm:$0xf] %v365_v43 }
  0x64   : > { %368 = vst [vmem:[%s9089_s7 + $0x1b0] sm:$0xf] %v367_v44  ;;  %370 = vst [vmem:[%s9089_s7 + $0x1b4] sm:$0xf] %v369_v45  ;;  %v371_v46 = vld [vmem:[%s9085_s6 + $0x6e0] sm:$0xf] }
  0x65   : > { %v373_v47 = vld [vmem:[%s9085_s6 + $0x6f0] sm:$0xf]  ;;  %v375_v48 = vld [vmem:[%s9085_s6 + $0x700] sm:$0xf]  ;;  %372 = vst [vmem:[%s9089_s7 + $0x1b8] sm:$0xf] %v371_v46 }
  0x66   : > { %374 = vst [vmem:[%s9089_s7 + $0x1bc] sm:$0xf] %v373_v47  ;;  %376 = vst [vmem:[%s9089_s7 + $0x1c0] sm:$0xf] %v375_v48  ;;  %v377_v49 = vld [vmem:[%s9085_s6 + $0x710] sm:$0xf] }
  0x67   : > { %v379_v50 = vld [vmem:[%s9085_s6 + $0x720] sm:$0xf]  ;;  %v381_v51 = vld [vmem:[%s9085_s6 + $0x730] sm:$0xf]  ;;  %378 = vst [vmem:[%s9089_s7 + $0x1c4] sm:$0xf] %v377_v49 }
  0x68   : > { %380 = vst [vmem:[%s9089_s7 + $0x1c8] sm:$0xf] %v379_v50  ;;  %382 = vst [vmem:[%s9089_s7 + $0x1cc] sm:$0xf] %v381_v51  ;;  %v383_v52 = vld [vmem:[%s9085_s6 + $0x740] sm:$0xf] }
  0x69   : > { %v385_v53 = vld [vmem:[%s9085_s6 + $0x750] sm:$0xf]  ;;  %v387_v54 = vld [vmem:[%s9085_s6 + $0x760] sm:$0xf]  ;;  %384 = vst [vmem:[%s9089_s7 + $0x1d0] sm:$0xf] %v383_v52 }
  0x6a   : > { %386 = vst [vmem:[%s9089_s7 + $0x1d4] sm:$0xf] %v385_v53  ;;  %388 = vst [vmem:[%s9089_s7 + $0x1d8] sm:$0xf] %v387_v54  ;;  %v389_v55 = vld [vmem:[%s9085_s6 + $0x770] sm:$0xf] }
  0x6b   : > { %v391_v56 = vld [vmem:[%s9085_s6 + $0x780] sm:$0xf]  ;;  %v393_v57 = vld [vmem:[%s9085_s6 + $0x790] sm:$0xf]  ;;  %390 = vst [vmem:[%s9089_s7 + $0x1dc] sm:$0xf] %v389_v55 }
  0x6c   : > { %392 = vst [vmem:[%s9089_s7 + $0x1e0] sm:$0xf] %v391_v56  ;;  %394 = vst [vmem:[%s9089_s7 + $0x1e4] sm:$0xf] %v393_v57  ;;  %v395_v58 = vld [vmem:[%s9085_s6 + $0x7a0] sm:$0xf] }
  0x6d   : > { %v397_v59 = vld [vmem:[%s9085_s6 + $0x7b0] sm:$0xf]  ;;  %v399_v60 = vld [vmem:[%s9085_s6 + $0x7c0] sm:$0xf]  ;;  %396 = vst [vmem:[%s9089_s7 + $0x1e8] sm:$0xf] %v395_v58 }
  0x6e   : > { %398 = vst [vmem:[%s9089_s7 + $0x1ec] sm:$0xf] %v397_v59  ;;  %400 = vst [vmem:[%s9089_s7 + $0x1f0] sm:$0xf] %v399_v60  ;;  %v401_v61 = vld [vmem:[%s9085_s6 + $0x7d0] sm:$0xf] }
  0x6f   : > { %v403_v62 = vld [vmem:[%s9085_s6 + $0x7e0] sm:$0xf]  ;;  %v405_v63 = vld [vmem:[%s9085_s6 + $0x7f0] sm:$0xf]  ;;  %402 = vst [vmem:[%s9089_s7 + $0x1f4] sm:$0xf] %v401_v61 }
  0x70   : > { %404 = vst [vmem:[%s9089_s7 + $0x1f8] sm:$0xf] %v403_v62  ;;  %406 = vst [vmem:[%s9089_s7 + $0x1fc] sm:$0xf] %v405_v63  ;;  %v407_v0 = vld [vmem:[%s9085_s6 + $0x800] sm:$0xf] }
  0x71   : > { %v409_v1 = vld [vmem:[%s9085_s6 + $0x810] sm:$0xf]  ;;  %v411_v2 = vld [vmem:[%s9085_s6 + $0x820] sm:$0xf]  ;;  %408 = vst [vmem:[%s9089_s7 + $0x200] sm:$0xf] %v407_v0 }
  0x72   : > { %410 = vst [vmem:[%s9089_s7 + $0x204] sm:$0xf] %v409_v1  ;;  %412 = vst [vmem:[%s9089_s7 + $0x208] sm:$0xf] %v411_v2  ;;  %v413_v3 = vld [vmem:[%s9085_s6 + $0x830] sm:$0xf] }
  0x73   : > { %v415_v4 = vld [vmem:[%s9085_s6 + $0x840] sm:$0xf]  ;;  %v417_v5 = vld [vmem:[%s9085_s6 + $0x850] sm:$0xf]  ;;  %414 = vst [vmem:[%s9089_s7 + $0x20c] sm:$0xf] %v413_v3 }
  0x74   : > { %416 = vst [vmem:[%s9089_s7 + $0x210] sm:$0xf] %v415_v4  ;;  %418 = vst [vmem:[%s9089_s7 + $0x214] sm:$0xf] %v417_v5  ;;  %v419_v6 = vld [vmem:[%s9085_s6 + $0x860] sm:$0xf] }
  0x75   : > { %v421_v7 = vld [vmem:[%s9085_s6 + $0x870] sm:$0xf]  ;;  %v423_v8 = vld [vmem:[%s9085_s6 + $0x880] sm:$0xf]  ;;  %420 = vst [vmem:[%s9089_s7 + $0x218] sm:$0xf] %v419_v6 }
  0x76   : > { %422 = vst [vmem:[%s9089_s7 + $0x21c] sm:$0xf] %v421_v7  ;;  %424 = vst [vmem:[%s9089_s7 + $0x220] sm:$0xf] %v423_v8  ;;  %v425_v9 = vld [vmem:[%s9085_s6 + $0x890] sm:$0xf] }
  0x77   : > { %v427_v10 = vld [vmem:[%s9085_s6 + $0x8a0] sm:$0xf]  ;;  %v429_v11 = vld [vmem:[%s9085_s6 + $0x8b0] sm:$0xf]  ;;  %426 = vst [vmem:[%s9089_s7 + $0x224] sm:$0xf] %v425_v9 }
  0x78   : > { %428 = vst [vmem:[%s9089_s7 + $0x228] sm:$0xf] %v427_v10  ;;  %430 = vst [vmem:[%s9089_s7 + $0x22c] sm:$0xf] %v429_v11  ;;  %v431_v12 = vld [vmem:[%s9085_s6 + $0x8c0] sm:$0xf] }
  0x79   : > { %v433_v13 = vld [vmem:[%s9085_s6 + $0x8d0] sm:$0xf]  ;;  %v435_v14 = vld [vmem:[%s9085_s6 + $0x8e0] sm:$0xf]  ;;  %432 = vst [vmem:[%s9089_s7 + $0x230] sm:$0xf] %v431_v12 }
  0x7a   : > { %434 = vst [vmem:[%s9089_s7 + $0x234] sm:$0xf] %v433_v13  ;;  %436 = vst [vmem:[%s9089_s7 + $0x238] sm:$0xf] %v435_v14  ;;  %v437_v15 = vld [vmem:[%s9085_s6 + $0x8f0] sm:$0xf] }
  0x7b   : > { %v439_v16 = vld [vmem:[%s9085_s6 + $0x900] sm:$0xf]  ;;  %v441_v17 = vld [vmem:[%s9085_s6 + $0x910] sm:$0xf]  ;;  %438 = vst [vmem:[%s9089_s7 + $0x23c] sm:$0xf] %v437_v15 }
  0x7c   : > { %440 = vst [vmem:[%s9089_s7 + $0x240] sm:$0xf] %v439_v16  ;;  %442 = vst [vmem:[%s9089_s7 + $0x244] sm:$0xf] %v441_v17  ;;  %v443_v18 = vld [vmem:[%s9085_s6 + $0x920] sm:$0xf] }
  0x7d   : > { %v445_v19 = vld [vmem:[%s9085_s6 + $0x930] sm:$0xf]  ;;  %v447_v20 = vld [vmem:[%s9085_s6 + $0x940] sm:$0xf]  ;;  %444 = vst [vmem:[%s9089_s7 + $0x248] sm:$0xf] %v443_v18 }
  0x7e   : > { %446 = vst [vmem:[%s9089_s7 + $0x24c] sm:$0xf] %v445_v19  ;;  %448 = vst [vmem:[%s9089_s7 + $0x250] sm:$0xf] %v447_v20  ;;  %v449_v21 = vld [vmem:[%s9085_s6 + $0x950] sm:$0xf] }
  0x7f   : > { %v451_v22 = vld [vmem:[%s9085_s6 + $0x960] sm:$0xf]  ;;  %v453_v23 = vld [vmem:[%s9085_s6 + $0x970] sm:$0xf]  ;;  %450 = vst [vmem:[%s9089_s7 + $0x254] sm:$0xf] %v449_v21 }
  0x80   : > { %452 = vst [vmem:[%s9089_s7 + $0x258] sm:$0xf] %v451_v22  ;;  %454 = vst [vmem:[%s9089_s7 + $0x25c] sm:$0xf] %v453_v23  ;;  %v455_v24 = vld [vmem:[%s9085_s6 + $0x980] sm:$0xf] }
  0x81   : > { %v457_v25 = vld [vmem:[%s9085_s6 + $0x990] sm:$0xf]  ;;  %v459_v26 = vld [vmem:[%s9085_s6 + $0x9a0] sm:$0xf]  ;;  %456 = vst [vmem:[%s9089_s7 + $0x260] sm:$0xf] %v455_v24 }
  0x82   : > { %458 = vst [vmem:[%s9089_s7 + $0x264] sm:$0xf] %v457_v25  ;;  %460 = vst [vmem:[%s9089_s7 + $0x268] sm:$0xf] %v459_v26  ;;  %v461_v27 = vld [vmem:[%s9085_s6 + $0x9b0] sm:$0xf] }
  0x83   : > { %v463_v28 = vld [vmem:[%s9085_s6 + $0x9c0] sm:$0xf]  ;;  %v465_v29 = vld [vmem:[%s9085_s6 + $0x9d0] sm:$0xf]  ;;  %462 = vst [vmem:[%s9089_s7 + $0x26c] sm:$0xf] %v461_v27 }
  0x84   : > { %464 = vst [vmem:[%s9089_s7 + $0x270] sm:$0xf] %v463_v28  ;;  %466 = vst [vmem:[%s9089_s7 + $0x274] sm:$0xf] %v465_v29  ;;  %v467_v30 = vld [vmem:[%s9085_s6 + $0x9e0] sm:$0xf] }
  0x85   : > { %v469_v31 = vld [vmem:[%s9085_s6 + $0x9f0] sm:$0xf]  ;;  %v471_v32 = vld [vmem:[%s9085_s6 + $0xa00] sm:$0xf]  ;;  %468 = vst [vmem:[%s9089_s7 + $0x278] sm:$0xf] %v467_v30 }
  0x86   : > { %470 = vst [vmem:[%s9089_s7 + $0x27c] sm:$0xf] %v469_v31  ;;  %472 = vst [vmem:[%s9089_s7 + $0x280] sm:$0xf] %v471_v32  ;;  %v473_v33 = vld [vmem:[%s9085_s6 + $0xa10] sm:$0xf] }
  0x87   : > { %v475_v34 = vld [vmem:[%s9085_s6 + $0xa20] sm:$0xf]  ;;  %v477_v35 = vld [vmem:[%s9085_s6 + $0xa30] sm:$0xf]  ;;  %474 = vst [vmem:[%s9089_s7 + $0x284] sm:$0xf] %v473_v33 }
  0x88   : > { %476 = vst [vmem:[%s9089_s7 + $0x288] sm:$0xf] %v475_v34  ;;  %478 = vst [vmem:[%s9089_s7 + $0x28c] sm:$0xf] %v477_v35  ;;  %v479_v36 = vld [vmem:[%s9085_s6 + $0xa40] sm:$0xf] }
  0x89   : > { %v481_v37 = vld [vmem:[%s9085_s6 + $0xa50] sm:$0xf]  ;;  %v483_v38 = vld [vmem:[%s9085_s6 + $0xa60] sm:$0xf]  ;;  %480 = vst [vmem:[%s9089_s7 + $0x290] sm:$0xf] %v479_v36 }
  0x8a   : > { %482 = vst [vmem:[%s9089_s7 + $0x294] sm:$0xf] %v481_v37  ;;  %484 = vst [vmem:[%s9089_s7 + $0x298] sm:$0xf] %v483_v38  ;;  %v485_v39 = vld [vmem:[%s9085_s6 + $0xa70] sm:$0xf] }
  0x8b   : > { %v487_v40 = vld [vmem:[%s9085_s6 + $0xa80] sm:$0xf]  ;;  %v489_v41 = vld [vmem:[%s9085_s6 + $0xa90] sm:$0xf]  ;;  %486 = vst [vmem:[%s9089_s7 + $0x29c] sm:$0xf] %v485_v39 }
  0x8c   : > { %488 = vst [vmem:[%s9089_s7 + $0x2a0] sm:$0xf] %v487_v40  ;;  %490 = vst [vmem:[%s9089_s7 + $0x2a4] sm:$0xf] %v489_v41  ;;  %v491_v42 = vld [vmem:[%s9085_s6 + $0xaa0] sm:$0xf] }
  0x8d   : > { %v493_v43 = vld [vmem:[%s9085_s6 + $0xab0] sm:$0xf]  ;;  %v495_v44 = vld [vmem:[%s9085_s6 + $0xac0] sm:$0xf]  ;;  %492 = vst [vmem:[%s9089_s7 + $0x2a8] sm:$0xf] %v491_v42 }
  0x8e   : > { %494 = vst [vmem:[%s9089_s7 + $0x2ac] sm:$0xf] %v493_v43  ;;  %496 = vst [vmem:[%s9089_s7 + $0x2b0] sm:$0xf] %v495_v44  ;;  %v497_v45 = vld [vmem:[%s9085_s6 + $0xad0] sm:$0xf] }
  0x8f   : > { %v499_v46 = vld [vmem:[%s9085_s6 + $0xae0] sm:$0xf]  ;;  %v501_v47 = vld [vmem:[%s9085_s6 + $0xaf0] sm:$0xf]  ;;  %498 = vst [vmem:[%s9089_s7 + $0x2b4] sm:$0xf] %v497_v45 }
  0x90   : > { %500 = vst [vmem:[%s9089_s7 + $0x2b8] sm:$0xf] %v499_v46  ;;  %502 = vst [vmem:[%s9089_s7 + $0x2bc] sm:$0xf] %v501_v47  ;;  %v503_v48 = vld [vmem:[%s9085_s6 + $0xb00] sm:$0xf] }
  0x91   : > { %v505_v49 = vld [vmem:[%s9085_s6 + $0xb10] sm:$0xf]  ;;  %v507_v50 = vld [vmem:[%s9085_s6 + $0xb20] sm:$0xf]  ;;  %504 = vst [vmem:[%s9089_s7 + $0x2c0] sm:$0xf] %v503_v48 }
  0x92   : > { %506 = vst [vmem:[%s9089_s7 + $0x2c4] sm:$0xf] %v505_v49  ;;  %508 = vst [vmem:[%s9089_s7 + $0x2c8] sm:$0xf] %v507_v50  ;;  %v509_v51 = vld [vmem:[%s9085_s6 + $0xb30] sm:$0xf] }
  0x93   : > { %v511_v52 = vld [vmem:[%s9085_s6 + $0xb40] sm:$0xf]  ;;  %v513_v53 = vld [vmem:[%s9085_s6 + $0xb50] sm:$0xf]  ;;  %510 = vst [vmem:[%s9089_s7 + $0x2cc] sm:$0xf] %v509_v51 }
  0x94   : > { %512 = vst [vmem:[%s9089_s7 + $0x2d0] sm:$0xf] %v511_v52  ;;  %514 = vst [vmem:[%s9089_s7 + $0x2d4] sm:$0xf] %v513_v53  ;;  %v515_v54 = vld [vmem:[%s9085_s6 + $0xb60] sm:$0xf] }
  0x95   : > { %v517_v55 = vld [vmem:[%s9085_s6 + $0xb70] sm:$0xf]  ;;  %v519_v56 = vld [vmem:[%s9085_s6 + $0xb80] sm:$0xf]  ;;  %516 = vst [vmem:[%s9089_s7 + $0x2d8] sm:$0xf] %v515_v54 }
  0x96   : > { %518 = vst [vmem:[%s9089_s7 + $0x2dc] sm:$0xf] %v517_v55  ;;  %520 = vst [vmem:[%s9089_s7 + $0x2e0] sm:$0xf] %v519_v56  ;;  %v521_v57 = vld [vmem:[%s9085_s6 + $0xb90] sm:$0xf] }
  0x97   : > { %v523_v58 = vld [vmem:[%s9085_s6 + $0xba0] sm:$0xf]  ;;  %v525_v59 = vld [vmem:[%s9085_s6 + $0xbb0] sm:$0xf]  ;;  %522 = vst [vmem:[%s9089_s7 + $0x2e4] sm:$0xf] %v521_v57 }
  0x98   : > { %524 = vst [vmem:[%s9089_s7 + $0x2e8] sm:$0xf] %v523_v58  ;;  %526 = vst [vmem:[%s9089_s7 + $0x2ec] sm:$0xf] %v525_v59  ;;  %v527_v60 = vld [vmem:[%s9085_s6 + $0xbc0] sm:$0xf] }
  0x99   : > { %v529_v61 = vld [vmem:[%s9085_s6 + $0xbd0] sm:$0xf]  ;;  %v531_v62 = vld [vmem:[%s9085_s6 + $0xbe0] sm:$0xf]  ;;  %528 = vst [vmem:[%s9089_s7 + $0x2f0] sm:$0xf] %v527_v60 }
  0x9a   : > { %530 = vst [vmem:[%s9089_s7 + $0x2f4] sm:$0xf] %v529_v61  ;;  %532 = vst [vmem:[%s9089_s7 + $0x2f8] sm:$0xf] %v531_v62  ;;  %v533_v63 = vld [vmem:[%s9085_s6 + $0xbf0] sm:$0xf] }
  0x9b   : > { %v535_v0 = vld [vmem:[%s9085_s6 + $0xc00] sm:$0xf]  ;;  %v537_v1 = vld [vmem:[%s9085_s6 + $0xc10] sm:$0xf]  ;;  %534 = vst [vmem:[%s9089_s7 + $0x2fc] sm:$0xf] %v533_v63 }
  0x9c   : > { %536 = vst [vmem:[%s9089_s7 + $0x300] sm:$0xf] %v535_v0  ;;  %538 = vst [vmem:[%s9089_s7 + $0x304] sm:$0xf] %v537_v1  ;;  %v539_v2 = vld [vmem:[%s9085_s6 + $0xc20] sm:$0xf] }
  0x9d   : > { %v541_v3 = vld [vmem:[%s9085_s6 + $0xc30] sm:$0xf]  ;;  %v543_v4 = vld [vmem:[%s9085_s6 + $0xc40] sm:$0xf]  ;;  %540 = vst [vmem:[%s9089_s7 + $0x308] sm:$0xf] %v539_v2 }
  0x9e   : > { %542 = vst [vmem:[%s9089_s7 + $0x30c] sm:$0xf] %v541_v3  ;;  %544 = vst [vmem:[%s9089_s7 + $0x310] sm:$0xf] %v543_v4  ;;  %v545_v5 = vld [vmem:[%s9085_s6 + $0xc50] sm:$0xf] }
  0x9f   : > { %v547_v6 = vld [vmem:[%s9085_s6 + $0xc60] sm:$0xf]  ;;  %v549_v7 = vld [vmem:[%s9085_s6 + $0xc70] sm:$0xf]  ;;  %546 = vst [vmem:[%s9089_s7 + $0x314] sm:$0xf] %v545_v5 }
  0xa0   : > { %548 = vst [vmem:[%s9089_s7 + $0x318] sm:$0xf] %v547_v6  ;;  %550 = vst [vmem:[%s9089_s7 + $0x31c] sm:$0xf] %v549_v7  ;;  %v551_v8 = vld [vmem:[%s9085_s6 + $0xc80] sm:$0xf] }
  0xa1   : > { %v553_v9 = vld [vmem:[%s9085_s6 + $0xc90] sm:$0xf]  ;;  %v555_v10 = vld [vmem:[%s9085_s6 + $0xca0] sm:$0xf]  ;;  %552 = vst [vmem:[%s9089_s7 + $0x320] sm:$0xf] %v551_v8 }
  0xa2   : > { %554 = vst [vmem:[%s9089_s7 + $0x324] sm:$0xf] %v553_v9  ;;  %556 = vst [vmem:[%s9089_s7 + $0x328] sm:$0xf] %v555_v10  ;;  %v557_v11 = vld [vmem:[%s9085_s6 + $0xcb0] sm:$0xf] }
  0xa3   : > { %v559_v12 = vld [vmem:[%s9085_s6 + $0xcc0] sm:$0xf]  ;;  %v561_v13 = vld [vmem:[%s9085_s6 + $0xcd0] sm:$0xf]  ;;  %558 = vst [vmem:[%s9089_s7 + $0x32c] sm:$0xf] %v557_v11 }
  0xa4   : > { %560 = vst [vmem:[%s9089_s7 + $0x330] sm:$0xf] %v559_v12  ;;  %562 = vst [vmem:[%s9089_s7 + $0x334] sm:$0xf] %v561_v13  ;;  %v563_v14 = vld [vmem:[%s9085_s6 + $0xce0] sm:$0xf] }
  0xa5   : > { %v565_v15 = vld [vmem:[%s9085_s6 + $0xcf0] sm:$0xf]  ;;  %v567_v16 = vld [vmem:[%s9085_s6 + $0xd00] sm:$0xf]  ;;  %564 = vst [vmem:[%s9089_s7 + $0x338] sm:$0xf] %v563_v14 }
  0xa6   : > { %566 = vst [vmem:[%s9089_s7 + $0x33c] sm:$0xf] %v565_v15  ;;  %568 = vst [vmem:[%s9089_s7 + $0x340] sm:$0xf] %v567_v16  ;;  %v569_v17 = vld [vmem:[%s9085_s6 + $0xd10] sm:$0xf] }
  0xa7   : > { %v571_v18 = vld [vmem:[%s9085_s6 + $0xd20] sm:$0xf]  ;;  %v573_v19 = vld [vmem:[%s9085_s6 + $0xd30] sm:$0xf]  ;;  %570 = vst [vmem:[%s9089_s7 + $0x344] sm:$0xf] %v569_v17 }
  0xa8   : > { %572 = vst [vmem:[%s9089_s7 + $0x348] sm:$0xf] %v571_v18  ;;  %574 = vst [vmem:[%s9089_s7 + $0x34c] sm:$0xf] %v573_v19  ;;  %v575_v20 = vld [vmem:[%s9085_s6 + $0xd40] sm:$0xf] }
  0xa9   : > { %v577_v21 = vld [vmem:[%s9085_s6 + $0xd50] sm:$0xf]  ;;  %v579_v22 = vld [vmem:[%s9085_s6 + $0xd60] sm:$0xf]  ;;  %576 = vst [vmem:[%s9089_s7 + $0x350] sm:$0xf] %v575_v20 }
  0xaa   : > { %578 = vst [vmem:[%s9089_s7 + $0x354] sm:$0xf] %v577_v21  ;;  %580 = vst [vmem:[%s9089_s7 + $0x358] sm:$0xf] %v579_v22  ;;  %v581_v23 = vld [vmem:[%s9085_s6 + $0xd70] sm:$0xf] }
  0xab   : > { %v583_v24 = vld [vmem:[%s9085_s6 + $0xd80] sm:$0xf]  ;;  %v585_v25 = vld [vmem:[%s9085_s6 + $0xd90] sm:$0xf]  ;;  %582 = vst [vmem:[%s9089_s7 + $0x35c] sm:$0xf] %v581_v23 }
  0xac   : > { %584 = vst [vmem:[%s9089_s7 + $0x360] sm:$0xf] %v583_v24  ;;  %586 = vst [vmem:[%s9089_s7 + $0x364] sm:$0xf] %v585_v25  ;;  %v587_v26 = vld [vmem:[%s9085_s6 + $0xda0] sm:$0xf] }
  0xad   : > { %v589_v27 = vld [vmem:[%s9085_s6 + $0xdb0] sm:$0xf]  ;;  %v591_v28 = vld [vmem:[%s9085_s6 + $0xdc0] sm:$0xf]  ;;  %588 = vst [vmem:[%s9089_s7 + $0x368] sm:$0xf] %v587_v26 }
  0xae   : > { %590 = vst [vmem:[%s9089_s7 + $0x36c] sm:$0xf] %v589_v27  ;;  %592 = vst [vmem:[%s9089_s7 + $0x370] sm:$0xf] %v591_v28  ;;  %v593_v29 = vld [vmem:[%s9085_s6 + $0xdd0] sm:$0xf] }
  0xaf   : > { %v595_v30 = vld [vmem:[%s9085_s6 + $0xde0] sm:$0xf]  ;;  %v597_v31 = vld [vmem:[%s9085_s6 + $0xdf0] sm:$0xf]  ;;  %594 = vst [vmem:[%s9089_s7 + $0x374] sm:$0xf] %v593_v29 }
  0xb0   : > { %596 = vst [vmem:[%s9089_s7 + $0x378] sm:$0xf] %v595_v30  ;;  %598 = vst [vmem:[%s9089_s7 + $0x37c] sm:$0xf] %v597_v31  ;;  %v599_v32 = vld [vmem:[%s9085_s6 + $0xe00] sm:$0xf] }
  0xb1   : > { %v601_v33 = vld [vmem:[%s9085_s6 + $0xe10] sm:$0xf]  ;;  %v603_v34 = vld [vmem:[%s9085_s6 + $0xe20] sm:$0xf]  ;;  %600 = vst [vmem:[%s9089_s7 + $0x380] sm:$0xf] %v599_v32 }
  0xb2   : > { %602 = vst [vmem:[%s9089_s7 + $0x384] sm:$0xf] %v601_v33  ;;  %604 = vst [vmem:[%s9089_s7 + $0x388] sm:$0xf] %v603_v34  ;;  %v605_v35 = vld [vmem:[%s9085_s6 + $0xe30] sm:$0xf] }
  0xb3   : > { %v607_v36 = vld [vmem:[%s9085_s6 + $0xe40] sm:$0xf]  ;;  %v609_v37 = vld [vmem:[%s9085_s6 + $0xe50] sm:$0xf]  ;;  %606 = vst [vmem:[%s9089_s7 + $0x38c] sm:$0xf] %v605_v35 }
  0xb4   : > { %608 = vst [vmem:[%s9089_s7 + $0x390] sm:$0xf] %v607_v36  ;;  %610 = vst [vmem:[%s9089_s7 + $0x394] sm:$0xf] %v609_v37  ;;  %v611_v38 = vld [vmem:[%s9085_s6 + $0xe60] sm:$0xf] }
  0xb5   : > { %v613_v39 = vld [vmem:[%s9085_s6 + $0xe70] sm:$0xf]  ;;  %v615_v40 = vld [vmem:[%s9085_s6 + $0xe80] sm:$0xf]  ;;  %612 = vst [vmem:[%s9089_s7 + $0x398] sm:$0xf] %v611_v38 }
  0xb6   : > { %614 = vst [vmem:[%s9089_s7 + $0x39c] sm:$0xf] %v613_v39  ;;  %616 = vst [vmem:[%s9089_s7 + $0x3a0] sm:$0xf] %v615_v40  ;;  %v617_v41 = vld [vmem:[%s9085_s6 + $0xe90] sm:$0xf] }
  0xb7   : > { %v619_v42 = vld [vmem:[%s9085_s6 + $0xea0] sm:$0xf]  ;;  %v621_v43 = vld [vmem:[%s9085_s6 + $0xeb0] sm:$0xf]  ;;  %618 = vst [vmem:[%s9089_s7 + $0x3a4] sm:$0xf] %v617_v41 }
  0xb8   : > { %620 = vst [vmem:[%s9089_s7 + $0x3a8] sm:$0xf] %v619_v42  ;;  %622 = vst [vmem:[%s9089_s7 + $0x3ac] sm:$0xf] %v621_v43  ;;  %v623_v44 = vld [vmem:[%s9085_s6 + $0xec0] sm:$0xf] }
  0xb9   : > { %v625_v45 = vld [vmem:[%s9085_s6 + $0xed0] sm:$0xf]  ;;  %v627_v46 = vld [vmem:[%s9085_s6 + $0xee0] sm:$0xf]  ;;  %624 = vst [vmem:[%s9089_s7 + $0x3b0] sm:$0xf] %v623_v44 }
  0xba   : > { %626 = vst [vmem:[%s9089_s7 + $0x3b4] sm:$0xf] %v625_v45  ;;  %628 = vst [vmem:[%s9089_s7 + $0x3b8] sm:$0xf] %v627_v46  ;;  %v629_v47 = vld [vmem:[%s9085_s6 + $0xef0] sm:$0xf] }
  0xbb   : > { %v631_v48 = vld [vmem:[%s9085_s6 + $0xf00] sm:$0xf]  ;;  %v633_v49 = vld [vmem:[%s9085_s6 + $0xf10] sm:$0xf]  ;;  %630 = vst [vmem:[%s9089_s7 + $0x3bc] sm:$0xf] %v629_v47 }
  0xbc   : > { %632 = vst [vmem:[%s9089_s7 + $0x3c0] sm:$0xf] %v631_v48  ;;  %634 = vst [vmem:[%s9089_s7 + $0x3c4] sm:$0xf] %v633_v49  ;;  %v635_v50 = vld [vmem:[%s9085_s6 + $0xf20] sm:$0xf] }
  0xbd   : > { %v637_v51 = vld [vmem:[%s9085_s6 + $0xf30] sm:$0xf]  ;;  %v639_v52 = vld [vmem:[%s9085_s6 + $0xf40] sm:$0xf]  ;;  %636 = vst [vmem:[%s9089_s7 + $0x3c8] sm:$0xf] %v635_v50 }
  0xbe   : > { %638 = vst [vmem:[%s9089_s7 + $0x3cc] sm:$0xf] %v637_v51  ;;  %640 = vst [vmem:[%s9089_s7 + $0x3d0] sm:$0xf] %v639_v52  ;;  %v641_v53 = vld [vmem:[%s9085_s6 + $0xf50] sm:$0xf] }
  0xbf   : > { %v643_v54 = vld [vmem:[%s9085_s6 + $0xf60] sm:$0xf]  ;;  %v645_v55 = vld [vmem:[%s9085_s6 + $0xf70] sm:$0xf]  ;;  %642 = vst [vmem:[%s9089_s7 + $0x3d4] sm:$0xf] %v641_v53 }
  0xc0   : > { %644 = vst [vmem:[%s9089_s7 + $0x3d8] sm:$0xf] %v643_v54  ;;  %646 = vst [vmem:[%s9089_s7 + $0x3dc] sm:$0xf] %v645_v55  ;;  %v647_v56 = vld [vmem:[%s9085_s6 + $0xf80] sm:$0xf] }
  0xc1   : > { %v649_v57 = vld [vmem:[%s9085_s6 + $0xf90] sm:$0xf]  ;;  %v651_v58 = vld [vmem:[%s9085_s6 + $0xfa0] sm:$0xf]  ;;  %648 = vst [vmem:[%s9089_s7 + $0x3e0] sm:$0xf] %v647_v56 }
  0xc2   : > { %650 = vst [vmem:[%s9089_s7 + $0x3e4] sm:$0xf] %v649_v57  ;;  %652 = vst [vmem:[%s9089_s7 + $0x3e8] sm:$0xf] %v651_v58  ;;  %v653_v59 = vld [vmem:[%s9085_s6 + $0xfb0] sm:$0xf] }
  0xc3   : > { %v655_v60 = vld [vmem:[%s9085_s6 + $0xfc0] sm:$0xf]  ;;  %v657_v61 = vld [vmem:[%s9085_s6 + $0xfd0] sm:$0xf]  ;;  %654 = vst [vmem:[%s9089_s7 + $0x3ec] sm:$0xf] %v653_v59 }
  0xc4   : > { %656 = vst [vmem:[%s9089_s7 + $0x3f0] sm:$0xf] %v655_v60  ;;  %658 = vst [vmem:[%s9089_s7 + $0x3f4] sm:$0xf] %v657_v61  ;;  %v659_v62 = vld [vmem:[%s9085_s6 + $0xfe0] sm:$0xf] }
  0xc5   : > { %v661_v63 = vld [vmem:[%s9085_s6 + $0xff0] sm:$0xf]  ;;  %v663_v0 = vld [vmem:[%s9085_s6 + $0x1000] sm:$0xf]  ;;  %660 = vst [vmem:[%s9089_s7 + $0x3f8] sm:$0xf] %v659_v62 }
  0xc6   : > { %662 = vst [vmem:[%s9089_s7 + $0x3fc] sm:$0xf] %v661_v63  ;;  %664 = vst [vmem:[%s9089_s7 + $0x400] sm:$0xf] %v663_v0  ;;  %v665_v1 = vld [vmem:[%s9085_s6 + $0x1010] sm:$0xf] }
  0xc7   : > { %v667_v2 = vld [vmem:[%s9085_s6 + $0x1020] sm:$0xf]  ;;  %v669_v3 = vld [vmem:[%s9085_s6 + $0x1030] sm:$0xf]  ;;  %666 = vst [vmem:[%s9089_s7 + $0x404] sm:$0xf] %v665_v1 }
  0xc8   : > { %668 = vst [vmem:[%s9089_s7 + $0x408] sm:$0xf] %v667_v2  ;;  %670 = vst [vmem:[%s9089_s7 + $0x40c] sm:$0xf] %v669_v3  ;;  %v671_v4 = vld [vmem:[%s9085_s6 + $0x1040] sm:$0xf] }
  0xc9   : > { %v673_v5 = vld [vmem:[%s9085_s6 + $0x1050] sm:$0xf]  ;;  %v675_v6 = vld [vmem:[%s9085_s6 + $0x1060] sm:$0xf]  ;;  %672 = vst [vmem:[%s9089_s7 + $0x410] sm:$0xf] %v671_v4 }
  0xca   : > { %674 = vst [vmem:[%s9089_s7 + $0x414] sm:$0xf] %v673_v5  ;;  %676 = vst [vmem:[%s9089_s7 + $0x418] sm:$0xf] %v675_v6  ;;  %v677_v7 = vld [vmem:[%s9085_s6 + $0x1070] sm:$0xf] }
  0xcb   : > { %v679_v8 = vld [vmem:[%s9085_s6 + $0x1080] sm:$0xf]  ;;  %v681_v9 = vld [vmem:[%s9085_s6 + $0x1090] sm:$0xf]  ;;  %678 = vst [vmem:[%s9089_s7 + $0x41c] sm:$0xf] %v677_v7 }
  0xcc   : > { %680 = vst [vmem:[%s9089_s7 + $0x420] sm:$0xf] %v679_v8  ;;  %682 = vst [vmem:[%s9089_s7 + $0x424] sm:$0xf] %v681_v9  ;;  %v683_v10 = vld [vmem:[%s9085_s6 + $0x10a0] sm:$0xf] }
  0xcd   : > { %v685_v11 = vld [vmem:[%s9085_s6 + $0x10b0] sm:$0xf]  ;;  %v687_v12 = vld [vmem:[%s9085_s6 + $0x10c0] sm:$0xf]  ;;  %684 = vst [vmem:[%s9089_s7 + $0x428] sm:$0xf] %v683_v10 }
  0xce   : > { %686 = vst [vmem:[%s9089_s7 + $0x42c] sm:$0xf] %v685_v11  ;;  %688 = vst [vmem:[%s9089_s7 + $0x430] sm:$0xf] %v687_v12  ;;  %v689_v13 = vld [vmem:[%s9085_s6 + $0x10d0] sm:$0xf] }
  0xcf   : > { %v691_v14 = vld [vmem:[%s9085_s6 + $0x10e0] sm:$0xf]  ;;  %v693_v15 = vld [vmem:[%s9085_s6 + $0x10f0] sm:$0xf]  ;;  %690 = vst [vmem:[%s9089_s7 + $0x434] sm:$0xf] %v689_v13 }
  0xd0   : > { %692 = vst [vmem:[%s9089_s7 + $0x438] sm:$0xf] %v691_v14  ;;  %694 = vst [vmem:[%s9089_s7 + $0x43c] sm:$0xf] %v693_v15  ;;  %v695_v16 = vld [vmem:[%s9085_s6 + $0x1100] sm:$0xf] }
  0xd1   : > { %v697_v17 = vld [vmem:[%s9085_s6 + $0x1110] sm:$0xf]  ;;  %v699_v18 = vld [vmem:[%s9085_s6 + $0x1120] sm:$0xf]  ;;  %696 = vst [vmem:[%s9089_s7 + $0x440] sm:$0xf] %v695_v16 }
  0xd2   : > { %698 = vst [vmem:[%s9089_s7 + $0x444] sm:$0xf] %v697_v17  ;;  %700 = vst [vmem:[%s9089_s7 + $0x448] sm:$0xf] %v699_v18  ;;  %v701_v19 = vld [vmem:[%s9085_s6 + $0x1130] sm:$0xf] }
  0xd3   : > { %v703_v20 = vld [vmem:[%s9085_s6 + $0x1140] sm:$0xf]  ;;  %v705_v21 = vld [vmem:[%s9085_s6 + $0x1150] sm:$0xf]  ;;  %702 = vst [vmem:[%s9089_s7 + $0x44c] sm:$0xf] %v701_v19 }
  0xd4   : > { %704 = vst [vmem:[%s9089_s7 + $0x450] sm:$0xf] %v703_v20  ;;  %706 = vst [vmem:[%s9089_s7 + $0x454] sm:$0xf] %v705_v21  ;;  %v707_v22 = vld [vmem:[%s9085_s6 + $0x1160] sm:$0xf] }
  0xd5   : > { %v709_v23 = vld [vmem:[%s9085_s6 + $0x1170] sm:$0xf]  ;;  %v711_v24 = vld [vmem:[%s9085_s6 + $0x1180] sm:$0xf]  ;;  %708 = vst [vmem:[%s9089_s7 + $0x458] sm:$0xf] %v707_v22 }
  0xd6   : > { %710 = vst [vmem:[%s9089_s7 + $0x45c] sm:$0xf] %v709_v23  ;;  %712 = vst [vmem:[%s9089_s7 + $0x460] sm:$0xf] %v711_v24  ;;  %v713_v25 = vld [vmem:[%s9085_s6 + $0x1190] sm:$0xf] }
  0xd7   : > { %v715_v26 = vld [vmem:[%s9085_s6 + $0x11a0] sm:$0xf]  ;;  %v717_v27 = vld [vmem:[%s9085_s6 + $0x11b0] sm:$0xf]  ;;  %714 = vst [vmem:[%s9089_s7 + $0x464] sm:$0xf] %v713_v25 }
  0xd8   : > { %716 = vst [vmem:[%s9089_s7 + $0x468] sm:$0xf] %v715_v26  ;;  %718 = vst [vmem:[%s9089_s7 + $0x46c] sm:$0xf] %v717_v27  ;;  %v719_v28 = vld [vmem:[%s9085_s6 + $0x11c0] sm:$0xf] }
  0xd9   : > { %v721_v29 = vld [vmem:[%s9085_s6 + $0x11d0] sm:$0xf]  ;;  %v723_v30 = vld [vmem:[%s9085_s6 + $0x11e0] sm:$0xf]  ;;  %720 = vst [vmem:[%s9089_s7 + $0x470] sm:$0xf] %v719_v28 }
  0xda   : > { %722 = vst [vmem:[%s9089_s7 + $0x474] sm:$0xf] %v721_v29  ;;  %724 = vst [vmem:[%s9089_s7 + $0x478] sm:$0xf] %v723_v30  ;;  %v725_v31 = vld [vmem:[%s9085_s6 + $0x11f0] sm:$0xf] }
  0xdb   : > { %v727_v32 = vld [vmem:[%s9085_s6 + $0x1200] sm:$0xf]  ;;  %v729_v33 = vld [vmem:[%s9085_s6 + $0x1210] sm:$0xf]  ;;  %726 = vst [vmem:[%s9089_s7 + $0x47c] sm:$0xf] %v725_v31 }
  0xdc   : > { %728 = vst [vmem:[%s9089_s7 + $0x480] sm:$0xf] %v727_v32  ;;  %730 = vst [vmem:[%s9089_s7 + $0x484] sm:$0xf] %v729_v33  ;;  %v731_v34 = vld [vmem:[%s9085_s6 + $0x1220] sm:$0xf] }
  0xdd   : > { %v733_v35 = vld [vmem:[%s9085_s6 + $0x1230] sm:$0xf]  ;;  %v735_v36 = vld [vmem:[%s9085_s6 + $0x1240] sm:$0xf]  ;;  %732 = vst [vmem:[%s9089_s7 + $0x488] sm:$0xf] %v731_v34 }
  0xde   : > { %734 = vst [vmem:[%s9089_s7 + $0x48c] sm:$0xf] %v733_v35  ;;  %736 = vst [vmem:[%s9089_s7 + $0x490] sm:$0xf] %v735_v36  ;;  %v737_v37 = vld [vmem:[%s9085_s6 + $0x1250] sm:$0xf] }
  0xdf   : > { %v739_v38 = vld [vmem:[%s9085_s6 + $0x1260] sm:$0xf]  ;;  %v741_v39 = vld [vmem:[%s9085_s6 + $0x1270] sm:$0xf]  ;;  %738 = vst [vmem:[%s9089_s7 + $0x494] sm:$0xf] %v737_v37 }
  0xe0   : > { %740 = vst [vmem:[%s9089_s7 + $0x498] sm:$0xf] %v739_v38  ;;  %742 = vst [vmem:[%s9089_s7 + $0x49c] sm:$0xf] %v741_v39  ;;  %v743_v40 = vld [vmem:[%s9085_s6 + $0x1280] sm:$0xf] }
  0xe1   : > { %v745_v41 = vld [vmem:[%s9085_s6 + $0x1290] sm:$0xf]  ;;  %v747_v42 = vld [vmem:[%s9085_s6 + $0x12a0] sm:$0xf]  ;;  %744 = vst [vmem:[%s9089_s7 + $0x4a0] sm:$0xf] %v743_v40 }
  0xe2   : > { %746 = vst [vmem:[%s9089_s7 + $0x4a4] sm:$0xf] %v745_v41  ;;  %748 = vst [vmem:[%s9089_s7 + $0x4a8] sm:$0xf] %v747_v42  ;;  %v749_v43 = vld [vmem:[%s9085_s6 + $0x12b0] sm:$0xf] }
  0xe3   : > { %v751_v44 = vld [vmem:[%s9085_s6 + $0x12c0] sm:$0xf]  ;;  %v753_v45 = vld [vmem:[%s9085_s6 + $0x12d0] sm:$0xf]  ;;  %750 = vst [vmem:[%s9089_s7 + $0x4ac] sm:$0xf] %v749_v43 }
  0xe4   : > { %752 = vst [vmem:[%s9089_s7 + $0x4b0] sm:$0xf] %v751_v44  ;;  %754 = vst [vmem:[%s9089_s7 + $0x4b4] sm:$0xf] %v753_v45  ;;  %v755_v46 = vld [vmem:[%s9085_s6 + $0x12e0] sm:$0xf] }
  0xe5   : > { %v757_v47 = vld [vmem:[%s9085_s6 + $0x12f0] sm:$0xf]  ;;  %v759_v48 = vld [vmem:[%s9085_s6 + $0x1300] sm:$0xf]  ;;  %756 = vst [vmem:[%s9089_s7 + $0x4b8] sm:$0xf] %v755_v46 }
  0xe6   : > { %758 = vst [vmem:[%s9089_s7 + $0x4bc] sm:$0xf] %v757_v47  ;;  %760 = vst [vmem:[%s9089_s7 + $0x4c0] sm:$0xf] %v759_v48  ;;  %v761_v49 = vld [vmem:[%s9085_s6 + $0x1310] sm:$0xf] }
  0xe7   : > { %v763_v50 = vld [vmem:[%s9085_s6 + $0x1320] sm:$0xf]  ;;  %v765_v51 = vld [vmem:[%s9085_s6 + $0x1330] sm:$0xf]  ;;  %762 = vst [vmem:[%s9089_s7 + $0x4c4] sm:$0xf] %v761_v49 }
  0xe8   : > { %764 = vst [vmem:[%s9089_s7 + $0x4c8] sm:$0xf] %v763_v50  ;;  %766 = vst [vmem:[%s9089_s7 + $0x4cc] sm:$0xf] %v765_v51  ;;  %v767_v52 = vld [vmem:[%s9085_s6 + $0x1340] sm:$0xf] }
  0xe9   : > { %v769_v53 = vld [vmem:[%s9085_s6 + $0x1350] sm:$0xf]  ;;  %v771_v54 = vld [vmem:[%s9085_s6 + $0x1360] sm:$0xf]  ;;  %768 = vst [vmem:[%s9089_s7 + $0x4d0] sm:$0xf] %v767_v52 }
  0xea   : > { %770 = vst [vmem:[%s9089_s7 + $0x4d4] sm:$0xf] %v769_v53  ;;  %772 = vst [vmem:[%s9089_s7 + $0x4d8] sm:$0xf] %v771_v54  ;;  %v773_v55 = vld [vmem:[%s9085_s6 + $0x1370] sm:$0xf] }
  0xeb   : > { %v775_v56 = vld [vmem:[%s9085_s6 + $0x1380] sm:$0xf]  ;;  %v777_v57 = vld [vmem:[%s9085_s6 + $0x1390] sm:$0xf]  ;;  %774 = vst [vmem:[%s9089_s7 + $0x4dc] sm:$0xf] %v773_v55 }
  0xec   : > { %776 = vst [vmem:[%s9089_s7 + $0x4e0] sm:$0xf] %v775_v56  ;;  %778 = vst [vmem:[%s9089_s7 + $0x4e4] sm:$0xf] %v777_v57  ;;  %v779_v58 = vld [vmem:[%s9085_s6 + $0x13a0] sm:$0xf] }
  0xed   : > { %v781_v59 = vld [vmem:[%s9085_s6 + $0x13b0] sm:$0xf]  ;;  %v783_v60 = vld [vmem:[%s9085_s6 + $0x13c0] sm:$0xf]  ;;  %780 = vst [vmem:[%s9089_s7 + $0x4e8] sm:$0xf] %v779_v58 }
  0xee   : > { %782 = vst [vmem:[%s9089_s7 + $0x4ec] sm:$0xf] %v781_v59  ;;  %784 = vst [vmem:[%s9089_s7 + $0x4f0] sm:$0xf] %v783_v60  ;;  %v785_v61 = vld [vmem:[%s9085_s6 + $0x13d0] sm:$0xf] }
  0xef   : > { %v787_v62 = vld [vmem:[%s9085_s6 + $0x13e0] sm:$0xf]  ;;  %v789_v63 = vld [vmem:[%s9085_s6 + $0x13f0] sm:$0xf]  ;;  %786 = vst [vmem:[%s9089_s7 + $0x4f4] sm:$0xf] %v785_v61 }
  0xf0   : > { %788 = vst [vmem:[%s9089_s7 + $0x4f8] sm:$0xf] %v787_v62  ;;  %790 = vst [vmem:[%s9089_s7 + $0x4fc] sm:$0xf] %v789_v63  ;;  %v791_v0 = vld [vmem:[%s9085_s6 + $0x1400] sm:$0xf] }
  0xf1   : > { %v793_v1 = vld [vmem:[%s9085_s6 + $0x1410] sm:$0xf]  ;;  %v795_v2 = vld [vmem:[%s9085_s6 + $0x1420] sm:$0xf]  ;;  %792 = vst [vmem:[%s9089_s7 + $0x500] sm:$0xf] %v791_v0 }
  0xf2   : > { %794 = vst [vmem:[%s9089_s7 + $0x504] sm:$0xf] %v793_v1  ;;  %796 = vst [vmem:[%s9089_s7 + $0x508] sm:$0xf] %v795_v2  ;;  %v797_v3 = vld [vmem:[%s9085_s6 + $0x1430] sm:$0xf] }
  0xf3   : > { %v799_v4 = vld [vmem:[%s9085_s6 + $0x1440] sm:$0xf]  ;;  %v801_v5 = vld [vmem:[%s9085_s6 + $0x1450] sm:$0xf]  ;;  %798 = vst [vmem:[%s9089_s7 + $0x50c] sm:$0xf] %v797_v3 }
  0xf4   : > { %800 = vst [vmem:[%s9089_s7 + $0x510] sm:$0xf] %v799_v4  ;;  %802 = vst [vmem:[%s9089_s7 + $0x514] sm:$0xf] %v801_v5  ;;  %v803_v6 = vld [vmem:[%s9085_s6 + $0x1460] sm:$0xf] }
  0xf5   : > { %v805_v7 = vld [vmem:[%s9085_s6 + $0x1470] sm:$0xf]  ;;  %v807_v8 = vld [vmem:[%s9085_s6 + $0x1480] sm:$0xf]  ;;  %804 = vst [vmem:[%s9089_s7 + $0x518] sm:$0xf] %v803_v6 }
  0xf6   : > { %806 = vst [vmem:[%s9089_s7 + $0x51c] sm:$0xf] %v805_v7  ;;  %808 = vst [vmem:[%s9089_s7 + $0x520] sm:$0xf] %v807_v8  ;;  %v809_v9 = vld [vmem:[%s9085_s6 + $0x1490] sm:$0xf] }
  0xf7   : > { %v811_v10 = vld [vmem:[%s9085_s6 + $0x14a0] sm:$0xf]  ;;  %v813_v11 = vld [vmem:[%s9085_s6 + $0x14b0] sm:$0xf]  ;;  %810 = vst [vmem:[%s9089_s7 + $0x524] sm:$0xf] %v809_v9 }
  0xf8   : > { %812 = vst [vmem:[%s9089_s7 + $0x528] sm:$0xf] %v811_v10  ;;  %814 = vst [vmem:[%s9089_s7 + $0x52c] sm:$0xf] %v813_v11  ;;  %v815_v12 = vld [vmem:[%s9085_s6 + $0x14c0] sm:$0xf] }
  0xf9   : > { %v817_v13 = vld [vmem:[%s9085_s6 + $0x14d0] sm:$0xf]  ;;  %v819_v14 = vld [vmem:[%s9085_s6 + $0x14e0] sm:$0xf]  ;;  %816 = vst [vmem:[%s9089_s7 + $0x530] sm:$0xf] %v815_v12 }
  0xfa   : > { %818 = vst [vmem:[%s9089_s7 + $0x534] sm:$0xf] %v817_v13  ;;  %820 = vst [vmem:[%s9089_s7 + $0x538] sm:$0xf] %v819_v14  ;;  %v821_v15 = vld [vmem:[%s9085_s6 + $0x14f0] sm:$0xf] }
  0xfb   : > { %v823_v16 = vld [vmem:[%s9085_s6 + $0x1500] sm:$0xf]  ;;  %v825_v17 = vld [vmem:[%s9085_s6 + $0x1510] sm:$0xf]  ;;  %822 = vst [vmem:[%s9089_s7 + $0x53c] sm:$0xf] %v821_v15 }
  0xfc   : > { %824 = vst [vmem:[%s9089_s7 + $0x540] sm:$0xf] %v823_v16  ;;  %826 = vst [vmem:[%s9089_s7 + $0x544] sm:$0xf] %v825_v17  ;;  %v827_v18 = vld [vmem:[%s9085_s6 + $0x1520] sm:$0xf] }
  0xfd   : > { %v829_v19 = vld [vmem:[%s9085_s6 + $0x1530] sm:$0xf]  ;;  %v831_v20 = vld [vmem:[%s9085_s6 + $0x1540] sm:$0xf]  ;;  %828 = vst [vmem:[%s9089_s7 + $0x548] sm:$0xf] %v827_v18 }
  0xfe   : > { %830 = vst [vmem:[%s9089_s7 + $0x54c] sm:$0xf] %v829_v19  ;;  %832 = vst [vmem:[%s9089_s7 + $0x550] sm:$0xf] %v831_v20  ;;  %v833_v21 = vld [vmem:[%s9085_s6 + $0x1550] sm:$0xf] }
  0xff   : > { %v835_v22 = vld [vmem:[%s9085_s6 + $0x1560] sm:$0xf]  ;;  %v837_v23 = vld [vmem:[%s9085_s6 + $0x1570] sm:$0xf]  ;;  %834 = vst [vmem:[%s9089_s7 + $0x554] sm:$0xf] %v833_v21 }
 0x100   : > { %836 = vst [vmem:[%s9089_s7 + $0x558] sm:$0xf] %v835_v22  ;;  %838 = vst [vmem:[%s9089_s7 + $0x55c] sm:$0xf] %v837_v23  ;;  %v839_v24 = vld [vmem:[%s9085_s6 + $0x1580] sm:$0xf] }
 0x101   : > { %v841_v25 = vld [vmem:[%s9085_s6 + $0x1590] sm:$0xf]  ;;  %v843_v26 = vld [vmem:[%s9085_s6 + $0x15a0] sm:$0xf]  ;;  %840 = vst [vmem:[%s9089_s7 + $0x560] sm:$0xf] %v839_v24 }
 0x102   : > { %842 = vst [vmem:[%s9089_s7 + $0x564] sm:$0xf] %v841_v25  ;;  %844 = vst [vmem:[%s9089_s7 + $0x568] sm:$0xf] %v843_v26  ;;  %v845_v27 = vld [vmem:[%s9085_s6 + $0x15b0] sm:$0xf] }
 0x103   : > { %v847_v28 = vld [vmem:[%s9085_s6 + $0x15c0] sm:$0xf]  ;;  %v849_v29 = vld [vmem:[%s9085_s6 + $0x15d0] sm:$0xf]  ;;  %846 = vst [vmem:[%s9089_s7 + $0x56c] sm:$0xf] %v845_v27 }
 0x104   : > { %848 = vst [vmem:[%s9089_s7 + $0x570] sm:$0xf] %v847_v28  ;;  %850 = vst [vmem:[%s9089_s7 + $0x574] sm:$0xf] %v849_v29  ;;  %v851_v30 = vld [vmem:[%s9085_s6 + $0x15e0] sm:$0xf] }
 0x105   : > { %v853_v31 = vld [vmem:[%s9085_s6 + $0x15f0] sm:$0xf]  ;;  %v855_v32 = vld [vmem:[%s9085_s6 + $0x1600] sm:$0xf]  ;;  %852 = vst [vmem:[%s9089_s7 + $0x578] sm:$0xf] %v851_v30 }
 0x106   : > { %854 = vst [vmem:[%s9089_s7 + $0x57c] sm:$0xf] %v853_v31  ;;  %856 = vst [vmem:[%s9089_s7 + $0x580] sm:$0xf] %v855_v32  ;;  %v857_v33 = vld [vmem:[%s9085_s6 + $0x1610] sm:$0xf] }
 0x107   : > { %v859_v34 = vld [vmem:[%s9085_s6 + $0x1620] sm:$0xf]  ;;  %v861_v35 = vld [vmem:[%s9085_s6 + $0x1630] sm:$0xf]  ;;  %858 = vst [vmem:[%s9089_s7 + $0x584] sm:$0xf] %v857_v33 }
 0x108   : > { %860 = vst [vmem:[%s9089_s7 + $0x588] sm:$0xf] %v859_v34  ;;  %862 = vst [vmem:[%s9089_s7 + $0x58c] sm:$0xf] %v861_v35  ;;  %v863_v36 = vld [vmem:[%s9085_s6 + $0x1640] sm:$0xf] }
 0x109   : > { %v865_v37 = vld [vmem:[%s9085_s6 + $0x1650] sm:$0xf]  ;;  %v867_v38 = vld [vmem:[%s9085_s6 + $0x1660] sm:$0xf]  ;;  %864 = vst [vmem:[%s9089_s7 + $0x590] sm:$0xf] %v863_v36 }
 0x10a   : > { %866 = vst [vmem:[%s9089_s7 + $0x594] sm:$0xf] %v865_v37  ;;  %868 = vst [vmem:[%s9089_s7 + $0x598] sm:$0xf] %v867_v38  ;;  %v869_v39 = vld [vmem:[%s9085_s6 + $0x1670] sm:$0xf] }
 0x10b   : > { %v871_v40 = vld [vmem:[%s9085_s6 + $0x1680] sm:$0xf]  ;;  %v873_v41 = vld [vmem:[%s9085_s6 + $0x1690] sm:$0xf]  ;;  %870 = vst [vmem:[%s9089_s7 + $0x59c] sm:$0xf] %v869_v39 }
 0x10c   : > { %872 = vst [vmem:[%s9089_s7 + $0x5a0] sm:$0xf] %v871_v40  ;;  %874 = vst [vmem:[%s9089_s7 + $0x5a4] sm:$0xf] %v873_v41  ;;  %v875_v42 = vld [vmem:[%s9085_s6 + $0x16a0] sm:$0xf] }
 0x10d   : > { %v877_v43 = vld [vmem:[%s9085_s6 + $0x16b0] sm:$0xf]  ;;  %v879_v44 = vld [vmem:[%s9085_s6 + $0x16c0] sm:$0xf]  ;;  %876 = vst [vmem:[%s9089_s7 + $0x5a8] sm:$0xf] %v875_v42 }
 0x10e   : > { %878 = vst [vmem:[%s9089_s7 + $0x5ac] sm:$0xf] %v877_v43  ;;  %880 = vst [vmem:[%s9089_s7 + $0x5b0] sm:$0xf] %v879_v44  ;;  %v881_v45 = vld [vmem:[%s9085_s6 + $0x16d0] sm:$0xf] }
 0x10f   : > { %v883_v46 = vld [vmem:[%s9085_s6 + $0x16e0] sm:$0xf]  ;;  %v885_v47 = vld [vmem:[%s9085_s6 + $0x16f0] sm:$0xf]  ;;  %882 = vst [vmem:[%s9089_s7 + $0x5b4] sm:$0xf] %v881_v45 }
 0x110   : > { %884 = vst [vmem:[%s9089_s7 + $0x5b8] sm:$0xf] %v883_v46  ;;  %886 = vst [vmem:[%s9089_s7 + $0x5bc] sm:$0xf] %v885_v47  ;;  %v887_v48 = vld [vmem:[%s9085_s6 + $0x1700] sm:$0xf] }
 0x111   : > { %v889_v49 = vld [vmem:[%s9085_s6 + $0x1710] sm:$0xf]  ;;  %v891_v50 = vld [vmem:[%s9085_s6 + $0x1720] sm:$0xf]  ;;  %888 = vst [vmem:[%s9089_s7 + $0x5c0] sm:$0xf] %v887_v48 }
 0x112   : > { %890 = vst [vmem:[%s9089_s7 + $0x5c4] sm:$0xf] %v889_v49  ;;  %892 = vst [vmem:[%s9089_s7 + $0x5c8] sm:$0xf] %v891_v50  ;;  %v893_v51 = vld [vmem:[%s9085_s6 + $0x1730] sm:$0xf] }
 0x113   : > { %v895_v52 = vld [vmem:[%s9085_s6 + $0x1740] sm:$0xf]  ;;  %v897_v53 = vld [vmem:[%s9085_s6 + $0x1750] sm:$0xf]  ;;  %894 = vst [vmem:[%s9089_s7 + $0x5cc] sm:$0xf] %v893_v51 }
 0x114   : > { %896 = vst [vmem:[%s9089_s7 + $0x5d0] sm:$0xf] %v895_v52  ;;  %898 = vst [vmem:[%s9089_s7 + $0x5d4] sm:$0xf] %v897_v53  ;;  %v899_v54 = vld [vmem:[%s9085_s6 + $0x1760] sm:$0xf] }
 0x115   : > { %v901_v55 = vld [vmem:[%s9085_s6 + $0x1770] sm:$0xf]  ;;  %v903_v56 = vld [vmem:[%s9085_s6 + $0x1780] sm:$0xf]  ;;  %900 = vst [vmem:[%s9089_s7 + $0x5d8] sm:$0xf] %v899_v54 }
 0x116   : > { %902 = vst [vmem:[%s9089_s7 + $0x5dc] sm:$0xf] %v901_v55  ;;  %904 = vst [vmem:[%s9089_s7 + $0x5e0] sm:$0xf] %v903_v56  ;;  %v905_v57 = vld [vmem:[%s9085_s6 + $0x1790] sm:$0xf] }
 0x117   : > { %v907_v58 = vld [vmem:[%s9085_s6 + $0x17a0] sm:$0xf]  ;;  %v909_v59 = vld [vmem:[%s9085_s6 + $0x17b0] sm:$0xf]  ;;  %906 = vst [vmem:[%s9089_s7 + $0x5e4] sm:$0xf] %v905_v57 }
 0x118   : > { %908 = vst [vmem:[%s9089_s7 + $0x5e8] sm:$0xf] %v907_v58  ;;  %910 = vst [vmem:[%s9089_s7 + $0x5ec] sm:$0xf] %v909_v59  ;;  %v911_v60 = vld [vmem:[%s9085_s6 + $0x17c0] sm:$0xf] }
 0x119   : > { %v913_v61 = vld [vmem:[%s9085_s6 + $0x17d0] sm:$0xf]  ;;  %v915_v62 = vld [vmem:[%s9085_s6 + $0x17e0] sm:$0xf]  ;;  %912 = vst [vmem:[%s9089_s7 + $0x5f0] sm:$0xf] %v911_v60 }
 0x11a   : > { %914 = vst [vmem:[%s9089_s7 + $0x5f4] sm:$0xf] %v913_v61  ;;  %916 = vst [vmem:[%s9089_s7 + $0x5f8] sm:$0xf] %v915_v62  ;;  %v917_v63 = vld [vmem:[%s9085_s6 + $0x17f0] sm:$0xf] }
 0x11b   : > { %v919_v0 = vld [vmem:[%s9085_s6 + $0x1800] sm:$0xf]  ;;  %v921_v1 = vld [vmem:[%s9085_s6 + $0x1810] sm:$0xf]  ;;  %918 = vst [vmem:[%s9089_s7 + $0x5fc] sm:$0xf] %v917_v63 }
 0x11c   : > { %920 = vst [vmem:[%s9089_s7 + $0x600] sm:$0xf] %v919_v0  ;;  %922 = vst [vmem:[%s9089_s7 + $0x604] sm:$0xf] %v921_v1  ;;  %v923_v2 = vld [vmem:[%s9085_s6 + $0x1820] sm:$0xf] }
 0x11d   : > { %v925_v3 = vld [vmem:[%s9085_s6 + $0x1830] sm:$0xf]  ;;  %v927_v4 = vld [vmem:[%s9085_s6 + $0x1840] sm:$0xf]  ;;  %924 = vst [vmem:[%s9089_s7 + $0x608] sm:$0xf] %v923_v2 }
 0x11e   : > { %926 = vst [vmem:[%s9089_s7 + $0x60c] sm:$0xf] %v925_v3  ;;  %928 = vst [vmem:[%s9089_s7 + $0x610] sm:$0xf] %v927_v4  ;;  %v929_v5 = vld [vmem:[%s9085_s6 + $0x1850] sm:$0xf] }
 0x11f   : > { %v931_v6 = vld [vmem:[%s9085_s6 + $0x1860] sm:$0xf]  ;;  %v933_v7 = vld [vmem:[%s9085_s6 + $0x1870] sm:$0xf]  ;;  %930 = vst [vmem:[%s9089_s7 + $0x614] sm:$0xf] %v929_v5 }
 0x120   : > { %932 = vst [vmem:[%s9089_s7 + $0x618] sm:$0xf] %v931_v6  ;;  %934 = vst [vmem:[%s9089_s7 + $0x61c] sm:$0xf] %v933_v7  ;;  %v935_v8 = vld [vmem:[%s9085_s6 + $0x1880] sm:$0xf] }
 0x121   : > { %v937_v9 = vld [vmem:[%s9085_s6 + $0x1890] sm:$0xf]  ;;  %v939_v10 = vld [vmem:[%s9085_s6 + $0x18a0] sm:$0xf]  ;;  %936 = vst [vmem:[%s9089_s7 + $0x620] sm:$0xf] %v935_v8 }
 0x122   : > { %938 = vst [vmem:[%s9089_s7 + $0x624] sm:$0xf] %v937_v9  ;;  %940 = vst [vmem:[%s9089_s7 + $0x628] sm:$0xf] %v939_v10  ;;  %v941_v11 = vld [vmem:[%s9085_s6 + $0x18b0] sm:$0xf] }
 0x123   : > { %v943_v12 = vld [vmem:[%s9085_s6 + $0x18c0] sm:$0xf]  ;;  %v945_v13 = vld [vmem:[%s9085_s6 + $0x18d0] sm:$0xf]  ;;  %942 = vst [vmem:[%s9089_s7 + $0x62c] sm:$0xf] %v941_v11 }
 0x124   : > { %944 = vst [vmem:[%s9089_s7 + $0x630] sm:$0xf] %v943_v12  ;;  %946 = vst [vmem:[%s9089_s7 + $0x634] sm:$0xf] %v945_v13  ;;  %v947_v14 = vld [vmem:[%s9085_s6 + $0x18e0] sm:$0xf] }
 0x125   : > { %v949_v15 = vld [vmem:[%s9085_s6 + $0x18f0] sm:$0xf]  ;;  %v951_v16 = vld [vmem:[%s9085_s6 + $0x1900] sm:$0xf]  ;;  %948 = vst [vmem:[%s9089_s7 + $0x638] sm:$0xf] %v947_v14 }
 0x126   : > { %950 = vst [vmem:[%s9089_s7 + $0x63c] sm:$0xf] %v949_v15  ;;  %952 = vst [vmem:[%s9089_s7 + $0x640] sm:$0xf] %v951_v16  ;;  %v953_v17 = vld [vmem:[%s9085_s6 + $0x1910] sm:$0xf] }
 0x127   : > { %v955_v18 = vld [vmem:[%s9085_s6 + $0x1920] sm:$0xf]  ;;  %v957_v19 = vld [vmem:[%s9085_s6 + $0x1930] sm:$0xf]  ;;  %954 = vst [vmem:[%s9089_s7 + $0x644] sm:$0xf] %v953_v17 }
 0x128   : > { %956 = vst [vmem:[%s9089_s7 + $0x648] sm:$0xf] %v955_v18  ;;  %958 = vst [vmem:[%s9089_s7 + $0x64c] sm:$0xf] %v957_v19  ;;  %v959_v20 = vld [vmem:[%s9085_s6 + $0x1940] sm:$0xf] }
 0x129   : > { %v961_v21 = vld [vmem:[%s9085_s6 + $0x1950] sm:$0xf]  ;;  %v963_v22 = vld [vmem:[%s9085_s6 + $0x1960] sm:$0xf]  ;;  %960 = vst [vmem:[%s9089_s7 + $0x650] sm:$0xf] %v959_v20 }
 0x12a   : > { %962 = vst [vmem:[%s9089_s7 + $0x654] sm:$0xf] %v961_v21  ;;  %964 = vst [vmem:[%s9089_s7 + $0x658] sm:$0xf] %v963_v22  ;;  %v965_v23 = vld [vmem:[%s9085_s6 + $0x1970] sm:$0xf] }
 0x12b   : > { %v967_v24 = vld [vmem:[%s9085_s6 + $0x1980] sm:$0xf]  ;;  %v969_v25 = vld [vmem:[%s9085_s6 + $0x1990] sm:$0xf]  ;;  %966 = vst [vmem:[%s9089_s7 + $0x65c] sm:$0xf] %v965_v23 }
 0x12c   : > { %968 = vst [vmem:[%s9089_s7 + $0x660] sm:$0xf] %v967_v24  ;;  %970 = vst [vmem:[%s9089_s7 + $0x664] sm:$0xf] %v969_v25  ;;  %v971_v26 = vld [vmem:[%s9085_s6 + $0x19a0] sm:$0xf] }
 0x12d   : > { %v973_v27 = vld [vmem:[%s9085_s6 + $0x19b0] sm:$0xf]  ;;  %v975_v28 = vld [vmem:[%s9085_s6 + $0x19c0] sm:$0xf]  ;;  %972 = vst [vmem:[%s9089_s7 + $0x668] sm:$0xf] %v971_v26 }
 0x12e   : > { %974 = vst [vmem:[%s9089_s7 + $0x66c] sm:$0xf] %v973_v27  ;;  %976 = vst [vmem:[%s9089_s7 + $0x670] sm:$0xf] %v975_v28  ;;  %v977_v29 = vld [vmem:[%s9085_s6 + $0x19d0] sm:$0xf] }
 0x12f   : > { %v979_v30 = vld [vmem:[%s9085_s6 + $0x19e0] sm:$0xf]  ;;  %v981_v31 = vld [vmem:[%s9085_s6 + $0x19f0] sm:$0xf]  ;;  %978 = vst [vmem:[%s9089_s7 + $0x674] sm:$0xf] %v977_v29 }
 0x130   : > { %980 = vst [vmem:[%s9089_s7 + $0x678] sm:$0xf] %v979_v30  ;;  %982 = vst [vmem:[%s9089_s7 + $0x67c] sm:$0xf] %v981_v31  ;;  %v983_v32 = vld [vmem:[%s9085_s6 + $0x1a00] sm:$0xf] }
 0x131   : > { %v985_v33 = vld [vmem:[%s9085_s6 + $0x1a10] sm:$0xf]  ;;  %v987_v34 = vld [vmem:[%s9085_s6 + $0x1a20] sm:$0xf]  ;;  %984 = vst [vmem:[%s9089_s7 + $0x680] sm:$0xf] %v983_v32 }
 0x132   : > { %986 = vst [vmem:[%s9089_s7 + $0x684] sm:$0xf] %v985_v33  ;;  %988 = vst [vmem:[%s9089_s7 + $0x688] sm:$0xf] %v987_v34  ;;  %v989_v35 = vld [vmem:[%s9085_s6 + $0x1a30] sm:$0xf] }
 0x133   : > { %v991_v36 = vld [vmem:[%s9085_s6 + $0x1a40] sm:$0xf]  ;;  %v993_v37 = vld [vmem:[%s9085_s6 + $0x1a50] sm:$0xf]  ;;  %990 = vst [vmem:[%s9089_s7 + $0x68c] sm:$0xf] %v989_v35 }
 0x134   : > { %992 = vst [vmem:[%s9089_s7 + $0x690] sm:$0xf] %v991_v36  ;;  %994 = vst [vmem:[%s9089_s7 + $0x694] sm:$0xf] %v993_v37  ;;  %v995_v38 = vld [vmem:[%s9085_s6 + $0x1a60] sm:$0xf] }
 0x135   : > { %v997_v39 = vld [vmem:[%s9085_s6 + $0x1a70] sm:$0xf]  ;;  %v999_v40 = vld [vmem:[%s9085_s6 + $0x1a80] sm:$0xf]  ;;  %996 = vst [vmem:[%s9089_s7 + $0x698] sm:$0xf] %v995_v38 }
 0x136   : > { %998 = vst [vmem:[%s9089_s7 + $0x69c] sm:$0xf] %v997_v39  ;;  %1000 = vst [vmem:[%s9089_s7 + $0x6a0] sm:$0xf] %v999_v40  ;;  %v1001_v41 = vld [vmem:[%s9085_s6 + $0x1a90] sm:$0xf] }
 0x137   : > { %v1003_v42 = vld [vmem:[%s9085_s6 + $0x1aa0] sm:$0xf]  ;;  %v1005_v43 = vld [vmem:[%s9085_s6 + $0x1ab0] sm:$0xf]  ;;  %1002 = vst [vmem:[%s9089_s7 + $0x6a4] sm:$0xf] %v1001_v41 }
 0x138   : > { %1004 = vst [vmem:[%s9089_s7 + $0x6a8] sm:$0xf] %v1003_v42  ;;  %1006 = vst [vmem:[%s9089_s7 + $0x6ac] sm:$0xf] %v1005_v43  ;;  %v1007_v44 = vld [vmem:[%s9085_s6 + $0x1ac0] sm:$0xf] }
 0x139   : > { %v1009_v45 = vld [vmem:[%s9085_s6 + $0x1ad0] sm:$0xf]  ;;  %v1011_v46 = vld [vmem:[%s9085_s6 + $0x1ae0] sm:$0xf]  ;;  %1008 = vst [vmem:[%s9089_s7 + $0x6b0] sm:$0xf] %v1007_v44 }
 0x13a   : > { %1010 = vst [vmem:[%s9089_s7 + $0x6b4] sm:$0xf] %v1009_v45  ;;  %1012 = vst [vmem:[%s9089_s7 + $0x6b8] sm:$0xf] %v1011_v46  ;;  %v1013_v47 = vld [vmem:[%s9085_s6 + $0x1af0] sm:$0xf] }
 0x13b   : > { %v1015_v48 = vld [vmem:[%s9085_s6 + $0x1b00] sm:$0xf]  ;;  %v1017_v49 = vld [vmem:[%s9085_s6 + $0x1b10] sm:$0xf]  ;;  %1014 = vst [vmem:[%s9089_s7 + $0x6bc] sm:$0xf] %v1013_v47 }
 0x13c   : > { %1016 = vst [vmem:[%s9089_s7 + $0x6c0] sm:$0xf] %v1015_v48  ;;  %1018 = vst [vmem:[%s9089_s7 + $0x6c4] sm:$0xf] %v1017_v49  ;;  %v1019_v50 = vld [vmem:[%s9085_s6 + $0x1b20] sm:$0xf] }
 0x13d   : > { %v1021_v51 = vld [vmem:[%s9085_s6 + $0x1b30] sm:$0xf]  ;;  %v1023_v52 = vld [vmem:[%s9085_s6 + $0x1b40] sm:$0xf]  ;;  %1020 = vst [vmem:[%s9089_s7 + $0x6c8] sm:$0xf] %v1019_v50 }
 0x13e   : > { %1022 = vst [vmem:[%s9089_s7 + $0x6cc] sm:$0xf] %v1021_v51  ;;  %1024 = vst [vmem:[%s9089_s7 + $0x6d0] sm:$0xf] %v1023_v52  ;;  %v1025_v53 = vld [vmem:[%s9085_s6 + $0x1b50] sm:$0xf] }
 0x13f   : > { %v1027_v54 = vld [vmem:[%s9085_s6 + $0x1b60] sm:$0xf]  ;;  %v1029_v55 = vld [vmem:[%s9085_s6 + $0x1b70] sm:$0xf]  ;;  %1026 = vst [vmem:[%s9089_s7 + $0x6d4] sm:$0xf] %v1025_v53 }
 0x140   : > { %1028 = vst [vmem:[%s9089_s7 + $0x6d8] sm:$0xf] %v1027_v54  ;;  %1030 = vst [vmem:[%s9089_s7 + $0x6dc] sm:$0xf] %v1029_v55  ;;  %v1031_v56 = vld [vmem:[%s9085_s6 + $0x1b80] sm:$0xf] }
 0x141   : > { %v1033_v57 = vld [vmem:[%s9085_s6 + $0x1b90] sm:$0xf]  ;;  %v1035_v58 = vld [vmem:[%s9085_s6 + $0x1ba0] sm:$0xf]  ;;  %1032 = vst [vmem:[%s9089_s7 + $0x6e0] sm:$0xf] %v1031_v56 }
 0x142   : > { %1034 = vst [vmem:[%s9089_s7 + $0x6e4] sm:$0xf] %v1033_v57  ;;  %1036 = vst [vmem:[%s9089_s7 + $0x6e8] sm:$0xf] %v1035_v58  ;;  %v1037_v59 = vld [vmem:[%s9085_s6 + $0x1bb0] sm:$0xf] }
 0x143   : > { %v1039_v60 = vld [vmem:[%s9085_s6 + $0x1bc0] sm:$0xf]  ;;  %v1041_v61 = vld [vmem:[%s9085_s6 + $0x1bd0] sm:$0xf]  ;;  %1038 = vst [vmem:[%s9089_s7 + $0x6ec] sm:$0xf] %v1037_v59 }
 0x144   : > { %1040 = vst [vmem:[%s9089_s7 + $0x6f0] sm:$0xf] %v1039_v60  ;;  %1042 = vst [vmem:[%s9089_s7 + $0x6f4] sm:$0xf] %v1041_v61  ;;  %v1043_v62 = vld [vmem:[%s9085_s6 + $0x1be0] sm:$0xf] }
 0x145   : > { %v1045_v63 = vld [vmem:[%s9085_s6 + $0x1bf0] sm:$0xf]  ;;  %v1047_v0 = vld [vmem:[%s9085_s6 + $0x1c00] sm:$0xf]  ;;  %1044 = vst [vmem:[%s9089_s7 + $0x6f8] sm:$0xf] %v1043_v62 }
 0x146   : > { %1046 = vst [vmem:[%s9089_s7 + $0x6fc] sm:$0xf] %v1045_v63  ;;  %1048 = vst [vmem:[%s9089_s7 + $0x700] sm:$0xf] %v1047_v0  ;;  %v1049_v1 = vld [vmem:[%s9085_s6 + $0x1c10] sm:$0xf] }
 0x147   : > { %v1051_v2 = vld [vmem:[%s9085_s6 + $0x1c20] sm:$0xf]  ;;  %v1053_v3 = vld [vmem:[%s9085_s6 + $0x1c30] sm:$0xf]  ;;  %1050 = vst [vmem:[%s9089_s7 + $0x704] sm:$0xf] %v1049_v1 }
 0x148   : > { %1052 = vst [vmem:[%s9089_s7 + $0x708] sm:$0xf] %v1051_v2  ;;  %1054 = vst [vmem:[%s9089_s7 + $0x70c] sm:$0xf] %v1053_v3  ;;  %v1055_v4 = vld [vmem:[%s9085_s6 + $0x1c40] sm:$0xf] }
 0x149   : > { %v1057_v5 = vld [vmem:[%s9085_s6 + $0x1c50] sm:$0xf]  ;;  %v1059_v6 = vld [vmem:[%s9085_s6 + $0x1c60] sm:$0xf]  ;;  %1056 = vst [vmem:[%s9089_s7 + $0x710] sm:$0xf] %v1055_v4 }
 0x14a   : > { %1058 = vst [vmem:[%s9089_s7 + $0x714] sm:$0xf] %v1057_v5  ;;  %1060 = vst [vmem:[%s9089_s7 + $0x718] sm:$0xf] %v1059_v6  ;;  %v1061_v7 = vld [vmem:[%s9085_s6 + $0x1c70] sm:$0xf] }
 0x14b   : > { %v1063_v8 = vld [vmem:[%s9085_s6 + $0x1c80] sm:$0xf]  ;;  %v1065_v9 = vld [vmem:[%s9085_s6 + $0x1c90] sm:$0xf]  ;;  %1062 = vst [vmem:[%s9089_s7 + $0x71c] sm:$0xf] %v1061_v7 }
 0x14c   : > { %1064 = vst [vmem:[%s9089_s7 + $0x720] sm:$0xf] %v1063_v8  ;;  %1066 = vst [vmem:[%s9089_s7 + $0x724] sm:$0xf] %v1065_v9  ;;  %v1067_v10 = vld [vmem:[%s9085_s6 + $0x1ca0] sm:$0xf] }
 0x14d   : > { %v1069_v11 = vld [vmem:[%s9085_s6 + $0x1cb0] sm:$0xf]  ;;  %v1071_v12 = vld [vmem:[%s9085_s6 + $0x1cc0] sm:$0xf]  ;;  %1068 = vst [vmem:[%s9089_s7 + $0x728] sm:$0xf] %v1067_v10 }
 0x14e   : > { %1070 = vst [vmem:[%s9089_s7 + $0x72c] sm:$0xf] %v1069_v11  ;;  %1072 = vst [vmem:[%s9089_s7 + $0x730] sm:$0xf] %v1071_v12  ;;  %v1073_v13 = vld [vmem:[%s9085_s6 + $0x1cd0] sm:$0xf] }
 0x14f   : > { %v1075_v14 = vld [vmem:[%s9085_s6 + $0x1ce0] sm:$0xf]  ;;  %v1077_v15 = vld [vmem:[%s9085_s6 + $0x1cf0] sm:$0xf]  ;;  %1074 = vst [vmem:[%s9089_s7 + $0x734] sm:$0xf] %v1073_v13 }
 0x150   : > { %1076 = vst [vmem:[%s9089_s7 + $0x738] sm:$0xf] %v1075_v14  ;;  %1078 = vst [vmem:[%s9089_s7 + $0x73c] sm:$0xf] %v1077_v15  ;;  %v1079_v16 = vld [vmem:[%s9085_s6 + $0x1d00] sm:$0xf] }
 0x151   : > { %v1081_v17 = vld [vmem:[%s9085_s6 + $0x1d10] sm:$0xf]  ;;  %v1083_v18 = vld [vmem:[%s9085_s6 + $0x1d20] sm:$0xf]  ;;  %1080 = vst [vmem:[%s9089_s7 + $0x740] sm:$0xf] %v1079_v16 }
 0x152   : > { %1082 = vst [vmem:[%s9089_s7 + $0x744] sm:$0xf] %v1081_v17  ;;  %1084 = vst [vmem:[%s9089_s7 + $0x748] sm:$0xf] %v1083_v18  ;;  %v1085_v19 = vld [vmem:[%s9085_s6 + $0x1d30] sm:$0xf] }
 0x153   : > { %v1087_v20 = vld [vmem:[%s9085_s6 + $0x1d40] sm:$0xf]  ;;  %v1089_v21 = vld [vmem:[%s9085_s6 + $0x1d50] sm:$0xf]  ;;  %1086 = vst [vmem:[%s9089_s7 + $0x74c] sm:$0xf] %v1085_v19 }
 0x154   : > { %1088 = vst [vmem:[%s9089_s7 + $0x750] sm:$0xf] %v1087_v20  ;;  %1090 = vst [vmem:[%s9089_s7 + $0x754] sm:$0xf] %v1089_v21  ;;  %v1091_v22 = vld [vmem:[%s9085_s6 + $0x1d60] sm:$0xf] }
 0x155   : > { %v1093_v23 = vld [vmem:[%s9085_s6 + $0x1d70] sm:$0xf]  ;;  %v1095_v24 = vld [vmem:[%s9085_s6 + $0x1d80] sm:$0xf]  ;;  %1092 = vst [vmem:[%s9089_s7 + $0x758] sm:$0xf] %v1091_v22 }
 0x156   : > { %1094 = vst [vmem:[%s9089_s7 + $0x75c] sm:$0xf] %v1093_v23  ;;  %1096 = vst [vmem:[%s9089_s7 + $0x760] sm:$0xf] %v1095_v24  ;;  %v1097_v25 = vld [vmem:[%s9085_s6 + $0x1d90] sm:$0xf] }
 0x157   : > { %v1099_v26 = vld [vmem:[%s9085_s6 + $0x1da0] sm:$0xf]  ;;  %v1101_v27 = vld [vmem:[%s9085_s6 + $0x1db0] sm:$0xf]  ;;  %1098 = vst [vmem:[%s9089_s7 + $0x764] sm:$0xf] %v1097_v25 }
 0x158   : > { %1100 = vst [vmem:[%s9089_s7 + $0x768] sm:$0xf] %v1099_v26  ;;  %1102 = vst [vmem:[%s9089_s7 + $0x76c] sm:$0xf] %v1101_v27  ;;  %v1103_v28 = vld [vmem:[%s9085_s6 + $0x1dc0] sm:$0xf] }
 0x159   : > { %v1105_v29 = vld [vmem:[%s9085_s6 + $0x1dd0] sm:$0xf]  ;;  %v1107_v30 = vld [vmem:[%s9085_s6 + $0x1de0] sm:$0xf]  ;;  %1104 = vst [vmem:[%s9089_s7 + $0x770] sm:$0xf] %v1103_v28 }
 0x15a   : > { %1106 = vst [vmem:[%s9089_s7 + $0x774] sm:$0xf] %v1105_v29  ;;  %1108 = vst [vmem:[%s9089_s7 + $0x778] sm:$0xf] %v1107_v30  ;;  %v1109_v31 = vld [vmem:[%s9085_s6 + $0x1df0] sm:$0xf] }
 0x15b   : > { %v1111_v32 = vld [vmem:[%s9085_s6 + $0x1e00] sm:$0xf]  ;;  %v1113_v33 = vld [vmem:[%s9085_s6 + $0x1e10] sm:$0xf]  ;;  %1110 = vst [vmem:[%s9089_s7 + $0x77c] sm:$0xf] %v1109_v31 }
 0x15c   : > { %1112 = vst [vmem:[%s9089_s7 + $0x780] sm:$0xf] %v1111_v32  ;;  %1114 = vst [vmem:[%s9089_s7 + $0x784] sm:$0xf] %v1113_v33  ;;  %v1115_v34 = vld [vmem:[%s9085_s6 + $0x1e20] sm:$0xf] }
 0x15d   : > { %v1117_v35 = vld [vmem:[%s9085_s6 + $0x1e30] sm:$0xf]  ;;  %v1119_v36 = vld [vmem:[%s9085_s6 + $0x1e40] sm:$0xf]  ;;  %1116 = vst [vmem:[%s9089_s7 + $0x788] sm:$0xf] %v1115_v34 }
 0x15e   : > { %1118 = vst [vmem:[%s9089_s7 + $0x78c] sm:$0xf] %v1117_v35  ;;  %1120 = vst [vmem:[%s9089_s7 + $0x790] sm:$0xf] %v1119_v36  ;;  %v1121_v37 = vld [vmem:[%s9085_s6 + $0x1e50] sm:$0xf] }
 0x15f   : > { %v1123_v38 = vld [vmem:[%s9085_s6 + $0x1e60] sm:$0xf]  ;;  %v1125_v39 = vld [vmem:[%s9085_s6 + $0x1e70] sm:$0xf]  ;;  %1122 = vst [vmem:[%s9089_s7 + $0x794] sm:$0xf] %v1121_v37 }
 0x160   : > { %1124 = vst [vmem:[%s9089_s7 + $0x798] sm:$0xf] %v1123_v38  ;;  %1126 = vst [vmem:[%s9089_s7 + $0x79c] sm:$0xf] %v1125_v39  ;;  %v1127_v40 = vld [vmem:[%s9085_s6 + $0x1e80] sm:$0xf] }
 0x161   : > { %v1129_v41 = vld [vmem:[%s9085_s6 + $0x1e90] sm:$0xf]  ;;  %v1131_v42 = vld [vmem:[%s9085_s6 + $0x1ea0] sm:$0xf]  ;;  %1128 = vst [vmem:[%s9089_s7 + $0x7a0] sm:$0xf] %v1127_v40 }
 0x162   : > { %1130 = vst [vmem:[%s9089_s7 + $0x7a4] sm:$0xf] %v1129_v41  ;;  %1132 = vst [vmem:[%s9089_s7 + $0x7a8] sm:$0xf] %v1131_v42  ;;  %v1133_v43 = vld [vmem:[%s9085_s6 + $0x1eb0] sm:$0xf] }
 0x163   : > { %v1135_v44 = vld [vmem:[%s9085_s6 + $0x1ec0] sm:$0xf]  ;;  %v1137_v45 = vld [vmem:[%s9085_s6 + $0x1ed0] sm:$0xf]  ;;  %1134 = vst [vmem:[%s9089_s7 + $0x7ac] sm:$0xf] %v1133_v43 }
 0x164   : > { %1136 = vst [vmem:[%s9089_s7 + $0x7b0] sm:$0xf] %v1135_v44  ;;  %1138 = vst [vmem:[%s9089_s7 + $0x7b4] sm:$0xf] %v1137_v45  ;;  %v1139_v46 = vld [vmem:[%s9085_s6 + $0x1ee0] sm:$0xf] }
 0x165   : > { %v1141_v47 = vld [vmem:[%s9085_s6 + $0x1ef0] sm:$0xf]  ;;  %v1143_v48 = vld [vmem:[%s9085_s6 + $0x1f00] sm:$0xf]  ;;  %1140 = vst [vmem:[%s9089_s7 + $0x7b8] sm:$0xf] %v1139_v46 }
 0x166   : > { %1142 = vst [vmem:[%s9089_s7 + $0x7bc] sm:$0xf] %v1141_v47  ;;  %1144 = vst [vmem:[%s9089_s7 + $0x7c0] sm:$0xf] %v1143_v48  ;;  %v1145_v49 = vld [vmem:[%s9085_s6 + $0x1f10] sm:$0xf] }
 0x167   : > { %v1147_v50 = vld [vmem:[%s9085_s6 + $0x1f20] sm:$0xf]  ;;  %v1149_v51 = vld [vmem:[%s9085_s6 + $0x1f30] sm:$0xf]  ;;  %1146 = vst [vmem:[%s9089_s7 + $0x7c4] sm:$0xf] %v1145_v49 }
 0x168   : > { %1148 = vst [vmem:[%s9089_s7 + $0x7c8] sm:$0xf] %v1147_v50  ;;  %1150 = vst [vmem:[%s9089_s7 + $0x7cc] sm:$0xf] %v1149_v51  ;;  %v1151_v52 = vld [vmem:[%s9085_s6 + $0x1f40] sm:$0xf] }
 0x169   : > { %v1153_v53 = vld [vmem:[%s9085_s6 + $0x1f50] sm:$0xf]  ;;  %v1155_v54 = vld [vmem:[%s9085_s6 + $0x1f60] sm:$0xf]  ;;  %1152 = vst [vmem:[%s9089_s7 + $0x7d0] sm:$0xf] %v1151_v52 }
 0x16a   : > { %1154 = vst [vmem:[%s9089_s7 + $0x7d4] sm:$0xf] %v1153_v53  ;;  %1156 = vst [vmem:[%s9089_s7 + $0x7d8] sm:$0xf] %v1155_v54  ;;  %v1157_v55 = vld [vmem:[%s9085_s6 + $0x1f70] sm:$0xf] }
 0x16b   : > { %v1159_v56 = vld [vmem:[%s9085_s6 + $0x1f80] sm:$0xf]  ;;  %v1161_v57 = vld [vmem:[%s9085_s6 + $0x1f90] sm:$0xf]  ;;  %1158 = vst [vmem:[%s9089_s7 + $0x7dc] sm:$0xf] %v1157_v55 }
 0x16c   : > { %1160 = vst [vmem:[%s9089_s7 + $0x7e0] sm:$0xf] %v1159_v56  ;;  %1162 = vst [vmem:[%s9089_s7 + $0x7e4] sm:$0xf] %v1161_v57  ;;  %v1163_v58 = vld [vmem:[%s9085_s6 + $0x1fa0] sm:$0xf] }
 0x16d   : > { %v1165_v59 = vld [vmem:[%s9085_s6 + $0x1fb0] sm:$0xf]  ;;  %v1167_v60 = vld [vmem:[%s9085_s6 + $0x1fc0] sm:$0xf]  ;;  %1164 = vst [vmem:[%s9089_s7 + $0x7e8] sm:$0xf] %v1163_v58 }
 0x16e   : > { %1166 = vst [vmem:[%s9089_s7 + $0x7ec] sm:$0xf] %v1165_v59  ;;  %1168 = vst [vmem:[%s9089_s7 + $0x7f0] sm:$0xf] %v1167_v60  ;;  %v1169_v61 = vld [vmem:[%s9085_s6 + $0x1fd0] sm:$0xf] }
 0x16f   : > { %v1171_v62 = vld [vmem:[%s9085_s6 + $0x1fe0] sm:$0xf]  ;;  %v1173_v63 = vld [vmem:[%s9085_s6 + $0x1ff0] sm:$0xf]  ;;  %1170 = vst [vmem:[%s9089_s7 + $0x7f4] sm:$0xf] %v1169_v61 }
 0x170   : > { %1172 = vst [vmem:[%s9089_s7 + $0x7f8] sm:$0xf] %v1171_v62  ;;  %1174 = vst [vmem:[%s9089_s7 + $0x7fc] sm:$0xf] %v1173_v63 }
 0x171 PF: > { %p7449_p11 = scmp.ge.s32.totalorder %s8984_s17, 1  ;;  %p4298_p12 = scmp.lt.s32.totalorder %s8984_s17, 9 }
 0x173   : > { %p4299_p13 = pnand %p7449_p11, %p4298_p12 }
 0x174   : > { %s4305_s8 = sand.u32 (!%p4299_p13), 1, %s8960_s11   ;;  %s4327_s18 = sand.u32 (!%p4299_p13), 1, %s8952_s9  }
 0x175   : > { %4302 = sbr.rel (%p4299_p13) target bundleno = 943 (0x3af), region = 76  ;;  %s7450_s21 = sshll.u32 (!%p4299_p13), %s4305_s8, 11 }
 0x176   : > { %s8561_s22 = smul.u32 (!%p4299_p13), 6, %s4327_s18  ;;  %p4330_p0 = scmp.lt.s32.totalorder (!%p4299_p13), %s8972_s14, 1 }
 0x177   : > { %s10124_s3 = scalar_lea.vmem (!%p4299_p13), [#allocation3], %s7450_s21  ;;  %s10128_s5 = smov (!%p4299_p13), 0  }
 0x178   : > { %s10126_s4 = scalar_lea.vmem (!%p4299_p13), [#allocation4], %s8561_s22 }
 0x17c   : > { %s4331_s23 = scalar_select %p4330_p0, %s8972_s14, 1 }
 0x17e   : > { %s8562_s25 = smul.u32 48, %s4331_s23 }
 0x180   : > { %s10122_s30 = scalar_lea.vmem %s10502_s0, %s8562_s25 }
 0x181 LB: >> { %v8644_v0 = vld [vmem:[%s10124_s3 + $0xc0] sm:$0xff]   ;;  %v8648_v4 = vld [vmem:[%s10124_s3 + $0xc8] sm:$0xff]   ;;  %v8652_v8 = vld [vmem:[%s10124_s3 + $0xd0] sm:$0xff]   ;;  %s8208_s9 = sshll.u32 %s8988_s5, 3  ;;  %s8204_s6 = sshll.u32 %s8988_s5, 2  ;;  %s8988_s5 = sphi %s10128_s5, %s4341_s5  }
 0x182   : >> { %v8645_v1 = vld [vmem:[%s10124_s3 + $0x40] sm:$0xff]   ;;  %8209 = vmatprep.subr.bf16.mxu0 %v8644_v0  ;;  %v8649_v5 = vld [vmem:[%s10124_s3 + $0x48] sm:$0xff]   ;;  %v8653_v9 = vld [vmem:[%s10124_s3 + $0x50] sm:$0xff]   ;;  %s10165_s11 = scalar_lea.vmem %s10122_s30, %s8208_s9  ;;  %s7219_s7 = scalar_lea.vmem [#allocation2], %s8204_s6 }
 0x183   : >> { %v8646_v2 = vld [vmem:[%s10124_s3 + $0x80] sm:$0xff]   ;;  %8231 = vmatprep.subr.bf16.mxu1 %v8645_v1  ;;  %v8650_v6 = vld [vmem:[%s10124_s3 + $0x88] sm:$0xff]   ;;  %v8654_v10 = vld [vmem:[%s10124_s3 + $0x90] sm:$0xff]   ;;  %s4341_s5 = sadd.s32 1, %s8988_s5  }
 0x184   : >> { %v8647_v3 = vld [vmem:[%s10124_s3] sm:$0xff]   ;;  %8210 = vmatpush3.bf16.msra.mxu0 %v8646_v2  ;;  %v8651_v7 = vld [vmem:[%s10124_s3 + $0x8] sm:$0xff]   ;;  %v8655_v11 = vld [vmem:[%s10124_s3 + $0x10] sm:$0xff]   ;;  %p4338_p1 = scmp.ge.s32.totalorder %s4341_s5, 3  }
 0x185   : >> { %8232 = vmatpush3.bf16.msra.mxu1 %v8647_v3  ;;  %8211 = vmatprep.subr.bf16.mxu0 %v8648_v4  ;;  %v8656_v12 = vld [vmem:[%s10124_s3 + $0xd8] sm:$0xff]   ;;  %v8660_v16 = vld [vmem:[%s10124_s3 + $0xe0] sm:$0xff]   ;;  %v8664_v20 = vld [vmem:[%s10124_s3 + $0xe8] sm:$0xff]   ;;  %vm7224_vm0 = vcmask (%p4338_p1), 1042432   ;;  %vm7273_vm1 = vcmask (%p4338_p1), 1041408  }
 0x186   : >> { %8233 = vmatprep.subr.bf16.mxu1 %v8649_v5  ;;  %v8657_v13 = vld [vmem:[%s10124_s3 + $0x58] sm:$0xff]   ;;  %v8661_v17 = vld [vmem:[%s10124_s3 + $0x60] sm:$0xff]   ;;  %v8665_v21 = vld [vmem:[%s10124_s3 + $0x68] sm:$0xff]   ;;  %vm7274_vm2 = vsmask.f32 (%p4338_p1), 1280 }
 0x187   : >> { %v8658_v14 = vld [vmem:[%s10124_s3 + $0x98] sm:$0xff]   ;;  %v8662_v18 = vld [vmem:[%s10124_s3 + $0xa0] sm:$0xff]   ;;  %v8666_v22 = vld [vmem:[%s10124_s3 + $0xa8] sm:$0xff]  }
 0x188   : >> { %8212 = vmatpush3.bf16.msra.mxu0 %v8650_v6  ;;  %v8659_v15 = vld [vmem:[%s10124_s3 + $0x18] sm:$0xff]   ;;  %v8663_v19 = vld [vmem:[%s10124_s3 + $0x20] sm:$0xff]   ;;  %v8667_v23 = vld [vmem:[%s10124_s3 + $0x28] sm:$0xff]  }
 0x189   : >> { %8234 = vmatpush3.bf16.msra.mxu1 %v8651_v7  ;;  %8213 = vmatprep.subr.bf16.mxu0 %v8652_v8  ;;  %v8668_v24 = vld [vmem:[%s10124_s3 + $0xf0] sm:$0xff]   ;;  %v8672_v28 = vld [vmem:[%s10124_s3 + $0xf8] sm:$0xff]   ;;  %v8678_v35 = vld [vmem:[%s10124_s3 + $0x140] sm:$0xff]  }
 0x18a   : >> { %8235 = vmatprep.subr.bf16.mxu1 %v8653_v9  ;;  %v8669_v25 = vld [vmem:[%s10124_s3 + $0x70] sm:$0xff]   ;;  %v8673_v29 = vld [vmem:[%s10124_s3 + $0x78] sm:$0xff]   ;;  %v8679_v36 = vld [vmem:[%s10124_s3 + $0x1c0] sm:$0xff]  }
 0x18b   : >> { %v8670_v26 = vld [vmem:[%s10124_s3 + $0xb0] sm:$0xff]   ;;  %v8674_v30 = vld [vmem:[%s10124_s3 + $0xb8] sm:$0xff]   ;;  %v8681_v41 = vld [vmem:[%s10124_s3 + $0x180] sm:$0xff]  }
 0x18c   : >> { %8214 = vmatpush3.bf16.msra.mxu0 %v8654_v10  ;;  %v8671_v27 = vld [vmem:[%s10124_s3 + $0x30] sm:$0xff]   ;;  %v8675_v31 = vld [vmem:[%s10124_s3 + $0x38] sm:$0xff]   ;;  %v8680_v45 = vld [vmem:[%s10124_s3 + $0x100] sm:$0xff]  }
 0x18d   : >> { %8236 = vmatpush3.bf16.msra.mxu1 %v8655_v11  ;;  %8215 = vmatprep.subr.bf16.mxu0 %v8656_v12  ;;  %v4345_v32 = vld [vmem:[%s10165_s11] sm:$0x77]  ;;  %v8683_v48 = vld [vmem:[%s10124_s3 + $0x1c8] sm:$0xff]   ;;  %v8695_v63 = vld [vmem:[%s10124_s3 + $0x1e0] sm:$0xff]  }
 0x18e   : >> { %8237 = vmatprep.subr.bf16.mxu1 %v8657_v13  ;;  %v10170_v33 = vcombine.low %v4345_v32, %v4345_v32  ;;  %v7487_v34 = vcombine.high %v4345_v32, %v4345_v32  ;;  %v8682_v50 = vld [vmem:[%s10124_s3 + $0x148] sm:$0xff]   ;;  %v8687_v55 = vld [vmem:[%s10124_s3 + $0x1d0] sm:$0xff]   ;;  %v8691_v59 = vld [vmem:[%s10124_s3 + $0x1d8] sm:$0xff]  }
 0x18f   : >> { %v8685_v52 = vld [vmem:[%s10124_s3 + $0x188] sm:$0xff]   ;;  %v8686_v56 = vld [vmem:[%s10124_s3 + $0x150] sm:$0xff]   ;;  %v8690_v60 = vld [vmem:[%s10124_s3 + $0x158] sm:$0xff]  }
 0x190   : >> { %8216 = vmatpush3.bf16.msra.mxu0 %v8658_v14  ;;  %v4424_v37 = vshrl.u32 %v7487_v34, 16  ;;  %v4426_v38 = vshll.u32 %v7487_v34, 16  ;;  %4698 = vmatprep.mubr.bf16.mxu1 %v7487_v34  ;;  %v4417_v39 = vshrl.u32 %v10170_v33, 16  ;;  %v4419_v40 = vshll.u32 %v10170_v33, 16  ;;  %v8684_v54 = vld [vmem:[%s10124_s3 + $0x108] sm:$0xff]   ;;  %v8689_v57 = vld [vmem:[%s10124_s3 + $0x190] sm:$0xff]   ;;  %vm7275_vm6 = vmand (%p4338_p1), %vm7273_vm1, %vm7274_vm2 }
 0x191   : >> { %8238 = vmatpush3.bf16.msra.mxu1 %v8659_v15  ;;  %8217 = vmatprep.subr.bf16.mxu0 %v8660_v16  ;;  %v4740_v51 = vrot.slane %v7487_v34, 1  ;;  %v8688_v58 = vld [vmem:[%s10124_s3 + $0x110] sm:$0xff]   ;;  %v8693_v61 = vld [vmem:[%s10124_s3 + $0x198] sm:$0xff]   ;;  %v8694_v0 = vld [vmem:[%s10124_s3 + $0x160] sm:$0xff]  }
 0x192   : >> { %8239 = vmatprep.subr.bf16.mxu1 %v8661_v17  ;;  %v4428_v42 = vrot.slane %v4426_v38, 1  ;;  %v4916_v43 = vrot.slane %v4424_v37, 1  ;;  %v4421_v44 = vrot.slane %v4419_v40, 1  ;;  %v4917_v49 = vrot.slane %v4426_v38, 2  ;;  %v8692_v62 = vld [vmem:[%s10124_s3 + $0x118] sm:$0xff]   ;;  %v8697_v1 = vld [vmem:[%s10124_s3 + $0x1a0] sm:$0xff]  }
 0x193   : >> { %v8696_v2 = vld [vmem:[%s10124_s3 + $0x120] sm:$0xff]   ;;  %v8699_v3 = vld [vmem:[%s10124_s3 + $0x1e8] sm:$0xff]   ;;  %v8703_v7 = vld [vmem:[%s10124_s3 + $0x1f0] sm:$0xff]   ;;  %v4913_v9 = vrot.slane %v4417_v39, 1  ;;  %v4914_v12 = vrot.slane %v4419_v40, 2 }
 0x194   : >> { %8218 = vmatpush3.bf16.msra.mxu0 %v8662_v18  ;;  %v4429_v46 = vor.u32 %v4428_v42, %v4424_v37  ;;  %v4422_v47 = vor.u32 %v4421_v44, %v4417_v39  ;;  %v4918_v53 = vor.u32 %v4917_v49, %v4916_v43  ;;  %v8698_v4 = vld [vmem:[%s10124_s3 + $0x168] sm:$0xff]   ;;  %v8702_v8 = vld [vmem:[%s10124_s3 + $0x170] sm:$0xff]   ;;  %v8707_v13 = vld [vmem:[%s10124_s3 + $0x1f8] sm:$0xff]  }
 0x195   : >> { %8240 = vmatpush3.bf16.msra.mxu1 %v8663_v19  ;;  %8219 = vmatprep.subr.bf16.mxu0 %v8664_v20  ;;  %v8701_v5 = vld [vmem:[%s10124_s3 + $0x1a8] sm:$0xff]   ;;  %v8705_v10 = vld [vmem:[%s10124_s3 + $0x1b0] sm:$0xff]   ;;  %v8706_v14 = vld [vmem:[%s10124_s3 + $0x178] sm:$0xff]   ;;  %v4915_v17 = vor.u32 %v4914_v12, %v4913_v9 }
 0x196   : >> { %8241 = vmatprep.subr.bf16.mxu1 %v8665_v21  ;;  %4560 = vmatprep.mubr.bf16.mxu0 %v4429_v46  ;;  %v8700_v6 = vld [vmem:[%s10124_s3 + $0x128] sm:$0xff]   ;;  %v8704_v11 = vld [vmem:[%s10124_s3 + $0x130] sm:$0xff]   ;;  %v8709_v15 = vld [vmem:[%s10124_s3 + $0x1b8] sm:$0xff]   ;;  %v4739_v21 = vrot.slane %v10170_v33, 1 }
 0x197   : >> { %v8708_v16 = vld [vmem:[%s10124_s3 + $0x138] sm:$0xff]   ;;  %v8711_v18 = vld [vmem:[%s10124_s3 + $0x2c0] sm:$0xff]   ;;  %v8731_v39 = vld [vmem:[%s10124_s3 + $0x2e8] sm:$0xff]  }
 0x198   : >> { %8220 = vmatpush3.bf16.msra.mxu0 %v8666_v22  ;;  %v8710_v19 = vld [vmem:[%s10124_s3 + $0x240] sm:$0xff]   ;;  %v8722_v32 = vld [vmem:[%s10124_s3 + $0x258] sm:$0xff]   ;;  %v8730_v40 = vld [vmem:[%s10124_s3 + $0x268] sm:$0xff]  }
 0x199   : >> { %8242 = vmatpush3.bf16.msra.mxu1 %v8667_v23  ;;  %8221 = vmatprep.subr.bf16.mxu0 %v8668_v24  ;;  %v8713_v20 = vld [vmem:[%s10124_s3 + $0x280] sm:$0xff]   ;;  %v8715_v23 = vld [vmem:[%s10124_s3 + $0x2c8] sm:$0xff]   ;;  %v8724_v34 = vld [vmem:[%s10124_s3 + $0x218] sm:$0xff]  }
 0x19a   : >> { %8243 = vmatprep.subr.bf16.mxu1 %v8669_v25  ;;  %v8712_v22 = vld [vmem:[%s10124_s3 + $0x200] sm:$0xff]   ;;  %v8714_v24 = vld [vmem:[%s10124_s3 + $0x248] sm:$0xff]   ;;  %v8735_v43 = vld [vmem:[%s10124_s3 + $0x2f0] sm:$0xff]  }
 0x19b   : >> { %v8717_v25 = vld [vmem:[%s10124_s3 + $0x288] sm:$0xff]   ;;  %v8729_v37 = vld [vmem:[%s10124_s3 + $0x2a0] sm:$0xff]   ;;  %v8734_v44 = vld [vmem:[%s10124_s3 + $0x270] sm:$0xff]  }
 0x19c   : >> { %8222 = vmatpush3.bf16.msra.mxu0 %v8670_v26  ;;  %v8716_v26 = vld [vmem:[%s10124_s3 + $0x208] sm:$0xff]   ;;  %v8728_v38 = vld [vmem:[%s10124_s3 + $0x220] sm:$0xff]   ;;  %v8736_v46 = vld [vmem:[%s10124_s3 + $0x230] sm:$0xff]  }
 0x19d   : >> { %8244 = vmatpush3.bf16.msra.mxu1 %v8671_v27  ;;  %8223 = vmatprep.subr.bf16.mxu0 %v8672_v28  ;;  %v8719_v27 = vld [vmem:[%s10124_s3 + $0x2d0] sm:$0xff]   ;;  %v8732_v42 = vld [vmem:[%s10124_s3 + $0x228] sm:$0xff]   ;;  %v8740_v49 = vld [vmem:[%s10124_s3 + $0x238] sm:$0xff]  }
 0x19e   : >> { %8245 = vmatprep.subr.bf16.mxu1 %v8673_v29  ;;  %v8718_v28 = vld [vmem:[%s10124_s3 + $0x250] sm:$0xff]  }
 0x19f   : >> { %v8721_v29 = vld [vmem:[%s10124_s3 + $0x290] sm:$0xff]  }
 0x1a0   : >> { %8224 = vmatpush3.bf16.msra.mxu0 %v8674_v30  ;;  %v8720_v30 = vld [vmem:[%s10124_s3 + $0x210] sm:$0xff]  }
 0x1a1   : >> { %8246 = vmatpush3.bf16.msra.mxu1 %v8675_v31  ;;  %8253 = vmatprep.subr.bf16.mxu0 %v8678_v35  ;;  %v8723_v31 = vld [vmem:[%s10124_s3 + $0x2d8] sm:$0xff]   ;;  %v8727_v35 = vld [vmem:[%s10124_s3 + $0x2e0] sm:$0xff]   ;;  %v8752_v9 = vld [vmem:[%s10124_s3 + $0x350] sm:$0xff]  }
 0x1a2   : >> { %8275 = vmatprep.subr.bf16.mxu1 %v8679_v36  ;;  %v8726_v36 = vld [vmem:[%s10124_s3 + $0x260] sm:$0xff]   ;;  %v8754_v12 = vld [vmem:[%s10124_s3 + $0x310] sm:$0xff]  }
 0x1a3   : >> { %4561 = vmatmul.mubr.bf16.vlgmr.msra.gmra.mrb[0].mxu0 %v4422_v47  ;;  %v8739_v47 = vld [vmem:[%s10124_s3 + $0x2f8] sm:$0xff]  }
 0x1a4   : >> { %4699 = vmatmul.mubr.bf16.vlgmr.msra.gmra.mrb[0].mxu1 %v10170_v33  ;;  %8254 = vmatpush3.bf16.msra.mxu0 %v8680_v45  ;;  %v8725_v33 = vld [vmem:[%s10124_s3 + $0x298] sm:$0xff]   ;;  %v8737_v45 = vld [vmem:[%s10124_s3 + $0x2b0] sm:$0xff]  }
 0x1a5   : >> { %8276 = vmatpush3.bf16.msra.mxu1 %v8681_v41  ;;  %8255 = vmatprep.subr.bf16.mxu0 %v8682_v50  ;;  %v8733_v41 = vld [vmem:[%s10124_s3 + $0x2a8] sm:$0xff]   ;;  %v8741_v50 = vld [vmem:[%s10124_s3 + $0x2b8] sm:$0xff]  }
 0x1a6   : >> { %8277 = vmatprep.subr.bf16.mxu1 %v8683_v48  ;;  %4871 = vmatprep.mubr.bf16.mxu0 %v4740_v51  ;;  %v8738_v48 = vld [vmem:[%s10124_s3 + $0x278] sm:$0xff]  }
 0x1a7   : >> { %5049 = vmatprep.mubr.bf16.mxu1 %v4918_v53  ;;  %v7617_v51 = vld [vmem:[%s10165_s11 + $0x8] sm:$0x77] }
 0x1a8   : >> { %8256 = vmatpush3.bf16.msra.mxu0 %v8684_v54  ;;  %v10245_v53 = vcombine.low %v7617_v51, %v7617_v51  ;;  %v8744_v54 = vld [vmem:[%s10124_s3 + $0x340] sm:$0xff]  }
 0x1a9   : >> { %8278 = vmatpush3.bf16.msra.mxu1 %v8685_v52  ;;  %8257 = vmatprep.subr.bf16.mxu0 %v8686_v56  ;;  %v7651_v52 = vcombine.high %v7617_v51, %v7617_v51  ;;  %v8789_v51 = vld [vmem:[%s10124_s3 + $0x4d8] sm:$0xff]  }
 0x1aa   : >> { %8279 = vmatprep.subr.bf16.mxu1 %v8687_v55  ;;  %v8745_v55 = vld [vmem:[%s10124_s3 + $0x3c0] sm:$0xff]  }
 0x1ab   : >> { %v5281_v56 = vshrl.u32 %v7651_v52, 16 }
 0x1ac   : >> { %8258 = vmatpush3.bf16.msra.mxu0 %v8688_v58  ;;  %v5274_v58 = vshrl.u32 %v10245_v53, 16 }
 0x1ad   : >> { %8280 = vmatpush3.bf16.msra.mxu1 %v8689_v57  ;;  %8259 = vmatprep.subr.bf16.mxu0 %v8690_v60  ;;  %v5283_v57 = vshll.u32 %v7651_v52, 16  ;;  %v8746_v60 = vld [vmem:[%s10124_s3 + $0x300] sm:$0xff]  }
 0x1ae   : >> { %8281 = vmatprep.subr.bf16.mxu1 %v8691_v59  ;;  %v5276_v59 = vshll.u32 %v10245_v53, 16 }
 0x1b0   : >> { %8260 = vmatpush3.bf16.msra.mxu0 %v8692_v62  ;;  %v5285_v62 = vrot.slane %v5283_v57, 1 }
 0x1b1   : >> { %8282 = vmatpush3.bf16.msra.mxu1 %v8693_v61  ;;  %8261 = vmatprep.subr.bf16.mxu0 %v8694_v0  ;;  %v5460_v61 = vrot.slane %v7651_v52, 1  ;;  %v8747_v0 = vld [vmem:[%s10124_s3 + $0x380] sm:$0xff]  }
 0x1b2   : >> { %8283 = vmatprep.subr.bf16.mxu1 %v8695_v63  ;;  %v5278_v63 = vrot.slane %v5276_v59, 1 }
 0x1b4   : >> { %8262 = vmatpush3.bf16.msra.mxu0 %v8696_v2  ;;  %v5286_v2 = vor.u32 %v5285_v62, %v5281_v56  ;;  %v8800_v62 = vld [vmem:[%s10124_s3 + $0x470] sm:$0xff]  }
 0x1b5   : >> { %8284 = vmatpush3.bf16.msra.mxu1 %v8697_v1  ;;  %8263 = vmatprep.subr.bf16.mxu0 %v8698_v4  ;;  %v8748_v1 = vld [vmem:[%s10124_s3 + $0x348] sm:$0xff]  }
 0x1b6   : >> { %8285 = vmatprep.subr.bf16.mxu1 %v8699_v3  ;;  %v5279_v3 = vor.u32 %v5278_v63, %v5274_v58  ;;  %v8749_v4 = vld [vmem:[%s10124_s3 + $0x3c8] sm:$0xff]   ;;  %v8801_v63 = vld [vmem:[%s10124_s3 + $0x4f0] sm:$0xff]  }
 0x1b8   : >> { %8264 = vmatpush3.bf16.msra.mxu0 %v8700_v6  ;;  %v8750_v6 = vld [vmem:[%s10124_s3 + $0x308] sm:$0xff]  }
 0x1b9   : >> { %8286 = vmatpush3.bf16.msra.mxu1 %v8701_v5  ;;  %8265 = vmatprep.subr.bf16.mxu0 %v8702_v8  ;;  %v5636_v5 = vrot.slane %v5281_v56, 1  ;;  %v8751_v8 = vld [vmem:[%s10124_s3 + $0x388] sm:$0xff]   ;;  %v8794_v56 = vld [vmem:[%s10124_s3 + $0x420] sm:$0xff]  }
 0x1ba   : >> { %8287 = vmatprep.subr.bf16.mxu1 %v8703_v7  ;;  %v5637_v7 = vrot.slane %v5283_v57, 2  ;;  %v8795_v57 = vld [vmem:[%s10124_s3 + $0x4a0] sm:$0xff]  }
 0x1bc   : >> { %8266 = vmatpush3.bf16.msra.mxu0 %v8704_v11  ;;  %v8753_v11 = vld [vmem:[%s10124_s3 + $0x3d0] sm:$0xff]  }
 0x1bd   : >> { %8288 = vmatpush3.bf16.msra.mxu1 %v8705_v10  ;;  %8267 = vmatprep.subr.bf16.mxu0 %v8706_v14  ;;  %v5638_v10 = vor.u32 %v5637_v7, %v5636_v5  ;;  %v8756_v14 = vld [vmem:[%s10124_s3 + $0x358] sm:$0xff]  }
 0x1be   : >> { %8289 = vmatprep.subr.bf16.mxu1 %v8707_v13  ;;  %v8755_v13 = vld [vmem:[%s10124_s3 + $0x390] sm:$0xff]   ;;  %v8807_v5 = vld [vmem:[%s10124_s3 + $0x4b8] sm:$0xff]  }
 0x1c0   : >> { %8268 = vmatpush3.bf16.msra.mxu0 %v8708_v16  ;;  %v8758_v16 = vld [vmem:[%s10124_s3 + $0x318] sm:$0xff]  }
 0x1c1   : >> { %8290 = vmatpush3.bf16.msra.mxu1 %v8709_v15  ;;  %8297 = vmatprep.subr.bf16.mxu0 %v8710_v19  ;;  %v8757_v15 = vld [vmem:[%s10124_s3 + $0x3d8] sm:$0xff]   ;;  %v8761_v19 = vld [vmem:[%s10124_s3 + $0x3e0] sm:$0xff]  }
 0x1c2   : >> { %8319 = vmatprep.subr.bf16.mxu1 %v8711_v18  ;;  %v8760_v18 = vld [vmem:[%s10124_s3 + $0x360] sm:$0xff]  }
 0x1c3   : >> { %4872 = vmatmul.mubr.bf16.vlgmr.msra.gmra.mrb[4].mxu0 %v4739_v21  ;;  %v8763_v21 = vld [vmem:[%s10124_s3 + $0x3a0] sm:$0xff]  }
 0x1c4   : >> { %5050 = vmatmul.mubr.bf16.vlgmr.msra.gmra.mrb[4].mxu1 %v4915_v17  ;;  %8298 = vmatpush3.bf16.msra.mxu0 %v8712_v22  ;;  %v8759_v17 = vld [vmem:[%s10124_s3 + $0x398] sm:$0xff]   ;;  %v8764_v22 = vld [vmem:[%s10124_s3 + $0x368] sm:$0xff]  }
 0x1c5   : >> { %8320 = vmatpush3.bf16.msra.mxu1 %v8713_v20  ;;  %8299 = vmatprep.subr.bf16.mxu0 %v8714_v24  ;;  %v8762_v20 = vld [vmem:[%s10124_s3 + $0x320] sm:$0xff]   ;;  %v8766_v24 = vld [vmem:[%s10124_s3 + $0x328] sm:$0xff]  }
 0x1c6   : >> { %8321 = vmatprep.subr.bf16.mxu1 %v8715_v23  ;;  %5231 = vmatprep.mubr.bf16.mxu0 %v7651_v52  ;;  %v8765_v23 = vld [vmem:[%s10124_s3 + $0x3e8] sm:$0xff]   ;;  %v8790_v52 = vld [vmem:[%s10124_s3 + $0x418] sm:$0xff]  }
 0x1c7   : >> { %5417 = vmatprep.mubr.bf16.mxu1 %v5286_v2  ;;  %v8804_v2 = vld [vmem:[%s10124_s3 + $0x478] sm:$0xff]  }
 0x1c8   : >> { %8300 = vmatpush3.bf16.msra.mxu0 %v8716_v26  ;;  %v8768_v26 = vld [vmem:[%s10124_s3 + $0x370] sm:$0xff]  }
 0x1c9   : >> { %8322 = vmatpush3.bf16.msra.mxu1 %v8717_v25  ;;  %8301 = vmatprep.subr.bf16.mxu0 %v8718_v28  ;;  %v8767_v25 = vld [vmem:[%s10124_s3 + $0x3a8] sm:$0xff]   ;;  %v8770_v28 = vld [vmem:[%s10124_s3 + $0x330] sm:$0xff]  }
 0x1ca   : >> { %8323 = vmatprep.subr.bf16.mxu1 %v8719_v27  ;;  %v8769_v27 = vld [vmem:[%s10124_s3 + $0x3f0] sm:$0xff]  }
 0x1cc   : >> { %8302 = vmatpush3.bf16.msra.mxu0 %v8720_v30  ;;  %v8772_v30 = vld [vmem:[%s10124_s3 + $0x378] sm:$0xff]  }
 0x1cd   : >> { %8324 = vmatpush3.bf16.msra.mxu1 %v8721_v29  ;;  %8303 = vmatprep.subr.bf16.mxu0 %v8722_v32  ;;  %v8771_v29 = vld [vmem:[%s10124_s3 + $0x3b0] sm:$0xff]   ;;  %v8774_v32 = vld [vmem:[%s10124_s3 + $0x338] sm:$0xff]  }
 0x1ce   : >> { %8325 = vmatprep.subr.bf16.mxu1 %v8723_v31  ;;  %v8773_v31 = vld [vmem:[%s10124_s3 + $0x3f8] sm:$0xff]  }
 0x1d0   : >> { %8304 = vmatpush3.bf16.msra.mxu0 %v8724_v34  ;;  %v5633_v34 = vrot.slane %v5274_v58, 1  ;;  %v8796_v58 = vld [vmem:[%s10124_s3 + $0x468] sm:$0xff]  }
 0x1d1   : >> { %8326 = vmatpush3.bf16.msra.mxu1 %v8725_v33  ;;  %8305 = vmatprep.subr.bf16.mxu0 %v8726_v36  ;;  %v8775_v33 = vld [vmem:[%s10124_s3 + $0x3b8] sm:$0xff]   ;;  %v8776_v36 = vld [vmem:[%s10124_s3 + $0x440] sm:$0xff]  }
 0x1d2   : >> { %8327 = vmatprep.subr.bf16.mxu1 %v8727_v35  ;;  %v5634_v35 = vrot.slane %v5276_v59, 2  ;;  %v8797_v59 = vld [vmem:[%s10124_s3 + $0x4e8] sm:$0xff]  }
 0x1d4   : >> { %8306 = vmatpush3.bf16.msra.mxu0 %v8728_v38  ;;  %v8778_v38 = vld [vmem:[%s10124_s3 + $0x400] sm:$0xff]  }
 0x1d5   : >> { %8328 = vmatpush3.bf16.msra.mxu1 %v8729_v37  ;;  %8307 = vmatprep.subr.bf16.mxu0 %v8730_v40  ;;  %v8777_v37 = vld [vmem:[%s10124_s3 + $0x4c0] sm:$0xff]  }
 0x1d6   : >> { %8329 = vmatprep.subr.bf16.mxu1 %v8731_v39  ;;  %v5459_v39 = vrot.slane %v10245_v53, 1  ;;  %v8779_v40 = vld [vmem:[%s10124_s3 + $0x480] sm:$0xff]  }
 0x1d8   : >> { %8308 = vmatpush3.bf16.msra.mxu0 %v8732_v42  ;;  %v8780_v42 = vld [vmem:[%s10124_s3 + $0x448] sm:$0xff]  }
 0x1d9   : >> { %8330 = vmatpush3.bf16.msra.mxu1 %v8733_v41  ;;  %8309 = vmatprep.subr.bf16.mxu0 %v8734_v44  ;;  %v5635_v41 = vor.u32 %v5634_v35, %v5633_v34  ;;  %v8782_v44 = vld [vmem:[%s10124_s3 + $0x408] sm:$0xff]   ;;  %v8823_v34 = vld [vmem:[%s10124_s3 + $0x5d8] sm:$0xff]  }
 0x1da   : >> { %8331 = vmatprep.subr.bf16.mxu1 %v8735_v43  ;;  %v8781_v43 = vld [vmem:[%s10124_s3 + $0x4c8] sm:$0xff]   ;;  %v8824_v35 = vld [vmem:[%s10124_s3 + $0x518] sm:$0xff]  }
 0x1dc   : >> { %8310 = vmatpush3.bf16.msra.mxu0 %v8736_v46  ;;  %v8784_v46 = vld [vmem:[%s10124_s3 + $0x450] sm:$0xff]  }
 0x1dd   : >> { %8332 = vmatpush3.bf16.msra.mxu1 %v8737_v45  ;;  %8311 = vmatprep.subr.bf16.mxu0 %v8738_v48  ;;  %v8783_v45 = vld [vmem:[%s10124_s3 + $0x488] sm:$0xff]   ;;  %v8786_v48 = vld [vmem:[%s10124_s3 + $0x410] sm:$0xff]  }
 0x1de   : >> { %8333 = vmatprep.subr.bf16.mxu1 %v8739_v47  ;;  %v8785_v47 = vld [vmem:[%s10124_s3 + $0x4d0] sm:$0xff]  }
 0x1e0   : >> { %8312 = vmatpush3.bf16.msra.mxu0 %v8740_v49  ;;  %v8787_v49 = vld [vmem:[%s10124_s3 + $0x490] sm:$0xff]  }
 0x1e1   : >> { %8334 = vmatpush3.bf16.msra.mxu1 %v8741_v50  ;;  %8341 = vmatprep.subr.bf16.mxu0 %v8744_v54  ;;  %v8788_v50 = vld [vmem:[%s10124_s3 + $0x458] sm:$0xff]   ;;  %v8792_v54 = vld [vmem:[%s10124_s3 + $0x460] sm:$0xff]  }
 0x1e2   : >> { %8363 = vmatprep.subr.bf16.mxu1 %v8745_v55  ;;  %v8793_v55 = vld [vmem:[%s10124_s3 + $0x4e0] sm:$0xff]  }
 0x1e3   : >> { %5232 = vmatmul.mubr.bf16.vlgmr.msra.gmra.mrb[8].mxu0 %v10245_v53  ;;  %v8791_v53 = vld [vmem:[%s10124_s3 + $0x498] sm:$0xff]  }
 0x1e4   : >> { %5418 = vmatmul.mubr.bf16.vlgmr.msra.gmra.mrb[8].mxu1 %v5279_v3  ;;  %8342 = vmatpush3.bf16.msra.mxu0 %v8746_v60  ;;  %v8798_v60 = vld [vmem:[%s10124_s3 + $0x428] sm:$0xff]   ;;  %v8805_v3 = vld [vmem:[%s10124_s3 + $0x4f8] sm:$0xff]  }
 0x1e5   : >> { %8364 = vmatpush3.bf16.msra.mxu1 %v8747_v0  ;;  %8343 = vmatprep.subr.bf16.mxu0 %v8748_v1  ;;  %v8802_v0 = vld [vmem:[%s10124_s3 + $0x430] sm:$0xff]  }
 0x1e6   : >> { %8365 = vmatprep.subr.bf16.mxu1 %v8749_v4  ;;  %5591 = vmatprep.mubr.bf16.mxu0 %v5460_v61  ;;  %v8799_v61 = vld [vmem:[%s10124_s3 + $0x4a8] sm:$0xff]   ;;  %v8803_v1 = vld [vmem:[%s10124_s3 + $0x4b0] sm:$0xff]   ;;  %v8806_v4 = vld [vmem:[%s10124_s3 + $0x438] sm:$0xff]  }
 0x1e7   : >> { %5769 = vmatprep.mubr.bf16.mxu1 %v5638_v10  ;;  %v8811_v10 = vld [vmem:[%s10124_s3 + $0x5c0] sm:$0xff]  }
 0x1e8   : >> { %8344 = vmatpush3.bf16.msra.mxu0 %v8750_v6  ;;  %v7813_v6 = vld [vmem:[%s10165_s11 + $0x10] sm:$0x77] }
 0x1e9   : >> { %8366 = vmatpush3.bf16.msra.mxu1 %v8751_v8  ;;  %8345 = vmatprep.subr.bf16.mxu0 %v8752_v9  ;;  %v7847_v7 = vcombine.high %v7813_v6, %v7813_v6  ;;  %v10324_v8 = vcombine.low %v7813_v6, %v7813_v6  ;;  %v8810_v9 = vld [vmem:[%s10124_s3 + $0x540] sm:$0xff]   ;;  %v8855_v6 = vld [vmem:[%s10124_s3 + $0x6d8] sm:$0xff]  }
 0x1ea   : >> { %8367 = vmatprep.subr.bf16.mxu1 %v8753_v11 }
 0x1eb   : >> { %v6001_v11 = vshrl.u32 %v7847_v7, 16 }
 0x1ec   : >> { %8346 = vmatpush3.bf16.msra.mxu0 %v8754_v12  ;;  %v6003_v12 = vshll.u32 %v7847_v7, 16 }
 0x1ed   : >> { %8368 = vmatpush3.bf16.msra.mxu1 %v8755_v13  ;;  %8347 = vmatprep.subr.bf16.mxu0 %v8756_v14  ;;  %v5994_v13 = vshrl.u32 %v10324_v8, 16  ;;  %v5996_v14 = vshll.u32 %v10324_v8, 16 }
 0x1ee   : >> { %8369 = vmatprep.subr.bf16.mxu1 %v8757_v15  ;;  %v8812_v15 = vld [vmem:[%s10124_s3 + $0x500] sm:$0xff]  }
 0x1f0   : >> { %8348 = vmatpush3.bf16.msra.mxu0 %v8758_v16  ;;  %v6180_v16 = vrot.slane %v7847_v7, 1 }
 0x1f1   : >> { %8370 = vmatpush3.bf16.msra.mxu1 %v8759_v17  ;;  %8349 = vmatprep.subr.bf16.mxu0 %v8760_v18  ;;  %v6005_v17 = vrot.slane %v6003_v12, 1  ;;  %v5998_v18 = vrot.slane %v5996_v14, 1 }
 0x1f2   : >> { %8371 = vmatprep.subr.bf16.mxu1 %v8761_v19  ;;  %v8813_v19 = vld [vmem:[%s10124_s3 + $0x580] sm:$0xff]  }
 0x1f4   : >> { %8350 = vmatpush3.bf16.msra.mxu0 %v8762_v20  ;;  %v8814_v20 = vld [vmem:[%s10124_s3 + $0x548] sm:$0xff]  }
 0x1f5   : >> { %8372 = vmatpush3.bf16.msra.mxu1 %v8763_v21  ;;  %8351 = vmatprep.subr.bf16.mxu0 %v8764_v22  ;;  %v6006_v21 = vor.u32 %v6005_v17, %v6001_v11  ;;  %v5999_v22 = vor.u32 %v5998_v18, %v5994_v13  ;;  %v8866_v17 = vld [vmem:[%s10124_s3 + $0x670] sm:$0xff]  }
 0x1f6   : >> { %8373 = vmatprep.subr.bf16.mxu1 %v8765_v23  ;;  %v8815_v23 = vld [vmem:[%s10124_s3 + $0x5c8] sm:$0xff]   ;;  %v8867_v18 = vld [vmem:[%s10124_s3 + $0x6f0] sm:$0xff]  }
 0x1f8   : >> { %8352 = vmatpush3.bf16.msra.mxu0 %v8766_v24  ;;  %v6356_v24 = vrot.slane %v6001_v11, 1  ;;  %v8860_v11 = vld [vmem:[%s10124_s3 + $0x620] sm:$0xff]  }
 0x1f9   : >> { %8374 = vmatpush3.bf16.msra.mxu1 %v8767_v25  ;;  %8353 = vmatprep.subr.bf16.mxu0 %v8768_v26  ;;  %v8816_v25 = vld [vmem:[%s10124_s3 + $0x508] sm:$0xff]   ;;  %v6357_v26 = vrot.slane %v6003_v12, 2  ;;  %v8861_v12 = vld [vmem:[%s10124_s3 + $0x6a0] sm:$0xff]  }
 0x1fa   : >> { %8375 = vmatprep.subr.bf16.mxu1 %v8769_v27  ;;  %v8817_v27 = vld [vmem:[%s10124_s3 + $0x588] sm:$0xff]  }
 0x1fc   : >> { %8354 = vmatpush3.bf16.msra.mxu0 %v8770_v28  ;;  %v8818_v28 = vld [vmem:[%s10124_s3 + $0x550] sm:$0xff]  }
 0x1fd   : >> { %8376 = vmatpush3.bf16.msra.mxu1 %v8771_v29  ;;  %8355 = vmatprep.subr.bf16.mxu0 %v8772_v30  ;;  %v6358_v29 = vor.u32 %v6357_v26, %v6356_v24  ;;  %v8819_v30 = vld [vmem:[%s10124_s3 + $0x5d0] sm:$0xff]   ;;  %v8873_v24 = vld [vmem:[%s10124_s3 + $0x6b8] sm:$0xff]  }
 0x1fe   : >> { %8377 = vmatprep.subr.bf16.mxu1 %v8773_v31  ;;  %v8820_v31 = vld [vmem:[%s10124_s3 + $0x510] sm:$0xff]  }
 0x200   : >> { %8356 = vmatpush3.bf16.msra.mxu0 %v8774_v32  ;;  %v8821_v32 = vld [vmem:[%s10124_s3 + $0x590] sm:$0xff]  }
 0x201   : >> { %8378 = vmatpush3.bf16.msra.mxu1 %v8775_v33  ;;  %8385 = vmatprep.subr.bf16.mxu0 %v8776_v36  ;;  %v8822_v33 = vld [vmem:[%s10124_s3 + $0x558] sm:$0xff]  }
 0x202   : >> { %8407 = vmatprep.subr.bf16.mxu1 %v8777_v37  ;;  %v8825_v36 = vld [vmem:[%s10124_s3 + $0x598] sm:$0xff]   ;;  %v8826_v37 = vld [vmem:[%s10124_s3 + $0x560] sm:$0xff]  }
 0x203   : >> { %5592 = vmatmul.mubr.bf16.vlgmr.msra.gmra.mrb[12].mxu0 %v5459_v39  ;;  %v8828_v39 = vld [vmem:[%s10124_s3 + $0x520] sm:$0xff]  }
 0x204   : >> { %5770 = vmatmul.mubr.bf16.vlgmr.msra.gmra.mrb[12].mxu1 %v5635_v41  ;;  %8386 = vmatpush3.bf16.msra.mxu0 %v8778_v38  ;;  %v8827_v38 = vld [vmem:[%s10124_s3 + $0x5e0] sm:$0xff]   ;;  %v8830_v41 = vld [vmem:[%s10124_s3 + $0x568] sm:$0xff]  }
 0x205   : >> { %8408 = vmatpush3.bf16.msra.mxu1 %v8779_v40  ;;  %8387 = vmatprep.subr.bf16.mxu0 %v8780_v42  ;;  %v8829_v40 = vld [vmem:[%s10124_s3 + $0x5a0] sm:$0xff]   ;;  %v8831_v42 = vld [vmem:[%s10124_s3 + $0x5e8] sm:$0xff]  }
 0x206   : >> { %8409 = vmatprep.subr.bf16.mxu1 %v8781_v43  ;;  %5951 = vmatprep.mubr.bf16.mxu0 %v7847_v7  ;;  %v8832_v43 = vld [vmem:[%s10124_s3 + $0x528] sm:$0xff]   ;;  %v8856_v7 = vld [vmem:[%s10124_s3 + $0x618] sm:$0xff]  }
 0x207   : >> { %6137 = vmatprep.mubr.bf16.mxu1 %v6006_v21  ;;  %v8870_v21 = vld [vmem:[%s10124_s3 + $0x678] sm:$0xff]  }
 0x208   : >> { %8388 = vmatpush3.bf16.msra.mxu0 %v8782_v44  ;;  %v8833_v44 = vld [vmem:[%s10124_s3 + $0x5a8] sm:$0xff]  }
 0x209   : >> { %8410 = vmatpush3.bf16.msra.mxu1 %v8783_v45  ;;  %8389 = vmatprep.subr.bf16.mxu0 %v8784_v46  ;;  %v8834_v45 = vld [vmem:[%s10124_s3 + $0x570] sm:$0xff]  }
 0x20a   : >> { %8411 = vmatprep.subr.bf16.mxu1 %v8785_v47  ;;  %v8835_v46 = vld [vmem:[%s10124_s3 + $0x5f0] sm:$0xff]  }
 0x20b   : >> { %v8836_v47 = vld [vmem:[%s10124_s3 + $0x530] sm:$0xff]  }
 0x20c   : >> { %8390 = vmatpush3.bf16.msra.mxu0 %v8786_v48  ;;  %v8837_v48 = vld [vmem:[%s10124_s3 + $0x5b0] sm:$0xff]  }
 0x20d   : >> { %8412 = vmatpush3.bf16.msra.mxu1 %v8787_v49  ;;  %8391 = vmatprep.subr.bf16.mxu0 %v8788_v50  ;;  %v8838_v49 = vld [vmem:[%s10124_s3 + $0x578] sm:$0xff]  }
 0x20e   : >> { %8413 = vmatprep.subr.bf16.mxu1 %v8789_v51  ;;  %v8839_v50 = vld [vmem:[%s10124_s3 + $0x5f8] sm:$0xff]  }
 0x20f   : >> { %v8840_v51 = vld [vmem:[%s10124_s3 + $0x538] sm:$0xff]  }
 0x210   : >> { %8392 = vmatpush3.bf16.msra.mxu0 %v8790_v52  ;;  %v8841_v52 = vld [vmem:[%s10124_s3 + $0x5b8] sm:$0xff]  }
 0x211   : >> { %8414 = vmatpush3.bf16.msra.mxu1 %v8791_v53  ;;  %8393 = vmatprep.subr.bf16.mxu0 %v8792_v54  ;;  %v6353_v53 = vrot.slane %v5994_v13, 1  ;;  %v6354_v54 = vrot.slane %v5996_v14, 2  ;;  %v8862_v13 = vld [vmem:[%s10124_s3 + $0x668] sm:$0xff]  }
 0x212   : >> { %8415 = vmatprep.subr.bf16.mxu1 %v8793_v55  ;;  %v8842_v55 = vld [vmem:[%s10124_s3 + $0x640] sm:$0xff]   ;;  %v8863_v14 = vld [vmem:[%s10124_s3 + $0x6e8] sm:$0xff]  }
 0x214   : >> { %8394 = vmatpush3.bf16.msra.mxu0 %v8794_v56  ;;  %v8843_v56 = vld [vmem:[%s10124_s3 + $0x6c0] sm:$0xff]  }
 0x215   : >> { %8416 = vmatpush3.bf16.msra.mxu1 %v8795_v57  ;;  %8395 = vmatprep.subr.bf16.mxu0 %v8796_v58  ;;  %v6179_v57 = vrot.slane %v10324_v8, 1  ;;  %v8844_v58 = vld [vmem:[%s10124_s3 + $0x600] sm:$0xff]  }
 0x216   : >> { %8417 = vmatprep.subr.bf16.mxu1 %v8797_v59  ;;  %v8845_v59 = vld [vmem:[%s10124_s3 + $0x680] sm:$0xff]  }
 0x218   : >> { %8396 = vmatpush3.bf16.msra.mxu0 %v8798_v60  ;;  %v6355_v60 = vor.u32 %v6354_v54, %v6353_v53  ;;  %v8889_v53 = vld [vmem:[%s10124_s3 + $0x7d8] sm:$0xff]  }
 0x219   : >> { %8418 = vmatpush3.bf16.msra.mxu1 %v8799_v61  ;;  %8397 = vmatprep.subr.bf16.mxu0 %v8800_v62  ;;  %v8846_v61 = vld [vmem:[%s10124_s3 + $0x648] sm:$0xff]   ;;  %v8890_v54 = vld [vmem:[%s10124_s3 + $0x718] sm:$0xff]  }
 0x21a   : >> { %8419 = vmatprep.subr.bf16.mxu1 %v8801_v63  ;;  %v8847_v62 = vld [vmem:[%s10124_s3 + $0x6c8] sm:$0xff]  }
 0x21b   : >> { %v8848_v63 = vld [vmem:[%s10124_s3 + $0x608] sm:$0xff]  }
 0x21c   : >> { %8398 = vmatpush3.bf16.msra.mxu0 %v8802_v0  ;;  %v8849_v0 = vld [vmem:[%s10124_s3 + $0x688] sm:$0xff]  }
 0x21d   : >> { %8420 = vmatpush3.bf16.msra.mxu1 %v8803_v1  ;;  %8399 = vmatprep.subr.bf16.mxu0 %v8804_v2  ;;  %v8850_v1 = vld [vmem:[%s10124_s3 + $0x650] sm:$0xff]  }
 0x21e   : >> { %8421 = vmatprep.subr.bf16.mxu1 %v8805_v3  ;;  %v8851_v2 = vld [vmem:[%s10124_s3 + $0x6d0] sm:$0xff]  }
 0x21f   : >> { %v8852_v3 = vld [vmem:[%s10124_s3 + $0x610] sm:$0xff]  }
 0x220   : >> { %8400 = vmatpush3.bf16.msra.mxu0 %v8806_v4  ;;  %v8853_v4 = vld [vmem:[%s10124_s3 + $0x690] sm:$0xff]  }
 0x221   : >> { %8422 = vmatpush3.bf16.msra.mxu1 %v8807_v5  ;;  %8429 = vmatprep.subr.bf16.mxu0 %v8810_v9  ;;  %v8854_v5 = vld [vmem:[%s10124_s3 + $0x658] sm:$0xff]   ;;  %v8858_v9 = vld [vmem:[%s10124_s3 + $0x660] sm:$0xff]  }
 0x222   : >> { %8451 = vmatprep.subr.bf16.mxu1 %v8811_v10  ;;  %v8859_v10 = vld [vmem:[%s10124_s3 + $0x6e0] sm:$0xff]  }
 0x223   : >> { %5952 = vmatmul.mubr.bf16.vlgmr.msra.gmra.mrb[16].mxu0 %v10324_v8  ;;  %v8857_v8 = vld [vmem:[%s10124_s3 + $0x698] sm:$0xff]  }
 0x224   : >> { %8430 = vmatpush3.bf16.msra.mxu0 %v8812_v15  ;;  %6138 = vmatmul.mubr.bf16.vlgmr.msra.gmra.mrb[16].mxu1 %v5999_v22  ;;  %v8864_v15 = vld [vmem:[%s10124_s3 + $0x628] sm:$0xff]   ;;  %v8871_v22 = vld [vmem:[%s10124_s3 + $0x6f8] sm:$0xff]  }
 0x225   : >> { %8431 = vmatprep.subr.bf16.mxu0 %v8814_v20  ;;  %8452 = vmatpush3.bf16.msra.mxu1 %v8813_v19  ;;  %v8868_v19 = vld [vmem:[%s10124_s3 + $0x630] sm:$0xff]  }
 0x226   : >> { %6311 = vmatprep.mubr.bf16.mxu0 %v6180_v16  ;;  %8453 = vmatprep.subr.bf16.mxu1 %v8815_v23  ;;  %v8865_v16 = vld [vmem:[%s10124_s3 + $0x6a8] sm:$0xff]   ;;  %v8869_v20 = vld [vmem:[%s10124_s3 + $0x6b0] sm:$0xff]   ;;  %v8872_v23 = vld [vmem:[%s10124_s3 + $0x638] sm:$0xff]  }
 0x227   : >> { %6489 = vmatprep.mubr.bf16.mxu1 %v6358_v29  ;;  %v8877_v29 = vld [vmem:[%s10124_s3 + $0x7c0] sm:$0xff]  }
 0x228   : >> { %8432 = vmatpush3.bf16.msra.mxu0 %v8816_v25  ;;  %v8009_v25 = vld [vmem:[%s10165_s11 + $0x18] sm:$0x77] }
 0x229   : >> { %8433 = vmatprep.subr.bf16.mxu0 %v8818_v28  ;;  %8454 = vmatpush3.bf16.msra.mxu1 %v8817_v27  ;;  %v8043_v26 = vcombine.high %v8009_v25, %v8009_v25  ;;  %v10403_v27 = vcombine.low %v8009_v25, %v8009_v25  ;;  %v8876_v28 = vld [vmem:[%s10124_s3 + $0x740] sm:$0xff]  }
 0x22a   : >> { %8455 = vmatprep.subr.bf16.mxu1 %v8819_v30 }
 0x22b   : >> { %v6721_v30 = vshrl.u32 %v8043_v26, 16 }
 0x22c   : >> { %8434 = vmatpush3.bf16.msra.mxu0 %v8820_v31  ;;  %v6723_v31 = vshll.u32 %v8043_v26, 16 }
 0x22d   : >> { %8435 = vmatprep.subr.bf16.mxu0 %v8822_v33  ;;  %8456 = vmatpush3.bf16.msra.mxu1 %v8821_v32  ;;  %v6714_v32 = vshrl.u32 %v10403_v27, 16  ;;  %v6716_v33 = vshll.u32 %v10403_v27, 16 }
 0x22e   : >> { %8457 = vmatprep.subr.bf16.mxu1 %v8823_v34  ;;  %v8878_v34 = vld [vmem:[%s10124_s3 + $0x700] sm:$0xff]  }
 0x230   : >> { %8436 = vmatpush3.bf16.msra.mxu0 %v8824_v35  ;;  %v6900_v35 = vrot.slane %v8043_v26, 1 }
 0x231   : >> { %8437 = vmatprep.subr.bf16.mxu0 %v8826_v37  ;;  %8458 = vmatpush3.bf16.msra.mxu1 %v8825_v36  ;;  %v6725_v36 = vrot.slane %v6723_v31, 1  ;;  %v6718_v37 = vrot.slane %v6716_v33, 1 }
 0x232   : >> { %8459 = vmatprep.subr.bf16.mxu1 %v8827_v38  ;;  %v8879_v38 = vld [vmem:[%s10124_s3 + $0x780] sm:$0xff]  }
 0x234   : >> { %8438 = vmatpush3.bf16.msra.mxu0 %v8828_v39  ;;  %v8880_v39 = vld [vmem:[%s10124_s3 + $0x748] sm:$0xff]  }
 0x235   : >> { %8439 = vmatprep.subr.bf16.mxu0 %v8830_v41  ;;  %8460 = vmatpush3.bf16.msra.mxu1 %v8829_v40  ;;  %v6726_v40 = vor.u32 %v6725_v36, %v6721_v30  ;;  %v6719_v41 = vor.u32 %v6718_v37, %v6714_v32 }
 0x236   : >> { %8461 = vmatprep.subr.bf16.mxu1 %v8831_v42  ;;  %v8881_v42 = vld [vmem:[%s10124_s3 + $0x7c8] sm:$0xff]  }
 0x238   : >> { %8440 = vmatpush3.bf16.msra.mxu0 %v8832_v43  ;;  %v7076_v43 = vrot.slane %v6721_v30, 1 }
 0x239   : >> { %8441 = vmatprep.subr.bf16.mxu0 %v8834_v45  ;;  %8462 = vmatpush3.bf16.msra.mxu1 %v8833_v44  ;;  %v8882_v44 = vld [vmem:[%s10124_s3 + $0x708] sm:$0xff]   ;;  %v7077_v45 = vrot.slane %v6723_v31, 2 }
 0x23a   : >> { %8463 = vmatprep.subr.bf16.mxu1 %v8835_v46  ;;  %v8883_v46 = vld [vmem:[%s10124_s3 + $0x788] sm:$0xff]  }
 0x23c   : >> { %8442 = vmatpush3.bf16.msra.mxu0 %v8836_v47  ;;  %v8884_v47 = vld [vmem:[%s10124_s3 + $0x750] sm:$0xff]  }
 0x23d   : >> { %8443 = vmatprep.subr.bf16.mxu0 %v8838_v49  ;;  %8464 = vmatpush3.bf16.msra.mxu1 %v8837_v48  ;;  %v7078_v48 = vor.u32 %v7077_v45, %v7076_v43  ;;  %v8885_v49 = vld [vmem:[%s10124_s3 + $0x7d0] sm:$0xff]  }
 0x23e   : >> { %8465 = vmatprep.subr.bf16.mxu1 %v8839_v50  ;;  %v8886_v50 = vld [vmem:[%s10124_s3 + $0x710] sm:$0xff]  }
 0x240   : >> { %8444 = vmatpush3.bf16.msra.mxu0 %v8840_v51  ;;  %v8887_v51 = vld [vmem:[%s10124_s3 + $0x790] sm:$0xff]  }
 0x241   : >> { %8473 = vmatprep.subr.bf16.mxu0 %v8842_v55  ;;  %8466 = vmatpush3.bf16.msra.mxu1 %v8841_v52  ;;  %v8888_v52 = vld [vmem:[%s10124_s3 + $0x758] sm:$0xff]  }
 0x242   : >> { %8495 = vmatprep.subr.bf16.mxu1 %v8843_v56  ;;  %v8891_v55 = vld [vmem:[%s10124_s3 + $0x798] sm:$0xff]   ;;  %v8892_v56 = vld [vmem:[%s10124_s3 + $0x760] sm:$0xff]  }
 0x243   : >> { %6312 = vmatmul.mubr.bf16.vlgmr.msra.gmra.mrb[20].mxu0 %v6179_v57  ;;  %v8893_v57 = vld [vmem:[%s10124_s3 + $0x7e0] sm:$0xff]  }
 0x244   : >> { %8474 = vmatpush3.bf16.msra.mxu0 %v8844_v58  ;;  %6490 = vmatmul.mubr.bf16.vlgmr.msra.gmra.mrb[20].mxu1 %v6355_v60  ;;  %v8894_v58 = vld [vmem:[%s10124_s3 + $0x720] sm:$0xff]  }
 0x245   : >> { %8475 = vmatprep.subr.bf16.mxu0 %v8846_v61  ;;  %8496 = vmatpush3.bf16.msra.mxu1 %v8845_v59  ;;  %v8895_v60 = vld [vmem:[%s10124_s3 + $0x7a0] sm:$0xff]  }
 0x246   : >> { %8497 = vmatprep.subr.bf16.mxu1 %v8847_v62  ;;  %6671 = vmatprep.mubr.bf16.mxu0 %v8043_v26 }
 0x247   : >> { %6857 = vmatprep.mubr.bf16.mxu1 %v6726_v40 }
 0x248   : >> { %8476 = vmatpush3.bf16.msra.mxu0 %v8848_v63  ;;  %v8896_v63 = vld [vmem:[%s10124_s3 + $0x768] sm:$0xff]  }
 0x249   : >> { %8477 = vmatprep.subr.bf16.mxu0 %v8850_v1  ;;  %8498 = vmatpush3.bf16.msra.mxu1 %v8849_v0  ;;  %v8897_v1 = vld [vmem:[%s10124_s3 + $0x7e8] sm:$0xff]  }
 0x24a   : >> { %8499 = vmatprep.subr.bf16.mxu1 %v8851_v2 }
 0x24c   : >> { %8478 = vmatpush3.bf16.msra.mxu0 %v8852_v3  ;;  %v8898_v3 = vld [vmem:[%s10124_s3 + $0x728] sm:$0xff]  }
 0x24d   : >> { %8479 = vmatprep.subr.bf16.mxu0 %v8854_v5  ;;  %8500 = vmatpush3.bf16.msra.mxu1 %v8853_v4  ;;  %v8899_v4 = vld [vmem:[%s10124_s3 + $0x7a8] sm:$0xff]  }
 0x24e   : >> { %8501 = vmatprep.subr.bf16.mxu1 %v8855_v6  ;;  %v8900_v6 = vld [vmem:[%s10124_s3 + $0x770] sm:$0xff]  }
 0x250   : >> { %8480 = vmatpush3.bf16.msra.mxu0 %v8856_v7 }
 0x251   : >> { %8481 = vmatprep.subr.bf16.mxu0 %v8858_v9  ;;  %8502 = vmatpush3.bf16.msra.mxu1 %v8857_v8  ;;  %v8901_v8 = vld [vmem:[%s10124_s3 + $0x7f0] sm:$0xff]  }
 0x252   : >> { %8503 = vmatprep.subr.bf16.mxu1 %v8859_v10 }
 0x254   : >> { %8482 = vmatpush3.bf16.msra.mxu0 %v8860_v11  ;;  %v8902_v11 = vld [vmem:[%s10124_s3 + $0x730] sm:$0xff]  }
 0x255   : >> { %8483 = vmatprep.subr.bf16.mxu0 %v8862_v13  ;;  %8504 = vmatpush3.bf16.msra.mxu1 %v8861_v12  ;;  %v8903_v13 = vld [vmem:[%s10124_s3 + $0x7b0] sm:$0xff]  }
 0x256   : >> { %8505 = vmatprep.subr.bf16.mxu1 %v8863_v14 }
 0x258   : >> { %8484 = vmatpush3.bf16.msra.mxu0 %v8864_v15  ;;  %v8904_v15 = vld [vmem:[%s10124_s3 + $0x778] sm:$0xff]  }
 0x259   : >> { %8485 = vmatprep.subr.bf16.mxu0 %v8866_v17  ;;  %8506 = vmatpush3.bf16.msra.mxu1 %v8865_v16  ;;  %v8905_v16 = vld [vmem:[%s10124_s3 + $0x7f8] sm:$0xff]  }
 0x25a   : >> { %8507 = vmatprep.subr.bf16.mxu1 %v8867_v18  ;;  %v8906_v17 = vld [vmem:[%s10124_s3 + $0x738] sm:$0xff]   ;;  %v7073_v18 = vrot.slane %v6714_v32, 1 }
 0x25c   : >> { %8486 = vmatpush3.bf16.msra.mxu0 %v8868_v19  ;;  %v7074_v19 = vrot.slane %v6716_v33, 2 }
 0x25d   : >> { %8487 = vmatprep.subr.bf16.mxu0 %v8870_v21  ;;  %8508 = vmatpush3.bf16.msra.mxu1 %v8869_v20  ;;  %v8907_v20 = vld [vmem:[%s10124_s3 + $0x7b8] sm:$0xff]   ;;  %v6899_v21 = vrot.slane %v10403_v27, 1 }
 0x25e   : >> { %8509 = vmatprep.subr.bf16.mxu1 %v8871_v22  ;;  %v7075_v22 = vor.u32 %v7074_v19, %v7073_v18 }
 0x260   : >> { %8488 = vmatpush3.bf16.msra.mxu0 %v8872_v23 }
 0x261   : >> { %8517 = vmatprep.subr.bf16.mxu0 %v8876_v28  ;;  %8510 = vmatpush3.bf16.msra.mxu1 %v8873_v24 }
 0x262   : >> { %8539 = vmatprep.subr.bf16.mxu1 %v8877_v29 }
 0x263   : >> { %6672 = vmatmul.mubr.bf16.vlgmr.msra.gmra.mrb[24].mxu0 %v10403_v27 }
 0x264   : >> { %8518 = vmatpush3.bf16.msra.mxu0 %v8878_v34  ;;  %7031 = vmatprep.mubr.bf16.mxu0 %v6900_v35 }
 0x265   : >> { %8519 = vmatprep.subr.bf16.mxu0 %v8880_v39  ;;  %6858 = vmatmul.mubr.bf16.vlgmr.msra.gmra.mrb[24].mxu1 %v6719_v41 }
 0x266   : >> { %8540 = vmatpush3.bf16.msra.mxu1 %v8879_v38  ;;  %7209 = vmatprep.mubr.bf16.mxu1 %v7078_v48 }
 0x267   : >> { %8541 = vmatprep.subr.bf16.mxu1 %v8881_v42 }
 0x268   : >> { %8520 = vmatpush3.bf16.msra.mxu0 %v8882_v44 }
 0x269   : >> { %8521 = vmatprep.subr.bf16.mxu0 %v8884_v47 }
 0x26a   : >> { %8542 = vmatpush3.bf16.msra.mxu1 %v8883_v46 }
 0x26b   : >> { %8543 = vmatprep.subr.bf16.mxu1 %v8885_v49 }
 0x26c   : >> { %8522 = vmatpush3.bf16.msra.mxu0 %v8886_v50 }
 0x26d   : >> { %8523 = vmatprep.subr.bf16.mxu0 %v8888_v52 }
 0x26e   : >> { %8544 = vmatpush3.bf16.msra.mxu1 %v8887_v51 }
 0x26f   : >> { %8545 = vmatprep.subr.bf16.mxu1 %v8889_v53 }
 0x270   : >> { %8524 = vmatpush3.bf16.msra.mxu0 %v8890_v54 }
 0x271   : >> { %8525 = vmatprep.subr.bf16.mxu0 %v8892_v56 }
 0x272   : >> { %8546 = vmatpush3.bf16.msra.mxu1 %v8891_v55 }
 0x273   : >> { %8547 = vmatprep.subr.bf16.mxu1 %v8893_v57 }
 0x274   : >> { %8526 = vmatpush3.bf16.msra.mxu0 %v8894_v58 }
 0x275   : >> { %8527 = vmatprep.subr.bf16.mxu0 %v8896_v63 }
 0x276   : >> { %v8225_v5 = vpop.f32.mrb[0].mxu0  ;;  %8548 = vmatpush3.bf16.msra.mxu1 %v8895_v60 }
 0x277   : >> { %v8247_v59 = vpop.f32.mrb[0].mxu1  ;;  %v8226_v7 = vpop.f32.mrb[1].mxu0  ;;  %8549 = vmatprep.subr.bf16.mxu1 %v8897_v1 }
 0x278   : >> { %v8248_v61 = vpop.f32.mrb[1].mxu1  ;;  %v8227_v9 = vadd.f32 %v8226_v7, %v8225_v5  ;;  %v8228_v10 = vpop.f32.mrb[2].mxu0  ;;  %8528 = vmatpush3.bf16.msra.mxu0 %v8898_v3 }
 0x279   : >> { %v8249_v62 = vadd.f32 %v8248_v61, %v8247_v59  ;;  %v8250_v0 = vpop.f32.mrb[2].mxu1  ;;  %v8229_v12 = vpop.f32.mrb[3].mxu0  ;;  %8529 = vmatprep.subr.bf16.mxu0 %v8900_v6 }
 0x27a   : >> { %v8251_v2 = vpop.f32.mrb[3].mxu1  ;;  %8550 = vmatpush3.bf16.msra.mxu1 %v8899_v4 }
 0x27b   : >> { %v4701_v14 = vadd.f32 %v8249_v62, %v8227_v9  ;;  %8551 = vmatprep.subr.bf16.mxu1 %v8901_v8 }
 0x27c   : >> { %8530 = vmatpush3.bf16.msra.mxu0 %v8902_v11 }
 0x27d   : >> { %8531 = vmatprep.subr.bf16.mxu0 %v8904_v15 }
 0x27e   : >> { %8552 = vmatpush3.bf16.msra.mxu1 %v8903_v13 }
 0x27f   : >> { %8553 = vmatprep.subr.bf16.mxu1 %v8905_v16 }
 0x280   : >> { %8532 = vmatpush3.bf16.msra.mxu0 %v8906_v17 }
 0x282   : >> { %8554 = vmatpush3.bf16.msra.mxu1 %v8907_v20 }
 0x283   : >> { %7032 = vmatmul.mubr.bf16.vlgmr.msra.gmra.mrb[28].mxu0 %v6899_v21 }
 0x285   : >> { %7210 = vmatmul.mubr.bf16.vlgmr.msra.gmra.mrb[28].mxu1 %v7075_v22 }
 0x296   : >> { %v8269_v29 = vpop.f32.mrb[4].mxu0 }
 0x297   : >> { %v8291_v23 = vpop.f32.mrb[4].mxu1  ;;  %v8270_v30 = vpop.f32.mrb[5].mxu0 }
 0x298   : >> { %v8292_v24 = vpop.f32.mrb[5].mxu1  ;;  %v8271_v31 = vadd.f32 %v8270_v30, %v8269_v29  ;;  %v8272_v32 = vpop.f32.mrb[6].mxu0 }
 0x299   : >> { %v8293_v25 = vadd.f32 %v8292_v24, %v8291_v23  ;;  %v8294_v26 = vpop.f32.mrb[6].mxu1  ;;  %v8273_v33 = vpop.f32.mrb[7].mxu0 }
 0x29a   : >> { %v8295_v28 = vpop.f32.mrb[7].mxu1  ;;  %v4879_v34 = vadd.f32 %v8271_v31, %v4701_v14 }
 0x29c   : >> { %v5057_v35 = vadd.f32 %v8293_v25, %v4879_v34 }
 0x2b6   : >> { %v8313_v36 = vpop.f32.mrb[8].mxu0 }
 0x2b7   : >> { %v8335_v27 = vpop.f32.mrb[8].mxu1  ;;  %v8314_v37 = vpop.f32.mrb[9].mxu0 }
 0x2b8   : >> { %v8315_v38 = vadd.f32 %v8314_v37, %v8313_v36  ;;  %v8336_v39 = vpop.f32.mrb[9].mxu1  ;;  %v8316_v40 = vpop.f32.mrb[10].mxu0 }
 0x2b9   : >> { %v8337_v41 = vadd.f32 %v8336_v39, %v8335_v27  ;;  %v8338_v42 = vpop.f32.mrb[10].mxu1  ;;  %v8317_v43 = vpop.f32.mrb[11].mxu0 }
 0x2ba   : >> { %v5239_v44 = vadd.f32 %v8315_v38, %v5057_v35  ;;  %v8339_v45 = vpop.f32.mrb[11].mxu1 }
 0x2bc   : >> { %v5425_v46 = vadd.f32 %v8337_v41, %v5239_v44 }
 0x2d6   : >> { %v8357_v47 = vpop.f32.mrb[12].mxu0 }
 0x2d7   : >> { %v8379_v48 = vpop.f32.mrb[12].mxu1  ;;  %v8358_v49 = vpop.f32.mrb[13].mxu0 }
 0x2d8   : >> { %v8359_v50 = vadd.f32 %v8358_v49, %v8357_v47  ;;  %v8380_v51 = vpop.f32.mrb[13].mxu1  ;;  %v8360_v52 = vpop.f32.mrb[14].mxu0 }
 0x2d9   : >> { %v8381_v53 = vadd.f32 %v8380_v51, %v8379_v48  ;;  %v8382_v54 = vpop.f32.mrb[14].mxu1  ;;  %v8361_v55 = vpop.f32.mrb[15].mxu0 }
 0x2da   : >> { %v5599_v56 = vadd.f32 %v8359_v50, %v5425_v46  ;;  %v8383_v57 = vpop.f32.mrb[15].mxu1 }
 0x2dc   : >> { %v5777_v58 = vadd.f32 %v8381_v53, %v5599_v56 }
 0x2f6   : >> { %v8401_v59 = vpop.f32.mrb[16].mxu0 }
 0x2f7   : >> { %v8402_v60 = vpop.f32.mrb[17].mxu0  ;;  %v8423_v61 = vpop.f32.mrb[16].mxu1 }
 0x2f8   : >> { %v8403_v62 = vadd.f32 %v8402_v60, %v8401_v59  ;;  %v8404_v63 = vpop.f32.mrb[18].mxu0  ;;  %v8424_v0 = vpop.f32.mrb[17].mxu1 }
 0x2f9   : >> { %v8405_v1 = vpop.f32.mrb[19].mxu0  ;;  %v8425_v3 = vadd.f32 %v8424_v0, %v8423_v61  ;;  %v8426_v4 = vpop.f32.mrb[18].mxu1 }
 0x2fa   : >> { %v5959_v2 = vadd.f32 %v8403_v62, %v5777_v58  ;;  %v8427_v5 = vpop.f32.mrb[19].mxu1 }
 0x2fc   : >> { %v6145_v6 = vadd.f32 %v8425_v3, %v5959_v2 }
 0x316   : >> { %v8445_v7 = vpop.f32.mrb[20].mxu0 }
 0x317   : >> { %v8446_v8 = vpop.f32.mrb[21].mxu0  ;;  %v8467_v9 = vpop.f32.mrb[20].mxu1 }
 0x318   : >> { %v8447_v10 = vadd.f32 %v8446_v8, %v8445_v7  ;;  %v8448_v11 = vpop.f32.mrb[22].mxu0  ;;  %v8468_v12 = vpop.f32.mrb[21].mxu1 }
 0x319   : >> { %v8449_v13 = vpop.f32.mrb[23].mxu0  ;;  %v8469_v15 = vadd.f32 %v8468_v12, %v8467_v9  ;;  %v8470_v16 = vpop.f32.mrb[22].mxu1 }
 0x31a   : >> { %v6319_v14 = vadd.f32 %v8447_v10, %v6145_v6  ;;  %v8471_v17 = vpop.f32.mrb[23].mxu1 }
 0x31c   : >> { %v6497_v18 = vadd.f32 %v8469_v15, %v6319_v14 }
 0x336   : >> { %v8489_v19 = vpop.f32.mrb[24].mxu0 }
 0x337   : >> { %v8490_v20 = vpop.f32.mrb[25].mxu0 }
 0x338   : >> { %v8491_v21 = vadd.f32 %v8490_v20, %v8489_v19  ;;  %v8492_v22 = vpop.f32.mrb[26].mxu0  ;;  %v8511_v23 = vpop.f32.mrb[24].mxu1 }
 0x339   : >> { %v8493_v24 = vpop.f32.mrb[27].mxu0  ;;  %v8512_v26 = vpop.f32.mrb[25].mxu1 }
 0x33a   : >> { %v6679_v25 = vadd.f32 %v8491_v21, %v6497_v18  ;;  %v8513_v28 = vadd.f32 %v8512_v26, %v8511_v23  ;;  %v8514_v29 = vpop.f32.mrb[26].mxu1  ;;  %v7276_v21 = vld [vmem:[%s10126_s4] sm:$0x3] (%p4338_p1)  ;;  %v7279_v23 = vld [vmem:[%s10126_s4 + $0x2] sm:$0x3] (%p4338_p1) }
 0x33b   : >> { %v8515_v30 = vpop.f32.mrb[27].mxu1 }
 0x33c   : >> { %v6865_v31 = vadd.f32 %v8513_v28, %v6679_v25  ;;  %v7282_v28 = vld [vmem:[%s10126_s4 + $0x4] sm:$0x3] (%p4338_p1) }
 0x356   : >> { %v8533_v32 = vpop.f32.mrb[28].mxu0 }
 0x357   : >> { %v8534_v33 = vpop.f32.mrb[29].mxu0 }
 0x358   : >> { %v8535_v34 = vadd.f32 %v8534_v33, %v8533_v32  ;;  %v8536_v35 = vpop.f32.mrb[30].mxu0  ;;  %v8555_v36 = vpop.f32.mrb[28].mxu1  ;;  %4340 = sbr.rel (!%p4338_p1) target bundleno = 385 (0x181), region = 183 }
 0x359   : >> { %v8537_v27 = vpop.f32.mrb[31].mxu0  ;;  %v8556_v38 = vpop.f32.mrb[29].mxu1 }
 0x35a   : >> { %v7039_v37 = vadd.f32 %v8535_v34, %v6865_v31  ;;  %v8557_v39 = vadd.f32 %v8556_v38, %v8555_v36  ;;  %v8558_v40 = vpop.f32.mrb[30].mxu1 }
 0x35b   : >> { %v8559_v41 = vpop.f32.mrb[31].mxu1 }
 0x35c   : >> { %v7217_v42 = vadd.f32 %v8557_v39, %v7039_v37 }
 0x35e   : >> { %7220 = vst [vmem:[%s7219_s7] sm:$0x7] %v7217_v42 }
 0x35f   : > { %s8563_s8 = smul.u32 (%p9072_p9), 12, %s8972_s14 }
 0x361   : > { %s7293_s18 = sadd.s32 (%p9072_p9), %s8968_s13, %s8563_s8 }
 0x362   : > { %s8205_s21 = sshll.u32 (%p9072_p9), %s7293_s18, 1 }
 0x363   : > { %s7295_s25 = scalar_lea.vmem (%p9072_p9), %s10504_s2, %s8205_s21 }
 0x365   : > { %v7221_v43 = vld [vmem:[#allocation2] sm:$0x7]  ;;  %v7222_v44 = vld [vmem:[#allocation2 + $0x4] sm:$0x7]  ;;  %v7223_v45 = vld [vmem:[#allocation2 + $0x8] sm:$0x7] }
 0x366   : > { %v7225_v46 = vsel %vm7224_vm0, %v7221_v43, 0.0  ;;  %v7226_v47 = vsel %vm7224_vm0, %v7222_v44, 0.0  ;;  %v7228_v48 = vsel %vm7224_vm0, %v7223_v45, 0.0 }
 0x367   : > { %v7227_v49 = vadd.f32 %v7226_v47, %v7225_v46 }
 0x369   : > { %v7229_v50 = vadd.f32 %v7228_v48, %v7227_v49 }
 0x36b   : > { %v7230_v51 = vrot.slane %v7229_v50, 4 }
 0x36d   : > { %v7231_v52 = vadd.f32 %v7230_v51, %v7229_v50 }
 0x36f   : > { %v7232_v53 = vrot.slane %v7231_v52, 2 }
 0x371   : > { %v7233_v54 = vadd.f32 %v7232_v53, %v7231_v52 }
 0x373   : > { %v7234_v55 = vrot.slane %v7233_v54, 1 }
 0x375   : > { %v7235_v56 = vadd.f32 %v7234_v55, %v7233_v54 }
 0x377   : > { %v7237_v57 = vmul.f32 0.11111111, %v7235_v56 }
 0x379   : > { %v7238_v58 = vsub.f32 %v7221_v43, %v7237_v57  ;;  %v7239_v59 = vsub.f32 %v7222_v44, %v7237_v57  ;;  %v7240_v60 = vsub.f32 %v7223_v45, %v7237_v57 }
 0x37b   : > { %v7241_v61 = vmul.f32 %v7238_v58, %v7238_v58  ;;  %v7242_v62 = vmul.f32 %v7239_v59, %v7239_v59  ;;  %v7243_v63 = vmul.f32 %v7240_v60, %v7240_v60 }
 0x37d   : > { %v7244_v0 = vsel %vm7224_vm0, %v7241_v61, 0.0  ;;  %v7245_v1 = vsel %vm7224_vm0, %v7242_v62, 0.0  ;;  %v7247_v2 = vsel %vm7224_vm0, %v7243_v63, 0.0 }
 0x37e   : > { %v7246_v3 = vadd.f32 %v7245_v1, %v7244_v0 }
 0x380   : > { %v7248_v4 = vadd.f32 %v7247_v2, %v7246_v3 }
 0x382   : > { %v7249_v5 = vrot.slane %v7248_v4, 4 }
 0x384   : > { %v7250_v6 = vadd.f32 %v7249_v5, %v7248_v4 }
 0x386   : > { %v7251_v7 = vrot.slane %v7250_v6, 2 }
 0x388   : > { %v7252_v8 = vadd.f32 %v7251_v7, %v7250_v6 }
 0x38a   : > { %v7253_v9 = vrot.slane %v7252_v8, 1 }
 0x38c   : > { %v7254_v10 = vadd.f32 %v7253_v9, %v7252_v8 }
 0x38e   : > { %v7255_v11 = vmul.f32 0.11111111, %v7254_v10 }
 0x390   : > { %v7256_v12 = vadd.f32 1e-05, %v7255_v11 }
 0x392   : > { %8908 = vrsqrt.f32 %v7256_v12 }
 0x39c   : > { %v8909_v13 = vpop.eup %8908 }
 0x39d   : > { %v7258_v14 = vmul.f32 %v8909_v13, %v7238_v58  ;;  %v7259_v15 = vmul.f32 %v8909_v13, %v7239_v59  ;;  %v7260_v16 = vmul.f32 %v8909_v13, %v7240_v60 }
 0x39f   : > { %vm7261_vm3 = vcmp.ge.f32.partialorder %v7258_v14, 0.0  ;;  %v7264_v17 = vmul.f32 0.2, %v7258_v14  ;;  %vm7262_vm4 = vcmp.ge.f32.partialorder %v7259_v15, 0.0  ;;  %v7265_v18 = vmul.f32 0.2, %v7259_v15 }
 0x3a0   : > { %vm7263_vm5 = vcmp.ge.f32.partialorder %v7260_v16, 0.0  ;;  %v7266_v19 = vmul.f32 0.2, %v7260_v16  ;;  %7291 = sbr.rel (!%p9072_p9) target bundleno = 943 (0x3af), region = 91 }
 0x3a1   : > { %v7267_v20 = vsel %vm7261_vm3, %v7258_v14, %v7264_v17  ;;  %v7268_v22 = vsel %vm7262_vm4, %v7259_v15, %v7265_v18 }
 0x3a2   : > { %v7270_v24 = vpack.c.bf16 %v7267_v20, %v7267_v20  ;;  %v7271_v25 = vpack.c.bf16 %v7268_v22, %v7268_v22  ;;  %v7269_v26 = vsel %vm7263_vm5, %v7260_v16, %v7266_v19 }
 0x3a3   : > { %v7272_v29 = vpack.c.bf16 %v7269_v26, %v7269_v26 }
 0x3a4   : > { %v7277_v30 = vsel %vm7275_vm6, %v7270_v24, %v7276_v21  ;;  %v7280_v31 = vsel %vm7275_vm6, %v7271_v25, %v7279_v23 }
 0x3a5   : > { %7278 = vst [vmem:[%s10126_s4] sm:$0x3] %v7277_v30  ;;  %7281 = vst [vmem:[%s10126_s4 + $0x2] sm:$0x3] %v7280_v31  ;;  %v7283_v32 = vsel %vm7275_vm6, %v7272_v29, %v7282_v28 }
 0x3a6   : > { %7284 = vst [vmem:[%s10126_s4 + $0x4] sm:$0x3] %v7283_v32 }
 0x3ac   : > { %v7311_v33 = vld [vmem:[%s10126_s4] sm:$0x3]  ;;  %v7313_v34 = vld [vmem:[%s10126_s4 + $0x2] sm:$0x3] }
 0x3ad   : > { %v7315_v35 = vld [vmem:[%s10126_s4 + $0x4] sm:$0x3]  ;;  %7312 = vst [vmem:[%s7295_s25] sm:$0x3] %v7311_v33  ;;  %7314 = vst [vmem:[%s7295_s25 + $0x8] sm:$0x3] %v7313_v34 }
 0x3ae   : > { %7316 = vst [vmem:[%s7295_s25 + $0x10] sm:$0x3] %v7315_v35 }
 0x3af PF: > { %s12_s17 = sadd.s32 1, %s8984_s17   ;;  %s10506_s9 = smov %s8956_s10 }
 0x3b0   : > { %p9_p2 = scmp.ge.s32.totalorder %s12_s17, 10   ;;  %s10507_s10 = smov %s9077_s28 }
 0x3b1   : > { %s10508_s11 = smov %s8964_s12  ;;  %s10509_s12 = smov %s9066_s24 }
 0x3b2   : > { %s10510_s13 = smov %s8976_s15  ;;  %s10511_s14 = smov %s8980_s16 }
 0x3b3   : > { %s10512_s15 = smov %s10515_s19  ;;  %s10513_s16 = smov %s10519_s20 }
 0x3b4   :  { %11 = sbr.rel (!%p9_p2) target bundleno = 5 (0x5), region = 194 }

</bundles_post_ra>
